<compile_context>
chip_gen: v7x
topology: tpu7x:2x2x1
jax: 0.10.0
libtpu: 0.0.40
codegen_flags: <defaults>
</compile_context>

<pallas_src>
import jax
import jax.numpy as jnp
from jax.experimental import pallas as pl
from jax.experimental.pallas import tpu as pltpu

_LANE = 128


def _round_up(v, m):
    return (v + m - 1) // m * m


# ----------------------------- the fused kernel -----------------------------
def _double_conv_kernel(x_ref, mask_ref, w1_ref, s1_ref, w2_ref, s2_ref,
                        o_ref, pad_ref, f1_ref, f2_ref):
    """One batch element: (conv3x3 -> BN -> ReLU) x 2, all in VMEM.

    x_ref:    (1, H, W, C1)        input tile, bf16, channels lane-padded
    mask_ref: (Hp*Wp, 1)           f32 0/1 mask of interior (non-pad) rows
    w1_ref:   (9*C1, C2)           stage-1 im2col weights (BN scale folded)
    s1_ref:   (1, C2)              stage-1 BN shift (f32)
    w2_ref:   (9*C2, C3)           stage-2 im2col weights (BN scale folded)
    s2_ref:   (1, C3)              stage-2 BN shift (f32)
    o_ref:    (1, Hp*Wp, C3)       flat lane-dense output slab
    pad_ref:  (Hp, Wp, C1)         scratch: zero-padded stage-1 input
    f1_ref:   (Hp*Wp + 2*halo, C1) scratch: flat padded stage-1 input (+halo)
    f2_ref:   (Hp*Wp + 2*halo, C2) scratch: flat padded stage-2 input (+halo)
    """
    _, h, w, c1 = x_ref.shape
    hp, wp = h + 2, w + 2
    npos = hp * wp
    halo = (f1_ref.shape[0] - npos) // 2   # extra zero rows above/below image

    # ---- stage-1 input: SAME-pad inside the kernel, flatten to rows --------
    pad_ref[...] = jnp.zeros_like(pad_ref)
    pad_ref[1:h + 1, 1:w + 1, :] = x_ref[0]
    f1_ref[...] = jnp.zeros_like(f1_ref)
    f1_ref[halo:halo + npos, :] = pad_ref[...].reshape(npos, c1)

    def conv3x3(f_ref, w_ref):
        # The 9 taps are pure row shifts of the flat padded image (leading-dim
        # slices only); one im2col matmul per stage on the MXU, f32 accumulate.
        taps = []
        for ky in range(3):
            for kx in range(3):
                start = halo + (ky - 1) * wp + (kx - 1)
                taps.append(f_ref[start:start + npos, :])
        patches = jnp.concatenate(taps, axis=-1)              # (npos, 9*Cin)
        return jnp.dot(patches, w_ref[...],
                       preferred_element_type=jnp.float32)    # (npos, Cout)

    interior = mask_ref[...]                                   # (npos, 1) f32

    # ---- stage 1: conv (BN scale pre-folded) + shift + ReLU ----------------
    y1 = jnp.maximum(conv3x3(f1_ref, w1_ref) + s1_ref[...], 0.0)
    y1 = y1 * interior           # zero 1-px border => SAME padding for stage 2
    f2_ref[...] = jnp.zeros_like(f2_ref)
    f2_ref[halo:halo + npos, :] = y1.astype(f2_ref.dtype)

    # ---- stage 2 -----------------------------------------------------------
    y2 = jnp.maximum(conv3x3(f2_ref, w2_ref) + s2_ref[...], 0.0)
    o_ref[0] = (y2 * interior).astype(o_ref.dtype)             # lane-dense


# ------------------------------- the wrapper --------------------------------
def _fold_bn(w_hwio, gamma, beta, mean, var, eps, cin_p, cout_p, compute_dtype):
    """Fold eval-mode BN scale into conv weights; lane-pad channels; cast."""
    cin, cout = w_hwio.shape[2], w_hwio.shape[3]
    scale = gamma / jnp.sqrt(var + eps)                       # (cout,)
    shift = (beta - mean * scale).astype(jnp.float32)         # (cout,)
    w = (w_hwio * scale).astype(jnp.float32)
    w = jnp.pad(w, ((0, 0), (0, 0), (0, cin_p - cin), (0, cout_p - cout)))
    w = w.reshape(9 * cin_p, cout_p).astype(compute_dtype)    # rows = (ky,kx,ci)
    shift = jnp.pad(shift, (0, cout_p - cout)).reshape(1, cout_p)
    return w, shift


def double_conv_nhwc(x_nhwc, params, eps=1e-5, compute_dtype=jnp.bfloat16):
    """DoubleConv on NHWC activations via one fused Pallas kernel."""
    n, h, w, cin = x_nhwc.shape
    cmid = params["w1"].shape[3]
    cout = params["w2"].shape[3]
    c1 = _round_up(cin, _LANE)
    c2 = _round_up(cmid, _LANE)
    c3 = _round_up(cout, _LANE)
    hp, wp = h + 2, w + 2
    npos = hp * wp
    halo = _round_up(wp + 1, 16)  # zero rows each side so tap slices stay in range

    w1, s1 = _fold_bn(params["w1"], params["gamma1"], params["beta1"],
                      params["mean1"], params["var1"], eps, c1, c2, compute_dtype)
    w2, s2 = _fold_bn(params["w2"], params["gamma2"], params["beta2"],
                      params["mean2"], params["var2"], eps, c2, c3, compute_dtype)

    # Lane-pad input channels + bf16 cast (fuses with the caller's layout ops;
    # real UNet channel counts of 64..1024 make this padding cheap).
    x_p = jnp.pad(x_nhwc, ((0, 0), (0, 0), (0, 0), (0, c1 - cin)))
    x_p = x_p.astype(compute_dtype)

    # 0/1 mask of interior (non-padding) rows of the flattened padded image.
    pos = jnp.arange(npos)
    py, px = pos // wp, pos % wp
    interior = ((py >= 1) & (py <= h) & (px >= 1) & (px <= w))
    interior = interior.astype(jnp.float32).reshape(npos, 1)

    out_flat = pl.pallas_call(
        _double_conv_kernel,
        out_shape=jax.ShapeDtypeStruct((n, npos, c3), x_nhwc.dtype),
        grid=(n,),
        in_specs=[
            pl.BlockSpec((1, h, w, c1), lambda b: (b, 0, 0, 0)),
            pl.BlockSpec((npos, 1), lambda b: (0, 0)),
            pl.BlockSpec((9 * c1, c2), lambda b: (0, 0)),
            pl.BlockSpec((1, c2), lambda b: (0, 0)),
            pl.BlockSpec((9 * c2, c3), lambda b: (0, 0)),
            pl.BlockSpec((1, c3), lambda b: (0, 0)),
        ],
        out_specs=pl.BlockSpec((1, npos, c3), lambda b: (b, 0, 0)),
        scratch_shapes=[
            pltpu.VMEM((hp, wp, c1), compute_dtype),
            pltpu.VMEM((npos + 2 * halo, c1), compute_dtype),
            pltpu.VMEM((npos + 2 * halo, c2), compute_dtype),
        ],
        compiler_params=pltpu.CompilerParams(
            dimension_semantics=("parallel",),
            vmem_limit_bytes=32 * 1024 * 1024),
    )(x_p, interior, w1, s1, w2, s2)

    # Interior + channel slice; fuses with the caller's next layout op.
    return out_flat.reshape(n, hp, wp, c3)[:, 1:h + 1, 1:w + 1, :cout]


def double_conv(x_nchw, params, eps=1e-5, compute_dtype=jnp.bfloat16):
    """Pallas implementation of DoubleConv.forward; NCHW in/out like PyTorch."""
    x = jnp.transpose(x_nchw, (0, 2, 3, 1))                   # NCHW -> NHWC
    y = double_conv_nhwc(x, params, eps=eps, compute_dtype=compute_dtype)
    return jnp.transpose(y, (0, 3, 1, 2))                     # NHWC -> NCHW


# ----------------------- pure-JAX reference (for checking) ------------------
def _ref_stage(x_nhwc, w_hwio, gamma, beta, mean, var, eps, compute_dtype):
    scale = gamma / jnp.sqrt(var + eps)
    shift = beta - mean * scale
    y = jax.lax.conv_general_dilated(
        x_nhwc.astype(compute_dtype), (w_hwio * scale).astype(compute_dtype),
        window_strides=(1, 1), padding="SAME",
        dimension_numbers=("NHWC", "HWIO", "NHWC"),
        preferred_element_type=jnp.float32)
    return jnp.maximum(y + shift, 0.0)


def double_conv_ref(x_nchw, p, eps=1e-5, compute_dtype=jnp.bfloat16):
    x = jnp.transpose(x_nchw, (0, 2, 3, 1))
    x = _ref_stage(x, p["w1"], p["gamma1"], p["beta1"], p["mean1"], p["var1"],
                   eps, compute_dtype)
    x = _ref_stage(x, p["w2"], p["gamma2"], p["beta2"], p["mean2"], p["var2"],
                   eps, compute_dtype)
    return jnp.transpose(x, (0, 3, 1, 2)).astype(x_nchw.dtype)


# ----------------------------- parameter setup ------------------------------
def make_params(key, in_channels, out_channels, mid_channels=None):
    if not mid_channels:
        mid_channels = out_channels
    k1, k2 = jax.random.split(key)
    # Conv weights in HWIO; deterministic synthetic init (not a checkpoint).
    w1 = 0.1 * jax.random.normal(k1, (3, 3, in_channels, mid_channels),
                                 jnp.float32)
    w2 = 0.1 * jax.random.normal(k2, (3, 3, mid_channels, out_channels),
                                 jnp.float32)
    mid_r = jnp.arange(mid_channels, dtype=jnp.float32)
    out_r = jnp.arange(out_channels, dtype=jnp.float32)
    return {
        "w1": w1,
        "gamma1": 1.0 + 0.10 * mid_r,
        "beta1": 0.05 * mid_r,
        "mean1": 0.01 * mid_r,
        "var1": 1.0 + 0.02 * mid_r,
        "w2": w2,
        "gamma2": 1.0 + 0.10 * out_r,
        "beta2": 0.05 * out_r,
        "mean2": 0.01 * out_r,
        "var2": 1.0 + 0.02 * out_r,
    }


if __name__ == "__main__":
    key = jax.random.PRNGKey(0)
    kx, kp = jax.random.split(key)

    N, C_IN, H, W = 2, 4, 16, 16
    C_OUT = 8

    x = jax.random.normal(kx, (N, C_IN, H, W), jnp.float32)   # NCHW, like torch
    params = make_params(kp, C_IN, C_OUT)

    out = jax.block_until_ready(jax.jit(double_conv)(x, params))
    ref = jax.block_until_ready(jax.jit(double_conv_ref)(x, params))

    assert out.shape == (N, C_OUT, H, W), out.shape
    max_err = float(jnp.max(jnp.abs(out - ref)))
    assert max_err < 1e-3, max_err

    print("KERNEL_OK")
</pallas_src>

<mosaic_0001>
module attributes {stable_mosaic.version = 11 : i64} {
  func.func @_double_conv_kernel(%arg0: i32, %arg1: memref<1x16x16x128xbf16, #tpu.memory_space<vmem>>, %arg2: memref<324x1xf32, #tpu.memory_space<vmem>>, %arg3: memref<1152x128xbf16, #tpu.memory_space<vmem>>, %arg4: memref<1x128xf32, #tpu.memory_space<vmem>>, %arg5: memref<1152x128xbf16, #tpu.memory_space<vmem>>, %arg6: memref<1x128xf32, #tpu.memory_space<vmem>>, %arg7: memref<1x324x128xf32, #tpu.memory_space<vmem>>, %arg8: memref<18x18x128xbf16, #tpu.memory_space<vmem>>, %arg9: memref<388x128xbf16, #tpu.memory_space<vmem>>, %arg10: memref<388x128xbf16, #tpu.memory_space<vmem>>) attributes {dimension_semantics = [#tpu.dimension_semantics<parallel>], iteration_bounds = array<i64: 2>, scalar_prefetch = 0 : i64, scratch_operands = 3 : i64, tpu.core_type = #tpu.core_type<tc>, window_params = [{transform_indices = @transform_0, window_bounds = array<i64: 1, 16, 16, 128>}, {pipeline_mode = #tpu.pipeline_mode<synchronous>, transform_indices = @transform_1, window_bounds = array<i64: 324, 1>}, {pipeline_mode = #tpu.pipeline_mode<synchronous>, transform_indices = @transform_2, window_bounds = array<i64: 1152, 128>}, {pipeline_mode = #tpu.pipeline_mode<synchronous>, transform_indices = @transform_3, window_bounds = array<i64: 1, 128>}, {pipeline_mode = #tpu.pipeline_mode<synchronous>, transform_indices = @transform_4, window_bounds = array<i64: 1152, 128>}, {pipeline_mode = #tpu.pipeline_mode<synchronous>, transform_indices = @transform_5, window_bounds = array<i64: 1, 128>}, {transform_indices = @transform_6, window_bounds = array<i64: 1, 324, 128>}]} {
    %cst = arith.constant 0.000000e+00 : bf16
    %0 = vector.broadcast %cst : bf16 to vector<18x18x128xbf16>
    %c0 = arith.constant 0 : index
    %c0_0 = arith.constant 0 : index
    %c0_1 = arith.constant 0 : index
    %1 = vector.load %arg8[%c0, %c0_0, %c0_1] : memref<18x18x128xbf16, #tpu.memory_space<vmem>>, vector<18x18x128xbf16>
    tpu.vector_store %arg8[%c0, %c0_0, %c0_1], %0 {strides = array<i32>} : memref<18x18x128xbf16, #tpu.memory_space<vmem>>, vector<18x18x128xbf16>,
    %c0_2 = arith.constant 0 : index
    %c0_3 = arith.constant 0 : index
    %c0_4 = arith.constant 0 : index
    %c0_5 = arith.constant 0 : index
    %2 = vector.load %arg1[%c0_2, %c0_3, %c0_4, %c0_5] : memref<1x16x16x128xbf16, #tpu.memory_space<vmem>>, vector<1x16x16x128xbf16>
    %3 = vector.shape_cast %2 : vector<1x16x16x128xbf16> to vector<16x16x128xbf16>
    %c1 = arith.constant 1 : index
    %c1_6 = arith.constant 1 : index
    %c0_7 = arith.constant 0 : index
    %4 = vector.load %arg8[%c1, %c1_6, %c0_7] : memref<18x18x128xbf16, #tpu.memory_space<vmem>>, vector<16x16x128xbf16>
    tpu.vector_store %arg8[%c1, %c1_6, %c0_7], %3 {strides = array<i32>} : memref<18x18x128xbf16, #tpu.memory_space<vmem>>, vector<16x16x128xbf16>,
    %cst_8 = arith.constant 0.000000e+00 : bf16
    %5 = vector.broadcast %cst_8 : bf16 to vector<388x128xbf16>
    %c0_9 = arith.constant 0 : index
    %c0_10 = arith.constant 0 : index
    %6 = vector.load %arg9[%c0_9, %c0_10] : memref<388x128xbf16, #tpu.memory_space<vmem>>, vector<388x128xbf16>
    tpu.vector_store %arg9[%c0_9, %c0_10], %5 {strides = array<i32>} : memref<388x128xbf16, #tpu.memory_space<vmem>>, vector<388x128xbf16>,
    %c0_11 = arith.constant 0 : index
    %c0_12 = arith.constant 0 : index
    %c0_13 = arith.constant 0 : index
    %7 = vector.load %arg8[%c0_11, %c0_12, %c0_13] : memref<18x18x128xbf16, #tpu.memory_space<vmem>>, vector<18x18x128xbf16>
    %8 = vector.shape_cast %7 : vector<18x18x128xbf16> to vector<324x128xbf16>
    %c32 = arith.constant 32 : index
    %c0_14 = arith.constant 0 : index
    %9 = vector.load %arg9[%c32, %c0_14] : memref<388x128xbf16, #tpu.memory_space<vmem>>, vector<324x128xbf16>
    tpu.vector_store %arg9[%c32, %c0_14], %8 {strides = array<i32>} : memref<388x128xbf16, #tpu.memory_space<vmem>>, vector<324x128xbf16>,
    %c0_15 = arith.constant 0 : index
    %c0_16 = arith.constant 0 : index
    %10 = vector.load %arg2[%c0_15, %c0_16] : memref<324x1xf32, #tpu.memory_space<vmem>>, vector<324x1xf32>
    %c13 = arith.constant 13 : index
    %c0_17 = arith.constant 0 : index
    %11 = vector.load %arg9[%c13, %c0_17] : memref<388x128xbf16, #tpu.memory_space<vmem>>, vector<324x128xbf16>
    %c14 = arith.constant 14 : index
    %c0_18 = arith.constant 0 : index
    %12 = vector.load %arg9[%c14, %c0_18] : memref<388x128xbf16, #tpu.memory_space<vmem>>, vector<324x128xbf16>
    %c15 = arith.constant 15 : index
    %c0_19 = arith.constant 0 : index
    %13 = vector.load %arg9[%c15, %c0_19] : memref<388x128xbf16, #tpu.memory_space<vmem>>, vector<324x128xbf16>
    %c31 = arith.constant 31 : index
    %c0_20 = arith.constant 0 : index
    %14 = vector.load %arg9[%c31, %c0_20] : memref<388x128xbf16, #tpu.memory_space<vmem>>, vector<324x128xbf16>
    %c32_21 = arith.constant 32 : index
    %c0_22 = arith.constant 0 : index
    %15 = vector.load %arg9[%c32_21, %c0_22] : memref<388x128xbf16, #tpu.memory_space<vmem>>, vector<324x128xbf16>
    %c33 = arith.constant 33 : index
    %c0_23 = arith.constant 0 : index
    %16 = vector.load %arg9[%c33, %c0_23] : memref<388x128xbf16, #tpu.memory_space<vmem>>, vector<324x128xbf16>
    %c49 = arith.constant 49 : index
    %c0_24 = arith.constant 0 : index
    %17 = vector.load %arg9[%c49, %c0_24] : memref<388x128xbf16, #tpu.memory_space<vmem>>, vector<324x128xbf16>
    %c50 = arith.constant 50 : index
    %c0_25 = arith.constant 0 : index
    %18 = vector.load %arg9[%c50, %c0_25] : memref<388x128xbf16, #tpu.memory_space<vmem>>, vector<324x128xbf16>
    %c51 = arith.constant 51 : index
    %c0_26 = arith.constant 0 : index
    %19 = vector.load %arg9[%c51, %c0_26] : memref<388x128xbf16, #tpu.memory_space<vmem>>, vector<324x128xbf16>
    %20 = tpu.concatenate %11, %12, %13, %14, %15, %16, %17, %18, %19 in 1 : vector<324x128xbf16>, vector<324x128xbf16>, vector<324x128xbf16>, vector<324x128xbf16>, vector<324x128xbf16>, vector<324x128xbf16>, vector<324x128xbf16>, vector<324x128xbf16>, vector<324x128xbf16> -> vector<324x1152xbf16>
    %c0_27 = arith.constant 0 : index
    %c0_28 = arith.constant 0 : index
    %21 = vector.load %arg3[%c0_27, %c0_28] : memref<1152x128xbf16, #tpu.memory_space<vmem>>, vector<1152x128xbf16>
    %cst_29 = arith.constant dense<0.000000e+00> : vector<324x128xf32>
    %22 = tpu.matmul %20, %21, %cst_29 {dimension_numbers = #tpu.dot_dimension_numbers<[1], [0], [0], [1], [0, 0, 1, 1], [], []>} : vector<324x1152xbf16>, vector<1152x128xbf16>, vector<324x128xf32> -> vector<324x128xf32>
    %c0_30 = arith.constant 0 : index
    %c0_31 = arith.constant 0 : index
    %23 = vector.load %arg4[%c0_30, %c0_31] : memref<1x128xf32, #tpu.memory_space<vmem>>, vector<1x128xf32>
    %24 = vector.broadcast %23 : vector<1x128xf32> to vector<324x128xf32>
    %25 = arith.addf %22, %24 : vector<324x128xf32>
    %cst_32 = arith.constant 0.000000e+00 : f32
    %26 = vector.broadcast %cst_32 : f32 to vector<324x128xf32>
    %27 = arith.maximumf %25, %26 : vector<324x128xf32>
    %28 = vector.broadcast %10 : vector<324x1xf32> to vector<324x128xf32>
    %29 = arith.mulf %27, %28 : vector<324x128xf32>
    %cst_33 = arith.constant 0.000000e+00 : bf16
    %30 = vector.broadcast %cst_33 : bf16 to vector<388x128xbf16>
    %c0_34 = arith.constant 0 : index
    %c0_35 = arith.constant 0 : index
    %31 = vector.load %arg10[%c0_34, %c0_35] : memref<388x128xbf16, #tpu.memory_space<vmem>>, vector<388x128xbf16>
    tpu.vector_store %arg10[%c0_34, %c0_35], %30 {strides = array<i32>} : memref<388x128xbf16, #tpu.memory_space<vmem>>, vector<388x128xbf16>,
    %32 = arith.truncf %29 : vector<324x128xf32> to vector<324x128xbf16>
    %c32_36 = arith.constant 32 : index
    %c0_37 = arith.constant 0 : index
    %33 = vector.load %arg10[%c32_36, %c0_37] : memref<388x128xbf16, #tpu.memory_space<vmem>>, vector<324x128xbf16>
    tpu.vector_store %arg10[%c32_36, %c0_37], %32 {strides = array<i32>} : memref<388x128xbf16, #tpu.memory_space<vmem>>, vector<324x128xbf16>,
    %c13_38 = arith.constant 13 : index
    %c0_39 = arith.constant 0 : index
    %34 = vector.load %arg10[%c13_38, %c0_39] : memref<388x128xbf16, #tpu.memory_space<vmem>>, vector<324x128xbf16>
    %c14_40 = arith.constant 14 : index
    %c0_41 = arith.constant 0 : index
    %35 = vector.load %arg10[%c14_40, %c0_41] : memref<388x128xbf16, #tpu.memory_space<vmem>>, vector<324x128xbf16>
    %c15_42 = arith.constant 15 : index
    %c0_43 = arith.constant 0 : index
    %36 = vector.load %arg10[%c15_42, %c0_43] : memref<388x128xbf16, #tpu.memory_space<vmem>>, vector<324x128xbf16>
    %c31_44 = arith.constant 31 : index
    %c0_45 = arith.constant 0 : index
    %37 = vector.load %arg10[%c31_44, %c0_45] : memref<388x128xbf16, #tpu.memory_space<vmem>>, vector<324x128xbf16>
    %c32_46 = arith.constant 32 : index
    %c0_47 = arith.constant 0 : index
    %38 = vector.load %arg10[%c32_46, %c0_47] : memref<388x128xbf16, #tpu.memory_space<vmem>>, vector<324x128xbf16>
    %c33_48 = arith.constant 33 : index
    %c0_49 = arith.constant 0 : index
    %39 = vector.load %arg10[%c33_48, %c0_49] : memref<388x128xbf16, #tpu.memory_space<vmem>>, vector<324x128xbf16>
    %c49_50 = arith.constant 49 : index
    %c0_51 = arith.constant 0 : index
    %40 = vector.load %arg10[%c49_50, %c0_51] : memref<388x128xbf16, #tpu.memory_space<vmem>>, vector<324x128xbf16>
    %c50_52 = arith.constant 50 : index
    %c0_53 = arith.constant 0 : index
    %41 = vector.load %arg10[%c50_52, %c0_53] : memref<388x128xbf16, #tpu.memory_space<vmem>>, vector<324x128xbf16>
    %c51_54 = arith.constant 51 : index
    %c0_55 = arith.constant 0 : index
    %42 = vector.load %arg10[%c51_54, %c0_55] : memref<388x128xbf16, #tpu.memory_space<vmem>>, vector<324x128xbf16>
    %43 = tpu.concatenate %34, %35, %36, %37, %38, %39, %40, %41, %42 in 1 : vector<324x128xbf16>, vector<324x128xbf16>, vector<324x128xbf16>, vector<324x128xbf16>, vector<324x128xbf16>, vector<324x128xbf16>, vector<324x128xbf16>, vector<324x128xbf16>, vector<324x128xbf16> -> vector<324x1152xbf16>
    %c0_56 = arith.constant 0 : index
    %c0_57 = arith.constant 0 : index
    %44 = vector.load %arg5[%c0_56, %c0_57] : memref<1152x128xbf16, #tpu.memory_space<vmem>>, vector<1152x128xbf16>
    %cst_58 = arith.constant dense<0.000000e+00> : vector<324x128xf32>
    %45 = tpu.matmul %43, %44, %cst_58 {dimension_numbers = #tpu.dot_dimension_numbers<[1], [0], [0], [1], [0, 0, 1, 1], [], []>} : vector<324x1152xbf16>, vector<1152x128xbf16>, vector<324x128xf32> -> vector<324x128xf32>
    %c0_59 = arith.constant 0 : index
    %c0_60 = arith.constant 0 : index
    %46 = vector.load %arg6[%c0_59, %c0_60] : memref<1x128xf32, #tpu.memory_space<vmem>>, vector<1x128xf32>
    %47 = vector.broadcast %46 : vector<1x128xf32> to vector<324x128xf32>
    %48 = arith.addf %45, %47 : vector<324x128xf32>
    %cst_61 = arith.constant 0.000000e+00 : f32
    %49 = vector.broadcast %cst_61 : f32 to vector<324x128xf32>
    %50 = arith.maximumf %48, %49 : vector<324x128xf32>
    %51 = vector.broadcast %10 : vector<324x1xf32> to vector<324x128xf32>
    %52 = arith.mulf %50, %51 : vector<324x128xf32>
    %c0_62 = arith.constant 0 : index
    %c0_63 = arith.constant 0 : index
    %c0_64 = arith.constant 0 : index
    %53 = vector.load %arg7[%c0_62, %c0_63, %c0_64] : memref<1x324x128xf32, #tpu.memory_space<vmem>>, vector<1x324x128xf32>
    %54 = vector.shape_cast %53 : vector<1x324x128xf32> to vector<324x128xf32>
    %55 = vector.shape_cast %52 : vector<324x128xf32> to vector<1x324x128xf32>
    tpu.vector_store %arg7[%c0_62, %c0_63, %c0_64], %55 {strides = array<i32>} : memref<1x324x128xf32, #tpu.memory_space<vmem>>, vector<1x324x128xf32>,
    return
  }
  func.func @transform_0(%arg0: i32) -> (i32, i32, i32, i32) {
    %c0_i32 = arith.constant 0 : i32
    %c0_i32_0 = arith.constant 0 : i32
    %c0_i32_1 = arith.constant 0 : i32
    %c0_i32_2 = arith.constant 0 : i32
    return %arg0, %c0_i32, %c0_i32_0, %c0_i32_1 : i32, i32, i32, i32
  }
  func.func @transform_1(%arg0: i32) -> (i32, i32) {
    %c0_i32 = arith.constant 0 : i32
    %c0_i32_0 = arith.constant 0 : i32
    %c0_i32_1 = arith.constant 0 : i32
    return %c0_i32, %c0_i32_0 : i32, i32
  }
  func.func @transform_2(%arg0: i32) -> (i32, i32) {
    %c0_i32 = arith.constant 0 : i32
    %c0_i32_0 = arith.constant 0 : i32
    %c0_i32_1 = arith.constant 0 : i32
    return %c0_i32, %c0_i32_0 : i32, i32
  }
  func.func @transform_3(%arg0: i32) -> (i32, i32) {
    %c0_i32 = arith.constant 0 : i32
    %c0_i32_0 = arith.constant 0 : i32
    %c0_i32_1 = arith.constant 0 : i32
    return %c0_i32, %c0_i32_0 : i32, i32
  }
  func.func @transform_4(%arg0: i32) -> (i32, i32) {
    %c0_i32 = arith.constant 0 : i32
    %c0_i32_0 = arith.constant 0 : i32
    %c0_i32_1 = arith.constant 0 : i32
    return %c0_i32, %c0_i32_0 : i32, i32
  }
  func.func @transform_5(%arg0: i32) -> (i32, i32) {
    %c0_i32 = arith.constant 0 : i32
    %c0_i32_0 = arith.constant 0 : i32
    %c0_i32_1 = arith.constant 0 : i32
    return %c0_i32, %c0_i32_0 : i32, i32
  }
  func.func @transform_6(%arg0: i32) -> (i32, i32, i32) {
    %c0_i32 = arith.constant 0 : i32
    %c0_i32_0 = arith.constant 0 : i32
    %c0_i32_1 = arith.constant 0 : i32
    return %arg0, %c0_i32, %c0_i32_0 : i32, i32, i32
  }
}

</mosaic_0001>

<bundles_post_ra>
// kernel: double_conv.1
= control target key start
LH: loop header
LB: loop body
LE: loop exit
PB: predicated region body
PF: predicated region fallthrough
CT: control target
= control target key end

     0   :  { %s13450_s21 = smov 0   ;;  %s17129_s0 = inlined_call_operand.vmem [shape: bf16[2,16,16,128], index: 0, kind: input, shape index: {}]   ;;  %s17130_s1 = inlined_call_operand.vmem [shape: f32[324,1], index: 1, kind: input, shape index: {}]   ;;  %s17131_s2 = inlined_call_operand.vmem [shape: bf16[1152,128], index: 2, kind: input, shape index: {}]   ;;  %s17132_s3 = inlined_call_operand.vmem [shape: f32[1,128], index: 3, kind: input, shape index: {}]   ;;  %s17133_s4 = inlined_call_operand.vmem [shape: bf16[1152,128], index: 4, kind: input, shape index: {}]   ;;  %s17134_s5 = inlined_call_operand.vmem [shape: f32[1,128], index: 5, kind: input, shape index: {}]   ;;  %s17135_s6 = inlined_call_operand.vmem [shape: f32[2,324,128], index: 6, kind: output, shape index: {}]  }
   0x1 LB: > { %s11520_s22 = sadd.s32 4294967295, %s13408_s21   ;;  %p11524_p0 = scmp.ge.s32.totalorder %s13408_s21, 1  ;;  %s13408_s21 = sphi %s13450_s21, %s16_s21  }
   0x2   : > { %p212_p1 = scmp.lt.s32.totalorder %s13408_s21, 3 }
   0x4   : > { %p213_p2 = pnand %p11524_p0, %p212_p1 }
   0x6   : > { %216 = sbr.rel (%p213_p2) target bundleno = 2169 (0x879), region = 44 }
   0xd   : > { %v13461_v0 = vld [vmem:[%s17131_s2] sm:$0xff]   ;;  %v17140_v1 = vmov 0   ;;  %v13107_v2 = vld [vmem:[%s17131_s2 + $0x8] sm:$0xff]   ;;  %p242_p3 = scmp.lt.s32.totalorder %s11520_s22, 1  ;;  %v13108_v3 = vld [vmem:[%s17131_s2 + $0x10] sm:$0xff]   ;;  %v948_v5 = vlaneseq  ;;  %vm663_vm0 = vcmask 1043456  }
   0xe   : > { %5982 = vmatprep.subr.bf16.mxu0 %v17140_v1  ;;  %253 = vst [vmem:[#allocation2] sm:$0xf] %v17140_v1  ;;  %254 = vst [vmem:[#allocation2 + $0x4] sm:$0xf] %v17140_v1  ;;  %13104 = vset.pattern.permute.xlu0 %v17140_v1  ;;  %v13109_v4 = vld [vmem:[%s17131_s2 + $0x18] sm:$0xff]   ;;  %v13110_v6 = vld [vmem:[%s17131_s2 + $0x20] sm:$0xff]  }
   0xf   : > { %255 = vst [vmem:[#allocation2 + $0x8] sm:$0x1] %v17140_v1  ;;  %256 = vst [vmem:[#allocation2 + $0xc] sm:$0xf] %v17140_v1  ;;  %5983 = vmatpush1.bf16.msra.mxu0 %v13461_v0  ;;  %13105 = vset.pattern.permute.xlu1 %v17140_v1  ;;  %s17459_s22 = smov (!%p242_p3, %s11520_s22), 1  ;;  %v949_v7 = vshrl.u32 %v948_v5, 7 }
  0x10   : > { %257 = vst [vmem:[#allocation2 + $0x10] sm:$0xf] %v17140_v1  ;;  %258 = vst [vmem:[#allocation2 + $0x14] sm:$0x1] %v17140_v1  ;;  %5984 = vmatprep.subr.bf16.mxu0 %v17140_v1  ;;  %10342 = vmatprep.subr.bf16.mxu1 %v17140_v1  ;;  %s11916_s7 = sshll.u32 %s17459_s22, 7  ;;  %v13111_v13 = vld [vmem:[%s17131_s2 + $0x28] sm:$0xff]  }
  0x11   : > { %259 = vst [vmem:[#allocation2 + $0x18] sm:$0xf] %v17140_v1  ;;  %260 = vst [vmem:[#allocation2 + $0x1c] sm:$0xf] %v17140_v1  ;;  %s13636_s10 = scalar_lea.vmem %s17129_s0, %s11916_s7  ;;  %vm339_vm1 = vsmask.f32 256 }
  0x12   : > { %261 = vst [vmem:[#allocation2 + $0x20] sm:$0x1] %v17140_v1  ;;  %262 = vst [vmem:[#allocation2 + $0x24] sm:$0xf] %v17140_v1  ;;  %v307_v8 = vld [vmem:[%s13636_s10] sm:$0xf] }
  0x13   : > { %263 = vst [vmem:[#allocation2 + $0x28] sm:$0xf] %v17140_v1  ;;  %264 = vst [vmem:[#allocation2 + $0x2c] sm:$0x1] %v17140_v1  ;;  %5985 = vmatpush1.bf16.msra.mxu0 %v13107_v2  ;;  %v308_v9 = vld [vmem:[%s13636_s10 + $0x4] sm:$0xf] }
  0x14   : > { %265 = vst [vmem:[#allocation2 + $0x30] sm:$0xf] %v17140_v1  ;;  %266 = vst [vmem:[#allocation2 + $0x34] sm:$0xf] %v17140_v1  ;;  %5986 = vmatprep.subr.bf16.mxu0 %v17140_v1  ;;  %vm340_vm2 = vsmask.f32 4368 }
  0x15   : > { %267 = vst [vmem:[#allocation2 + $0x38] sm:$0x1] %v17140_v1  ;;  %268 = vst [vmem:[#allocation2 + $0x3c] sm:$0xf] %v17140_v1  ;;  %v343_v10 = vshrl.u32 %v307_v8, 16  ;;  %v346_v11 = vshll.u32 %v307_v8, 16 }
  0x16   : > { %269 = vst [vmem:[#allocation2 + $0x40] sm:$0xf] %v17140_v1  ;;  %270 = vst [vmem:[#allocation2 + $0x44] sm:$0x1] %v17140_v1  ;;  %v351_v12 = vshrl.u32 %v308_v9, 16  ;;  %v354_v14 = vshll.u32 %v308_v9, 16 }
  0x17   : > { %271 = vst [vmem:[#allocation2 + $0x48] sm:$0xf] %v17140_v1  ;;  %272 = vst [vmem:[#allocation2 + $0x4c] sm:$0xf] %v17140_v1  ;;  %5987 = vmatpush1.bf16.msra.mxu0 %v13108_v3  ;;  %vm664_vm3 = vsmask.f32 7938 }
  0x18   : > { %273 = vst [vmem:[#allocation2 + $0x50] sm:$0x1] %v17140_v1  ;;  %274 = vst [vmem:[#allocation2 + $0x54] sm:$0xf] %v17140_v1  ;;  %5988 = vmatprep.subr.bf16.mxu0 %v17140_v1  ;;  %v666_v15 = vld [vmem:[#allocation2 + $0xc] sm:$0xf] }
  0x19   : > { %275 = vst [vmem:[#allocation2 + $0x58] sm:$0xf] %v17140_v1  ;;  %276 = vst [vmem:[#allocation2 + $0x5c] sm:$0x1] %v17140_v1  ;;  %v345_v17 = vrot.slane %v343_v10, 7  ;;  %v13653_v18 = vrot.slane %v351_v12, 7 }
  0x1a   : > { %277 = vst [vmem:[#allocation2 + $0x60] sm:$0xf] %v17140_v1  ;;  %278 = vst [vmem:[#allocation2 + $0x64] sm:$0xf] %v17140_v1  ;;  %v13411_v25 = vmov 1966171168  }
  0x1b   : > { %279 = vst [vmem:[#allocation2 + $0x68] sm:$0x1] %v17140_v1  ;;  %280 = vst [vmem:[#allocation2 + $0x6c] sm:$0xf] %v17140_v1  ;;  %5989 = vmatpush1.bf16.msra.mxu0 %v13109_v4  ;;  %v348_v22 = vor.u32 %v346_v11, %v345_v17  ;;  %v349_v23 = vrot.slane %v345_v17, 4  ;;  %v356_v24 = vor.u32 %v354_v14, %v13653_v18  ;;  %v946_v26 = vunpack.c.l.s4 %v13411_v25  ;;  %v13112_v27 = vld [vmem:[%s17131_s2 + $0x30] sm:$0xff]  }
  0x1c   : > { %281 = vst [vmem:[#allocation2 + $0x70] sm:$0xf] %v17140_v1  ;;  %282 = vst [vmem:[#allocation2 + $0x74] sm:$0x1] %v17140_v1  ;;  %5990 = vmatprep.subr.bf16.mxu0 %v17140_v1  ;;  %v13412_v34 = vmov 1935823168  }
  0x1d   : > { %283 = vst [vmem:[#allocation2 + $0x78] sm:$0xf] %v17140_v1  ;;  %284 = vst [vmem:[#allocation2 + $0x7c] sm:$0xf] %v17140_v1  ;;  %v947_v33 = vunpack.c.0.s8 %v946_v26  ;;  %v2056_v35 = vunpack.c.l.s4 %v13412_v34  ;;  %v13113_v43 = vld [vmem:[%s17131_s2 + $0x38] sm:$0xff]   ;;  %v358_v46 = vrot.slane %v13653_v18, 4 }
  0x1e   : > { %285 = vst [vmem:[#allocation2 + $0x80] sm:$0x1] %v17140_v1  ;;  %286 = vst [vmem:[#allocation2 + $0x84] sm:$0xf] %v17140_v1  ;;  %vm670_vm6 = vcmask 1040384   ;;  %v13114_v60 = vld [vmem:[%s17131_s2 + $0x40] sm:$0xff]  }
  0x1f   : > { %287 = vst [vmem:[#allocation2 + $0x88] sm:$0xf] %v17140_v1  ;;  %288 = vst [vmem:[#allocation2 + $0x8c] sm:$0x1] %v17140_v1  ;;  %5991 = vmatpush1.bf16.msra.mxu0 %v13110_v6  ;;  %v13673_v41 = vsub.s32 %v947_v33, %v949_v7  ;;  %v2057_v42 = vunpack.c.0.s8 %v2056_v35  ;;  %v309_v51 = vld [vmem:[%s13636_s10 + $0x8] sm:$0xf] }
  0x20   : > { %289 = vst [vmem:[#allocation2 + $0x90] sm:$0xf] %v17140_v1  ;;  %290 = vst [vmem:[#allocation2 + $0x94] sm:$0xf] %v17140_v1  ;;  %5992 = vmatprep.subr.bf16.mxu0 %v17140_v1  ;;  %v360_v63 = vshrl.u32 %v309_v51, 16  ;;  %v363_v0 = vshll.u32 %v309_v51, 16 }
  0x21   : > { %291 = vst [vmem:[#allocation2 + $0x98] sm:$0x1] %v17140_v1  ;;  %292 = vst [vmem:[#allocation2 + $0x9c] sm:$0xf] %v17140_v1  ;;  %v13687_v52 = vsub.s32 %v2057_v42, %v949_v7  ;;  %v13115_v12 = vld [vmem:[%s17131_s2 + $0x48] sm:$0xff]   ;;  %vm3491_vm10 = vcmask 1046528  }
  0x22   : > { %293 = vst [vmem:[#allocation2 + $0xa0] sm:$0xf] %v17140_v1  ;;  %294 = vst [vmem:[#allocation2 + $0xa4] sm:$0x1] %v17140_v1  ;;  %v13701_v11 = vrot.slane %v360_v63, 7  ;;  %vm3763_vm11 = vcmask 1041408  }
  0x23   : > { %295 = vst [vmem:[#allocation2 + $0xa8] sm:$0xf] %v17140_v1  ;;  %296 = vst [vmem:[#allocation2 + $0xac] sm:$0xf] %v17140_v1  ;;  %5993 = vmatpush1.bf16.msra.mxu0 %v13111_v13  ;;  %v675_v25 = vld [vmem:[#allocation2 + $0x18] sm:$0xf] }
  0x24   : > { %297 = vst [vmem:[#allocation2 + $0xb0] sm:$0x1] %v17140_v1  ;;  %298 = vst [vmem:[#allocation2 + $0xb4] sm:$0xf] %v17140_v1  ;;  %5994 = vmatprep.subr.bf16.mxu0 %v17140_v1  ;;  %v311_v35 = vld [vmem:[%s13636_s10 + $0x10] sm:$0xf] }
  0x25   : > { %299 = vst [vmem:[#allocation2 + $0xb8] sm:$0xf] %v17140_v1  ;;  %300 = vst [vmem:[#allocation2 + $0xbc] sm:$0x1] %v17140_v1  ;;  %v312_v42 = vld [vmem:[%s13636_s10 + $0x14] sm:$0xf] }
  0x26   : > { %301 = vst [vmem:[#allocation2 + $0xc0] sm:$0xf] %v17140_v1  ;;  %302 = vst [vmem:[#allocation2 + $0xc4] sm:$0xf] %v17140_v1  ;;  %vm3320_vm8 = vsmask.f32 7424 }
  0x27   : > { %303 = vst [vmem:[#allocation2 + $0xc8] sm:$0x1] %v17140_v1  ;;  %304 = vst [vmem:[#allocation2 + $0xcc] sm:$0xf] %v17140_v1  ;;  %5995 = vmatpush1.bf16.msra.mxu0 %v13112_v27  ;;  %v388_v63 = vshll.u32 %v312_v42, 16  ;;  %vm13414_vm14 = vmmov 0  }
  0x28   : > { %305 = vst [vmem:[#allocation2 + $0xd0] sm:$0xf] %v17140_v1  ;;  %306 = vst [vmem:[#allocation2 + $0xd4] sm:$0x1] %v17140_v1  ;;  %5996 = vmatprep.subr.bf16.mxu0 %v17140_v1  ;;  %vm4114_vm9 = vsmask.f32 5376 }
  0x29   : > { %781 = vst [vmem:[#allocation3 + $0x4] sm:$0xf] %v17140_v1  ;;  %782 = vst [vmem:[#allocation3 + $0x8] sm:$0xf] %v17140_v1  ;;  %vm3571_vm12 = vsmask.f32 2304 }
  0x2a   : > { %783 = vst [vmem:[#allocation3 + $0xc] sm:$0xf] %v17140_v1  ;;  %784 = vst [vmem:[#allocation3 + $0x10] sm:$0xf] %v17140_v1  ;;  %vm3820_vm13 = vsmask.f32 1280 }
  0x2b   : > { %785 = vst [vmem:[#allocation3 + $0x14] sm:$0xf] %v17140_v1  ;;  %786 = vst [vmem:[#allocation3 + $0x18] sm:$0xf] %v17140_v1  ;;  %5997 = vmatpush1.bf16.msra.mxu0 %v13113_v43  ;;  %v13733_v43 = vld [vmem:[%s13636_s10 + $0x18] sm:$0xf] }
  0x2c   : > { %787 = vst [vmem:[#allocation3 + $0x1c] sm:$0xf] %v17140_v1  ;;  %788 = vst [vmem:[#allocation3 + $0x20] sm:$0xf] %v17140_v1  ;;  %5998 = vmatprep.subr.bf16.mxu0 %v17140_v1  ;;  %s13090_s30 = smul.u32 328, %s17459_s22 }
  0x2d   : > { %789 = vst [vmem:[#allocation3 + $0x24] sm:$0xf] %v17140_v1  ;;  %790 = vst [vmem:[#allocation3 + $0x28] sm:$0xf] %v17140_v1 }
  0x2e   : > { %791 = vst [vmem:[#allocation3 + $0x2c] sm:$0xf] %v17140_v1  ;;  %792 = vst [vmem:[#allocation3 + $0x30] sm:$0xf] %v17140_v1  ;;  %s17003_s9 = scalar_lea.vmem %s17135_s6, %s13090_s30 }
  0x2f   : > { %793 = vst [vmem:[#allocation3 + $0x34] sm:$0xf] %v17140_v1  ;;  %794 = vst [vmem:[#allocation3 + $0x38] sm:$0xf] %v17140_v1  ;;  %5999 = vmatpush1.bf16.msra.mxu0 %v13114_v60 }
  0x30   : > { %795 = vst [vmem:[#allocation3 + $0x3c] sm:$0xf] %v17140_v1  ;;  %796 = vst [vmem:[#allocation3 + $0x40] sm:$0xf] %v17140_v1  ;;  %v3159_v30 = vld [vmem:[#allocation3 + $0x8] sm:$0xf]  ;;  %6000 = vmatprep.subr.bf16.mxu0 %v17140_v1 }
  0x31   : > { %797 = vst [vmem:[#allocation3 + $0x44] sm:$0xf] %v17140_v1  ;;  %798 = vst [vmem:[#allocation3 + $0x48] sm:$0xf] %v17140_v1  ;;  %v3200_v36 = vld [vmem:[#allocation3 + $0x4] sm:$0x8] }
  0x32   : > { %799 = vst [vmem:[#allocation3 + $0x4c] sm:$0xf] %v17140_v1  ;;  %800 = vst [vmem:[#allocation3 + $0x50] sm:$0xf] %v17140_v1  ;;  %v3158_v37 = vld [vmem:[#allocation3 + $0x4] sm:$0xc]  ;;  %v13669_v38 = vcombine.low %v3200_v36, %v3159_v30 }
  0x33   : > { %801 = vst [vmem:[#allocation3 + $0x54] sm:$0xf] %v17140_v1  ;;  %802 = vst [vmem:[#allocation3 + $0x58] sm:$0xf] %v17140_v1  ;;  %v13671_v39 = vcombine.low %v3158_v37, %v3159_v30  ;;  %v310_v30 = vld [vmem:[%s13636_s10 + $0xc] sm:$0xf]  ;;  %6001 = vmatpush1.bf16.msra.mxu0 %v13115_v12 }
  0x34   : > { %803 = vst [vmem:[#allocation3 + $0x5c] sm:$0xf] %v17140_v1  ;;  %804 = vst [vmem:[#allocation3 + $0x60] sm:$0xf] %v17140_v1  ;;  %v3324_v44 = vshll.u32 %v13669_v38, 16  ;;  %v3322_v53 = vshrl.u32 %v13669_v38, 16  ;;  %6002 = vmatprep.subr.bf16.mxu0 %v17140_v1 }
  0x35   : > { %805 = vst [vmem:[#allocation3 + $0x64] sm:$0xf] %v17140_v1  ;;  %806 = vst [vmem:[#allocation3 + $0x68] sm:$0xf] %v17140_v1  ;;  %v4116_v45 = vshrl.u32 %v13671_v39, 16  ;;  %v4119_v55 = vshll.u32 %v13671_v39, 16 }
  0x36   : > { %807 = vst [vmem:[#allocation3 + $0x6c] sm:$0xf] %v17140_v1  ;;  %808 = vst [vmem:[#allocation3 + $0x70] sm:$0xf] %v17140_v1  ;;  %v3326_v54 = vrot.slane %v3324_v44, 1  ;;  %v13116_v44 = vld [vmem:[%s17131_s2 + $0x50] sm:$0xff]  }
  0x37   : > { %809 = vst [vmem:[#allocation3 + $0x74] sm:$0xf] %v17140_v1  ;;  %810 = vst [vmem:[#allocation3 + $0x78] sm:$0xf] %v17140_v1  ;;  %v13695_v62 = vrot.slane %v4116_v45, 2  ;;  %v13725_v37 = vrot.slane %v4119_v55, 3  ;;  %6003 = vmatpush1.bf16.msra.mxu0 %v13116_v44 }
  0x38   : > { %811 = vst [vmem:[#allocation3 + $0x7c] sm:$0xf] %v17140_v1  ;;  %812 = vst [vmem:[#allocation3 + $0x80] sm:$0xf] %v17140_v1  ;;  %v13699_v10 = vor.u32 %v3326_v54, %v3322_v53  ;;  %v371_v51 = vshll.u32 %v310_v30, 16  ;;  %v377_v53 = vshrl.u32 %v311_v35, 16  ;;  %6004 = vmatprep.subr.bf16.mxu0 %v17140_v1 }
  0x39   : > { %813 = vst [vmem:[#allocation3 + $0x84] sm:$0xf] %v17140_v1  ;;  %814 = vst [vmem:[#allocation3 + $0x88] sm:$0xf] %v17140_v1  ;;  %v13117_v54 = vld [vmem:[%s17131_s2 + $0x58] sm:$0xff]  }
  0x3a   : > { %815 = vst [vmem:[#allocation3 + $0x8c] sm:$0xf] %v17140_v1  ;;  %816 = vst [vmem:[#allocation3 + $0x90] sm:$0xf] %v17140_v1 }
  0x3b   : > { %817 = vst [vmem:[#allocation3 + $0x94] sm:$0xf] %v17140_v1  ;;  %818 = vst [vmem:[#allocation3 + $0x98] sm:$0xf] %v17140_v1  ;;  %6005 = vmatpush1.bf16.msra.mxu0 %v13117_v54 }
  0x3c   : > { %819 = vst [vmem:[#allocation3 + $0x9c] sm:$0xf] %v17140_v1  ;;  %820 = vst [vmem:[#allocation3 + $0xa0] sm:$0xf] %v17140_v1  ;;  %6006 = vmatprep.subr.bf16.mxu0 %v17140_v1 }
  0x3d   : > { %821 = vst [vmem:[#allocation3 + $0xa4] sm:$0xf] %v17140_v1  ;;  %822 = vst [vmem:[#allocation3 + $0xa8] sm:$0xf] %v17140_v1 }
  0x3e   : > { %823 = vst [vmem:[#allocation3 + $0xac] sm:$0xf] %v17140_v1  ;;  %824 = vst [vmem:[#allocation3 + $0xb0] sm:$0xf] %v17140_v1 }
  0x3f   : > { %825 = vst [vmem:[#allocation3 + $0xb4] sm:$0xf] %v17140_v1  ;;  %826 = vst [vmem:[#allocation3 + $0xb8] sm:$0xf] %v17140_v1 }
  0x40   : > { %7270 = vst [vmem:[#allocation4 + $0x4] sm:$0xf] %v17140_v1  ;;  %7271 = vst [vmem:[#allocation4 + $0x8] sm:$0xf] %v17140_v1 }
  0x41   : > { %7272 = vst [vmem:[#allocation4 + $0xc] sm:$0xf] %v17140_v1  ;;  %7273 = vst [vmem:[#allocation4 + $0x10] sm:$0xf] %v17140_v1 }
  0x42   : > { %7274 = vst [vmem:[#allocation4 + $0x14] sm:$0xf] %v17140_v1  ;;  %7275 = vst [vmem:[#allocation4 + $0x18] sm:$0xf] %v17140_v1 }
  0x43   : > { %7276 = vst [vmem:[#allocation4 + $0x1c] sm:$0xf] %v17140_v1  ;;  %7277 = vst [vmem:[#allocation4 + $0x20] sm:$0xf] %v17140_v1 }
  0x44   : > { %7278 = vst [vmem:[#allocation4 + $0x24] sm:$0xf] %v17140_v1  ;;  %7279 = vst [vmem:[#allocation4 + $0x28] sm:$0xf] %v17140_v1 }
  0x45   : > { %7280 = vst [vmem:[#allocation4 + $0x2c] sm:$0xf] %v17140_v1  ;;  %7281 = vst [vmem:[#allocation4 + $0x30] sm:$0xf] %v17140_v1 }
  0x46   : > { %7282 = vst [vmem:[#allocation4 + $0x34] sm:$0xf] %v17140_v1  ;;  %7283 = vst [vmem:[#allocation4 + $0x38] sm:$0xf] %v17140_v1 }
  0x47   : > { %7284 = vst [vmem:[#allocation4 + $0x3c] sm:$0xf] %v17140_v1  ;;  %7285 = vst [vmem:[#allocation4 + $0x40] sm:$0xf] %v17140_v1 }
  0x48   : > { %7286 = vst [vmem:[#allocation4 + $0x44] sm:$0xf] %v17140_v1  ;;  %7287 = vst [vmem:[#allocation4 + $0x48] sm:$0xf] %v17140_v1 }
  0x49   : > { %7288 = vst [vmem:[#allocation4 + $0x4c] sm:$0xf] %v17140_v1  ;;  %7289 = vst [vmem:[#allocation4 + $0x50] sm:$0xf] %v17140_v1 }
  0x4a   : > { %7290 = vst [vmem:[#allocation4 + $0x54] sm:$0xf] %v17140_v1  ;;  %7291 = vst [vmem:[#allocation4 + $0x58] sm:$0xf] %v17140_v1 }
  0x4b   : > { %7292 = vst [vmem:[#allocation4 + $0x5c] sm:$0xf] %v17140_v1  ;;  %7293 = vst [vmem:[#allocation4 + $0x60] sm:$0xf] %v17140_v1 }
  0x4c   : > { %7294 = vst [vmem:[#allocation4 + $0x64] sm:$0xf] %v17140_v1  ;;  %7295 = vst [vmem:[#allocation4 + $0x68] sm:$0xf] %v17140_v1 }
  0x4d   : > { %7296 = vst [vmem:[#allocation4 + $0x6c] sm:$0xf] %v17140_v1  ;;  %7297 = vst [vmem:[#allocation4 + $0x70] sm:$0xf] %v17140_v1 }
  0x4e   : > { %7298 = vst [vmem:[#allocation4 + $0x74] sm:$0xf] %v17140_v1  ;;  %7299 = vst [vmem:[#allocation4 + $0x78] sm:$0xf] %v17140_v1 }
  0x4f   : > { %7300 = vst [vmem:[#allocation4 + $0x7c] sm:$0xf] %v17140_v1  ;;  %7301 = vst [vmem:[#allocation4 + $0x80] sm:$0xf] %v17140_v1 }
  0x50   : > { %7302 = vst [vmem:[#allocation4 + $0x84] sm:$0xf] %v17140_v1  ;;  %7303 = vst [vmem:[#allocation4 + $0x88] sm:$0xf] %v17140_v1 }
  0x51   : > { %7304 = vst [vmem:[#allocation4 + $0x8c] sm:$0xf] %v17140_v1  ;;  %7305 = vst [vmem:[#allocation4 + $0x90] sm:$0xf] %v17140_v1 }
  0x52   : > { %7306 = vst [vmem:[#allocation4 + $0x94] sm:$0xf] %v17140_v1  ;;  %7307 = vst [vmem:[#allocation4 + $0x98] sm:$0xf] %v17140_v1 }
  0x53   : > { %7308 = vst [vmem:[#allocation4 + $0x9c] sm:$0xf] %v17140_v1  ;;  %7309 = vst [vmem:[#allocation4 + $0xa0] sm:$0xf] %v17140_v1 }
  0x54   : > { %7310 = vst [vmem:[#allocation4 + $0xa4] sm:$0xf] %v17140_v1  ;;  %7311 = vst [vmem:[#allocation4 + $0xa8] sm:$0xf] %v17140_v1 }
  0x55   : > { %7312 = vst [vmem:[#allocation4 + $0xac] sm:$0xf] %v17140_v1  ;;  %7313 = vst [vmem:[#allocation4 + $0xb0] sm:$0xf] %v17140_v1 }
  0x56   : > { %7314 = vst [vmem:[#allocation4 + $0xb4] sm:$0xf] %v17140_v1  ;;  %7315 = vst [vmem:[#allocation4 + $0xb8] sm:$0xf] %v17140_v1 }
  0x57   : > { %vm13649_vm4 = vmor %vm339_vm1, %vm340_vm2  ;;  %v11528_v19 = vld.sshfl [vmem:[#allocation2] sm:$0x33 pattern:$0x75316420] }
  0x58   : > { %vm13656_vm5 = vmand %vm663_vm0, %vm664_vm3  ;;  %v11529_v21 = vld.sshfl [vmem:[#allocation2 + $0x4] sm:$0x33 pattern:$0x75316420]  ;;  %v944_v28 = vcombine.high %v11528_v19, %v11528_v19  ;;  %v357_v31 = vsel %vm13649_vm4, %v349_v23, %v356_v24  ;;  %v951_v47 = vrot.slane %v11528_v19, %v13673_v41  ;;  %v672_v19 = vld [vmem:[#allocation2 + $0x14] sm:$0x1] }
  0x59   : > { %v968_v29 = vcombine.high %v11529_v21, %v11529_v21  ;;  %v667_v32 = vsel %vm13656_vm5, %v348_v22, %v666_v15  ;;  %669 = vst [vmem:[#allocation2 + $0x10] sm:$0xf] %v357_v31  ;;  %v11530_v40 = vld.sshfl [vmem:[#allocation2 + $0x8] sm:$0x1 pattern:$0x75316420]  ;;  %v975_v49 = vrot.slane %v11529_v21, %v13673_v41  ;;  %vm13711_vm7 = vmand %vm670_vm6, %vm339_vm1 }
  0x5a   : > { %668 = vst [vmem:[#allocation2 + $0xc] sm:$0xf] %v667_v32  ;;  %v958_v48 = vrot.slane %v944_v28, %v13673_v41  ;;  %v959_v56 = vcombine.high %v951_v47, %v951_v47  ;;  %v998_v61 = vrot.slane %v11530_v40, %v13673_v41  ;;  %v673_v39 = vsel %vm13711_vm7, %v358_v46, %v672_v19 }
  0x5b   : > { %v982_v50 = vrot.slane %v968_v29, %v13673_v41  ;;  %v983_v58 = vcombine.high %v975_v49, %v975_v49  ;;  %v365_v29 = vor.u32 %v363_v0, %v13701_v11  ;;  %674 = vst [vmem:[#allocation2 + $0x14] sm:$0x1] %v673_v39  ;;  %v366_v46 = vrot.slane %v13701_v11, 4  ;;  %v13749_v0 = vld [vmem:[%s13636_s10 + $0x1c] sm:$0xf] }
  0x5c   : > { %v960_v57 = vcombine.high %v958_v48, %v958_v48  ;;  %v2053_v3 = vcombine.low %v951_v47, %v959_v56 }
  0x5d   : > { %v984_v59 = vcombine.high %v982_v50, %v982_v50  ;;  %v2077_v5 = vcombine.low %v975_v49, %v983_v58  ;;  %v676_v40 = vsel %vm13656_vm5, %v365_v29, %v675_v25  ;;  %v380_v58 = vshll.u32 %v311_v35, 16  ;;  %v689_v29 = vld [vmem:[#allocation2 + $0x30] sm:$0xf] }
  0x5e   : > { %v2054_v4 = vcombine.low %v958_v48, %v960_v57  ;;  %v2061_v15 = vrot.slane %v2053_v3, %v13687_v52  ;;  %677 = vst [vmem:[#allocation2 + $0x18] sm:$0xf] %v676_v40  ;;  %v3160_v57 = vld [vmem:[#allocation3 + $0xc] sm:$0xf] }
  0x5f   : > { %v2078_v6 = vcombine.low %v982_v50, %v984_v59  ;;  %v2085_v23 = vrot.slane %v2077_v5, %v13687_v52  ;;  %v368_v50 = vshrl.u32 %v310_v30, 16  ;;  %v385_v59 = vshrl.u32 %v312_v42, 16  ;;  %v679_v5 = vld [vmem:[#allocation2 + $0x20] sm:$0x1] }
  0x60   : > { %v11532_v7 = vld.sshfl [vmem:[#allocation2 + $0x10] sm:$0x33 pattern:$0x75316420]  ;;  %v2068_v17 = vrot.slane %v2054_v4, %v13687_v52 }
  0x61   : > { %v11531_v2 = vld.sshfl [vmem:[#allocation2 + $0xc] sm:$0x33 pattern:$0x75316420]  ;;  %v1030_v13 = vcombine.high %v11532_v7, %v11532_v7  ;;  %v1037_v14 = vrot.slane %v11532_v7, %v13673_v41  ;;  %v2092_v24 = vrot.slane %v2078_v6, %v13687_v52  ;;  %v370_v60 = vrot.slane %v368_v50, 7 }
  0x62   : > { %v1006_v8 = vcombine.high %v11531_v2, %v11531_v2  ;;  %v1013_v9 = vrot.slane %v11531_v2, %v13673_v41  ;;  %v2069_v28 = vcombine.low %v2061_v15, %v2068_v17  ;;  %v394_v2 = vshrl.u32 %v13733_v43, 16  ;;  %v682_v6 = vld [vmem:[#allocation2 + $0x24] sm:$0xf] }
  0x63   : > { %v13720_v26 = vrot.slane %v1030_v13, %v13673_v41  ;;  %v1045_v27 = vcombine.high %v1037_v14, %v1037_v14  ;;  %v2093_v32 = vcombine.low %v2085_v23, %v2092_v24  ;;  %v387_v7 = vrot.slane %v385_v59, 7  ;;  %v13118_v15 = vld [vmem:[%s17131_s2 + $0x60] sm:$0xff]   ;;  %v11533_v25 = vld.sshfl [vmem:[#allocation2 + $0x14] sm:$0x1 pattern:$0x75316420] }
  0x64   : > { %v1020_v21 = vrot.slane %v1006_v8, %v13673_v41  ;;  %v1021_v22 = vcombine.high %v1013_v9, %v1013_v9  ;;  %11582 = vst.sshfl [vmem:[#allocation3 + $0x10] sm:$0x33 pattern:$0x75316420] %v2069_v28  ;;  %v397_v8 = vshll.u32 %v13733_v43, 16  ;;  %v375_v11 = vrot.slane %v370_v60, 4  ;;  %6007 = vmatpush1.bf16.msra.mxu0 %v13118_v15 }
  0x65   : > { %v2126_v36 = vcombine.low %v1037_v14, %v1045_v27  ;;  %11583 = vst.sshfl [vmem:[#allocation3 + $0x14] sm:$0x33 pattern:$0x75316420] %v2093_v32  ;;  %v1046_v4 = vcombine.high %v13720_v26, %v13720_v26  ;;  %v686_v14 = vld [vmem:[#allocation2 + $0x2c] sm:$0x1]  ;;  %v390_v19 = vor.u32 %v388_v63, %v387_v7  ;;  %v4122_v43 = vor.u32 %v13725_v37, %v13695_v62 }
  0x66   : > { %v1022_v31 = vcombine.high %v1020_v21, %v1020_v21  ;;  %v2101_v33 = vcombine.low %v998_v61, %v1020_v21  ;;  %v2102_v34 = vcombine.low %v1013_v9, %v1021_v22  ;;  %v379_v61 = vrot.slane %v377_v53, 7  ;;  %v11534_v30 = vld.sshfl [vmem:[#allocation2 + $0x18] sm:$0x33 pattern:$0x75316420]  ;;  %v13119_v53 = vld [vmem:[%s17131_s2 + $0x68] sm:$0xff]   ;;  %6008 = vmatprep.subr.bf16.mxu0 %v17140_v1 }
  0x67   : > { %v2140_v49 = vrot.slane %v2126_v36, %v13687_v52  ;;  %v373_v9 = vor.u32 %v371_v51, %v370_v60  ;;  %v392_v21 = vrot.slane %v387_v7, 4  ;;  %v13759_v22 = vrot.slane %v394_v2, 7 }
  0x68   : > { %v2109_v45 = vrot.slane %v2101_v33, %v13687_v52  ;;  %v2116_v47 = vrot.slane %v2102_v34, %v13687_v52  ;;  %v2125_v48 = vcombine.low %v1022_v31, %v13720_v26  ;;  %v382_v12 = vor.u32 %v380_v58, %v379_v61  ;;  %6009 = vmatpush1.bf16.msra.mxu0 %v13119_v53 }
  0x69   : > { %v383_v13 = vrot.slane %v379_v61, 4  ;;  %v402_v23 = vshrl.u32 %v13749_v0, 16  ;;  %v374_v26 = vsel %vm13649_vm4, %v366_v46, %v373_v9  ;;  %v680_v27 = vsel %vm13711_vm7, %v375_v11, %v679_v5  ;;  %6010 = vmatprep.subr.bf16.mxu0 %v17140_v1 }
  0x6a   : > { %v2117_v55 = vcombine.low %v2109_v45, %v2116_v47  ;;  %v2133_v56 = vrot.slane %v2125_v48, %v13687_v52  ;;  %v683_v28 = vsel %vm13656_vm5, %v382_v12, %v682_v6  ;;  %v1060_v31 = vrot.slane %v11533_v25, %v13673_v41  ;;  %678 = vst [vmem:[#allocation2 + $0x1c] sm:$0xf] %v374_v26 }
  0x6b   : > { %v3161_v17 = vld [vmem:[#allocation3 + $0x10] sm:$0xf]  ;;  %681 = vst [vmem:[#allocation2 + $0x20] sm:$0x1] %v680_v27  ;;  %684 = vst [vmem:[#allocation2 + $0x24] sm:$0xf] %v683_v28  ;;  %v391_v32 = vsel %vm13649_vm4, %v383_v13, %v390_v19  ;;  %v687_v33 = vsel %vm13711_vm7, %v392_v21, %v686_v14  ;;  %v399_v34 = vor.u32 %v397_v8, %v13759_v22 }
  0x6c   : > { %v2141_v3 = vcombine.low %v2133_v56, %v2140_v49  ;;  %11584 = vst.sshfl [vmem:[#allocation3 + $0x18] sm:$0x33 pattern:$0x75316420] %v2117_v55  ;;  %v13762_v24 = vcombine.low %v3160_v57, %v3161_v17  ;;  %v3162_v35 = vld [vmem:[#allocation3 + $0x14] sm:$0xf]  ;;  %v1068_v40 = vcombine.high %v11534_v30, %v11534_v30  ;;  %v1075_v42 = vrot.slane %v11534_v30, %v13673_v41 }
  0x6d   : > { %685 = vst [vmem:[#allocation2 + $0x28] sm:$0xf] %v391_v32  ;;  %688 = vst [vmem:[#allocation2 + $0x2c] sm:$0x1] %v687_v33  ;;  %v13782_v44 = vrot.slane %v402_v23, 7  ;;  %v405_v45 = vshll.u32 %v13749_v0, 16  ;;  %v690_v47 = vsel %vm13656_vm5, %v399_v34, %v689_v29 }
  0x6e   : > { %11585 = vst.sshfl [vmem:[#allocation3 + $0x1c] sm:$0x33 pattern:$0x75316420] %v2141_v3  ;;  %v3329_v36 = vshll.u32 %v13762_v24, 16  ;;  %v3333_v39 = vshrl.u32 %v13762_v24, 16  ;;  %v1082_v51 = vrot.slane %v1068_v40, %v13673_v41  ;;  %v2149_v37 = vcombine.low %v1046_v4, %v1075_v42 }
  0x6f   : > { %691 = vst [vmem:[#allocation2 + $0x30] sm:$0xf] %v690_v47  ;;  %v400_v54 = vrot.slane %v13759_v22, 4  ;;  %v409_v55 = vrot.slane %v13782_v44, 4  ;;  %v1083_v59 = vcombine.high %v1075_v42, %v1075_v42  ;;  %v13805_v6 = vor.u32 %v405_v45, %v13782_v44  ;;  %v13121_v27 = vld [vmem:[%s17131_s2 + $0x78] sm:$0xff]  }
  0x70   : > { %v3331_v46 = vrot.slane %v3329_v36, 1  ;;  %v4123_v49 = vrot.slane %v3333_v39, 2  ;;  %v4124_v50 = vrot.slane %v3329_v36, 3  ;;  %v2150_v58 = vcombine.low %v1060_v31, %v1082_v51 }
  0x71   : > { %v2157_v2 = vrot.slane %v2149_v37, %v13687_v52  ;;  %v11535_v5 = vld.sshfl [vmem:[#allocation2 + $0x1c] sm:$0x33 pattern:$0x75316420]  ;;  %v1084_v25 = vcombine.high %v1082_v51, %v1082_v51 }
  0x72   : > { %v3332_v56 = vsel %vm3320_vm8, %v13699_v10, %v3331_v46  ;;  %v13798_v57 = vor.u32 %v4124_v50, %v4123_v49  ;;  %v3335_v60 = vor.u32 %v3333_v39, %v3331_v46  ;;  %v2164_v3 = vrot.slane %v2150_v58, %v13687_v52  ;;  %v13120_v10 = vld [vmem:[%s17131_s2 + $0x70] sm:$0xff]   ;;  %v11536_v15 = vld.sshfl [vmem:[#allocation2 + $0x20] sm:$0x1 pattern:$0x75316420] }
  0x73   : > { %v3163_v48 = vld [vmem:[#allocation3 + $0x18] sm:$0xf]  ;;  %v4128_v63 = vshrl.u32 %v3332_v56, 16  ;;  %v4131_v0 = vshll.u32 %v3332_v56, 16  ;;  %v1092_v17 = vcombine.high %v11535_v5, %v11535_v5  ;;  %v1099_v26 = vrot.slane %v11535_v5, %v13673_v41  ;;  %6011 = vmatpush1.bf16.msra.mxu0 %v13120_v10  ;;  %v13127_v58 = vld [vmem:[%s17131_s2 + $0x80] sm:$0xff]  }
  0x74   : > { %v13791_v62 = vcombine.low %v3162_v35, %v3163_v48  ;;  %v4126_v11 = vsel %vm4114_vm9, %v4122_v43, %v13798_v57  ;;  %v2165_v12 = vcombine.low %v2157_v2, %v2164_v3  ;;  %v11537_v23 = vld.sshfl [vmem:[#allocation2 + $0x24] sm:$0x33 pattern:$0x75316420]  ;;  %v1122_v33 = vrot.slane %v11536_v15, %v13673_v41  ;;  %6012 = vmatprep.subr.bf16.mxu0 %v17140_v1 }
  0x75   : > { %v4130_v8 = vrot.slane %v4128_v63, 2  ;;  %v4133_v9 = vrot.slane %v4131_v0, 3  ;;  %v1106_v31 = vrot.slane %v1092_v17, %v13673_v41  ;;  %v1107_v32 = vcombine.high %v1099_v26, %v1099_v26  ;;  %v11538_v36 = vld.sshfl [vmem:[#allocation2 + $0x28] sm:$0x33 pattern:$0x75316420] }
  0x76   : > { %v3337_v61 = vshll.u32 %v13791_v62, 16  ;;  %v3341_v4 = vshrl.u32 %v13791_v62, 16  ;;  %11586 = vst.sshfl [vmem:[#allocation3 + $0x20] sm:$0x33 pattern:$0x75316420] %v2165_v12  ;;  %v1137_v34 = vrot.slane %v11537_v23, %v13673_v41  ;;  %v2173_v35 = vcombine.low %v1083_v59, %v1099_v26 }
  0x77   : > { %v4134_v21 = vor.u32 %v4133_v9, %v4130_v8  ;;  %v1108_v43 = vcombine.high %v1106_v31, %v1106_v31  ;;  %v2174_v45 = vcombine.low %v1084_v25, %v1106_v31  ;;  %v2197_v48 = vcombine.low %v1107_v32, %v1122_v33  ;;  %v11539_v46 = vld.sshfl [vmem:[#allocation2 + $0x2c] sm:$0x1 pattern:$0x75316420]  ;;  %6013 = vmatpush1.bf16.msra.mxu0 %v13121_v27  ;;  %v3164_v56 = vld [vmem:[#allocation3 + $0x1c] sm:$0xf] }
  0x78   : > { %v3339_v7 = vrot.slane %v3337_v61, 1  ;;  %v4263_v13 = vrot.slane %v3341_v4, 2  ;;  %v4264_v14 = vrot.slane %v3337_v61, 3  ;;  %v2181_v47 = vrot.slane %v2173_v35, %v13687_v52  ;;  %6182 = vmatprep.subr.bf16.mxu0 %v17140_v1  ;;  %v693_v33 = vld [vmem:[#allocation2 + $0x38] sm:$0x1] }
  0x79   : > { %v1130_v49 = vcombine.high %v11537_v23, %v11537_v23  ;;  %v2198_v51 = vcombine.low %v1108_v43, %v1137_v34  ;;  %v1145_v53 = vcombine.high %v1137_v34, %v1137_v34  ;;  %v1154_v37 = vcombine.high %v11538_v36, %v11538_v36  ;;  %v11540_v5 = vld.sshfl [vmem:[#allocation2 + $0x30] sm:$0x33 pattern:$0x75316420] }
  0x7a   : > { %v3340_v19 = vsel %vm3320_vm8, %v3335_v60, %v3339_v7  ;;  %v13818_v30 = vor.u32 %v3341_v4, %v3339_v7  ;;  %v13824_v42 = vor.u32 %v4264_v14, %v4263_v13  ;;  %v2188_v59 = vrot.slane %v2174_v45, %v13687_v52 }
  0x7b   : > { %v4136_v28 = vshrl.u32 %v3340_v19, 16  ;;  %v4139_v29 = vshll.u32 %v3340_v19, 16  ;;  %v2205_v60 = vrot.slane %v2197_v48, %v13687_v52  ;;  %v1144_v61 = vrot.slane %v1130_v49, %v13673_v41  ;;  %v13850_v19 = vld [vmem:[%s13636_s10 + $0x20] sm:$0xf] }
  0x7c   : > { %v1161_v63 = vrot.slane %v11538_v36, %v13673_v41  ;;  %v2212_v2 = vrot.slane %v2198_v51, %v13687_v52  ;;  %v1168_v3 = vrot.slane %v1154_v37, %v13673_v41  ;;  %v1184_v4 = vrot.slane %v11539_v46, %v13673_v41 }
  0x7d   : > { %v4138_v39 = vrot.slane %v4136_v28, 2  ;;  %v4141_v40 = vrot.slane %v4139_v29, 3  ;;  %v3165_v10 = vld [vmem:[#allocation3 + $0x20] sm:$0xf]  ;;  %v2189_v7 = vcombine.low %v2181_v47, %v2188_v59  ;;  %v1146_v8 = vcombine.high %v1144_v61, %v1144_v61 }
  0x7e   : > { %v1169_v9 = vcombine.high %v1161_v63, %v1161_v63  ;;  %v2222_v12 = vcombine.low %v1145_v53, %v1161_v63  ;;  %v13842_v13 = vcombine.low %v3164_v56, %v3165_v10  ;;  %v2213_v14 = vcombine.low %v2205_v60, %v2212_v2 }
  0x7f   : > { %v13827_v50 = vor.u32 %v4141_v40, %v4138_v39  ;;  %v1170_v15 = vcombine.high %v1168_v3, %v1168_v3  ;;  %v408_v17 = vsel %vm13649_vm4, %v400_v54, %v13805_v6  ;;  %11587 = vst.sshfl [vmem:[#allocation3 + $0x24] sm:$0x33 pattern:$0x75316420] %v2189_v7  ;;  %v2221_v23 = vcombine.low %v1144_v61, %v1146_v8  ;;  %v13130_v40 = vld [vmem:[%s17131_s2 + $0x90] sm:$0xff]  }
  0x80   : > { %v2246_v25 = vcombine.low %v1169_v9, %v1184_v4  ;;  %692 = vst [vmem:[#allocation2 + $0x34] sm:$0xf] %v408_v17  ;;  %v1192_v26 = vcombine.high %v11540_v5, %v11540_v5  ;;  %v3345_v27 = vshll.u32 %v13842_v13, 16  ;;  %v3349_v22 = vshrl.u32 %v13842_v13, 16 }
  0x81   : > { %v4143_v0 = vsel %vm4114_vm9, %v4134_v21, %v13827_v50  ;;  %v13128_v21 = vld [vmem:[%s17131_s2 + $0x88] sm:$0xff]   ;;  %11588 = vst.sshfl [vmem:[#allocation3 + $0x28] sm:$0x33 pattern:$0x75316420] %v2213_v14  ;;  %v2245_v54 = vcombine.low %v1168_v3, %v1170_v15  ;;  %v1199_v6 = vrot.slane %v11540_v5, %v13673_v41  ;;  %v2229_v28 = vrot.slane %v2221_v23, %v13687_v52 }
  0x82   : > { %6014 = vmatprep.mubr.bf16.mxu0 %v4143_v0  ;;  %v2260_v29 = vrot.slane %v2246_v25, %v13687_v52  ;;  %v1206_v31 = vrot.slane %v1192_v26, %v13673_v41  ;;  %v411_v32 = vshrl.u32 %v13850_v19, 16  ;;  %v3347_v34 = vrot.slane %v3345_v27, 1  ;;  %v316_v0 = vld [vmem:[%s13636_s10 + $0x24] sm:$0xf] }
  0x83   : > { %6015 = vmatmul.mubr.bf16.vlgmr.msra.gmra.mrb[0].mxu0 %v4126_v11  ;;  %v2236_v11 = vrot.slane %v2222_v12, %v13687_v52  ;;  %v4323_v35 = vrot.slane %v3349_v22, 2  ;;  %v4324_v36 = vrot.slane %v3345_v27, 3  ;;  %v2253_v39 = vrot.slane %v2245_v54, %v13687_v52  ;;  %v696_v12 = vld [vmem:[#allocation2 + $0x3c] sm:$0xf]  ;;  %v13135_v54 = vld [vmem:[%s17131_s2 + $0xa0] sm:$0xff]  }
  0x84   : > { %6183 = vmatpush1.bf16.msra.mxu0 %v13127_v58  ;;  %v1207_v45 = vcombine.high %v1199_v6, %v1199_v6  ;;  %v1208_v47 = vcombine.high %v1206_v31, %v1206_v31  ;;  %v13868_v48 = vrot.slane %v411_v32, 7  ;;  %v3348_v46 = vsel %vm3320_vm8, %v13818_v30, %v3347_v34  ;;  %v13133_v58 = vld [vmem:[%s17131_s2 + $0x98] sm:$0xff]  }
  0x85   : > { %6184 = vmatprep.subr.bf16.mxu0 %v17140_v1  ;;  %v2237_v43 = vcombine.low %v2229_v28, %v2236_v11  ;;  %v2261_v49 = vcombine.low %v2253_v39, %v2260_v29  ;;  %v4268_v51 = vshrl.u32 %v3348_v46, 16  ;;  %v4271_v53 = vshll.u32 %v3348_v46, 16 }
  0x86   : > { %v2269_v37 = vcombine.low %v1199_v6, %v1207_v45  ;;  %v2270_v56 = vcombine.low %v1206_v31, %v1208_v47  ;;  %v4266_v59 = vsel %vm4114_vm9, %v13798_v57, %v13824_v42  ;;  %v3166_v60 = vld [vmem:[#allocation3 + $0x24] sm:$0xf]  ;;  %v3351_v61 = vor.u32 %v3349_v22, %v3347_v34  ;;  %v317_v45 = vld [vmem:[%s13636_s10 + $0x28] sm:$0xf] }
  0x87   : > { %11589 = vst.sshfl [vmem:[#allocation3 + $0x2c] sm:$0x33 pattern:$0x75316420] %v2237_v43  ;;  %v13879_v63 = vor.u32 %v4324_v36, %v4323_v35  ;;  %v694_v2 = vsel %vm13711_vm7, %v409_v55, %v693_v33  ;;  %v4270_v3 = vrot.slane %v4268_v51, 2  ;;  %v4273_v4 = vrot.slane %v4271_v53, 3 }
  0x88   : > { %6185 = vmatpush1.bf16.msra.mxu0 %v13128_v21  ;;  %11590 = vst.sshfl [vmem:[#allocation3 + $0x30] sm:$0x33 pattern:$0x75316420] %v2261_v49  ;;  %v3167_v5 = vld [vmem:[#allocation3 + $0x28] sm:$0xf]  ;;  %v2277_v8 = vrot.slane %v2269_v37, %v13687_v52  ;;  %v2284_v9 = vrot.slane %v2270_v56, %v13687_v52 }
  0x89   : > { %6186 = vmatprep.subr.bf16.mxu0 %v17140_v1  ;;  %v11541_v30 = vld.sshfl [vmem:[#allocation2 + $0x34] sm:$0x33 pattern:$0x75316420]  ;;  %695 = vst [vmem:[#allocation2 + $0x38] sm:$0x1] %v694_v2  ;;  %v13887_v57 = vcombine.low %v3166_v60, %v3167_v5  ;;  %v13893_v55 = vor.u32 %v4273_v4, %v4270_v3  ;;  %v4326_v56 = vsel %vm4114_vm9, %v13824_v42, %v13879_v63 }
  0x8a   : > { %v1216_v10 = vcombine.high %v11541_v30, %v11541_v30  ;;  %v1223_v7 = vrot.slane %v11541_v30, %v13673_v41  ;;  %v414_v44 = vshll.u32 %v13850_v19, 16  ;;  %v417_v17 = vrot.slane %v13868_v48, 4  ;;  %v13137_v47 = vld [vmem:[%s17131_s2 + $0xa8] sm:$0xff]   ;;  %v700_v3 = vld [vmem:[#allocation2 + $0x44] sm:$0x1] }
  0x8b   : > { %v3353_v21 = vshll.u32 %v13887_v57, 16  ;;  %v3357_v23 = vshrl.u32 %v13887_v57, 16  ;;  %v2285_v11 = vcombine.low %v2277_v8, %v2284_v9  ;;  %v4275_v26 = vsel %vm4114_vm9, %v13827_v50, %v13893_v55  ;;  %v318_v37 = vld [vmem:[%s13636_s10 + $0x2c] sm:$0xf] }
  0x8c   : > { %6187 = vmatpush1.bf16.msra.mxu0 %v13130_v40  ;;  %v1230_v14 = vrot.slane %v1216_v10, %v13673_v41  ;;  %v1231_v15 = vcombine.high %v1223_v7, %v1223_v7  ;;  %v416_v25 = vor.u32 %v414_v44, %v13868_v48  ;;  %v419_v22 = vshrl.u32 %v316_v0, 16  ;;  %6022 = vmatprep.mubr.bf16.mxu0 %v4275_v26 }
  0x8d   : > { %6188 = vmatprep.subr.bf16.mxu0 %v17140_v1  ;;  %v3355_v6 = vrot.slane %v3353_v21, 1  ;;  %v4381_v29 = vrot.slane %v3357_v23, 2  ;;  %v4382_v31 = vrot.slane %v3353_v21, 3  ;;  %v422_v32 = vshll.u32 %v316_v0, 16  ;;  %6023 = vmatmul.mubr.bf16.gmra.mrb[4].mxu0 %v4266_v59  ;;  %v13943_v21 = vld [vmem:[%s13636_s10 + $0x30] sm:$0xf] }
  0x8e   : > { %v1232_v19 = vcombine.high %v1230_v14, %v1230_v14  ;;  %v2293_v27 = vcombine.low %v1223_v7, %v1231_v15  ;;  %v3168_v28 = vld [vmem:[#allocation3 + $0x2c] sm:$0xf]  ;;  %11591 = vst.sshfl [vmem:[#allocation3 + $0x34] sm:$0x33 pattern:$0x75316420] %v2285_v11  ;;  %v697_v36 = vsel %vm13656_vm5, %v416_v25, %v696_v12 }
  0x8f   : > { %v3169_v50 = vld [vmem:[#allocation3 + $0x30] sm:$0xf]  ;;  %v421_v35 = vrot.slane %v419_v22, 7  ;;  %v3356_v39 = vsel %vm3320_vm8, %v3351_v61, %v3355_v6  ;;  %v13913_v43 = vor.u32 %v4382_v31, %v4381_v29  ;;  %698 = vst [vmem:[#allocation2 + $0x3c] sm:$0xf] %v697_v36  ;;  %v428_v9 = vshrl.u32 %v317_v45, 16 }
  0x90   : > { %6189 = vmatpush1.bf16.msra.mxu0 %v13133_v58  ;;  %v2294_v33 = vcombine.low %v1230_v14, %v1232_v19  ;;  %v2301_v34 = vrot.slane %v2293_v27, %v13687_v52  ;;  %v13911_v40 = vcombine.low %v3168_v28, %v3169_v50  ;;  %v4328_v48 = vshrl.u32 %v3356_v39, 16  ;;  %v13920_v53 = vld.sshfl [vmem:[#allocation2 + $0x38] sm:$0x1 pattern:$0x75316420]  ;;  %v13140_v12 = vld [vmem:[%s17131_s2 + $0xb0] sm:$0xff]  }
  0x91   : > { %6190 = vmatprep.subr.bf16.mxu0 %v17140_v1  ;;  %v4331_v46 = vshll.u32 %v3356_v39, 16  ;;  %v424_v51 = vor.u32 %v422_v32, %v421_v35  ;;  %v3359_v58 = vor.u32 %v3357_v23, %v3355_v6  ;;  %v13934_v42 = vsel %vm4114_vm9, %v13879_v63, %v13913_v43  ;;  %v703_v50 = vld [vmem:[#allocation2 + $0x48] sm:$0xf]  ;;  %v13142_v39 = vld [vmem:[%s17131_s2 + $0xb8] sm:$0xff]  }
  0x92   : > { %v2308_v49 = vrot.slane %v2294_v33, %v13687_v52  ;;  %v3361_v59 = vshll.u32 %v13911_v40, 16  ;;  %v3365_v60 = vshrl.u32 %v13911_v40, 16  ;;  %v4330_v61 = vrot.slane %v4328_v48, 2 }
  0x93   : > { %v4333_v30 = vrot.slane %v4331_v46, 3  ;;  %v425_v2 = vsel %vm13649_vm4, %v417_v17, %v424_v51  ;;  %v426_v10 = vrot.slane %v421_v35, 4  ;;  %v436_v44 = vshrl.u32 %v318_v37, 16 }
  0x94   : > { %6191 = vmatpush1.bf16.msra.mxu0 %v13135_v54  ;;  %v2309_v0 = vcombine.low %v2301_v34, %v2308_v49  ;;  %v3363_v4 = vrot.slane %v3361_v59, 1  ;;  %v4439_v5 = vrot.slane %v3365_v60, 2  ;;  %699 = vst [vmem:[#allocation2 + $0x40] sm:$0xf] %v425_v2  ;;  %v4440_v8 = vrot.slane %v3361_v59, 3 }
  0x95   : > { %6192 = vmatprep.subr.bf16.mxu0 %v17140_v1  ;;  %v4334_v7 = vor.u32 %v4333_v30, %v4330_v61  ;;  %v1246_v15 = vrot.slane %v13920_v53, %v13673_v41  ;;  %v431_v63 = vshll.u32 %v317_v45, 16  ;;  %v439_v17 = vshll.u32 %v318_v37, 16  ;;  %v3170_v27 = vld [vmem:[#allocation3 + $0x34] sm:$0xf]  ;;  %v707_v59 = vld [vmem:[#allocation2 + $0x50] sm:$0x1] }
  0x96   : > { %11592 = vst.sshfl [vmem:[#allocation3 + $0x38] sm:$0x33 pattern:$0x75316420] %v2309_v0  ;;  %v3364_v14 = vsel %vm3320_vm8, %v3359_v58, %v3363_v4  ;;  %v701_v19 = vsel %vm13711_vm7, %v426_v10, %v700_v3  ;;  %v13950_v22 = vor.u32 %v3365_v60, %v3363_v4  ;;  %v430_v28 = vrot.slane %v428_v9, 7 }
  0x97   : > { %v4335_v23 = vsel %vm4114_vm9, %v13893_v55, %v4334_v7  ;;  %v4386_v11 = vshrl.u32 %v3364_v14, 16  ;;  %v4389_v25 = vshll.u32 %v3364_v14, 16  ;;  %v11543_v26 = vld.sshfl [vmem:[#allocation2 + $0x3c] sm:$0x33 pattern:$0x75316420]  ;;  %v13953_v32 = vor.u32 %v4440_v8, %v4439_v5 }
  0x98   : > { %6193 = vmatpush1.bf16.msra.mxu0 %v13137_v47  ;;  %6030 = vmatprep.mubr.bf16.mxu0 %v4335_v23  ;;  %v1254_v54 = vcombine.high %v11543_v26, %v11543_v26  ;;  %v1261_v6 = vrot.slane %v11543_v26, %v13673_v41  ;;  %702 = vst [vmem:[#allocation2 + $0x44] sm:$0x1] %v701_v19  ;;  %v438_v55 = vrot.slane %v436_v44, 7  ;;  %v434_v36 = vrot.slane %v430_v28, 4  ;;  %v320_v9 = vld [vmem:[%s13636_s10 + $0x34] sm:$0xf] }
  0x99   : > { %6194 = vmatprep.subr.bf16.mxu0 %v17140_v1  ;;  %6031 = vmatmul.mubr.bf16.gmra.mrb[8].mxu0 %v4326_v56  ;;  %v4388_v29 = vrot.slane %v4386_v11, 2  ;;  %v4391_v31 = vrot.slane %v4389_v25, 3  ;;  %v433_v35 = vor.u32 %v431_v63, %v430_v28  ;;  %v445_v49 = vshrl.u32 %v13943_v21, 16  ;;  %v13147_v19 = vld [vmem:[%s17131_s2 + $0xc8] sm:$0xff]  }
  0x9a   : > { %v1268_v33 = vrot.slane %v1254_v54, %v13673_v41  ;;  %v1269_v34 = vcombine.high %v1261_v6, %v1261_v6  ;;  %v441_v48 = vor.u32 %v439_v17, %v438_v55  ;;  %v443_v46 = vrot.slane %v438_v55, 4 }
  0x9b   : > { %v13959_v45 = vor.u32 %v4391_v31, %v4388_v29  ;;  %v11544_v47 = vld.sshfl [vmem:[#allocation2 + $0x40] sm:$0x33 pattern:$0x75316420]  ;;  %v704_v5 = vsel %vm13656_vm5, %v433_v35, %v703_v50  ;;  %v447_v17 = vrot.slane %v445_v49, 7  ;;  %v13993_v11 = vsel %vm4114_vm9, %v13913_v43, %v13953_v32 }
  0x9c   : > { %6195 = vmatpush1.bf16.msra.mxu0 %v13140_v12  ;;  %v1270_v53 = vcombine.high %v1268_v33, %v1268_v33  ;;  %v1278_v37 = vcombine.high %v11544_v47, %v11544_v47  ;;  %v1285_v56 = vrot.slane %v11544_v47, %v13673_v41  ;;  %v2317_v58 = vcombine.low %v1246_v15, %v1268_v33  ;;  %v13144_v12 = vld [vmem:[%s17131_s2 + $0xc0] sm:$0xff]   ;;  %v710_v35 = vld [vmem:[#allocation2 + $0x54] sm:$0xf] }
  0x9d   : > { %6196 = vmatprep.subr.bf16.mxu0 %v17140_v1  ;;  %v3171_v51 = vld [vmem:[#allocation3 + $0x38] sm:$0xf]  ;;  %v4393_v60 = vsel %vm4114_vm9, %v4334_v7, %v13959_v45  ;;  %v2318_v30 = vcombine.low %v1261_v6, %v1269_v34  ;;  %v442_v0 = vsel %vm13649_vm4, %v434_v36, %v441_v48  ;;  %705 = vst [vmem:[#allocation2 + $0x48] sm:$0xf] %v704_v5  ;;  %v448_v28 = vshll.u32 %v13943_v21, 16 }
  0x9e   : > { %v13966_v61 = vcombine.low %v3170_v27, %v3171_v51  ;;  %6038 = vmatprep.mubr.bf16.mxu0 %v4393_v60  ;;  %v13971_v2 = vrot.slane %v1278_v37, %v13673_v41  ;;  %v1293_v3 = vcombine.high %v1285_v56, %v1285_v56  ;;  %v2325_v4 = vrot.slane %v2317_v58, %v13687_v52 }
  0x9f   : > { %706 = vst [vmem:[#allocation2 + $0x4c] sm:$0xf] %v442_v0  ;;  %v2332_v7 = vrot.slane %v2318_v30, %v13687_v52  ;;  %v708_v44 = vsel %vm13711_vm7, %v443_v46, %v707_v59  ;;  %v13986_v63 = vld.sshfl [vmem:[#allocation2 + $0x44] sm:$0x1 pattern:$0x75316420]  ;;  %v450_v34 = vor.u32 %v448_v28, %v447_v17 }
  0xa0   : > { %v3369_v10 = vshll.u32 %v13966_v61, 16  ;;  %v3373_v8 = vshrl.u32 %v13966_v61, 16  ;;  %6197 = vmatpush1.bf16.msra.mxu0 %v13142_v39  ;;  %v2341_v14 = vcombine.low %v1270_v53, %v13971_v2  ;;  %v2342_v15 = vcombine.low %v1285_v56, %v1293_v3  ;;  %709 = vst [vmem:[#allocation2 + $0x50] sm:$0x1] %v708_v44  ;;  %v321_v30 = vld [vmem:[%s13636_s10 + $0x38] sm:$0xf] }
  0xa1   : > { %6198 = vmatprep.subr.bf16.mxu0 %v17140_v1  ;;  %6039 = vmatmul.mubr.bf16.gmra.mrb[12].mxu0 %v13934_v42  ;;  %v2333_v25 = vcombine.low %v2325_v4, %v2332_v7  ;;  %v1294_v43 = vcombine.high %v13971_v2, %v13971_v2  ;;  %v451_v29 = vrot.slane %v447_v17, 4  ;;  %v453_v31 = vshrl.u32 %v320_v9, 16  ;;  %v714_v0 = vld [vmem:[#allocation2 + $0x5c] sm:$0x1]  ;;  %v13149_v7 = vld [vmem:[%s17131_s2 + $0xd0] sm:$0xff]  }
  0xa2   : > { %v3371_v23 = vrot.slane %v3369_v10, 1  ;;  %v4497_v26 = vrot.slane %v3373_v8, 2  ;;  %v2349_v27 = vrot.slane %v2341_v14, %v13687_v52  ;;  %v2356_v54 = vrot.slane %v2342_v15, %v13687_v52 }
  0xa3   : > { %v4498_v6 = vrot.slane %v3369_v10, 3  ;;  %11593 = vst.sshfl [vmem:[#allocation3 + $0x3c] sm:$0x33 pattern:$0x75316420] %v2333_v25  ;;  %v455_v39 = vrot.slane %v453_v31, 7  ;;  %v711_v59 = vsel %vm13656_vm5, %v450_v34, %v710_v35 }
  0xa4   : > { %v3372_v42 = vsel %vm3320_vm8, %v13950_v22, %v3371_v23  ;;  %6199 = vmatpush1.bf16.msra.mxu0 %v13144_v12  ;;  %v2357_v33 = vcombine.low %v2349_v27, %v2356_v54  ;;  %v14006_v36 = vor.u32 %v3373_v8, %v3371_v23  ;;  %v1308_v22 = vrot.slane %v13986_v63, %v13673_v41  ;;  %v11546_v49 = vld.sshfl [vmem:[#allocation2 + $0x48] sm:$0x33 pattern:$0x75316420]  ;;  %v14022_v10 = vld [vmem:[%s13636_s10 + $0x3c] sm:$0xf] }
  0xa5   : > { %v4444_v55 = vshrl.u32 %v3372_v42, 16  ;;  %v4447_v50 = vshll.u32 %v3372_v42, 16  ;;  %6200 = vmatprep.subr.bf16.mxu0 %v17140_v1  ;;  %v456_v47 = vshll.u32 %v320_v9, 16  ;;  %v1316_v37 = vcombine.high %v11546_v49, %v11546_v49  ;;  %712 = vst [vmem:[#allocation2 + $0x54] sm:$0xf] %v711_v59 }
  0xa6   : > { %v11547_v21 = vld.sshfl [vmem:[#allocation2 + $0x4c] sm:$0x33 pattern:$0x75316420]  ;;  %v1323_v56 = vrot.slane %v11546_v49, %v13673_v41  ;;  %v14034_v63 = vor.u32 %v4498_v6, %v4497_v26  ;;  %v460_v23 = vrot.slane %v455_v39, 4  ;;  %v462_v42 = vshrl.u32 %v321_v30, 16 }
  0xa7   : > { %v4446_v48 = vrot.slane %v4444_v55, 2  ;;  %v4449_v46 = vrot.slane %v4447_v50, 3  ;;  %11594 = vst.sshfl [vmem:[#allocation3 + $0x40] sm:$0x33 pattern:$0x75316420] %v2357_v33  ;;  %v1340_v51 = vcombine.high %v11547_v21, %v11547_v21  ;;  %v1347_v53 = vrot.slane %v11547_v21, %v13673_v41 }
  0xa8   : > { %v458_v58 = vor.u32 %v456_v47, %v455_v39  ;;  %v11548_v60 = vld.sshfl [vmem:[#allocation2 + $0x50] sm:$0x1 pattern:$0x75316420]  ;;  %6201 = vmatpush1.bf16.msra.mxu0 %v13147_v19  ;;  %v1330_v8 = vrot.slane %v1316_v37, %v13673_v41  ;;  %v1331_v9 = vcombine.high %v1323_v56, %v1323_v56  ;;  %v2365_v44 = vcombine.low %v1294_v43, %v1323_v56  ;;  %v14039_v25 = vld [vmem:[%s13636_s10 + $0x40] sm:$0xf] }
  0xa9   : > { %v14015_v2 = vor.u32 %v4449_v46, %v4446_v48  ;;  %v14018_v3 = vrot.slane %v1340_v51, %v13673_v41  ;;  %v1355_v4 = vcombine.high %v1347_v53, %v1347_v53  ;;  %v1370_v5 = vrot.slane %v11548_v60, %v13673_v41  ;;  %6202 = vmatprep.subr.bf16.mxu0 %v17140_v1  ;;  %v717_v56 = vld [vmem:[#allocation2 + $0x60] sm:$0xf] }
  0xaa   : > { %v459_v12 = vsel %vm13649_vm4, %v451_v29, %v458_v58  ;;  %v3172_v15 = vld [vmem:[#allocation3 + $0x3c] sm:$0xf]  ;;  %v1332_v19 = vcombine.high %v1330_v8, %v1330_v8  ;;  %v2366_v27 = vcombine.low %v1308_v22, %v1330_v8  ;;  %v2373_v54 = vrot.slane %v2365_v44, %v13687_v52 }
  0xab   : > { %v4451_v14 = vsel %vm4114_vm9, %v13959_v45, %v14015_v2  ;;  %713 = vst [vmem:[#allocation2 + $0x58] sm:$0xf] %v459_v12  ;;  %v14036_v17 = vcombine.low %v1355_v4, %v1370_v5  ;;  %v2389_v28 = vcombine.low %v1331_v9, %v1347_v53  ;;  %v1356_v45 = vcombine.high %v14018_v3, %v14018_v3 }
  0xac   : > { %6046 = vmatprep.mubr.bf16.mxu0 %v4451_v14  ;;  %v465_v26 = vshll.u32 %v321_v30, 16  ;;  %v715_v6 = vsel %vm13711_vm7, %v460_v23, %v714_v0  ;;  %v2380_v29 = vrot.slane %v2366_v27, %v13687_v52  ;;  %v2390_v31 = vcombine.low %v1332_v19, %v14018_v3  ;;  %6203 = vmatpush1.bf16.msra.mxu0 %v13149_v7  ;;  %v11549_v47 = vld.sshfl [vmem:[#allocation2 + $0x54] sm:$0x33 pattern:$0x75316420] }
  0xad   : > { %6047 = vmatmul.mubr.bf16.gmra.mrb[16].mxu0 %v13993_v11  ;;  %v2397_v55 = vrot.slane %v2389_v28, %v13687_v52  ;;  %716 = vst [vmem:[#allocation2 + $0x5c] sm:$0x1] %v715_v6  ;;  %v470_v50 = vshrl.u32 %v14022_v10, 16  ;;  %v13151_v11 = vld [vmem:[%s17131_s2 + $0xd8] sm:$0xff]   ;;  %v2421_v34 = vrot.slane %v14036_v17, %v13687_v52  ;;  %v464_v35 = vrot.slane %v462_v42, 7  ;;  %6204 = vmatprep.subr.bf16.mxu0 %v17140_v1 }
  0xae   : > { %v3173_v43 = vld [vmem:[#allocation3 + $0x40] sm:$0xf]  ;;  %v473_v21 = vshll.u32 %v14022_v10, 16  ;;  %v2381_v22 = vcombine.low %v2373_v54, %v2380_v29  ;;  %v2404_v39 = vrot.slane %v2390_v31, %v13687_v52  ;;  %v479_v46 = vshrl.u32 %v14039_v25, 16  ;;  %v721_v6 = vld [vmem:[#allocation2 + $0x68] sm:$0x1] }
  0xaf   : > { %v14054_v33 = vcombine.low %v3172_v15, %v3173_v43  ;;  %v14061_v48 = vrot.slane %v470_v50, 7  ;;  %v1378_v53 = vcombine.high %v11549_v47, %v11549_v47  ;;  %v1385_v37 = vrot.slane %v11549_v47, %v13673_v41 }
  0xb0   : > { %v2405_v58 = vcombine.low %v2397_v55, %v2404_v39  ;;  %11595 = vst.sshfl [vmem:[#allocation3 + $0x44] sm:$0x33 pattern:$0x75316420] %v2381_v22  ;;  %v467_v60 = vor.u32 %v465_v26, %v464_v35  ;;  %v468_v30 = vrot.slane %v464_v35, 4  ;;  %v482_v0 = vshll.u32 %v14039_v25, 16  ;;  %6205 = vmatpush1.bf16.msra.mxu0 %v13151_v11 }
  0xb1   : > { %v3377_v49 = vshll.u32 %v14054_v33, 16  ;;  %v3381_v51 = vshrl.u32 %v14054_v33, 16  ;;  %v1392_v10 = vrot.slane %v1378_v53, %v13673_v41  ;;  %6206 = vmatprep.subr.bf16.mxu0 %v17140_v1  ;;  %v1393_v7 = vcombine.high %v1385_v37, %v1385_v37  ;;  %v14080_v25 = vld [vmem:[%s13636_s10 + $0x44] sm:$0xf]  ;;  %v724_v22 = vld [vmem:[#allocation2 + $0x6c] sm:$0xf] }
  0xb2   : > { %v11550_v59 = vld.sshfl [vmem:[#allocation2 + $0x58] sm:$0x33 pattern:$0x75316420]  ;;  %v2414_v9 = vcombine.low %v1356_v45, %v1385_v37  ;;  %v718_v44 = vsel %vm13656_vm5, %v467_v60, %v717_v56  ;;  %v4500_v14 = vsel %vm4114_vm9, %v13953_v32, %v14034_v63  ;;  %v475_v23 = vor.u32 %v473_v21, %v14061_v48 }
  0xb3   : > { %v3379_v3 = vrot.slane %v3377_v49, 1  ;;  %v4555_v4 = vrot.slane %v3381_v51, 2  ;;  %v4556_v5 = vrot.slane %v3377_v49, 3  ;;  %v1409_v8 = vrot.slane %v11550_v59, %v13673_v41  ;;  %719 = vst [vmem:[#allocation2 + $0x60] sm:$0xf] %v718_v44 }
  0xb4   : > { %11596 = vst.sshfl [vmem:[#allocation3 + $0x48] sm:$0x33 pattern:$0x75316420] %v2405_v58  ;;  %v1394_v15 = vcombine.high %v1392_v10, %v1392_v10  ;;  %v2428_v54 = vrot.slane %v2414_v9, %v13687_v52  ;;  %v1402_v26 = vcombine.high %v11550_v59, %v11550_v59  ;;  %v476_v21 = vsel %vm13649_vm4, %v468_v30, %v475_v23 }
  0xb5   : > { %v3380_v12 = vsel %vm3320_vm8, %v14006_v36, %v3379_v3  ;;  %v11551_v17 = vld.sshfl [vmem:[#allocation2 + $0x5c] sm:$0x1 pattern:$0x75316420]  ;;  %v2438_v28 = vcombine.low %v1393_v7, %v1409_v8  ;;  %v3383_v45 = vor.u32 %v3381_v51, %v3379_v3  ;;  %v1417_v36 = vcombine.high %v1409_v8, %v1409_v8  ;;  %720 = vst [vmem:[#allocation2 + $0x64] sm:$0xf] %v476_v21 }
  0xb6   : > { %v4502_v19 = vshrl.u32 %v3380_v12, 16  ;;  %v4505_v27 = vshll.u32 %v3380_v12, 16  ;;  %v2437_v42 = vcombine.low %v1392_v10, %v1394_v15  ;;  %v2429_v32 = vcombine.low %v2421_v34, %v2428_v54  ;;  %v14110_v12 = vld [vmem:[%s13636_s10 + $0x48] sm:$0xf] }
  0xb7   : > { %v2452_v31 = vrot.slane %v2438_v28, %v13687_v52  ;;  %v3174_v55 = vld [vmem:[#allocation3 + $0x44] sm:$0xf]  ;;  %v1416_v11 = vrot.slane %v1402_v26, %v13673_v41  ;;  %v1432_v35 = vrot.slane %v11551_v17, %v13673_v41  ;;  %v477_v47 = vrot.slane %v14061_v48, 4 }
  0xb8   : > { %v4504_v43 = vrot.slane %v4502_v19, 2  ;;  %v4507_v29 = vrot.slane %v4505_v27, 3  ;;  %v2445_v50 = vrot.slane %v2437_v42, %v13687_v52  ;;  %11597 = vst.sshfl [vmem:[#allocation3 + $0x4c] sm:$0x33 pattern:$0x75316420] %v2429_v32  ;;  %v14104_v9 = vor.u32 %v4556_v5, %v4555_v4 }
  0xb9   : > { %v481_v49 = vrot.slane %v479_v46, 7  ;;  %v487_v34 = vshrl.u32 %v14080_v25, 16  ;;  %v1418_v37 = vcombine.high %v1416_v11, %v1416_v11  ;;  %v2462_v56 = vcombine.low %v1417_v36, %v1432_v35 }
  0xba   : > { %v14089_v39 = vor.u32 %v4507_v29, %v4504_v43  ;;  %v2453_v53 = vcombine.low %v2445_v50, %v2452_v31  ;;  %v490_v58 = vshll.u32 %v14080_v25, 16  ;;  %v11552_v30 = vld.sshfl [vmem:[#allocation2 + $0x60] sm:$0x33 pattern:$0x75316420]  ;;  %v722_v48 = vsel %vm13711_vm7, %v477_v47, %v721_v6 }
  0xbb   : > { %v3175_v51 = vld [vmem:[#allocation3 + $0x48] sm:$0xf]  ;;  %v484_v3 = vor.u32 %v482_v0, %v481_v49  ;;  %v1440_v46 = vcombine.high %v11552_v30, %v11552_v30  ;;  %v1447_v10 = vrot.slane %v11552_v30, %v13673_v41  ;;  %v2461_v7 = vcombine.low %v1416_v11, %v1418_v37  ;;  %723 = vst [vmem:[#allocation2 + $0x68] sm:$0x1] %v722_v48 }
  0xbc   : > { %v4509_v59 = vsel %vm4114_vm9, %v14015_v2, %v14089_v39  ;;  %v14097_v60 = vcombine.low %v3174_v55, %v3175_v51  ;;  %11598 = vst.sshfl [vmem:[#allocation3 + $0x50] sm:$0x33 pattern:$0x75316420] %v2453_v53  ;;  %v2476_v8 = vrot.slane %v2462_v56, %v13687_v52  ;;  %v14114_v25 = vrot.slane %v487_v34, 7  ;;  %v13154_v31 = vld [vmem:[%s17131_s2 + $0xe0] sm:$0xff]  }
  0xbd   : > { %6054 = vmatprep.mubr.bf16.mxu0 %v4509_v59  ;;  %v725_v0 = vsel %vm13656_vm5, %v484_v3, %v724_v22  ;;  %v1454_v15 = vrot.slane %v1440_v46, %v13673_v41  ;;  %v1455_v17 = vcombine.high %v1447_v10, %v1447_v10  ;;  %v2469_v23 = vrot.slane %v2461_v7, %v13687_v52  ;;  %v11553_v26 = vld.sshfl [vmem:[#allocation2 + $0x64] sm:$0x33 pattern:$0x75316420] }
  0xbe   : > { %6055 = vmatmul.mubr.bf16.gmra.mrb[20].mxu0 %v4500_v14  ;;  %v3385_v2 = vshll.u32 %v14097_v60, 16  ;;  %v3389_v44 = vshrl.u32 %v14097_v60, 16  ;;  %726 = vst [vmem:[#allocation2 + $0x6c] sm:$0xf] %v725_v0  ;;  %v485_v4 = vrot.slane %v481_v49, 4  ;;  %v492_v36 = vor.u32 %v490_v58, %v14114_v25 }
  0xbf   : > { %v3176_v5 = vld [vmem:[#allocation3 + $0x4c] sm:$0xf]  ;;  %v1456_v54 = vcombine.high %v1454_v15, %v1454_v15  ;;  %v2477_v28 = vcombine.low %v2469_v23, %v2476_v8  ;;  %v2485_v42 = vcombine.low %v1447_v10, %v1455_v17  ;;  %v4558_v43 = vsel %vm4114_vm9, %v14034_v63, %v14104_v9  ;;  %6207 = vmatpush1.bf16.msra.mxu0 %v13154_v31 }
  0xc0   : > { %v3387_v14 = vrot.slane %v3385_v2, 1  ;;  %v4613_v19 = vrot.slane %v3389_v44, 2  ;;  %v4614_v27 = vrot.slane %v3385_v2, 3  ;;  %v1464_v29 = vcombine.high %v11553_v26, %v11553_v26  ;;  %6208 = vmatprep.subr.bf16.mxu0 %v17140_v1 }
  0xc1   : > { %v496_v32 = vshrl.u32 %v14110_v12, 16  ;;  %v2486_v11 = vcombine.low %v1454_v15, %v1456_v54  ;;  %v2493_v35 = vrot.slane %v2485_v42, %v13687_v52  ;;  %11599 = vst.sshfl [vmem:[#allocation3 + $0x54] sm:$0x33 pattern:$0x75316420] %v2477_v28  ;;  %v1471_v47 = vrot.slane %v11553_v26, %v13673_v41  ;;  %v13156_v28 = vld [vmem:[%s17131_s2 + $0xe8] sm:$0xff]  }
  0xc2   : > { %v3388_v6 = vsel %vm3320_vm8, %v3383_v45, %v3387_v14  ;;  %v3391_v22 = vor.u32 %v3389_v44, %v3387_v14  ;;  %v11554_v45 = vld.sshfl [vmem:[#allocation2 + $0x68] sm:$0x1 pattern:$0x75316420]  ;;  %v1478_v63 = vrot.slane %v1464_v29, %v13673_v41  ;;  %v493_v49 = vsel %vm13649_vm4, %v485_v4, %v492_v36  ;;  %v728_v54 = vld [vmem:[#allocation2 + $0x74] sm:$0x1] }
  0xc3   : > { %v4560_v55 = vshrl.u32 %v3388_v6, 16  ;;  %v4563_v50 = vshll.u32 %v3388_v6, 16  ;;  %v3177_v21 = vld [vmem:[#allocation3 + $0x50] sm:$0xf]  ;;  %v2500_v37 = vrot.slane %v2486_v11, %v13687_v52  ;;  %727 = vst [vmem:[#allocation2 + $0x70] sm:$0xf] %v493_v49  ;;  %v14134_v56 = vor.u32 %v4614_v27, %v4613_v19  ;;  %6209 = vmatpush1.bf16.msra.mxu0 %v13156_v28 }
  0xc4   : > { %v14130_v53 = vcombine.low %v3176_v5, %v3177_v21  ;;  %v1479_v59 = vcombine.high %v1471_v47, %v1471_v47  ;;  %v1480_v30 = vcombine.high %v1478_v63, %v1478_v63  ;;  %v1494_v3 = vrot.slane %v11554_v45, %v13673_v41  ;;  %v326_v36 = vld [vmem:[%s13636_s10 + $0x4c] sm:$0xf]  ;;  %v731_v11 = vld [vmem:[#allocation2 + $0x78] sm:$0xf]  ;;  %v14160_v45 = vld [vmem:[%s13636_s10 + $0x50] sm:$0xf]  ;;  %6210 = vmatprep.subr.bf16.mxu0 %v17140_v1 }
  0xc5   : > { %v4562_v34 = vrot.slane %v4560_v55, 2  ;;  %v4565_v51 = vrot.slane %v4563_v50, 3  ;;  %v11555_v58 = vld.sshfl [vmem:[#allocation2 + $0x6c] sm:$0x33 pattern:$0x75316420]  ;;  %v2501_v10 = vcombine.low %v2493_v35, %v2500_v37 }
  0xc6   : > { %v3393_v46 = vshll.u32 %v14130_v53, 16  ;;  %v3397_v7 = vshrl.u32 %v14130_v53, 16  ;;  %v1502_v8 = vcombine.high %v11555_v58, %v11555_v58  ;;  %v1509_v2 = vrot.slane %v11555_v58, %v13673_v41 }
  0xc7   : > { %v4566_v48 = vor.u32 %v4565_v51, %v4562_v34  ;;  %v2509_v44 = vcombine.low %v1471_v47, %v1479_v59  ;;  %v2510_v0 = vcombine.low %v1478_v63, %v1480_v30  ;;  %11600 = vst.sshfl [vmem:[#allocation3 + $0x58] sm:$0x33 pattern:$0x75316420] %v2501_v10  ;;  %v494_v14 = vrot.slane %v14114_v25, 4 }
  0xc8   : > { %v3395_v17 = vrot.slane %v3393_v46, 1  ;;  %v4671_v23 = vrot.slane %v3397_v7, 2  ;;  %v1516_v19 = vrot.slane %v1502_v8, %v13673_v41  ;;  %v1517_v27 = vcombine.high %v1509_v2, %v1509_v2  ;;  %v3178_v31 = vld [vmem:[#allocation3 + $0x54] sm:$0xf] }
  0xc9   : > { %v4567_v15 = vsel %vm4114_vm9, %v14089_v39, %v4566_v48  ;;  %v2517_v4 = vrot.slane %v2509_v44, %v13687_v52  ;;  %v2524_v5 = vrot.slane %v2510_v0, %v13687_v52  ;;  %v4616_v25 = vsel %vm4114_vm9, %v14104_v9, %v14134_v56  ;;  %v735_v44 = vld [vmem:[#allocation2 + $0x80] sm:$0x1] }
  0xca   : > { %6062 = vmatprep.mubr.bf16.mxu0 %v4567_v15  ;;  %v3396_v39 = vsel %vm3320_vm8, %v3391_v22, %v3395_v17  ;;  %v4672_v42 = vrot.slane %v3393_v46, 3  ;;  %v14153_v26 = vrot.slane %v496_v32, 7  ;;  %v2533_v50 = vcombine.low %v1494_v3, %v1516_v19  ;;  %v11556_v35 = vld.sshfl [vmem:[#allocation2 + $0x70] sm:$0x33 pattern:$0x75316420] }
  0xcb   : > { %6063 = vmatmul.mubr.bf16.gmra.mrb[24].mxu0 %v4558_v43  ;;  %v4618_v6 = vshrl.u32 %v3396_v39, 16  ;;  %v4621_v29 = vshll.u32 %v3396_v39, 16  ;;  %v2525_v55 = vcombine.low %v2517_v4, %v2524_v5  ;;  %v3399_v43 = vor.u32 %v3397_v7, %v3395_v17 }
  0xcc   : > { %v2534_v21 = vcombine.low %v1509_v2, %v1517_v27  ;;  %v499_v22 = vshll.u32 %v14110_v12, 16  ;;  %v729_v9 = vsel %vm13711_vm7, %v494_v14, %v728_v54  ;;  %v2541_v63 = vrot.slane %v2533_v50, %v13687_v52 }
  0xcd   : > { %v4620_v32 = vrot.slane %v4618_v6, 2  ;;  %v4623_v47 = vrot.slane %v4621_v29, 3  ;;  %11601 = vst.sshfl [vmem:[#allocation3 + $0x5c] sm:$0x33 pattern:$0x75316420] %v2525_v55  ;;  %v1518_v49 = vcombine.high %v1516_v19, %v1516_v19  ;;  %v1526_v37 = vcombine.high %v11556_v35, %v11556_v35 }
  0xce   : > { %730 = vst [vmem:[#allocation2 + $0x74] sm:$0x1] %v729_v9  ;;  %v2548_v34 = vrot.slane %v2534_v21, %v13687_v52  ;;  %v501_v51 = vor.u32 %v499_v22, %v14153_v26  ;;  %v1533_v12 = vrot.slane %v11556_v35, %v13673_v41  ;;  %v3179_v59 = vld [vmem:[#allocation3 + $0x58] sm:$0xf]  ;;  %v502_v30 = vrot.slane %v14153_v26, 4 }
  0xcf   : > { %v14167_v58 = vor.u32 %v4623_v47, %v4620_v32  ;;  %v504_v3 = vshrl.u32 %v326_v36, 16  ;;  %v507_v46 = vshll.u32 %v326_v36, 16  ;;  %v14170_v10 = vcombine.low %v3178_v31, %v3179_v59  ;;  %v13158_v19 = vld [vmem:[%s17131_s2 + $0xf0] sm:$0xff]   ;;  %v738_v21 = vld [vmem:[#allocation2 + $0x84] sm:$0xf] }
  0xd0   : > { %v2549_v7 = vcombine.low %v2541_v63, %v2548_v34  ;;  %v732_v8 = vsel %vm13656_vm5, %v501_v51, %v731_v11  ;;  %v1540_v2 = vrot.slane %v1526_v37, %v13673_v41  ;;  %v1541_v15 = vcombine.high %v1533_v12, %v1533_v12  ;;  %v328_v55 = vld [vmem:[%s13636_s10 + $0x54] sm:$0xf]  ;;  %6211 = vmatpush1.bf16.msra.mxu0 %v13158_v19 }
  0xd1   : > { %v4625_v0 = vsel %vm4114_vm9, %v4566_v48, %v14167_v58  ;;  %733 = vst [vmem:[#allocation2 + $0x78] sm:$0xf] %v732_v8  ;;  %v506_v17 = vrot.slane %v504_v3, 7  ;;  %v513_v14 = vshrl.u32 %v14160_v45, 16  ;;  %v3401_v27 = vshll.u32 %v14170_v10, 16  ;;  %6212 = vmatprep.subr.bf16.mxu0 %v17140_v1 }
  0xd2   : > { %6070 = vmatprep.mubr.bf16.mxu0 %v4625_v0  ;;  %v14182_v4 = vor.u32 %v4672_v42, %v4671_v23  ;;  %11602 = vst.sshfl [vmem:[#allocation3 + $0x60] sm:$0x33 pattern:$0x75316420] %v2549_v7  ;;  %v3405_v5 = vshrl.u32 %v14170_v10, 16  ;;  %v2557_v54 = vcombine.low %v1518_v49, %v1540_v2  ;;  %v2558_v48 = vcombine.low %v1533_v12, %v1541_v15  ;;  %v13159_v15 = vld [vmem:[%s17131_s2 + $0xf8] sm:$0xff]  }
  0xd3   : > { %6071 = vmatmul.mubr.bf16.gmra.mrb[28].mxu0 %v4616_v25  ;;  %v509_v28 = vor.u32 %v507_v46, %v506_v17  ;;  %v511_v39 = vrot.slane %v506_v17, 4  ;;  %v14185_v26 = vrot.slane %v513_v14, 7  ;;  %v3403_v36 = vrot.slane %v3401_v27, 1 }
  0xd4   : > { %v4729_v6 = vrot.slane %v3405_v5, 2  ;;  %v4730_v29 = vrot.slane %v3401_v27, 3  ;;  %v2565_v31 = vrot.slane %v2557_v54, %v13687_v52  ;;  %v3180_v50 = vld [vmem:[#allocation3 + $0x5c] sm:$0xf]  ;;  %v2572_v42 = vrot.slane %v2558_v48, %v13687_v52  ;;  %6213 = vmatpush1.bf16.msra.mxu0 %v13159_v15 }
  0xd5   : > { %v11557_v23 = vld.sshfl [vmem:[#allocation2 + $0x74] sm:$0x1 pattern:$0x75316420]  ;;  %v510_v11 = vsel %vm13649_vm4, %v502_v30, %v509_v28  ;;  %v516_v25 = vshll.u32 %v14160_v45, 16  ;;  %v736_v35 = vsel %vm13711_vm7, %v511_v39, %v735_v44  ;;  %v3404_v22 = vsel %vm3320_vm8, %v3399_v43, %v3403_v36  ;;  %6382 = vmatprep.subr.bf16.mxu0 %v17140_v1 }
  0xd6   : > { %v4674_v9 = vsel %vm4114_vm9, %v14134_v56, %v14182_v4  ;;  %v3407_v32 = vor.u32 %v3405_v5, %v3403_v36  ;;  %v1542_v47 = vcombine.high %v1540_v2, %v1540_v2  ;;  %734 = vst [vmem:[#allocation2 + $0x7c] sm:$0xf] %v510_v11  ;;  %737 = vst [vmem:[#allocation2 + $0x80] sm:$0x1] %v736_v35  ;;  %v4676_v63 = vshrl.u32 %v3404_v22, 16 }
  0xd7   : > { %v4679_v49 = vshll.u32 %v3404_v22, 16  ;;  %v2573_v34 = vcombine.low %v2565_v31, %v2572_v42  ;;  %v518_v45 = vor.u32 %v516_v25, %v14185_v26  ;;  %v14201_v51 = vor.u32 %v4730_v29, %v4729_v6  ;;  %v742_v5 = vld [vmem:[#allocation2 + $0x8c] sm:$0x1] }
  0xd8   : > { %v11558_v37 = vld.sshfl [vmem:[#allocation2 + $0x78] sm:$0x33 pattern:$0x75316420]  ;;  %v1556_v12 = vrot.slane %v11557_v23, %v13673_v41  ;;  %v519_v43 = vrot.slane %v14185_v26, 4  ;;  %v521_v59 = vshrl.u32 %v328_v55, 16 }
  0xd9   : > { %v4678_v30 = vrot.slane %v4676_v63, 2  ;;  %v4681_v3 = vrot.slane %v4679_v49, 3  ;;  %v3181_v56 = vld [vmem:[#allocation3 + $0x60] sm:$0xf]  ;;  %v1564_v46 = vcombine.high %v11558_v37, %v11558_v37  ;;  %v1571_v7 = vrot.slane %v11558_v37, %v13673_v41 }
  0xda   : > { %11603 = vst.sshfl [vmem:[#allocation3 + $0x64] sm:$0x33 pattern:$0x75316420] %v2573_v34  ;;  %v14206_v8 = vcombine.low %v3180_v50, %v3181_v56  ;;  %v739_v2 = vsel %vm13656_vm5, %v518_v45, %v738_v21  ;;  %v523_v44 = vrot.slane %v521_v59, 7  ;;  %v524_v0 = vshll.u32 %v328_v55, 16 }
  0xdb   : > { %v14213_v17 = vor.u32 %v4681_v3, %v4678_v30  ;;  %v1578_v14 = vrot.slane %v1564_v46, %v13673_v41  ;;  %v2581_v19 = vcombine.low %v1542_v47, %v1571_v7  ;;  %740 = vst [vmem:[#allocation2 + $0x84] sm:$0xf] %v739_v2  ;;  %v1579_v27 = vcombine.high %v1571_v7, %v1571_v7  ;;  %v329_v49 = vld [vmem:[%s13636_s10 + $0x58] sm:$0xf]  ;;  %v330_v56 = vld [vmem:[%s13636_s10 + $0x5c] sm:$0xf] }
  0xdc   : > { %v3409_v54 = vshll.u32 %v14206_v8, 16  ;;  %v3413_v48 = vshrl.u32 %v14206_v8, 16  ;;  %v526_v28 = vor.u32 %v524_v0, %v523_v44  ;;  %v528_v39 = vrot.slane %v523_v44, 4 }
  0xdd   : > { %v4683_v26 = vsel %vm4114_vm9, %v14167_v58, %v14213_v17  ;;  %v2582_v36 = vcombine.low %v1556_v12, %v1578_v14  ;;  %v2589_v6 = vrot.slane %v2581_v19, %v13687_v52  ;;  %v11559_v29 = vld.sshfl [vmem:[#allocation2 + $0x7c] sm:$0x33 pattern:$0x75316420]  ;;  %v1580_v31 = vcombine.high %v1578_v14, %v1578_v14 }
  0xde   : > { %6078 = vmatprep.mubr.bf16.mxu0 %v4683_v26  ;;  %v3411_v55 = vrot.slane %v3409_v54, 1  ;;  %v4787_v50 = vrot.slane %v3413_v48, 2  ;;  %v4788_v23 = vrot.slane %v3409_v54, 3  ;;  %v1588_v42 = vcombine.high %v11559_v29, %v11559_v29 }
  0xdf   : > { %6079 = vmatmul.mubr.bf16.gmra.mrb[32].mxu0 %v4674_v9  ;;  %v2596_v11 = vrot.slane %v2582_v36, %v13687_v52  ;;  %v11560_v25 = vld.sshfl [vmem:[#allocation2 + $0x80] sm:$0x1 pattern:$0x75316420]  ;;  %v1595_v35 = vrot.slane %v11559_v29, %v13673_v41  ;;  %v527_v58 = vsel %vm13649_vm4, %v519_v43, %v526_v28  ;;  %v743_v21 = vsel %vm13711_vm7, %v528_v39, %v742_v5 }
  0xe0   : > { %v3412_v22 = vsel %vm3320_vm8, %v3407_v32, %v3411_v55  ;;  %v4732_v47 = vsel %vm4114_vm9, %v14182_v4, %v14201_v51  ;;  %v14233_v63 = vor.u32 %v3413_v48, %v3411_v55  ;;  %v1602_v9 = vrot.slane %v1588_v42, %v13673_v41  ;;  %741 = vst [vmem:[#allocation2 + $0x88] sm:$0xf] %v527_v58 }
  0xe1   : > { %744 = vst [vmem:[#allocation2 + $0x8c] sm:$0x1] %v743_v21  ;;  %v4734_v34 = vshrl.u32 %v3412_v22, 16  ;;  %v4737_v45 = vshll.u32 %v3412_v22, 16  ;;  %v2597_v37 = vcombine.low %v2589_v6, %v2596_v11  ;;  %v1603_v12 = vcombine.high %v1595_v35, %v1595_v35  ;;  %v3182_v28 = vld [vmem:[#allocation3 + $0x64] sm:$0xf] }
  0xe2   : > { %v14237_v43 = vor.u32 %v4788_v23, %v4787_v50  ;;  %v11561_v59 = vld.sshfl [vmem:[#allocation2 + $0x84] sm:$0x33 pattern:$0x75316420]  ;;  %v1604_v32 = vcombine.high %v1602_v9, %v1602_v9  ;;  %v1618_v30 = vrot.slane %v11560_v25, %v13673_v41  ;;  %v2605_v3 = vcombine.low %v1579_v27, %v1595_v35  ;;  %v745_v6 = vld [vmem:[#allocation2 + $0x90] sm:$0xf] }
  0xe3   : > { %v4736_v4 = vrot.slane %v4734_v34, 2  ;;  %v4739_v46 = vrot.slane %v4737_v45, 3  ;;  %11604 = vst.sshfl [vmem:[#allocation3 + $0x68] sm:$0x33 pattern:$0x75316420] %v2597_v37  ;;  %v1633_v7 = vrot.slane %v11561_v59, %v13673_v41  ;;  %v2606_v2 = vcombine.low %v1580_v31, %v1602_v9 }
  0xe4   : > { %v2613_v44 = vrot.slane %v2605_v3, %v13687_v52  ;;  %v2629_v0 = vcombine.low %v1603_v12, %v1618_v30  ;;  %v1626_v15 = vcombine.high %v11561_v59, %v11561_v59  ;;  %v530_v14 = vshrl.u32 %v329_v49, 16  ;;  %v332_v3 = vld [vmem:[%s13636_s10 + $0x64] sm:$0xf] }
  0xe5   : > { %v14243_v19 = vor.u32 %v4739_v46, %v4736_v4  ;;  %v2620_v5 = vrot.slane %v2606_v2, %v13687_v52  ;;  %v2630_v54 = vcombine.low %v1604_v32, %v1633_v7  ;;  %v1641_v48 = vcombine.high %v1633_v7, %v1633_v7 }
  0xe6   : > { %v2637_v27 = vrot.slane %v2629_v0, %v13687_v52  ;;  %v1640_v39 = vrot.slane %v1626_v15, %v13673_v41  ;;  %v532_v26 = vrot.slane %v530_v14, 7  ;;  %v533_v36 = vshll.u32 %v329_v49, 16  ;;  %v331_v49 = vld [vmem:[%s13636_s10 + $0x60] sm:$0xf]  ;;  %v749_v0 = vld [vmem:[#allocation2 + $0x98] sm:$0x1] }
  0xe7   : > { %v4741_v29 = vsel %vm4114_vm9, %v14213_v17, %v14243_v19  ;;  %v2621_v31 = vcombine.low %v2613_v44, %v2620_v5  ;;  %v2644_v55 = vrot.slane %v2630_v54, %v13687_v52  ;;  %v11562_v50 = vld.sshfl [vmem:[#allocation2 + $0x88] sm:$0x33 pattern:$0x75316420]  ;;  %v538_v23 = vshrl.u32 %v330_v56, 16 }
  0xe8   : > { %6086 = vmatprep.mubr.bf16.mxu0 %v4741_v29  ;;  %v11563_v42 = vld.sshfl [vmem:[#allocation2 + $0x8c] sm:$0x1 pattern:$0x75316420]  ;;  %v1642_v11 = vcombine.high %v1640_v39, %v1640_v39  ;;  %v1650_v25 = vcombine.high %v11562_v50, %v11562_v50  ;;  %v1657_v35 = vrot.slane %v11562_v50, %v13673_v41  ;;  %v535_v58 = vor.u32 %v533_v36, %v532_v26 }
  0xe9   : > { %6087 = vmatmul.mubr.bf16.gmra.mrb[36].mxu0 %v4732_v47  ;;  %v2645_v21 = vcombine.low %v2637_v27, %v2644_v55  ;;  %11605 = vst.sshfl [vmem:[#allocation3 + $0x6c] sm:$0x33 pattern:$0x75316420] %v2621_v31  ;;  %v1680_v22 = vrot.slane %v11563_v42, %v13673_v41  ;;  %v536_v17 = vrot.slane %v532_v26, 4  ;;  %v540_v9 = vrot.slane %v538_v23, 7 }
  0xea   : > { %v3183_v34 = vld [vmem:[#allocation3 + $0x68] sm:$0xf]  ;;  %v1664_v45 = vrot.slane %v1650_v25, %v13673_v41  ;;  %v1665_v37 = vcombine.high %v1657_v35, %v1657_v35  ;;  %v2653_v12 = vcombine.low %v1640_v39, %v1642_v11  ;;  %v2654_v59 = vcombine.low %v1641_v48, %v1657_v35  ;;  %v752_v42 = vld [vmem:[#allocation2 + $0x9c] sm:$0xf] }
  0xeb   : > { %v14256_v32 = vcombine.low %v3182_v28, %v3183_v34  ;;  %11606 = vst.sshfl [vmem:[#allocation3 + $0x70] sm:$0x33 pattern:$0x75316420] %v2645_v21  ;;  %v541_v30 = vshll.u32 %v330_v56, 16  ;;  %v746_v47 = vsel %vm13656_vm5, %v535_v58, %v745_v6  ;;  %v545_v4 = vrot.slane %v540_v9, 4 }
  0xec   : > { %v1666_v46 = vcombine.high %v1664_v45, %v1664_v45  ;;  %v2661_v7 = vrot.slane %v2653_v12, %v13687_v52  ;;  %v2668_v2 = vrot.slane %v2654_v59, %v13687_v52  ;;  %v2678_v44 = vcombine.low %v1665_v37, %v1680_v22  ;;  %747 = vst [vmem:[#allocation2 + $0x90] sm:$0xf] %v746_v47 }
  0xed   : > { %v3417_v15 = vshll.u32 %v14256_v32, 16  ;;  %v3421_v14 = vshrl.u32 %v14256_v32, 16  ;;  %v543_v5 = vor.u32 %v541_v30, %v540_v9  ;;  %v547_v54 = vshrl.u32 %v331_v49, 16 }
  0xee   : > { %v2669_v56 = vcombine.low %v2661_v7, %v2668_v2  ;;  %v2677_v48 = vcombine.low %v1664_v45, %v1666_v46  ;;  %v2692_v28 = vrot.slane %v2678_v44, %v13687_v52  ;;  %v550_v27 = vshll.u32 %v331_v49, 16 }
  0xef   : > { %v3419_v39 = vrot.slane %v3417_v15, 1  ;;  %v4845_v26 = vrot.slane %v3421_v14, 2  ;;  %v4846_v36 = vrot.slane %v3417_v15, 3  ;;  %v544_v6 = vsel %vm13649_vm4, %v536_v17, %v543_v5 }
  0xf0   : > { %v4790_v29 = vsel %vm4114_vm9, %v14201_v51, %v14237_v43  ;;  %v3184_v31 = vld [vmem:[#allocation3 + $0x6c] sm:$0xf]  ;;  %v2685_v55 = vrot.slane %v2677_v48, %v13687_v52  ;;  %11607 = vst.sshfl [vmem:[#allocation3 + $0x74] sm:$0x33 pattern:$0x75316420] %v2669_v56  ;;  %v750_v58 = vsel %vm13711_vm7, %v545_v4, %v749_v0 }
  0xf1   : > { %748 = vst [vmem:[#allocation2 + $0x94] sm:$0xf] %v544_v6  ;;  %v549_v50 = vrot.slane %v547_v54, 7  ;;  %v555_v23 = vshrl.u32 %v332_v3, 16  ;;  %v3420_v11 = vsel %vm3320_vm8, %v14233_v63, %v3419_v39  ;;  %v3423_v25 = vor.u32 %v3421_v14, %v3419_v39  ;;  %751 = vst [vmem:[#allocation2 + $0x98] sm:$0x1] %v750_v58 }
  0xf2   : > { %v558_v35 = vshll.u32 %v332_v3, 16  ;;  %v4792_v21 = vshrl.u32 %v3420_v11, 16  ;;  %v4795_v22 = vshll.u32 %v3420_v11, 16  ;;  %v3185_v51 = vld [vmem:[#allocation3 + $0x70] sm:$0xf]  ;;  %v2693_v17 = vcombine.low %v2685_v55, %v2692_v28 }
  0xf3   : > { %v552_v9 = vor.u32 %v550_v27, %v549_v50  ;;  %v14276_v49 = vcombine.low %v3184_v31, %v3185_v51  ;;  %v14278_v34 = vor.u32 %v4846_v36, %v4845_v26  ;;  %v11564_v45 = vld.sshfl [vmem:[#allocation2 + $0x90] sm:$0x33 pattern:$0x75316420]  ;;  %v553_v37 = vrot.slane %v549_v50, 4 }
  0xf4   : > { %v14280_v12 = vrot.slane %v555_v23, 7  ;;  %v4794_v63 = vrot.slane %v4792_v21, 2  ;;  %v4797_v59 = vrot.slane %v4795_v22, 3  ;;  %v1688_v30 = vcombine.high %v11564_v45, %v11564_v45  ;;  %v14284_v3 = vld [vmem:[%s13636_s10 + $0x68] sm:$0xf] }
  0xf5   : > { %11608 = vst.sshfl [vmem:[#allocation3 + $0x78] sm:$0x33 pattern:$0x75316420] %v2693_v17  ;;  %v1695_v47 = vrot.slane %v11564_v45, %v13673_v41  ;;  %v3425_v4 = vshll.u32 %v14276_v49, 16  ;;  %v3429_v46 = vshrl.u32 %v14276_v49, 16  ;;  %v753_v2 = vsel %vm13656_vm5, %v552_v9, %v752_v42 }
  0xf6   : > { %v560_v7 = vor.u32 %v558_v35, %v14280_v12  ;;  %v4798_v44 = vor.u32 %v4797_v59, %v4794_v63  ;;  %v1702_v0 = vrot.slane %v1688_v30, %v13673_v41  ;;  %754 = vst [vmem:[#allocation2 + $0x9c] sm:$0xf] %v753_v2  ;;  %v562_v14 = vrot.slane %v14280_v12, 4 }
  0xf7   : > { %v1703_v15 = vcombine.high %v1695_v47, %v1695_v47  ;;  %v3427_v5 = vrot.slane %v3425_v4, 1  ;;  %v4903_v54 = vrot.slane %v3429_v46, 2  ;;  %v4904_v56 = vrot.slane %v3425_v4, 3  ;;  %v3186_v39 = vld [vmem:[#allocation3 + $0x74] sm:$0xf] }
  0xf8   : > { %v561_v48 = vsel %vm13649_vm4, %v553_v37, %v560_v7  ;;  %v4799_v28 = vsel %vm4114_vm9, %v14243_v19, %v4798_v44  ;;  %v4848_v27 = vsel %vm4114_vm9, %v14237_v43, %v14278_v34  ;;  %v11565_v26 = vld.sshfl [vmem:[#allocation2 + $0x94] sm:$0x33 pattern:$0x75316420]  ;;  %v1704_v36 = vcombine.high %v1702_v0, %v1702_v0 }
  0xf9   : > { %v2701_v6 = vcombine.low %v1695_v47, %v1703_v15  ;;  %755 = vst [vmem:[#allocation2 + $0xa0] sm:$0xf] %v561_v48  ;;  %6094 = vmatprep.mubr.bf16.mxu0 %v4799_v28  ;;  %v3428_v31 = vsel %vm3320_vm8, %v3423_v25, %v3427_v5  ;;  %v3431_v55 = vor.u32 %v3429_v46, %v3427_v5  ;;  %v11566_v23 = vld.sshfl [vmem:[#allocation2 + $0x98] sm:$0x1 pattern:$0x75316420] }
  0xfa   : > { %v1712_v50 = vcombine.high %v11565_v26, %v11565_v26  ;;  %v564_v42 = vshrl.u32 %v14284_v3, 16  ;;  %6095 = vmatmul.mubr.bf16.gmra.mrb[40].mxu0 %v4790_v29  ;;  %v4850_v11 = vshrl.u32 %v3428_v31, 16  ;;  %v4853_v19 = vshll.u32 %v3428_v31, 16 }
  0xfb   : > { %v1719_v35 = vrot.slane %v11565_v26, %v13673_v41  ;;  %v2702_v58 = vcombine.low %v1702_v0, %v1704_v36  ;;  %v14303_v21 = vor.u32 %v4904_v56, %v4903_v54  ;;  %v2709_v51 = vrot.slane %v2701_v6, %v13687_v52 }
  0xfc   : > { %v3187_v43 = vld [vmem:[#allocation3 + $0x78] sm:$0xf]  ;;  %v1726_v22 = vrot.slane %v1712_v50, %v13673_v41  ;;  %v1742_v25 = vrot.slane %v11566_v23, %v13673_v41  ;;  %v4852_v17 = vrot.slane %v4850_v11, 2  ;;  %v4855_v9 = vrot.slane %v4853_v19, 3 }
  0xfd   : > { %v14308_v45 = vcombine.low %v3186_v39, %v3187_v43  ;;  %v1727_v37 = vcombine.high %v1719_v35, %v1719_v35  ;;  %v2716_v63 = vrot.slane %v2702_v58, %v13687_v52  ;;  %v11567_v59 = vld.sshfl [vmem:[#allocation2 + $0x9c] sm:$0x33 pattern:$0x75316420]  ;;  %v14311_v30 = vrot.slane %v564_v42, 7 }
  0xfe   : > { %v1728_v29 = vcombine.high %v1726_v22, %v1726_v22  ;;  %v567_v47 = vshll.u32 %v14284_v3, 16  ;;  %v4856_v4 = vor.u32 %v4855_v9, %v4852_v17  ;;  %v1750_v54 = vcombine.high %v11567_v59, %v11567_v59  ;;  %v334_v42 = vld [vmem:[%s13636_s10 + $0x6c] sm:$0xf]  ;;  %v756_v58 = vld [vmem:[#allocation2 + $0xa4] sm:$0x1] }
  0xff   : > { %v3433_v46 = vshll.u32 %v14308_v45, 16  ;;  %v2725_v7 = vcombine.low %v1719_v35, %v1727_v37  ;;  %v3437_v2 = vshrl.u32 %v14308_v45, 16  ;;  %v2717_v0 = vcombine.low %v2709_v51, %v2716_v63  ;;  %v759_v9 = vld [vmem:[#allocation2 + $0xa8] sm:$0xf]  ;;  %v335_v63 = vld [vmem:[%s13636_s10 + $0x70] sm:$0xf] }
 0x100   : > { %v2726_v15 = vcombine.low %v1726_v22, %v1728_v29  ;;  %v11568_v5 = vld.sshfl [vmem:[#allocation2 + $0xa0] sm:$0x33 pattern:$0x75316420]  ;;  %v1757_v56 = vrot.slane %v11567_v59, %v13673_v41  ;;  %v4857_v48 = vsel %vm4114_vm9, %v4798_v44, %v4856_v4  ;;  %v1764_v6 = vrot.slane %v1750_v54, %v13673_v41 }
 0x101   : > { %v3435_v28 = vrot.slane %v3433_v46, 1  ;;  %v2733_v39 = vrot.slane %v2725_v7, %v13687_v52  ;;  %v14319_v26 = vrot.slane %v3437_v2, 2  ;;  %6102 = vmatprep.mubr.bf16.mxu0 %v4857_v48  ;;  %11609 = vst.sshfl [vmem:[#allocation3 + $0x7c] sm:$0x33 pattern:$0x75316420] %v2717_v0  ;;  %v1774_v23 = vcombine.high %v11568_v5, %v11568_v5 }
 0x102   : > { %v2740_v3 = vrot.slane %v2726_v15, %v13687_v52  ;;  %v14322_v36 = vrot.slane %v3433_v46, 3  ;;  %v1765_v31 = vcombine.high %v1757_v56, %v1757_v56  ;;  %6103 = vmatmul.mubr.bf16.gmra.mrb[44].mxu0 %v4848_v27  ;;  %v1781_v44 = vrot.slane %v11568_v5, %v13673_v41 }
 0x103   : > { %v3436_v50 = vsel %vm3320_vm8, %v3431_v55, %v3435_v28  ;;  %v1766_v43 = vcombine.high %v1764_v6, %v1764_v6  ;;  %v14329_v22 = vrot.slane %v1774_v23, %v13673_v41  ;;  %v2749_v17 = vcombine.low %v1742_v25, %v1764_v6  ;;  %v336_v25 = vld [vmem:[%s13636_s10 + $0x74] sm:$0xf] }
 0x104   : > { %v4908_v11 = vshrl.u32 %v3436_v50, 16  ;;  %v4911_v19 = vshll.u32 %v3436_v50, 16  ;;  %v2741_v35 = vcombine.low %v2733_v39, %v2740_v3  ;;  %v1789_v51 = vcombine.high %v1781_v44, %v1781_v44  ;;  %v337_v39 = vld [vmem:[%s13636_s10 + $0x78] sm:$0xf]  ;;  %v763_v50 = vld [vmem:[#allocation2 + $0xb0] sm:$0x1] }
 0x105   : > { %v4906_v37 = vsel %vm4114_vm9, %v14278_v34, %v14303_v21  ;;  %v2750_v29 = vcombine.low %v1757_v56, %v1765_v31  ;;  %v2757_v59 = vrot.slane %v2749_v17, %v13687_v52  ;;  %v2773_v46 = vcombine.low %v1766_v43, %v14329_v22  ;;  %v338_v34 = vld [vmem:[%s13636_s10 + $0x7c] sm:$0xf]  ;;  %v766_v17 = vld [vmem:[#allocation2 + $0xb4] sm:$0xf] }
 0x106   : > { %v4910_v27 = vrot.slane %v4908_v11, 2  ;;  %v4913_v55 = vrot.slane %v4911_v19, 3  ;;  %11610 = vst.sshfl [vmem:[#allocation3 + $0x80] sm:$0x33 pattern:$0x75316420] %v2741_v35  ;;  %v2774_v7 = vcombine.low %v1781_v44, %v1789_v51  ;;  %v569_v0 = vor.u32 %v567_v47, %v14311_v30 }
 0x107   : > { %v2764_v5 = vrot.slane %v2750_v29, %v13687_v52  ;;  %v570_v54 = vrot.slane %v14311_v30, 4  ;;  %v572_v48 = vshrl.u32 %v334_v42, 16  ;;  %v2781_v56 = vrot.slane %v2773_v46, %v13687_v52  ;;  %v773_v46 = vld [vmem:[#allocation2 + $0xc0] sm:$0xf] }
 0x108   : > { %v14339_v15 = vor.u32 %v4913_v55, %v4910_v27  ;;  %v3188_v3 = vld [vmem:[#allocation3 + $0x7c] sm:$0xf]  ;;  %v2788_v6 = vrot.slane %v2774_v7, %v13687_v52  ;;  %v575_v31 = vshll.u32 %v334_v42, 16  ;;  %v757_v47 = vsel %vm13711_vm7, %v562_v14, %v756_v58 }
 0x109   : > { %v2765_v44 = vcombine.low %v2757_v59, %v2764_v5  ;;  %v574_v30 = vrot.slane %v572_v48, 7  ;;  %758 = vst [vmem:[#allocation2 + $0xa4] sm:$0x1] %v757_v47  ;;  %v760_v11 = vsel %vm13656_vm5, %v569_v0, %v759_v9  ;;  %v3439_v19 = vor.u32 %v3437_v2, %v3435_v28 }
 0x10a   : > { %v4915_v23 = vsel %vm4114_vm9, %v4856_v4, %v14339_v15  ;;  %v2789_v35 = vcombine.low %v2781_v56, %v2788_v6  ;;  %761 = vst [vmem:[#allocation2 + $0xa8] sm:$0xf] %v760_v11  ;;  %v581_v42 = vshrl.u32 %v335_v63, 16  ;;  %v584_v43 = vshll.u32 %v335_v63, 16  ;;  %v770_v63 = vld [vmem:[#allocation2 + $0xbc] sm:$0x1] }
 0x10b   : > { %6110 = vmatprep.mubr.bf16.mxu0 %v4915_v23  ;;  %11611 = vst.sshfl [vmem:[#allocation3 + $0x84] sm:$0x33 pattern:$0x75316420] %v2765_v44  ;;  %v577_v12 = vor.u32 %v575_v31, %v574_v30  ;;  %v579_v14 = vrot.slane %v574_v30, 4  ;;  %v589_v58 = vshrl.u32 %v336_v25, 16  ;;  %v14369_v23 = vor.u32 %v14322_v36, %v14319_v26 }
 0x10c   : > { %6111 = vmatmul.mubr.bf16.gmra.mrb[48].mxu0 %v4906_v37  ;;  %v592_v51 = vshll.u32 %v336_v25, 16  ;;  %11612 = vst.sshfl [vmem:[#allocation3 + $0x88] sm:$0x33 pattern:$0x75316420] %v2789_v35  ;;  %v583_v27 = vrot.slane %v581_v42, 7  ;;  %v1790_v36 = vcombine.high %v14329_v22, %v14329_v22 }
 0x10d   : > { %v3189_v4 = vld [vmem:[#allocation3 + $0x80] sm:$0xf]  ;;  %v598_v55 = vshrl.u32 %v337_v39, 16  ;;  %v601_v29 = vshll.u32 %v337_v39, 16  ;;  %v606_v59 = vshrl.u32 %v338_v34, 16  ;;  %v578_v2 = vsel %vm13649_vm4, %v570_v54, %v577_v12 }
 0x10e   : > { %v14355_v9 = vcombine.low %v3188_v3, %v3189_v4  ;;  %v591_v28 = vrot.slane %v589_v58, 7  ;;  %v764_v37 = vsel %vm13711_vm7, %v579_v14, %v763_v50  ;;  %762 = vst [vmem:[#allocation2 + $0xac] sm:$0xf] %v578_v2  ;;  %v586_v7 = vor.u32 %v584_v43, %v583_v27 }
 0x10f   : > { %v587_v0 = vrot.slane %v583_v27, 4  ;;  %765 = vst [vmem:[#allocation2 + $0xb0] sm:$0x1] %v764_v37  ;;  %v600_v25 = vrot.slane %v598_v55, 7  ;;  %v14361_v5 = vrot.slane %v606_v59, 7  ;;  %v609_v47 = vshll.u32 %v338_v34, 16 }
 0x110   : > { %v3441_v48 = vshll.u32 %v14355_v9, 16  ;;  %v3445_v39 = vshrl.u32 %v14355_v9, 16  ;;  %v594_v3 = vor.u32 %v592_v51, %v591_v28  ;;  %v596_v56 = vrot.slane %v591_v28, 4 }
 0x111   : > { %v11569_v54 = vld.sshfl [vmem:[#allocation2 + $0xa4] sm:$0x1 pattern:$0x75316420]  ;;  %v767_v6 = vsel %vm13656_vm5, %v586_v7, %v766_v17  ;;  %v603_v31 = vor.u32 %v601_v29, %v600_v25  ;;  %v604_v30 = vrot.slane %v600_v25, 4  ;;  %v611_v34 = vor.u32 %v609_v47, %v14361_v5 }
 0x112   : > { %v3443_v50 = vrot.slane %v3441_v48, 1  ;;  %v5019_v44 = vrot.slane %v3445_v39, 2  ;;  %768 = vst [vmem:[#allocation2 + $0xb4] sm:$0xf] %v767_v6  ;;  %v3190_v11 = vld [vmem:[#allocation3 + $0x84] sm:$0xf]  ;;  %v595_v42 = vsel %vm13649_vm4, %v587_v0, %v594_v3  ;;  %v771_v43 = vsel %vm13711_vm7, %v596_v56, %v770_v63 }
 0x113   : > { %v11570_v35 = vld.sshfl [vmem:[#allocation2 + $0xa8] sm:$0x33 pattern:$0x75316420]  ;;  %v774_v12 = vsel %vm13656_vm5, %v603_v31, %v773_v46  ;;  %v3191_v26 = vld [vmem:[#allocation3 + $0x88] sm:$0xf]  ;;  %v1804_v58 = vrot.slane %v11569_v54, %v13673_v41  ;;  %v612_v22 = vsel %vm13649_vm4, %v604_v30, %v611_v34 }
 0x114   : > { %v3444_v14 = vsel %vm3320_vm8, %v3439_v19, %v3443_v50  ;;  %v1812_v51 = vcombine.high %v11570_v35, %v11570_v35  ;;  %769 = vst [vmem:[#allocation2 + $0xb8] sm:$0xf] %v595_v42  ;;  %772 = vst [vmem:[#allocation2 + $0xbc] sm:$0x1] %v771_v43  ;;  %v14382_v27 = vcombine.low %v3190_v11, %v3191_v26  ;;  %v5020_v29 = vrot.slane %v3441_v48, 3 }
 0x115   : > { %775 = vst [vmem:[#allocation2 + $0xc0] sm:$0xf] %v774_v12  ;;  %v4966_v17 = vshrl.u32 %v3444_v14, 16  ;;  %v4969_v4 = vshll.u32 %v3444_v14, 16  ;;  %v1819_v20 = vrot.slane %v11570_v35, %v13673_v41  ;;  %v3447_v55 = vor.u32 %v3445_v39, %v3443_v50  ;;  %776 = vst [vmem:[#allocation2 + $0xc4] sm:$0xf] %v612_v22 }
 0x116   : > { %v11571_v59 = vld.sshfl [vmem:[#allocation2 + $0xac] sm:$0x33 pattern:$0x75316420]  ;;  %v1826_v19 = vrot.slane %v1812_v51, %v13673_v41  ;;  %v3449_v37 = vshll.u32 %v14382_v27, 16  ;;  %v4964_v48 = vsel %vm4114_vm9, %v14303_v21, %v14369_v23  ;;  %v613_v47 = vrot.slane %v14361_v5, 4 }
 0x117   : > { %v4968_v2 = vrot.slane %v4966_v17, 2  ;;  %v4971_v28 = vrot.slane %v4969_v4, 3  ;;  %v1827_v63 = vcombine.high %v1819_v20, %v1819_v20  ;;  %v1836_v7 = vcombine.high %v11571_v59, %v11571_v59  ;;  %v11572_v56 = vld.sshfl [vmem:[#allocation2 + $0xb0] sm:$0x1 pattern:$0x75316420] }
 0x118   : > { %v1828_v46 = vcombine.high %v1826_v19, %v1826_v19  ;;  %v1843_v0 = vrot.slane %v11571_v59, %v13673_v41  ;;  %v2797_v25 = vcombine.low %v1790_v36, %v1819_v20  ;;  %v14395_v16 = vrot.slane %v3449_v37, 1  ;;  %v14400_v50 = vld.sshfl [vmem:[#allocation2 + $0xcc] sm:$0x33 pattern:$0x75316420] }
 0x119   : > { %v4972_v3 = vor.u32 %v4971_v28, %v4968_v2  ;;  %v2798_v39 = vcombine.low %v1804_v58, %v1826_v19  ;;  %v1850_v54 = vrot.slane %v1836_v7, %v13673_v41  ;;  %v14406_v11 = vor.u32 %v5020_v29, %v5019_v44  ;;  %v11573_v42 = vld.sshfl [vmem:[#allocation2 + $0xb4] sm:$0x33 pattern:$0x75316420]  ;;  %v777_v22 = vld [vmem:[#allocation2 + $0xc8] sm:$0x1] }
 0x11a   : > { %v2805_v6 = vrot.slane %v2797_v25, %v13687_v52  ;;  %v2821_v31 = vcombine.low %v1827_v63, %v1843_v0  ;;  %v3452_v21 = vsel %vm3320_vm8, %v3447_v55, %v14395_v16  ;;  %v3453_v36 = vshrl.u32 %v14382_v27, 16 }
 0x11b   : > { %v4973_v30 = vsel %vm4114_vm9, %v14339_v15, %v4972_v3  ;;  %v2812_v35 = vrot.slane %v2798_v39, %v13687_v52  ;;  %v5024_v43 = vshrl.u32 %v3452_v21, 16  ;;  %v5027_v12 = vshll.u32 %v3452_v21, 16  ;;  %v11574_v5 = vld.sshfl [vmem:[#allocation2 + $0xb8] sm:$0x33 pattern:$0x75316420] }
 0x11c   : > { %6118 = vmatprep.mubr.bf16.mxu0 %v4973_v30  ;;  %v2822_v34 = vcombine.low %v1828_v46, %v1850_v54  ;;  %v2829_v14 = vrot.slane %v2821_v31, %v13687_v52  ;;  %v1851_v15 = vcombine.high %v1843_v0, %v1843_v0  ;;  %v1852_v58 = vcombine.high %v1850_v54, %v1850_v54  ;;  %v11575_v20 = vld.sshfl [vmem:[#allocation2 + $0xbc] sm:$0x1 pattern:$0x75316420] }
 0x11d   : > { %6119 = vmatmul.mubr.bf16.gmra.mrb[52].mxu0 %v4964_v48  ;;  %v2813_v26 = vcombine.low %v2805_v6, %v2812_v35  ;;  %v5026_v51 = vrot.slane %v5024_v43, 2  ;;  %v5029_v17 = vrot.slane %v5027_v12, 3  ;;  %v1866_v4 = vrot.slane %v11572_v56, %v13673_v41  ;;  %v11576_v19 = vld.sshfl [vmem:[#allocation2 + $0xc0] sm:$0x33 pattern:$0x75316420] }
 0x11e   : > { %v2836_v44 = vrot.slane %v2822_v34, %v13687_v52  ;;  %v1874_v55 = vcombine.high %v11573_v42, %v11573_v42  ;;  %v1881_v29 = vrot.slane %v11573_v42, %v13673_v41  ;;  %v1905_v59 = vrot.slane %v11574_v5, %v13673_v41  ;;  %v11577_v56 = vld.sshfl [vmem:[#allocation2 + $0xc4] sm:$0x33 pattern:$0x75316420] }
 0x11f   : > { %11613 = vst.sshfl [vmem:[#allocation3 + $0x8c] sm:$0x33 pattern:$0x75316420] %v2813_v26  ;;  %v1998_v2 = vcombine.high %v14400_v50, %v14400_v50  ;;  %v14417_v28 = vor.u32 %v5029_v17, %v5026_v51  ;;  %v2845_v46 = vcombine.low %v1851_v15, %v1866_v4  ;;  %v1898_v7 = vcombine.high %v11574_v5, %v11574_v5 }
 0x120   : > { %v2837_v63 = vcombine.low %v2829_v14, %v2836_v44  ;;  %v5022_v0 = vsel %vm4114_vm9, %v14369_v23, %v14406_v11  ;;  %v1888_v25 = vrot.slane %v1874_v55, %v13673_v41  ;;  %v1889_v48 = vcombine.high %v1881_v29, %v1881_v29 }
 0x121   : > { %v2846_v39 = vcombine.low %v1852_v58, %v1881_v29  ;;  %v5031_v54 = vsel %vm4114_vm9, %v4972_v3, %v14417_v28  ;;  %v2853_v6 = vrot.slane %v2845_v46, %v13687_v52  ;;  %v1912_v31 = vrot.slane %v1898_v7, %v13673_v41 }
 0x122   : > { %11614 = vst.sshfl [vmem:[#allocation3 + $0x90] sm:$0x33 pattern:$0x75316420] %v2837_v63  ;;  %v1913_v30 = vcombine.high %v1905_v59, %v1905_v59  ;;  %6126 = vmatprep.mubr.bf16.mxu0 %v5031_v54  ;;  %v1890_v21 = vcombine.high %v1888_v25, %v1888_v25  ;;  %v2870_v42 = vcombine.low %v1889_v48, %v1905_v59 }
 0x123   : > { %v2860_v35 = vrot.slane %v2846_v39, %v13687_v52  ;;  %v1928_v23 = vrot.slane %v11575_v20, %v13673_v41  ;;  %v1914_v43 = vcombine.high %v1912_v31, %v1912_v31  ;;  %v1936_v12 = vcombine.high %v11576_v19, %v11576_v19 }
 0x124   : > { %v1943_v34 = vrot.slane %v11576_v19, %v13673_v41  ;;  %v778_v3 = vsel %vm13711_vm7, %v613_v47, %v777_v22  ;;  %v2869_v5 = vcombine.low %v1888_v25, %v1890_v21  ;;  %v2884_v26 = vrot.slane %v2870_v42, %v13687_v52 }
 0x125   : > { %6127 = vmatmul.mubr.bf16.gmra.mrb[56].mxu0 %v5022_v0  ;;  %v2861_v14 = vcombine.low %v2853_v6, %v2860_v35  ;;  %v2894_v15 = vcombine.low %v1913_v30, %v1928_v23  ;;  %779 = vst [vmem:[#allocation2 + $0xc8] sm:$0x1] %v778_v3  ;;  %v1950_v51 = vrot.slane %v1936_v12, %v13673_v41  ;;  %v5078_v3 = vrot.slane %v3449_v37, 3 }
 0x126   : > { %v3192_v58 = vld [vmem:[#allocation3 + $0x8c] sm:$0xf]  ;;  %v1951_v17 = vcombine.high %v1943_v34, %v1943_v34  ;;  %v2893_v44 = vcombine.low %v1912_v31, %v1914_v43  ;;  %v1960_v4 = vcombine.high %v11577_v56, %v11577_v56  ;;  %v2877_v20 = vrot.slane %v2869_v5, %v13687_v52 }
 0x127   : > { %11615 = vst.sshfl [vmem:[#allocation3 + $0x94] sm:$0x33 pattern:$0x75316420] %v2861_v14  ;;  %v2908_v55 = vrot.slane %v2894_v15, %v13687_v52  ;;  %v1967_v18 = vrot.slane %v11577_v56, %v13673_v41  ;;  %v2005_v47 = vrot.slane %v14400_v50, %v13673_v41  ;;  %v1952_v29 = vcombine.high %v1950_v51, %v1950_v51 }
 0x128   : > { %v2901_v59 = vrot.slane %v2893_v44, %v13687_v52  ;;  %v2917_v19 = vcombine.low %v1943_v34, %v1951_v17  ;;  %v1974_v22 = vrot.slane %v1960_v4, %v13673_v41  ;;  %v2885_v46 = vcombine.low %v2877_v20, %v2884_v26 }
 0x129   : > { %v3193_v63 = vld [vmem:[#allocation3 + $0x90] sm:$0xf]  ;;  %v1975_v7 = vcombine.high %v1967_v18, %v1967_v18  ;;  %v2013_v0 = vcombine.high %v2005_v47, %v2005_v47  ;;  %v2918_v39 = vcombine.low %v1950_v51, %v1952_v29  ;;  %v14445_v50 = vrot.slane %v1998_v2, %v13673_v41 }
 0x12a   : > { %v14441_v25 = vcombine.low %v3192_v58, %v3193_v63  ;;  %v2909_v48 = vcombine.low %v2901_v59, %v2908_v55  ;;  %v2925_v54 = vrot.slane %v2917_v19, %v13687_v52  ;;  %11616 = vst.sshfl [vmem:[#allocation3 + $0x98] sm:$0x33 pattern:$0x75316420] %v2885_v46  ;;  %v1976_v56 = vcombine.high %v1974_v22, %v1974_v22 }
 0x12b   : > { %v2941_v6 = vcombine.low %v1967_v18, %v1975_v7  ;;  %v2966_v31 = vcombine.low %v2005_v47, %v2013_v0  ;;  %v3455_v30 = vor.u32 %v3453_v36, %v14395_v16  ;;  %v2932_v35 = vrot.slane %v2918_v39, %v13687_v52 }
 0x12c   : > { %v3457_v21 = vshll.u32 %v14441_v25, 16  ;;  %11617 = vst.sshfl [vmem:[#allocation3 + $0x9c] sm:$0x33 pattern:$0x75316420] %v2909_v48  ;;  %v2942_v43 = vcombine.low %v1974_v22, %v1976_v56  ;;  %v5077_v2 = vrot.slane %v3453_v36, 2 }
 0x12d   : > { %v11578_v42 = vld.sshfl [vmem:[#allocation2 + $0xc8] sm:$0x1 pattern:$0x75316420]  ;;  %v2949_v12 = vrot.slane %v2941_v6, %v13687_v52  ;;  %v2933_v14 = vcombine.low %v2925_v54, %v2932_v35  ;;  %v2980_v26 = vrot.slane %v2966_v31, %v13687_v52  ;;  %v3461_v51 = vshrl.u32 %v14441_v25, 16 }
 0x12e   : > { %v1990_v23 = vrot.slane %v11578_v42, %v13673_v41  ;;  %v3459_v34 = vrot.slane %v3457_v21, 1  ;;  %v2956_v16 = vrot.slane %v2942_v43, %v13687_v52  ;;  %v3194_v58 = vld [vmem:[#allocation3 + $0x94] sm:$0xf]  ;;  %v5079_v20 = vor.u32 %v5078_v3, %v5077_v2 }
 0x12f   : > { %11618 = vst.sshfl [vmem:[#allocation3 + $0xa0] sm:$0x33 pattern:$0x75316420] %v2933_v14  ;;  %v5135_v59 = vrot.slane %v3461_v51, 2  ;;  %v5136_v46 = vrot.slane %v3457_v21, 3 }
 0x130   : > { %v2965_v5 = vcombine.low %v1990_v23, %v14445_v50  ;;  %v3460_v15 = vsel %vm3320_vm8, %v3455_v30, %v3459_v34  ;;  %v2957_v4 = vcombine.low %v2949_v12, %v2956_v16  ;;  %v3463_v22 = vor.u32 %v3461_v51, %v3459_v34 }
 0x131   : > { %v5082_v17 = vshrl.u32 %v3460_v15, 16  ;;  %v5085_v44 = vshll.u32 %v3460_v15, 16  ;;  %v3195_v37 = vld [vmem:[#allocation3 + $0x98] sm:$0xf]  ;;  %v5080_v0 = vsel %vm4114_vm9, %v14406_v11, %v5079_v20  ;;  %v5137_v30 = vor.u32 %v5136_v46, %v5135_v59  ;;  %v3202_v46 = vld [vmem:[#allocation3 + $0xc] sm:$0x8] }
 0x132   : > { %v2973_v36 = vrot.slane %v2965_v5, %v13687_v52  ;;  %v14464_v47 = vcombine.low %v3194_v58, %v3195_v37  ;;  %11619 = vst.sshfl [vmem:[#allocation3 + $0xa4] sm:$0x33 pattern:$0x75316420] %v2957_v4 }
 0x133   : > { %v5084_v55 = vrot.slane %v5082_v17, 2  ;;  %v5087_v18 = vrot.slane %v5085_v44, 3  ;;  %v3196_v7 = vld [vmem:[#allocation3 + $0x9c] sm:$0xf]  ;;  %v5138_v3 = vsel %vm4114_vm9, %v5079_v20, %v5137_v30 }
 0x134   : > { %v2981_v29 = vcombine.low %v2973_v36, %v2980_v26  ;;  %v3465_v63 = vshll.u32 %v14464_v47, 16  ;;  %v3469_v48 = vshrl.u32 %v14464_v47, 16 }
 0x135   : > { %v5088_v19 = vor.u32 %v5087_v18, %v5084_v55 }
 0x136   : > { %11620 = vst.sshfl [vmem:[#allocation3 + $0xa8] sm:$0x33 pattern:$0x75316420] %v2981_v29  ;;  %v3467_v54 = vrot.slane %v3465_v63, 1  ;;  %v5193_v26 = vrot.slane %v3469_v48, 2 }
 0x137   : > { %v5089_v39 = vsel %vm4114_vm9, %v14417_v28, %v5088_v19  ;;  %v3197_v56 = vld [vmem:[#allocation3 + $0xa0] sm:$0xf]  ;;  %v5194_v15 = vrot.slane %v3465_v63, 3 }
 0x138   : > { %6134 = vmatprep.mubr.bf16.mxu0 %v5089_v39  ;;  %v14472_v6 = vcombine.low %v3196_v7, %v3197_v56  ;;  %v3468_v31 = vsel %vm3320_vm8, %v3463_v22, %v3467_v54  ;;  %v3471_v42 = vor.u32 %v3469_v48, %v3467_v54  ;;  %v14485_v56 = vld [vmem:[#allocation3 + $0x10] sm:$0xf] }
 0x139   : > { %6135 = vmatmul.mubr.bf16.gmra.mrb[60].mxu0 %v5080_v0  ;;  %v5140_v21 = vshrl.u32 %v3468_v31, 16  ;;  %v5143_v35 = vshll.u32 %v3468_v31, 16  ;;  %v14476_v11 = vld [vmem:[#allocation3 + $0xa4] sm:$0xf]  ;;  %v5195_v29 = vor.u32 %v5194_v15, %v5193_v26  ;;  %v11646_v31 = vcombine.low %v3202_v46, %v14485_v56 }
 0x13a   : > { %v3473_v23 = vshll.u32 %v14472_v6, 16  ;;  %v3477_v43 = vshrl.u32 %v14472_v6, 16  ;;  %v3497_v26 = vrot.slane %v13842_v13, 1 }
 0x13b   : > { %v5142_v12 = vrot.slane %v5140_v21, 2  ;;  %v5145_v28 = vrot.slane %v5143_v35, 3  ;;  %v5196_v21 = vsel %vm4114_vm9, %v5137_v30, %v5195_v29  ;;  %v3492_v30 = vrot.slane %v13669_v38, 1 }
 0x13c   : > { %v3475_v34 = vrot.slane %v3473_v23, 1  ;;  %v5251_v35 = vrot.slane %v3477_v43, 2 }
 0x13d   : > { %v3199_v2 = vld [vmem:[#allocation3 + $0xa8] sm:$0x1]  ;;  %v5146_v16 = vor.u32 %v5145_v28, %v5142_v12 }
 0x13e   : > { %v11643_v14 = vcombine.low %v14476_v11, %v3199_v2  ;;  %v3476_v5 = vsel %vm3320_vm8, %v3471_v42, %v3475_v34  ;;  %v3479_v17 = vor.u32 %v3477_v43, %v3475_v34  ;;  %v5252_v42 = vrot.slane %v3473_v23, 3 }
 0x13f   : > { %v5198_v58 = vshrl.u32 %v3476_v5, 16  ;;  %v5201_v51 = vshll.u32 %v3476_v5, 16  ;;  %v5147_v4 = vsel %vm4114_vm9, %v5088_v19, %v5146_v16 }
 0x140   : > { %v3481_v44 = vshll.u32 %v11643_v14, 16  ;;  %v3485_v36 = vshrl.u32 %v11643_v14, 16  ;;  %6142 = vmatprep.mubr.bf16.mxu0 %v5147_v4  ;;  %v3544_v14 = vrot.slane %v11646_v31, 1  ;;  %v3499_v4 = vrot.slane %v13887_v57, 1 }
 0x141   : > { %v5200_v37 = vrot.slane %v5198_v58, 2  ;;  %v5203_v55 = vrot.slane %v5201_v51, 3  ;;  %6143 = vmatmul.mubr.bf16.gmra.mrb[64].mxu0 %v5138_v3  ;;  %v3495_v3 = vrot.slane %v13791_v62, 1  ;;  %v3493_v51 = vrot.slane %v13762_v24, 1 }
 0x142   : > { %v3483_v18 = vrot.slane %v3481_v44, 1  ;;  %v5318_v43 = vrot.slane %v3485_v36, 2  ;;  %v5319_v58 = vrot.slane %v3481_v44, 3  ;;  %v3500_v44 = vsel %vm3491_vm10, %v3497_v26, %v3499_v4 }
 0x143   : > { %v5204_v20 = vor.u32 %v5203_v55, %v5200_v37  ;;  %v3545_v15 = vsel %vm3491_vm10, %v3544_v14, %v3495_v3  ;;  %v3498_v62 = vsel %vm3491_vm10, %v3495_v3, %v3497_v26  ;;  %v3494_v38 = vsel %vm3491_vm10, %v3492_v30, %v3493_v51 }
 0x144   : > { %v3484_v59 = vsel %vm3320_vm8, %v3479_v17, %v3483_v18  ;;  %v3487_v22 = vor.u32 %v3485_v36, %v3483_v18  ;;  %v4162_v37 = vshrl.u32 %v3545_v15, 16  ;;  %v4165_v55 = vshll.u32 %v3545_v15, 16 }
 0x145   : > { %v5256_v7 = vshrl.u32 %v3484_v59, 16  ;;  %v5259_v63 = vshll.u32 %v3484_v59, 16  ;;  %v5205_v0 = vsel %vm4114_vm9, %v5146_v16, %v5204_v20  ;;  %v5253_v16 = vor.u32 %v5252_v42, %v5251_v35 }
 0x146   : > { %v5323_v48 = vshrl.u32 %v3487_v22, 16  ;;  %v5326_v39 = vshll.u32 %v3487_v22, 16  ;;  %6150 = vmatprep.mubr.bf16.mxu0 %v5205_v0  ;;  %v5320_v13 = vor.u32 %v5319_v58, %v5318_v43  ;;  %v4170_v18 = vshrl.u32 %v3498_v62, 16 }
 0x147   : > { %v5258_v19 = vrot.slane %v5256_v7, 2  ;;  %v5261_v54 = vrot.slane %v5259_v63, 3  ;;  %v5254_v23 = vsel %vm4114_vm9, %v5195_v29, %v5253_v16  ;;  %v4173_v36 = vshll.u32 %v3498_v62, 16 }
 0x148   : > { %v5325_v28 = vrot.slane %v5323_v48, 2  ;;  %v5328_v34 = vrot.slane %v5326_v39, 3  ;;  %v4145_v24 = vshrl.u32 %v3494_v38, 16  ;;  %v4148_v29 = vshll.u32 %v3494_v38, 16 }
 0x149   : > { %v5262_v12 = vor.u32 %v5261_v54, %v5258_v19  ;;  %6151 = vmatmul.mubr.bf16.gmra.mrb[68].mxu0 %v5196_v21  ;;  %v5321_v46 = vsel %vm4114_vm9, %v5253_v16, %v5320_v13  ;;  %v4164_v57 = vrot.slane %v4162_v37, 2  ;;  %v4167_v7 = vrot.slane %v4165_v55, 3  ;;  %v11580_v37 = vld.sshfl [vmem:[#allocation2 + $0xd0] sm:$0x33 pattern:$0x75316420] }
 0x14a   : > { %v5329_v5 = vor.u32 %v5328_v34, %v5325_v28  ;;  %v4172_v63 = vrot.slane %v4170_v18, 2  ;;  %v4175_v0 = vrot.slane %v4173_v36, 3  ;;  %v4278_v48 = vshrl.u32 %v3500_v44, 16 }
 0x14b   : > { %v5263_v2 = vsel %vm4114_vm9, %v5204_v20, %v5262_v12  ;;  %v3496_v20 = vsel %vm3491_vm10, %v3493_v51, %v3495_v3  ;;  %v4281_v39 = vshll.u32 %v3500_v44, 16  ;;  %v3501_v19 = vrot.slane %v13911_v40, 1 }
 0x14c   : > { %6158 = vmatprep.mubr.bf16.mxu0 %v5263_v2  ;;  %v5330_v17 = vsel %vm4114_vm9, %v5262_v12, %v5329_v5  ;;  %v4153_v59 = vshrl.u32 %v3496_v20, 16  ;;  %v4156_v22 = vshll.u32 %v3496_v20, 16  ;;  %v4147_v54 = vrot.slane %v4145_v24, 2  ;;  %v14539_v24 = vld [vmem:[#allocation3 + $0xa8] sm:$0xf] }
 0x14d   : > { %v4150_v31 = vrot.slane %v4148_v29, 3  ;;  %v4168_v42 = vor.u32 %v4167_v7, %v4164_v57  ;;  %v14504_v12 = vor.u32 %v4175_v0, %v4172_v63  ;;  %v4280_v28 = vrot.slane %v4278_v48, 2  ;;  %v11581_v20 = vld.sshfl [vmem:[#allocation2 + $0xd4] sm:$0x1 pattern:$0x75316420] }
 0x14e   : > { %v4155_v21 = vrot.slane %v4153_v59, 2  ;;  %v4158_v35 = vrot.slane %v4156_v22, 3  ;;  %v4283_v34 = vrot.slane %v4281_v39, 3  ;;  %v3502_v2 = vsel %vm3491_vm10, %v3499_v4, %v3501_v19  ;;  %v13160_v48 = vld [vmem:[%s17131_s2 + $0x100] sm:$0xff]  }
 0x14f   : > { %v3503_v3 = vrot.slane %v13966_v61, 1  ;;  %v4151_v14 = vor.u32 %v4150_v31, %v4147_v54  ;;  %v4337_v26 = vshrl.u32 %v3502_v2, 16  ;;  %v4340_v40 = vshll.u32 %v3502_v2, 16 }
 0x150   : > { %v14508_v16 = vor.u32 %v4158_v35, %v4155_v21  ;;  %v3523_v15 = vrot.slane %v14382_v27, 1  ;;  %v3525_v30 = vrot.slane %v14441_v25, 1  ;;  %v3527_v43 = vrot.slane %v14464_v47, 1 }
 0x151   : > { %6159 = vmatmul.mubr.bf16.gmra.mrb[72].mxu0 %v5254_v23  ;;  %v14514_v23 = vor.u32 %v4283_v34, %v4280_v28  ;;  %v14520_v58 = vsel %vm3491_vm10, %v3501_v19, %v3503_v3  ;;  %v4339_v47 = vrot.slane %v4337_v26, 2  ;;  %v4342_v55 = vrot.slane %v4340_v40, 3 }
 0x152   : > { %6166 = vmatprep.mubr.bf16.mxu0 %v5330_v17  ;;  %v3526_v51 = vsel %vm3491_vm10, %v3523_v15, %v3525_v30  ;;  %v14526_v17 = vrot.slane %v14472_v6, 1  ;;  %v4160_v25 = vsel %vm4114_vm9, %v4151_v14, %v14508_v16  ;;  %v3528_v18 = vsel %vm3491_vm10, %v3525_v30, %v3527_v43 }
 0x153   : > { %v5033_v62 = vshrl.u32 %v3526_v51, 16  ;;  %v5036_v4 = vshll.u32 %v3526_v51, 16  ;;  %v14536_v6 = vsel %vm4114_vm9, %v14504_v12, %v14514_v23  ;;  %v5091_v44 = vshrl.u32 %v3528_v18, 16 }
 0x154   : > { %v3530_v38 = vsel %vm3491_vm10, %v3527_v43, %v14526_v17  ;;  %v5094_v59 = vshll.u32 %v3528_v18, 16  ;;  %v11647_v7 = vcombine.low %v14476_v11, %v14539_v24  ;;  %v2014_v63 = vcombine.high %v14445_v50, %v14445_v50 }
 0x155   : > { %v5035_v36 = vrot.slane %v5033_v62, 2  ;;  %v5038_v29 = vrot.slane %v5036_v4, 3  ;;  %v5149_v22 = vshrl.u32 %v3530_v38, 16  ;;  %v5093_v57 = vrot.slane %v5091_v44, 2  ;;  %v3201_v44 = vld [vmem:[#allocation3 + $0xa8] sm:$0x3] }
 0x156   : > { %v2022_v0 = vcombine.high %v11580_v37, %v11580_v37  ;;  %v5096_v39 = vrot.slane %v5094_v59, 3  ;;  %v2029_v31 = vrot.slane %v11580_v37, %v13673_v41  ;;  %v4398_v21 = vshll.u32 %v14520_v58, 16 }
 0x157   : > { %v5151_v19 = vrot.slane %v5149_v22, 2  ;;  %v14550_v35 = vrot.slane %v11647_v7, 1  ;;  %v2052_v28 = vrot.slane %v11581_v20, %v13673_v41  ;;  %v14554_v34 = vor.u32 %v5038_v29, %v5035_v36 }
 0x158   : > { %v5097_v50 = vor.u32 %v5096_v39, %v5093_v57  ;;  %v2037_v14 = vcombine.high %v2029_v31, %v2029_v31  ;;  %v4343_v62 = vor.u32 %v4342_v55, %v4339_v47  ;;  %v11645_v22 = vcombine.low %v14476_v11, %v3201_v44  ;;  %v13162_v47 = vld [vmem:[%s17131_s2 + $0x110] sm:$0xff]  }
 0x159   : > { %6167 = vmatmul.mubr.bf16.gmra.mrb[76].mxu0 %v5321_v46  ;;  %v5152_v46 = vshll.u32 %v3530_v38, 16  ;;  %v3547_v26 = vsel %vm3491_vm10, %v14526_v17, %v14550_v35  ;;  %v3505_v38 = vrot.slane %v14054_v33, 1  ;;  %v3507_v39 = vrot.slane %v14097_v60, 1 }
 0x15a   : > { %6174 = vmatprep.mubr.bf16.mxu0 %v5329_v5  ;;  %v4177_v5 = vsel %vm4114_vm9, %v4168_v42, %v14504_v12  ;;  %v2036_v42 = vrot.slane %v2022_v0, %v13673_v41  ;;  %v13161_v41 = vld [vmem:[%s17131_s2 + $0x108] sm:$0xff]   ;;  %v14568_v43 = vsel %vm4114_vm9, %v14554_v34, %v5097_v50  ;;  %v5207_v51 = vshrl.u32 %v3547_v26, 16 }
 0x15b   : > { %v5154_v54 = vrot.slane %v5152_v46, 3  ;;  %v2990_v4 = vcombine.low %v2029_v31, %v2037_v14  ;;  %v4276_v46 = vsel %vm4114_vm9, %v14508_v16, %v14504_v12  ;;  %v4344_v33 = vsel %vm4114_vm9, %v14514_v23, %v4343_v62 }
 0x15c   : > { %v2038_v40 = vcombine.high %v2036_v42, %v2036_v42  ;;  %v2989_v30 = vcombine.low %v2014_v63, %v2036_v42  ;;  %v5209_v20 = vrot.slane %v5207_v51, 2  ;;  %v14591_v11 = vrot.slane %v11645_v22, 1 }
 0x15d   : > { %v14556_v2 = vor.u32 %v5154_v54, %v5151_v19  ;;  %v3004_v29 = vrot.slane %v2990_v4, %v13687_v52  ;;  %v3506_v12 = vsel %vm3491_vm10, %v3503_v3, %v3505_v38 }
 0x15e   : > { %v2997_v37 = vrot.slane %v2989_v30, %v13687_v52  ;;  %v3019_v18 = vrot.slane %v2038_v40, %v13687_v52  ;;  %v3532_v23 = vsel %vm3491_vm10, %v14526_v17, %v14591_v11  ;;  %v4453_v0 = vshrl.u32 %v3506_v12, 16  ;;  %v13164_v17 = vld [vmem:[%s17131_s2 + $0x120] sm:$0xff]   ;;  %v13165_v40 = vld [vmem:[%s17131_s2 + $0x128] sm:$0xff]  }
 0x15f   : > { %v5265_v61 = vshrl.u32 %v3532_v23, 16  ;;  %v5268_v63 = vshll.u32 %v3532_v23, 16 }
 0x160   : > { %v3005_v7 = vcombine.low %v2997_v37, %v3004_v29  ;;  %v4455_v42 = vrot.slane %v4453_v0, 2  ;;  %v13172_v0 = vld [vmem:[%s17131_s2 + $0x160] sm:$0xff]  }
 0x161   : > { %6175 = vmatmul.mubr.bf16.gmra.mrb[80].mxu0 %v5320_v13  ;;  %v4395_v13 = vshrl.u32 %v14520_v58, 16  ;;  %v14572_v58 = vsel %vm4114_vm9, %v5097_v50, %v14556_v2  ;;  %v5267_v19 = vrot.slane %v5265_v61, 2  ;;  %v5270_v54 = vrot.slane %v5268_v63, 3 }
 0x162   : > { %6214 = vmatprep.mubr.bf16.mxu0 %v4177_v5  ;;  %v3026_v5 = vrot.slane %v2052_v28, %v13687_v52  ;;  %v4400_v52 = vrot.slane %v4398_v21, 3  ;;  %11621 = vst.sshfl [vmem:[#allocation3 + $0xac] sm:$0x33 pattern:$0x75316420] %v3005_v7  ;;  %v3508_v50 = vsel %vm3491_vm10, %v3505_v38, %v3507_v39  ;;  %v3511_v38 = vrot.slane %v14170_v10, 1 }
 0x163   : > { %v4397_v55 = vrot.slane %v4395_v13, 2  ;;  %v13163_v13 = vld [vmem:[%s17131_s2 + $0x118] sm:$0xff]   ;;  %v14612_v31 = vor.u32 %v5270_v54, %v5267_v19  ;;  %v13169_v10 = vld [vmem:[%s17131_s2 + $0x148] sm:$0xff]  }
 0x164   : > { %v3027_v59 = vcombine.low %v3019_v18, %v3026_v5  ;;  %v4511_v5 = vshrl.u32 %v3508_v50, 16 }
 0x165   : > { %v4401_v3 = vor.u32 %v4400_v52, %v4397_v55  ;;  %v14622_v60 = vsel %vm4114_vm9, %v14556_v2, %v14612_v31  ;;  %v3513_v55 = vrot.slane %v14206_v8, 1  ;;  %v13171_v8 = vld [vmem:[%s17131_s2 + $0x158] sm:$0xff]  }
 0x166   : > { %11622 = vst.sshfl [vmem:[#allocation3 + $0xb0] sm:$0x11 pattern:$0x75316420] %v3027_v59  ;;  %v4513_v51 = vrot.slane %v4511_v5, 2 }
 0x167   : > { %v4402_v21 = vsel %vm4114_vm9, %v4343_v62, %v4401_v3  ;;  %v3514_v23 = vsel %vm3491_vm10, %v3511_v38, %v3513_v55 }
 0x168   : > { %v4685_v61 = vshrl.u32 %v3514_v23, 16  ;;  %v4688_v63 = vshll.u32 %v3514_v23, 16 }
 0x169   : > { %6215 = vmatmul.mubr.bf16.vlgmr.msra.gmra.mrb[0].mxu0 %v4160_v25  ;;  %v5210_v25 = vshll.u32 %v3547_v26, 16  ;;  %v14617_v14 = vld [vmem:[#allocation3 + $0xac] sm:$0xf] }
 0x16a   : > { %6383 = vmatpush1.bf16.msra.mxu0 %v13160_v48  ;;  %6222 = vmatprep.mubr.bf16.mxu0 %v14536_v6  ;;  %v4456_v48 = vshll.u32 %v3506_v12, 16  ;;  %v14627_v26 = vcombine.low %v14539_v24, %v14617_v14  ;;  %v4690_v19 = vrot.slane %v4688_v63, 3 }
 0x16b   : > { %6384 = vmatprep.subr.bf16.mxu0 %v17140_v1  ;;  %v5212_v36 = vrot.slane %v5210_v25, 3 }
 0x16c   : > { %v4458_v28 = vrot.slane %v4456_v48, 3 }
 0x16d   : > { %v14586_v57 = vor.u32 %v5212_v36, %v5209_v20  ;;  %v13168_v20 = vld [vmem:[%s17131_s2 + $0x140] sm:$0xff]  }
 0x16e   : > { %6385 = vmatpush1.bf16.msra.mxu0 %v13161_v41  ;;  %v4459_v30 = vor.u32 %v4458_v28, %v4455_v42  ;;  %v4514_v41 = vshll.u32 %v3508_v50, 16  ;;  %v3517_v28 = vrot.slane %v14276_v49, 1  ;;  %v13177_v50 = vld [vmem:[%s17131_s2 + $0x170] sm:$0xff]   ;;  %v13178_v49 = vld [vmem:[%s17131_s2 + $0x178] sm:$0xff]  }
 0x16f   : > { %6386 = vmatprep.subr.bf16.mxu0 %v17140_v1  ;;  %v14599_v16 = vsel %vm4114_vm9, %v14556_v2, %v14586_v57  ;;  %v3509_v2 = vrot.slane %v14130_v53, 1  ;;  %v13167_v53 = vld [vmem:[%s17131_s2 + $0x138] sm:$0xff]  }
 0x170   : > { %v4460_v24 = vsel %vm4114_vm9, %v4401_v3, %v4459_v30  ;;  %v4516_v25 = vrot.slane %v4514_v41, 3  ;;  %v3515_v3 = vrot.slane %v14256_v32, 1  ;;  %v13174_v32 = vld [vmem:[%s17131_s2 + $0x168] sm:$0xff]  }
 0x171   : > { %6223 = vmatmul.mubr.bf16.gmra.mrb[4].mxu0 %v4276_v46  ;;  %v3510_v62 = vsel %vm3491_vm10, %v3507_v39, %v3509_v2  ;;  %v3512_v59 = vsel %vm3491_vm10, %v3509_v2, %v3511_v38  ;;  %v4687_v39 = vrot.slane %v4685_v61, 2 }
 0x172   : > { %6230 = vmatprep.mubr.bf16.mxu0 %v4344_v33  ;;  %6387 = vmatpush1.bf16.msra.mxu0 %v13162_v47  ;;  %v4517_v4 = vor.u32 %v4516_v25, %v4513_v51  ;;  %v4569_v37 = vshrl.u32 %v3510_v62, 16  ;;  %v4572_v18 = vshll.u32 %v3510_v62, 16  ;;  %v4627_v46 = vshrl.u32 %v3512_v59, 16 }
 0x173   : > { %6388 = vmatprep.subr.bf16.mxu0 %v17140_v1  ;;  %v4630_v47 = vshll.u32 %v3512_v59, 16  ;;  %v3516_v54 = vsel %vm3491_vm10, %v3513_v55, %v3515_v3  ;;  %v3518_v41 = vsel %vm3491_vm10, %v3515_v3, %v3517_v28  ;;  %v3519_v51 = vrot.slane %v14308_v45, 1 }
 0x174   : > { %v4518_v36 = vsel %vm4114_vm9, %v4459_v30, %v4517_v4  ;;  %v4571_v44 = vrot.slane %v4569_v37, 2  ;;  %v4574_v29 = vrot.slane %v4572_v18, 3  ;;  %v4629_v7 = vrot.slane %v4627_v46, 2 }
 0x175   : > { %v4632_v12 = vrot.slane %v4630_v47, 3  ;;  %v4746_v42 = vshll.u32 %v3516_v54, 16 }
 0x176   : > { %6389 = vmatpush1.bf16.msra.mxu0 %v13163_v13  ;;  %v4575_v22 = vor.u32 %v4574_v29, %v4571_v44 }
 0x177   : > { %6390 = vmatprep.subr.bf16.mxu0 %v17140_v1  ;;  %v4633_v13 = vor.u32 %v4632_v12, %v4629_v7  ;;  %v4748_v5 = vrot.slane %v4746_v42, 3  ;;  %v13333_v42 = vld [vmem:[#allocation3 + $0x18] sm:$0xf] }
 0x178   : > { %v4576_v52 = vsel %vm4114_vm9, %v4517_v4, %v4575_v22  ;;  %v3520_v4 = vsel %vm3491_vm10, %v3517_v28, %v3519_v51  ;;  %v13334_v28 = vld [vmem:[#allocation3 + $0x1c] sm:$0xf] }
 0x179   : > { %6231 = vmatmul.mubr.bf16.gmra.mrb[8].mxu0 %v14536_v6  ;;  %v13166_v6 = vld [vmem:[%s17131_s2 + $0x130] sm:$0xff]   ;;  %v4634_v48 = vsel %vm4114_vm9, %v4575_v22, %v4633_v13  ;;  %v4859_v18 = vshrl.u32 %v3520_v4, 16  ;;  %v4862_v38 = vshll.u32 %v3520_v4, 16 }
 0x17a   : > { %6238 = vmatprep.mubr.bf16.mxu0 %v4402_v21  ;;  %6391 = vmatpush1.bf16.msra.mxu0 %v13164_v17  ;;  %v4691_v17 = vor.u32 %v4690_v19, %v4687_v39 }
 0x17b   : > { %6392 = vmatprep.subr.bf16.mxu0 %v17140_v1  ;;  %v4861_v44 = vrot.slane %v4859_v18, 2  ;;  %v4864_v45 = vrot.slane %v4862_v38, 3 }
 0x17d   : > { %v4865_v59 = vor.u32 %v4864_v45, %v4861_v44 }
 0x17e   : > { %6393 = vmatpush1.bf16.msra.mxu0 %v13165_v40  ;;  %v4692_v40 = vsel %vm4114_vm9, %v4633_v13, %v4691_v17 }
 0x17f   : > { %6394 = vmatprep.subr.bf16.mxu0 %v17140_v1 }
 0x181   : > { %6239 = vmatmul.mubr.bf16.gmra.mrb[12].mxu0 %v4344_v33  ;;  %v13170_v33 = vld [vmem:[%s17131_s2 + $0x150] sm:$0xff]  }
 0x182   : > { %6246 = vmatprep.mubr.bf16.mxu0 %v4460_v24  ;;  %6395 = vmatpush1.bf16.msra.mxu0 %v13166_v6  ;;  %v4801_v6 = vshrl.u32 %v3518_v41, 16 }
 0x183   : > { %6396 = vmatprep.subr.bf16.mxu0 %v17140_v1 }
 0x184   : > { %v4803_v62 = vrot.slane %v4801_v6, 2 }
 0x186   : > { %6397 = vmatpush1.bf16.msra.mxu0 %v13167_v53 }
 0x187   : > { %6398 = vmatprep.subr.bf16.mxu0 %v17140_v1 }
 0x189   : > { %6247 = vmatmul.mubr.bf16.gmra.mrb[16].mxu0 %v4402_v21  ;;  %v4743_v21 = vshrl.u32 %v3516_v54, 16 }
 0x18a   : > { %6254 = vmatprep.mubr.bf16.mxu0 %v4518_v36  ;;  %6399 = vmatpush1.bf16.msra.mxu0 %v13168_v20  ;;  %v3521_v20 = vrot.slane %v14355_v9, 1 }
 0x18b   : > { %6400 = vmatprep.subr.bf16.mxu0 %v17140_v1  ;;  %v4745_v30 = vrot.slane %v4743_v21, 2 }
 0x18c   : > { %v3522_v29 = vsel %vm3491_vm10, %v3519_v51, %v3521_v20 }
 0x18d   : > { %v4749_v2 = vor.u32 %v4748_v5, %v4745_v30  ;;  %v4920_v22 = vshll.u32 %v3522_v29, 16  ;;  %v5332_v5 = vshrl.u32 %v14591_v11, 16 }
 0x18e   : > { %6401 = vmatpush1.bf16.msra.mxu0 %v13169_v10  ;;  %v4917_v10 = vshrl.u32 %v3522_v29, 16 }
 0x18f   : > { %6402 = vmatprep.subr.bf16.mxu0 %v17140_v1  ;;  %v4750_v25 = vsel %vm4114_vm9, %v4691_v17, %v4749_v2  ;;  %v4922_v55 = vrot.slane %v4920_v22, 3  ;;  %v13332_v17 = vld [vmem:[#allocation3 + $0x14] sm:$0xf]  ;;  %v5334_v6 = vrot.slane %v5332_v5, 2  ;;  %v13339_v5 = vld [vmem:[#allocation3 + $0x30] sm:$0xf] }
 0x190   : > { %v4919_v47 = vrot.slane %v4917_v10, 2  ;;  %v11649_v21 = vcombine.low %v14485_v56, %v13332_v17 }
 0x191   : > { %6255 = vmatmul.mubr.bf16.gmra.mrb[20].mxu0 %v4460_v24  ;;  %v4804_v24 = vshll.u32 %v3518_v41, 16 }
 0x192   : > { %6262 = vmatprep.mubr.bf16.mxu0 %v4576_v52  ;;  %6403 = vmatpush1.bf16.msra.mxu0 %v13170_v33  ;;  %v3524_v33 = vsel %vm3491_vm10, %v3521_v20, %v3523_v15  ;;  %v4923_v9 = vor.u32 %v4922_v55, %v4919_v47  ;;  %v14703_v15 = vld [vmem:[#allocation3 + $0xb0] sm:$0x3]  ;;  %v3576_v41 = vshll.u32 %v11649_v21, 16 }
 0x193   : > { %6404 = vmatprep.subr.bf16.mxu0 %v17140_v1  ;;  %v4806_v53 = vrot.slane %v4804_v24, 3  ;;  %v4978_v7 = vshll.u32 %v3524_v33, 16  ;;  %v11648_v63 = vcombine.low %v14617_v14, %v14703_v15  ;;  %v3764_v24 = vrot.slane %v11649_v21, 6 }
 0x194   : > { %v4924_v12 = vsel %vm4114_vm9, %v4865_v59, %v4923_v9 }
 0x195   : > { %v4807_v37 = vor.u32 %v4806_v53, %v4803_v62  ;;  %v3548_v3 = vrot.slane %v11648_v63, 1  ;;  %v3578_v62 = vrot.slane %v3576_v41, 6  ;;  %v4199_v10 = vshll.u32 %v3764_v24, 16 }
 0x196   : > { %6405 = vmatpush1.bf16.msra.mxu0 %v13171_v8  ;;  %v4980_v8 = vrot.slane %v4978_v7, 3  ;;  %v13338_v7 = vld [vmem:[#allocation3 + $0x2c] sm:$0xf] }
 0x197   : > { %6406 = vmatprep.subr.bf16.mxu0 %v17140_v1  ;;  %v4866_v46 = vsel %vm4114_vm9, %v4807_v37, %v4865_v59  ;;  %v5341_v14 = vshrl.u32 %v3548_v3, 16  ;;  %v4196_v59 = vshrl.u32 %v3764_v24, 16 }
 0x199   : > { %6263 = vmatmul.mubr.bf16.gmra.mrb[24].mxu0 %v4518_v36  ;;  %v4808_v36 = vsel %vm4114_vm9, %v4749_v2, %v4807_v37  ;;  %v13335_v37 = vld [vmem:[#allocation3 + $0x20] sm:$0xf] }
 0x19a   : > { %6270 = vmatprep.mubr.bf16.mxu0 %v4634_v48  ;;  %6407 = vmatpush1.bf16.msra.mxu0 %v13172_v0  ;;  %v3549_v0 = vsel %vm3491_vm10, %v14550_v35, %v3548_v3  ;;  %v11650_v35 = vcombine.low %v13333_v42, %v13334_v28 }
 0x19b   : > { %6408 = vmatprep.subr.bf16.mxu0 %v17140_v1  ;;  %v5277_v39 = vshll.u32 %v3549_v0, 16 }
 0x19c   : > { %v3584_v2 = vshll.u32 %v11650_v35, 16  ;;  %v14719_v51 = vrot.slane %v11650_v35, 6 }
 0x19d   : > { %v5279_v19 = vrot.slane %v5277_v39, 3 }
 0x19e   : > { %6409 = vmatpush1.bf16.msra.mxu0 %v13174_v32  ;;  %v5344_v32 = vshll.u32 %v3548_v3, 16  ;;  %v3586_v4 = vrot.slane %v3584_v2, 6  ;;  %v3766_v38 = vsel %vm3763_vm11, %v3764_v24, %v14719_v51 }
 0x19f   : > { %6410 = vmatprep.subr.bf16.mxu0 %v17140_v1  ;;  %v4204_v22 = vshrl.u32 %v3766_v38, 16 }
 0x1a0   : > { %v5346_v30 = vrot.slane %v5344_v32, 3 }
 0x1a1   : > { %6271 = vmatmul.mubr.bf16.gmra.mrb[28].mxu0 %v4576_v52  ;;  %v4975_v52 = vshrl.u32 %v3524_v33, 16 }
 0x1a2   : > { %6278 = vmatprep.mubr.bf16.mxu0 %v4692_v40  ;;  %6411 = vmatpush1.bf16.msra.mxu0 %v13177_v50 }
 0x1a3   : > { %6412 = vmatprep.subr.bf16.mxu0 %v17140_v1  ;;  %v4977_v23 = vrot.slane %v4975_v52, 2  ;;  %v13337_v52 = vld [vmem:[#allocation3 + $0x28] sm:$0xf] }
 0x1a5   : > { %v4981_v13 = vor.u32 %v4980_v8, %v4977_v23  ;;  %v4198_v23 = vrot.slane %v4196_v59, 2  ;;  %v4201_v8 = vrot.slane %v4199_v10, 3  ;;  %v13179_v59 = vld [vmem:[%s17131_s2 + $0x180] sm:$0xff]  }
 0x1a6   : > { %6413 = vmatpush1.bf16.msra.mxu0 %v13178_v49  ;;  %v3581_v49 = vshrl.u32 %v11650_v35, 16 }
 0x1a7   : > { %6582 = vmatprep.subr.bf16.mxu0 %v17140_v1  ;;  %v4982_v61 = vsel %vm4114_vm9, %v4923_v9, %v4981_v13  ;;  %v5040_v27 = vsel %vm4114_vm9, %v4981_v13, %v14554_v34  ;;  %v4206_v13 = vrot.slane %v4204_v22, 2 }
 0x1a8   : > { %v3583_v53 = vrot.slane %v3581_v49, 5 }
 0x1a9   : > { %6279 = vmatmul.mubr.bf16.gmra.mrb[32].mxu0 %v4634_v48  ;;  %v5274_v48 = vshrl.u32 %v3549_v0, 16 }
 0x1aa   : > { %6286 = vmatprep.mubr.bf16.mxu0 %v4750_v25  ;;  %v3587_v44 = vor.u32 %v3586_v4, %v3583_v53 }
 0x1ab   : > { %v5276_v34 = vrot.slane %v5274_v48, 2 }
 0x1ad   : > { %v5280_v54 = vor.u32 %v5279_v19, %v5276_v34  ;;  %v4202_v19 = vor.u32 %v4201_v8, %v4198_v23 }
 0x1af   : > { %v5281_v50 = vsel %vm4114_vm9, %v14586_v57, %v5280_v54 }
 0x1b1   : > { %6287 = vmatmul.mubr.bf16.gmra.mrb[36].mxu0 %v4692_v40  ;;  %v5343_v40 = vrot.slane %v5341_v14, 2 }
 0x1b2   : > { %6294 = vmatprep.mubr.bf16.mxu0 %v4808_v36 }
 0x1b3   : > { %v5347_v56 = vor.u32 %v5346_v30, %v5343_v40 }
 0x1b9   : > { %6295 = vmatmul.mubr.bf16.gmra.mrb[40].mxu0 %v4750_v25 }
 0x1ba   : > { %6302 = vmatprep.mubr.bf16.mxu0 %v4866_v46 }
 0x1c1   : > { %6303 = vmatmul.mubr.bf16.gmra.mrb[44].mxu0 %v4808_v36 }
 0x1c2   : > { %6310 = vmatprep.mubr.bf16.mxu0 %v4924_v12 }
 0x1c9   : > { %6311 = vmatmul.mubr.bf16.gmra.mrb[48].mxu0 %v4866_v46  ;;  %v4207_v46 = vshll.u32 %v3766_v38, 16 }
 0x1ca   : > { %6318 = vmatprep.mubr.bf16.mxu0 %v4982_v61 }
 0x1d1   : > { %6319 = vmatmul.mubr.bf16.gmra.mrb[52].mxu0 %v4924_v12  ;;  %v14737_v12 = vcombine.low %v13337_v52, %v13338_v7 }
 0x1d2   : > { %6326 = vmatprep.mubr.bf16.mxu0 %v5040_v27 }
 0x1d3   : > { %17273 = vst [vmem:[#allocation6_spill] sm:$0xff] %v14737_v12  ;;  %v17173_v39 = vshrl.u32 %v14737_v12, 16  ;;  %v17168_v34 = vshll.u32 %v14737_v12, 16  ;;  %v3769_v17 = vrot.slane %v14737_v12, 6 }
 0x1d5   : > { %v3601_v40 = vrot.slane %v17173_v39, 5  ;;  %v3604_v30 = vrot.slane %v17168_v34, 6 }
 0x1d9   : > { %6327 = vmatmul.mubr.bf16.gmra.mrb[56].mxu0 %v4982_v61  ;;  %v4209_v61 = vrot.slane %v4207_v46, 3 }
 0x1da   : > { %6334 = vmatprep.mubr.bf16.mxu0 %v14568_v43 }
 0x1e1   : > { %6335 = vmatmul.mubr.bf16.gmra.mrb[60].mxu0 %v5040_v27 }
 0x1e2   : > { %6342 = vmatprep.mubr.bf16.mxu0 %v14572_v58 }
 0x1e9   : > { %6343 = vmatmul.mubr.bf16.gmra.mrb[64].mxu0 %v14568_v43  ;;  %v5335_v43 = vshll.u32 %v14591_v11, 16  ;;  %v5348_v11 = vsel %vm4114_vm9, %v5280_v54, %v5347_v56  ;;  %v4210_v54 = vor.u32 %v4209_v61, %v4206_v13  ;;  %v13180_v61 = vld [vmem:[%s17131_s2 + $0x188] sm:$0xff]  }
 0x1ea   : > { %6350 = vmatprep.mubr.bf16.mxu0 %v14599_v16  ;;  %v3573_v16 = vshrl.u32 %v11649_v21, 16 }
 0x1eb   : > { %v5337_v25 = vrot.slane %v5335_v43, 3  ;;  %v13340_v43 = vld [vmem:[#allocation3 + $0x34] sm:$0xf]  ;;  %v4211_v41 = vsel %vm4114_vm9, %v4202_v19, %v4210_v54 }
 0x1ec   : > { %v3575_v57 = vrot.slane %v3573_v16, 5  ;;  %v14749_v16 = vcombine.low %v13339_v5, %v13340_v43 }
 0x1ed   : > { %v5338_v20 = vor.u32 %v5337_v25, %v5334_v6 }
 0x1ee   : > { %v3579_v36 = vor.u32 %v3578_v62, %v3575_v57  ;;  %v3605_v62 = vor.u32 %v3604_v30, %v3601_v40  ;;  %v17167_v53 = vshrl.u32 %v14749_v16, 16  ;;  %v17165_v4 = vshll.u32 %v14749_v16, 16 }
 0x1ef   : > { %v5339_v55 = vsel %vm4114_vm9, %v14612_v31, %v5338_v20  ;;  %v3771_v38 = vrot.slane %v14749_v16, 6 }
 0x1f0   : > { %v4179_v31 = vshrl.u32 %v3579_v36, 16  ;;  %v4182_v63 = vshll.u32 %v3579_v36, 16  ;;  %v3610_v22 = vrot.slane %v17167_v53, 5  ;;  %v3613_v46 = vrot.slane %v17165_v4, 6 }
 0x1f1   : > { %6351 = vmatmul.mubr.bf16.gmra.mrb[68].mxu0 %v14572_v58  ;;  %v13336_v58 = vld [vmem:[#allocation3 + $0x24] sm:$0xf]  ;;  %v3772_v7 = vsel %vm3763_vm11, %v3769_v17, %v3771_v38 }
 0x1f2   : > { %6358 = vmatprep.mubr.bf16.mxu0 %v5281_v50  ;;  %v14721_v18 = vcombine.low %v13335_v37, %v13336_v58  ;;  %v4181_v21 = vrot.slane %v4179_v31, 2  ;;  %v4184_v42 = vrot.slane %v4182_v63, 3 }
 0x1f4   : > { %17272 = vst [vmem:[#allocation5_spill] sm:$0xff] %v14721_v18  ;;  %v17175_v45 = vshrl.u32 %v14721_v18, 16  ;;  %v17174_v29 = vshll.u32 %v14721_v18, 16  ;;  %v3767_v47 = vrot.slane %v14721_v18, 6  ;;  %v4185_v6 = vor.u32 %v4184_v42, %v4181_v21 }
 0x1f6   : > { %v3592_v33 = vrot.slane %v17175_v45, 5  ;;  %v3595_v9 = vrot.slane %v17174_v29, 6  ;;  %v3768_v27 = vsel %vm3763_vm11, %v14719_v51, %v3767_v47 }
 0x1f7   : > { %v4221_v14 = vshrl.u32 %v3768_v27, 16  ;;  %v4224_v32 = vshll.u32 %v3768_v27, 16  ;;  %v3614_v27 = vor.u32 %v3613_v46, %v3610_v22  ;;  %v13183_v46 = vld [vmem:[%s17131_s2 + $0x1a0] sm:$0xff]  }
 0x1f8   : > { %v3596_v48 = vor.u32 %v3595_v9, %v3592_v33 }
 0x1f9   : > { %6359 = vmatmul.mubr.bf16.gmra.mrb[72].mxu0 %v14622_v60  ;;  %v3588_v60 = vsel %vm3571_vm12, %v3579_v36, %v3587_v44  ;;  %v4223_v49 = vrot.slane %v4221_v14, 2  ;;  %v4226_v2 = vrot.slane %v4224_v32, 3  ;;  %v3615_v21 = vsel %vm3571_vm12, %v3605_v62, %v3614_v27 }
 0x1fa   : > { %6366 = vmatprep.mubr.bf16.mxu0 %v5348_v11  ;;  %v4187_v3 = vshrl.u32 %v3588_v60, 16  ;;  %v4190_v0 = vshll.u32 %v3588_v60, 16  ;;  %v3597_v50 = vsel %vm3571_vm12, %v3587_v44, %v3596_v48  ;;  %v3606_v10 = vsel %vm3571_vm12, %v3596_v48, %v3605_v62 }
 0x1fb   : > { %v4287_v25 = vshrl.u32 %v3597_v50, 16  ;;  %v4290_v57 = vshll.u32 %v3597_v50, 16  ;;  %v14755_v37 = vor.u32 %v4226_v2, %v4223_v49  ;;  %v4346_v8 = vshrl.u32 %v3606_v10, 16  ;;  %v13344_v50 = vld [vmem:[#allocation3 + $0x44] sm:$0xf] }
 0x1fc   : > { %v4189_v28 = vrot.slane %v4187_v3, 2  ;;  %v4192_v35 = vrot.slane %v4190_v0, 3  ;;  %v4349_v13 = vshll.u32 %v3606_v10, 16  ;;  %v4355_v0 = vshrl.u32 %v3772_v7, 16 }
 0x1fd   : > { %v4289_v44 = vrot.slane %v4287_v25, 2  ;;  %v4295_v33 = vsel %vm4114_vm9, %v4210_v54, %v14755_v37  ;;  %v4358_v48 = vshll.u32 %v3772_v7, 16  ;;  %v4348_v14 = vrot.slane %v4346_v8, 2 }
 0x1fe   : > { %v4193_v24 = vor.u32 %v4192_v35, %v4189_v28  ;;  %v4351_v32 = vrot.slane %v4349_v13, 3  ;;  %v13343_v35 = vld [vmem:[#allocation3 + $0x40] sm:$0xf]  ;;  %v4357_v5 = vrot.slane %v4355_v0, 2  ;;  %v4404_v2 = vshrl.u32 %v3615_v21, 16 }
 0x1ff   : > { %v14788_v40 = vcombine.low %v13343_v35, %v13344_v50  ;;  %v4360_v43 = vrot.slane %v4358_v48, 3 }
 0x200   : > { %v4194_v36 = vsel %vm4114_vm9, %v4185_v6, %v4193_v24  ;;  %v4352_v49 = vor.u32 %v4351_v32, %v4348_v14 }
 0x201   : > { %6367 = vmatmul.mubr.bf16.gmra.mrb[76].mxu0 %v5339_v55  ;;  %v13342_v55 = vld [vmem:[#allocation3 + $0x3c] sm:$0xf]  ;;  %v17159_v25 = vshrl.u32 %v14788_v40, 16  ;;  %v4361_v62 = vor.u32 %v4360_v43, %v4357_v5  ;;  %v13347_v5 = vld [vmem:[#allocation3 + $0x50] sm:$0xf] }
 0x202   : > { %6374 = vmatprep.mubr.bf16.mxu0 %v5347_v56  ;;  %v3770_v56 = vsel %vm3763_vm11, %v3767_v47, %v3769_v17  ;;  %v13341_v47 = vld [vmem:[#allocation3 + $0x38] sm:$0xf]  ;;  %v13348_v43 = vld [vmem:[#allocation3 + $0x54] sm:$0xf] }
 0x203   : > { %v4297_v58 = vshrl.u32 %v3770_v56, 16  ;;  %v4300_v11 = vshll.u32 %v3770_v56, 16  ;;  %v14767_v60 = vcombine.low %v13341_v47, %v13342_v55  ;;  %v13181_v17 = vld [vmem:[%s17131_s2 + $0x190] sm:$0xff]   ;;  %v4407_v56 = vshll.u32 %v3615_v21, 16  ;;  %v13345_v47 = vld [vmem:[#allocation3 + $0x48] sm:$0xf] }
 0x204   : > { %v3628_v10 = vrot.slane %v17159_v25, 5  ;;  %v13346_v55 = vld [vmem:[#allocation3 + $0x4c] sm:$0xf] }
 0x205   : > { %v4299_v9 = vrot.slane %v4297_v58, 2  ;;  %v4302_v52 = vrot.slane %v4300_v11, 3  ;;  %v17161_v31 = vshrl.u32 %v14767_v60, 16  ;;  %v17160_v63 = vshll.u32 %v14767_v60, 16 }
 0x206   : > { %v3773_v19 = vrot.slane %v14767_v60, 6 }
 0x207   : > { %v4303_v3 = vor.u32 %v4302_v52, %v4299_v9  ;;  %v3619_v42 = vrot.slane %v17161_v31, 5  ;;  %v3622_v28 = vrot.slane %v17160_v63, 6  ;;  %v13365_v31 = vld [vmem:[#allocation3 + $0x98] sm:$0xf] }
 0x209   : > { %6375 = vmatmul.mubr.bf16.gmra.mrb[80].mxu0 %v5338_v20  ;;  %v4292_v20 = vrot.slane %v4290_v57, 3  ;;  %v14792_v30 = vsel %vm4114_vm9, %v14755_v37, %v4303_v3  ;;  %v3623_v6 = vor.u32 %v3622_v28, %v3619_v42  ;;  %v17157_v57 = vshll.u32 %v14788_v40, 16 }
 0x20a   : > { %6414 = vmatprep.mubr.bf16.mxu0 %v4211_v41  ;;  %v3774_v41 = vsel %vm3763_vm11, %v3771_v38, %v3773_v19  ;;  %v3775_v38 = vrot.slane %v14788_v40, 6  ;;  %v14816_v9 = vsel %vm4114_vm9, %v4303_v3, %v4361_v62  ;;  %v13184_v3 = vld [vmem:[%s17131_s2 + $0x1a8] sm:$0xff]  }
 0x20b   : > { %v4293_v23 = vor.u32 %v4292_v20, %v4289_v44  ;;  %v4413_v58 = vshrl.u32 %v3774_v41, 16  ;;  %v4416_v11 = vshll.u32 %v3774_v41, 16  ;;  %v4406_v44 = vrot.slane %v4404_v2, 2  ;;  %v13185_v2 = vld [vmem:[%s17131_s2 + $0x1b0] sm:$0xff]  }
 0x20c   : > { %v4409_v20 = vrot.slane %v4407_v56, 3  ;;  %v3631_v22 = vrot.slane %v17157_v57, 6  ;;  %v14834_v41 = vcombine.low %v13347_v5, %v13348_v43 }
 0x20d   : > { %v4294_v54 = vsel %vm4114_vm9, %v4193_v24, %v4293_v23  ;;  %v13182_v24 = vld [vmem:[%s17131_s2 + $0x198] sm:$0xff]   ;;  %v4415_v52 = vrot.slane %v4413_v58, 2  ;;  %v4418_v7 = vrot.slane %v4416_v11, 3 }
 0x20e   : > { %v4410_v8 = vor.u32 %v4409_v20, %v4406_v44  ;;  %v17149_v20 = vshrl.u32 %v14834_v41, 16 }
 0x211   : > { %6415 = vmatmul.mubr.bf16.vlgmr.msra.gmra.mrb[0].mxu0 %v4194_v36  ;;  %v4353_v36 = vsel %vm4114_vm9, %v4293_v23, %v4352_v49  ;;  %v3776_v23 = vsel %vm3763_vm11, %v3773_v19, %v3775_v38 }
 0x212   : > { %6583 = vmatpush1.bf16.msra.mxu0 %v13179_v59  ;;  %6422 = vmatprep.mubr.bf16.mxu0 %v4295_v33  ;;  %v3624_v59 = vsel %vm3571_vm12, %v3614_v27, %v3623_v6  ;;  %v14813_v33 = vcombine.low %v13345_v47, %v13346_v55  ;;  %v3632_v27 = vor.u32 %v3631_v22, %v3628_v10  ;;  %v4471_v14 = vshrl.u32 %v3776_v23, 16 }
 0x213   : > { %6584 = vmatprep.subr.bf16.mxu0 %v17140_v1  ;;  %v4462_v13 = vshrl.u32 %v3624_v59, 16  ;;  %v4474_v32 = vshll.u32 %v3776_v23, 16  ;;  %v3646_v23 = vrot.slane %v17149_v20, 5 }
 0x214   : > { %v17153_v0 = vshrl.u32 %v14813_v33, 16  ;;  %v17150_v48 = vshll.u32 %v14813_v33, 16  ;;  %v3777_v19 = vrot.slane %v14813_v33, 6  ;;  %v3633_v28 = vsel %vm3571_vm12, %v3623_v6, %v3632_v27 }
 0x215   : > { %v4464_v21 = vrot.slane %v4462_v13, 2  ;;  %v4473_v56 = vrot.slane %v4471_v14, 2  ;;  %v4476_v6 = vrot.slane %v4474_v32, 3  ;;  %v4520_v11 = vshrl.u32 %v3633_v28, 16  ;;  %v13187_v32 = vld [vmem:[%s17131_s2 + $0x1c0] sm:$0xff]  }
 0x216   : > { %6585 = vmatpush1.bf16.msra.mxu0 %v13180_v61  ;;  %v4465_v61 = vshll.u32 %v3624_v59, 16  ;;  %v3637_v35 = vrot.slane %v17153_v0, 5  ;;  %v3640_v50 = vrot.slane %v17150_v48, 6  ;;  %v17146_v59 = vshll.u32 %v14834_v41, 16 }
 0x217   : > { %6586 = vmatprep.subr.bf16.mxu0 %v17140_v1  ;;  %v4477_v10 = vor.u32 %v4476_v6, %v4473_v56  ;;  %v4522_v55 = vrot.slane %v4520_v11, 2 }
 0x218   : > { %v4467_v42 = vrot.slane %v4465_v61, 3  ;;  %v3641_v44 = vor.u32 %v3640_v50, %v3637_v35  ;;  %v3649_v13 = vrot.slane %v17146_v59, 6  ;;  %v13349_v61 = vld [vmem:[#allocation3 + $0x58] sm:$0xf] }
 0x219   : > { %6423 = vmatmul.mubr.bf16.gmra.mrb[4].mxu0 %v4294_v54  ;;  %v4419_v54 = vor.u32 %v4418_v7, %v4415_v52 }
 0x21a   : > { %6430 = vmatprep.mubr.bf16.mxu0 %v14792_v30  ;;  %6587 = vmatpush1.bf16.msra.mxu0 %v13181_v17  ;;  %v4411_v17 = vsel %vm4114_vm9, %v4352_v49, %v4410_v8  ;;  %v4468_v58 = vor.u32 %v4467_v42, %v4464_v21  ;;  %v3642_v7 = vsel %vm3571_vm12, %v3632_v27, %v3641_v44 }
 0x21b   : > { %6588 = vmatprep.subr.bf16.mxu0 %v17140_v1  ;;  %v14840_v49 = vsel %vm4114_vm9, %v4361_v62, %v4419_v54  ;;  %v13186_v62 = vld [vmem:[%s17131_s2 + $0x1b8] sm:$0xff]   ;;  %v4581_v35 = vshll.u32 %v3642_v7, 16  ;;  %v3650_v50 = vor.u32 %v3649_v13, %v3646_v23 }
 0x21c   : > { %v4469_v47 = vsel %vm4114_vm9, %v4410_v8, %v4468_v58  ;;  %v14864_v8 = vsel %vm4114_vm9, %v4419_v54, %v4477_v10  ;;  %v13188_v54 = vld [vmem:[%s17131_s2 + $0x1c8] sm:$0xff]  }
 0x21e   : > { %6589 = vmatpush1.bf16.msra.mxu0 %v13182_v24  ;;  %v3778_v24 = vsel %vm3763_vm11, %v3775_v38, %v3777_v19  ;;  %v3779_v38 = vrot.slane %v14834_v41, 6 }
 0x21f   : > { %6590 = vmatprep.subr.bf16.mxu0 %v17140_v1  ;;  %v4529_v22 = vshrl.u32 %v3778_v24, 16 }
 0x220   : > { %v3780_v21 = vsel %vm3763_vm11, %v3777_v19, %v3779_v38 }
 0x221   : > { %6431 = vmatmul.mubr.bf16.gmra.mrb[8].mxu0 %v4353_v36  ;;  %v4523_v36 = vshll.u32 %v3633_v28, 16  ;;  %v4578_v28 = vshrl.u32 %v3642_v7, 16  ;;  %v4587_v56 = vshrl.u32 %v3780_v21, 16  ;;  %v4590_v6 = vshll.u32 %v3780_v21, 16  ;;  %v13189_v7 = vld [vmem:[%s17131_s2 + $0x1d0] sm:$0xff]  }
 0x222   : > { %6438 = vmatprep.mubr.bf16.mxu0 %v14816_v9  ;;  %6591 = vmatpush1.bf16.msra.mxu0 %v13183_v46  ;;  %v4532_v46 = vshll.u32 %v3778_v24, 16 }
 0x223   : > { %6592 = vmatprep.subr.bf16.mxu0 %v17140_v1  ;;  %v4525_v52 = vrot.slane %v4523_v36, 3  ;;  %v4580_v11 = vrot.slane %v4578_v28, 2  ;;  %v4583_v36 = vrot.slane %v4581_v35, 3  ;;  %v4589_v23 = vrot.slane %v4587_v56, 2 }
 0x224   : > { %v4534_v27 = vrot.slane %v4532_v46, 3 }
 0x225   : > { %v4526_v42 = vor.u32 %v4525_v52, %v4522_v55  ;;  %v13352_v55 = vld [vmem:[#allocation3 + $0x64] sm:$0xf] }
 0x226   : > { %6593 = vmatpush1.bf16.msra.mxu0 %v13184_v3  ;;  %v13350_v3 = vld [vmem:[#allocation3 + $0x5c] sm:$0xf] }
 0x227   : > { %6594 = vmatprep.subr.bf16.mxu0 %v17140_v1  ;;  %v14858_v14 = vcombine.low %v13349_v61, %v13350_v3  ;;  %v4527_v24 = vsel %vm4114_vm9, %v4468_v58, %v4526_v42  ;;  %v4584_v61 = vor.u32 %v4583_v36, %v4580_v11 }
 0x229   : > { %6439 = vmatmul.mubr.bf16.gmra.mrb[12].mxu0 %v4411_v17  ;;  %v4531_v17 = vrot.slane %v4529_v22, 2  ;;  %v17145_v5 = vshrl.u32 %v14858_v14, 16  ;;  %v17143_v43 = vshll.u32 %v14858_v14, 16  ;;  %v3781_v19 = vrot.slane %v14858_v14, 6 }
 0x22a   : > { %6446 = vmatprep.mubr.bf16.mxu0 %v14840_v49  ;;  %6595 = vmatpush1.bf16.msra.mxu0 %v13185_v2  ;;  %v4585_v56 = vsel %vm4114_vm9, %v4526_v42, %v4584_v61 }
 0x22b   : > { %6596 = vmatprep.subr.bf16.mxu0 %v17140_v1  ;;  %v4535_v2 = vor.u32 %v4534_v27, %v4531_v17  ;;  %v3655_v22 = vrot.slane %v17145_v5, 5  ;;  %v3658_v46 = vrot.slane %v17143_v43, 6  ;;  %v3782_v13 = vsel %vm3763_vm11, %v3779_v38, %v3781_v19 }
 0x22c   : > { %v4645_v35 = vshrl.u32 %v3782_v13, 16 }
 0x22d   : > { %v14888_v58 = vsel %vm4114_vm9, %v4477_v10, %v4535_v2  ;;  %v3659_v17 = vor.u32 %v3658_v46, %v3655_v22  ;;  %v13190_v10 = vld [vmem:[%s17131_s2 + $0x1d8] sm:$0xff]   ;;  %v13353_v22 = vld [vmem:[#allocation3 + $0x68] sm:$0xf]  ;;  %v13354_v46 = vld [vmem:[#allocation3 + $0x6c] sm:$0xf] }
 0x22e   : > { %6597 = vmatpush1.bf16.msra.mxu0 %v13186_v62  ;;  %v3651_v62 = vsel %vm3571_vm12, %v3641_v44, %v3650_v50  ;;  %v4592_v44 = vrot.slane %v4590_v6, 3 }
 0x22f   : > { %6598 = vmatprep.subr.bf16.mxu0 %v17140_v1  ;;  %v4636_v3 = vshrl.u32 %v3651_v62, 16  ;;  %v3660_v11 = vsel %vm3571_vm12, %v3650_v50, %v3659_v17 }
 0x230   : > { %v4593_v28 = vor.u32 %v4592_v44, %v4589_v23 }
 0x231   : > { %6447 = vmatmul.mubr.bf16.gmra.mrb[16].mxu0 %v4469_v47  ;;  %v13351_v47 = vld [vmem:[#allocation3 + $0x60] sm:$0xf]  ;;  %v4638_v6 = vrot.slane %v4636_v3, 2  ;;  %v4697_v3 = vshll.u32 %v3660_v11, 16 }
 0x232   : > { %6454 = vmatprep.mubr.bf16.mxu0 %v14864_v8  ;;  %6599 = vmatpush1.bf16.msra.mxu0 %v13187_v32  ;;  %v14882_v52 = vcombine.low %v13351_v47, %v13352_v55  ;;  %v4639_v32 = vshll.u32 %v3651_v62, 16  ;;  %v14906_v47 = vcombine.low %v13353_v22, %v13354_v46  ;;  %v13191_v55 = vld [vmem:[%s17131_s2 + $0x1e0] sm:$0xff]   ;;  %v14912_v42 = vsel %vm4114_vm9, %v4535_v2, %v4593_v28  ;;  %v13192_v2 = vld [vmem:[%s17131_s2 + $0x1e8] sm:$0xff]  }
 0x233   : > { %6600 = vmatprep.subr.bf16.mxu0 %v17140_v1 }
 0x234   : > { %v17139_v27 = vshrl.u32 %v14882_v52, 16  ;;  %v17138_v21 = vshll.u32 %v14882_v52, 16  ;;  %v3783_v38 = vrot.slane %v14882_v52, 6  ;;  %v17136_v22 = vshll.u32 %v14906_v47, 16 }
 0x236   : > { %6601 = vmatpush1.bf16.msra.mxu0 %v13188_v54  ;;  %v4648_v54 = vshll.u32 %v3782_v13, 16  ;;  %v3664_v36 = vrot.slane %v17139_v27, 5  ;;  %v3667_v62 = vrot.slane %v17138_v21, 6  ;;  %v3784_v23 = vsel %vm3763_vm11, %v3781_v19, %v3783_v38 }
 0x237   : > { %6602 = vmatprep.subr.bf16.mxu0 %v17140_v1  ;;  %v4694_v13 = vshrl.u32 %v3660_v11, 16  ;;  %v4706_v46 = vshll.u32 %v3784_v23, 16  ;;  %v3785_v19 = vrot.slane %v14906_v47, 6 }
 0x238   : > { %v4650_v50 = vrot.slane %v4648_v54, 3  ;;  %v4703_v54 = vshrl.u32 %v3784_v23, 16  ;;  %v13193_v23 = vld [vmem:[%s17131_s2 + $0x1f0] sm:$0xff]  }
 0x239   : > { %6455 = vmatmul.mubr.bf16.gmra.mrb[20].mxu0 %v4527_v24  ;;  %v4641_v24 = vrot.slane %v4639_v32, 3  ;;  %v3668_v32 = vor.u32 %v3667_v62, %v3664_v36  ;;  %v3676_v62 = vrot.slane %v17136_v22, 6 }
 0x23a   : > { %6462 = vmatprep.mubr.bf16.mxu0 %v14888_v58  ;;  %6603 = vmatpush1.bf16.msra.mxu0 %v13189_v7  ;;  %v4647_v7 = vrot.slane %v4645_v35, 2 }
 0x23b   : > { %6604 = vmatprep.subr.bf16.mxu0 %v17140_v1  ;;  %v4642_v44 = vor.u32 %v4641_v24, %v4638_v6  ;;  %v4696_v6 = vrot.slane %v4694_v13, 2  ;;  %v4699_v24 = vrot.slane %v4697_v3, 3  ;;  %v3669_v11 = vsel %vm3571_vm12, %v3659_v17, %v3668_v32 }
 0x23c   : > { %v4651_v35 = vor.u32 %v4650_v50, %v4647_v7  ;;  %v13356_v7 = vld [vmem:[#allocation3 + $0x74] sm:$0xf]  ;;  %v4705_v13 = vrot.slane %v4703_v54, 2  ;;  %v4708_v17 = vrot.slane %v4706_v46, 3  ;;  %v3786_v3 = vsel %vm3763_vm11, %v3783_v38, %v3785_v19 }
 0x23d   : > { %v4700_v22 = vor.u32 %v4699_v24, %v4696_v6  ;;  %v4755_v21 = vshll.u32 %v3669_v11, 16  ;;  %v4761_v46 = vshrl.u32 %v3786_v3, 16  ;;  %v4764_v27 = vshll.u32 %v3786_v3, 16 }
 0x23e   : > { %6605 = vmatpush1.bf16.msra.mxu0 %v13190_v10  ;;  %v17137_v10 = vshrl.u32 %v14906_v47, 16  ;;  %v4709_v54 = vor.u32 %v4708_v17, %v4705_v13  ;;  %v13358_v13 = vld [vmem:[#allocation3 + $0x7c] sm:$0xf] }
 0x23f   : > { %6606 = vmatprep.subr.bf16.mxu0 %v17140_v1  ;;  %v4757_v24 = vrot.slane %v4755_v21, 3 }
 0x240   : > { %v3673_v36 = vrot.slane %v17137_v10, 5  ;;  %v4752_v10 = vshrl.u32 %v3669_v11, 16  ;;  %v14957_v3 = vsel %vm4114_vm9, %v4651_v35, %v4709_v54 }
 0x241   : > { %6463 = vmatmul.mubr.bf16.gmra.mrb[24].mxu0 %v4585_v56  ;;  %v4643_v56 = vsel %vm4114_vm9, %v4584_v61, %v4642_v44  ;;  %v14936_v61 = vsel %vm4114_vm9, %v4593_v28, %v4651_v35  ;;  %v13195_v28 = vld [vmem:[%s17131_s2 + $0x1f8] sm:$0xff]  }
 0x242   : > { %6470 = vmatprep.mubr.bf16.mxu0 %v14912_v42  ;;  %6607 = vmatpush1.bf16.msra.mxu0 %v13191_v55  ;;  %v13355_v55 = vld [vmem:[#allocation3 + $0x70] sm:$0xf]  ;;  %v4754_v6 = vrot.slane %v4752_v10, 2  ;;  %v17154_v10 = vmov 0.0  }
 0x243   : > { %6608 = vmatprep.subr.bf16.mxu0 %v17140_v1  ;;  %v14930_v50 = vcombine.low %v13355_v55, %v13356_v7 }
 0x245   : > { %v17142_v55 = vshrl.u32 %v14930_v50, 16  ;;  %v17144_v7 = vshll.u32 %v14930_v50, 16  ;;  %v3787_v38 = vrot.slane %v14930_v50, 6 }
 0x246   : > { %6609 = vmatpush1.bf16.msra.mxu0 %v13192_v2  ;;  %v3677_v2 = vor.u32 %v3676_v62, %v3673_v36 }
 0x247   : > { %6610 = vmatprep.subr.bf16.mxu0 %v17140_v1  ;;  %v3682_v36 = vrot.slane %v17142_v55, 5  ;;  %v3685_v62 = vrot.slane %v17144_v7, 6  ;;  %v3788_v21 = vsel %vm3763_vm11, %v3785_v19, %v3787_v38 }
 0x248   : > { %v3678_v11 = vsel %vm3571_vm12, %v3668_v32, %v3677_v2  ;;  %v4758_v32 = vor.u32 %v4757_v24, %v4754_v6 }
 0x249   : > { %6471 = vmatmul.mubr.bf16.gmra.mrb[28].mxu0 %v4643_v56  ;;  %v4701_v56 = vsel %vm4114_vm9, %v4642_v44, %v4700_v22  ;;  %v4766_v44 = vrot.slane %v4764_v27, 3  ;;  %v4810_v55 = vshrl.u32 %v3678_v11, 16  ;;  %v4813_v43 = vshll.u32 %v3678_v11, 16  ;;  %v13359_v11 = vld [vmem:[#allocation3 + $0x80] sm:$0xf] }
 0x24a   : > { %6478 = vmatprep.mubr.bf16.mxu0 %v14936_v61  ;;  %6611 = vmatpush1.bf16.msra.mxu0 %v13193_v23  ;;  %v13357_v23 = vld [vmem:[#allocation3 + $0x78] sm:$0xf]  ;;  %v3686_v7 = vor.u32 %v3685_v62, %v3682_v36  ;;  %v4759_v5 = vsel %vm4114_vm9, %v4700_v22, %v4758_v32  ;;  %v13360_v36 = vld [vmem:[#allocation3 + $0x84] sm:$0xf] }
 0x24b   : > { %6612 = vmatprep.subr.bf16.mxu0 %v17140_v1  ;;  %v14954_v17 = vcombine.low %v13357_v23, %v13358_v13  ;;  %v4763_v1 = vrot.slane %v4761_v46, 2  ;;  %v4819_v13 = vshrl.u32 %v3788_v21, 16  ;;  %v4822_v46 = vshll.u32 %v3788_v21, 16 }
 0x24c   : > { %v4812_v59 = vrot.slane %v4810_v55, 2  ;;  %v4815_v19 = vrot.slane %v4813_v43, 3  ;;  %v14971_v62 = vcombine.low %v13359_v11, %v13360_v36 }
 0x24d   : > { %v17147_v23 = vshrl.u32 %v14954_v17, 16  ;;  %v4767_v35 = vor.u32 %v4766_v44, %v4763_v1  ;;  %v3789_v27 = vrot.slane %v14954_v17, 6  ;;  %v4821_v44 = vrot.slane %v4819_v13, 2 }
 0x24e   : > { %6613 = vmatpush1.bf16.msra.mxu0 %v13195_v28  ;;  %v17148_v28 = vshll.u32 %v14954_v17, 16  ;;  %v4824_v21 = vrot.slane %v4822_v46, 3  ;;  %v4816_v43 = vor.u32 %v4815_v19, %v4812_v59  ;;  %v17152_v20 = vshll.u32 %v14971_v62, 16 }
 0x24f   : > { %12136 = vmatprep.subr.bf16.mxu0 %v17154_v10  ;;  %v3691_v6 = vrot.slane %v17147_v23, 5  ;;  %v14974_v1 = vsel %vm4114_vm9, %v4709_v54, %v4767_v35  ;;  %v3790_v22 = vsel %vm3763_vm11, %v3787_v38, %v3789_v27  ;;  %v3791_v54 = vrot.slane %v14971_v62, 6 }
 0x250   : > { %v3694_v24 = vrot.slane %v17148_v28, 6  ;;  %v17151_v28 = vshrl.u32 %v14971_v62, 16  ;;  %v4825_v11 = vor.u32 %v4824_v21, %v4821_v44  ;;  %v4877_v36 = vshrl.u32 %v3790_v22, 16 }
 0x251   : > { %6479 = vmatmul.mubr.bf16.gmra.mrb[32].mxu0 %v4701_v56  ;;  %v3687_v56 = vsel %vm3571_vm12, %v3677_v2, %v3686_v7  ;;  %v4880_v48 = vshll.u32 %v3790_v22, 16  ;;  %v4817_v13 = vsel %vm4114_vm9, %v4758_v32, %v4816_v43  ;;  %v3703_v19 = vrot.slane %v17152_v20, 6 }
 0x252   : > { %6486 = vmatprep.mubr.bf16.mxu0 %v14957_v3  ;;  %v4868_v2 = vshrl.u32 %v3687_v56, 16  ;;  %v4871_v55 = vshll.u32 %v3687_v56, 16  ;;  %v3695_v23 = vor.u32 %v3694_v24, %v3691_v6  ;;  %v13361_v56 = vld [vmem:[#allocation3 + $0x88] sm:$0xf]  ;;  %v13362_v6 = vld [vmem:[#allocation3 + $0x8c] sm:$0xf]  ;;  %v14990_v44 = vsel %vm4114_vm9, %v4767_v35, %v4825_v11 }
 0x253   : > { %v14987_v24 = vcombine.low %v13361_v56, %v13362_v6  ;;  %v4879_v21 = vrot.slane %v4877_v36, 2  ;;  %v4882_v22 = vrot.slane %v4880_v48, 3  ;;  %v3792_v32 = vsel %vm3763_vm11, %v3789_v27, %v3791_v54  ;;  %v13363_v27 = vld [vmem:[#allocation3 + $0x90] sm:$0xf] }
 0x254   : > { %v4870_v46 = vrot.slane %v4868_v2, 2  ;;  %v4873_v38 = vrot.slane %v4871_v55, 3  ;;  %v3696_v59 = vsel %vm3571_vm12, %v3686_v7, %v3695_v23  ;;  %v4935_v6 = vshrl.u32 %v3792_v32, 16 }
 0x255   : > { %v4926_v7 = vshrl.u32 %v3696_v59, 16  ;;  %v4929_v55 = vshll.u32 %v3696_v59, 16  ;;  %v17156_v20 = vshrl.u32 %v14987_v24, 16  ;;  %v17158_v0 = vshll.u32 %v14987_v24, 16 }
 0x256   : > { %v4874_v2 = vor.u32 %v4873_v38, %v4870_v46  ;;  %v4883_v56 = vor.u32 %v4882_v22, %v4879_v21  ;;  %v4938_v10 = vshll.u32 %v3792_v32, 16  ;;  %v3793_v35 = vrot.slane %v14987_v24, 6 }
 0x257   : > { %v4928_v36 = vrot.slane %v4926_v7, 2  ;;  %v4931_v38 = vrot.slane %v4929_v55, 3  ;;  %v4937_v22 = vrot.slane %v4935_v6, 2 }
 0x258   : > { %v4875_v48 = vsel %vm4114_vm9, %v4816_v43, %v4874_v2  ;;  %v15006_v21 = vsel %vm4114_vm9, %v4825_v11, %v4883_v56  ;;  %v4940_v32 = vrot.slane %v4938_v10, 3  ;;  %v3794_v43 = vsel %vm3763_vm11, %v3791_v54, %v3793_v35 }
 0x259   : > { %6487 = vmatmul.mubr.bf16.gmra.mrb[36].mxu0 %v4759_v5  ;;  %v3700_v5 = vrot.slane %v17151_v28, 5  ;;  %v4996_v25 = vshll.u32 %v3794_v43, 16 }
 0x25a   : > { %6494 = vmatprep.mubr.bf16.mxu0 %v14974_v1  ;;  %v4941_v57 = vor.u32 %v4940_v32, %v4937_v22 }
 0x25b   : > { %v3704_v28 = vor.u32 %v3703_v19, %v3700_v5  ;;  %v3709_v5 = vrot.slane %v17156_v20, 5  ;;  %v3712_v19 = vrot.slane %v17158_v0, 6  ;;  %v4993_v0 = vshrl.u32 %v3794_v43, 16 }
 0x25c   : > { %v4998_v22 = vrot.slane %v4996_v25, 3 }
 0x25d   : > { %v3705_v59 = vsel %vm3571_vm12, %v3695_v23, %v3704_v28  ;;  %v3713_v20 = vor.u32 %v3712_v19, %v3709_v5  ;;  %v15022_v5 = vsel %vm4114_vm9, %v4883_v56, %v4941_v57  ;;  %v4995_v19 = vrot.slane %v4993_v0, 2 }
 0x25e   : > { %v4984_v7 = vshrl.u32 %v3705_v59, 16 }
 0x25f   : > { %v3714_v63 = vsel %vm3571_vm12, %v3704_v28, %v3713_v20 }
 0x260   : > { %v4986_v6 = vrot.slane %v4984_v7, 2  ;;  %v5042_v7 = vshrl.u32 %v3714_v63, 16 }
 0x261   : > { %6495 = vmatmul.mubr.bf16.gmra.mrb[40].mxu0 %v4817_v13  ;;  %v13364_v13 = vld [vmem:[#allocation3 + $0x94] sm:$0xf] }
 0x262   : > { %6502 = vmatprep.mubr.bf16.mxu0 %v14990_v44  ;;  %v14998_v46 = vcombine.low %v13363_v27, %v13364_v13  ;;  %v4987_v27 = vshll.u32 %v3705_v59, 16  ;;  %v4932_v13 = vor.u32 %v4931_v38, %v4928_v36  ;;  %v13366_v36 = vld [vmem:[#allocation3 + $0x9c] sm:$0xf]  ;;  %v5044_v0 = vrot.slane %v5042_v7, 2 }
 0x263   : > { %v15019_v38 = vcombine.low %v13365_v31, %v13366_v36  ;;  %v4999_v36 = vor.u32 %v4998_v22, %v4995_v19  ;;  %v13367_v22 = vld [vmem:[#allocation3 + $0xa0] sm:$0xf] }
 0x264   : > { %v17163_v55 = vshrl.u32 %v14998_v46, 16  ;;  %v17162_v23 = vshll.u32 %v14998_v46, 16  ;;  %v3795_v11 = vrot.slane %v14998_v46, 6  ;;  %v4989_v10 = vrot.slane %v4987_v27, 3 }
 0x265   : > { %v4933_v59 = vsel %vm4114_vm9, %v4874_v2, %v4932_v13  ;;  %v5045_v27 = vshll.u32 %v3714_v63, 16  ;;  %v17166_v31 = vshll.u32 %v15019_v38, 16  ;;  %v3797_v56 = vrot.slane %v15019_v38, 6 }
 0x266   : > { %v3718_v54 = vrot.slane %v17163_v55, 5  ;;  %v3796_v32 = vsel %vm3763_vm11, %v3793_v35, %v3795_v11  ;;  %v4990_v43 = vor.u32 %v4989_v10, %v4986_v6  ;;  %v17164_v55 = vshrl.u32 %v15019_v38, 16 }
 0x267   : > { %v5051_v2 = vshrl.u32 %v3796_v32, 16  ;;  %v5054_v28 = vshll.u32 %v3796_v32, 16  ;;  %v5047_v35 = vrot.slane %v5045_v27, 3  ;;  %v3798_v19 = vsel %vm3763_vm11, %v3795_v11, %v3797_v56  ;;  %v13368_v32 = vld [vmem:[#allocation3 + $0xa4] sm:$0xf] }
 0x268   : > { %v4991_v25 = vsel %vm4114_vm9, %v4932_v13, %v4990_v43  ;;  %v15039_v13 = vcombine.low %v13367_v22, %v13368_v32  ;;  %v5112_v4 = vshll.u32 %v3798_v19, 16 }
 0x269   : > { %6503 = vmatmul.mubr.bf16.gmra.mrb[44].mxu0 %v4875_v48  ;;  %v3721_v48 = vrot.slane %v17162_v23, 6  ;;  %v5053_v10 = vrot.slane %v5051_v2, 2  ;;  %v5056_v63 = vrot.slane %v5054_v28, 3  ;;  %v5048_v27 = vor.u32 %v5047_v35, %v5044_v0 }
 0x26a   : > { %6510 = vmatprep.mubr.bf16.mxu0 %v15006_v21  ;;  %v5109_v28 = vshrl.u32 %v3798_v19, 16  ;;  %v17169_v11 = vshll.u32 %v15039_v13, 16  ;;  %v5114_v35 = vrot.slane %v5112_v4, 3  ;;  %v17171_v4 = vshll.u32 %v14627_v26, 16 }
 0x26b   : > { %v3722_v23 = vor.u32 %v3721_v48, %v3718_v54  ;;  %v3727_v54 = vrot.slane %v17164_v55, 5  ;;  %v3730_v48 = vrot.slane %v17166_v31, 6  ;;  %v5057_v2 = vor.u32 %v5056_v63, %v5053_v10 }
 0x26c   : > { %v3799_v31 = vrot.slane %v15039_v13, 6  ;;  %v5049_v22 = vsel %vm4114_vm9, %v4990_v43, %v5048_v27 }
 0x26d   : > { %v3723_v6 = vsel %vm3571_vm12, %v3713_v20, %v3722_v23  ;;  %v3731_v55 = vor.u32 %v3730_v48, %v3727_v54  ;;  %v3739_v54 = vrot.slane %v17169_v11, 6 }
 0x26e   : > { %v5100_v7 = vshrl.u32 %v3723_v6, 16  ;;  %v5103_v20 = vshll.u32 %v3723_v6, 16  ;;  %v5111_v6 = vrot.slane %v5109_v28, 2  ;;  %v3800_v10 = vsel %vm3763_vm11, %v3797_v56, %v3799_v31 }
 0x26f   : > { %v3732_v0 = vsel %vm3571_vm12, %v3722_v23, %v3731_v55  ;;  %v5167_v43 = vshrl.u32 %v3800_v10, 16 }
 0x270   : > { %v5102_v53 = vrot.slane %v5100_v7, 2  ;;  %v5105_v34 = vrot.slane %v5103_v20, 3  ;;  %v5158_v19 = vshrl.u32 %v3732_v0, 16  ;;  %v5161_v32 = vshll.u32 %v3732_v0, 16 }
 0x271   : > { %6511 = vmatmul.mubr.bf16.gmra.mrb[48].mxu0 %v4933_v59  ;;  %v15036_v59 = vsel %vm4114_vm9, %v4941_v57, %v4999_v36  ;;  %v17170_v57 = vshrl.u32 %v15039_v13, 16  ;;  %v17172_v7 = vshrl.u32 %v14627_v26, 16  ;;  %v5115_v23 = vor.u32 %v5114_v35, %v5111_v6 }
 0x272   : > { %6518 = vmatprep.mubr.bf16.mxu0 %v15022_v5  ;;  %v5106_v48 = vor.u32 %v5105_v34, %v5102_v53  ;;  %v15059_v20 = vrot.slane %v14627_v26, 6  ;;  %v5160_v11 = vrot.slane %v5158_v19, 2  ;;  %v5169_v34 = vrot.slane %v5167_v43, 2 }
 0x273   : > { %v3736_v63 = vrot.slane %v17170_v57, 5  ;;  %v3745_v0 = vrot.slane %v17172_v7, 5  ;;  %v11669_v57 = vcombine.low %v14703_v15, %v14703_v15  ;;  %v15069_v6 = vsel %vm4114_vm9, %v5057_v2, %v5115_v23 }
 0x274   : > { %v5107_v28 = vsel %vm4114_vm9, %v5048_v27, %v5106_v48  ;;  %v3802_v27 = vsel %vm3763_vm11, %v3799_v31, %v15059_v20 }
 0x275   : > { %v3740_v56 = vor.u32 %v3739_v54, %v3736_v63  ;;  %v13194_v63 = vld [vmem:[#allocation3 + $0xb0] ss:$0 sps:$4 sm:$0x77]   ;;  %v5228_v7 = vshll.u32 %v3802_v27, 16  ;;  %v3752_v15 = vshrl.u32 %v11669_v57, 16  ;;  %v3755_v39 = vshll.u32 %v11669_v57, 16 }
 0x277   : > { %v3741_v35 = vsel %vm3571_vm12, %v3731_v55, %v3740_v56  ;;  %v3210_v55 = vld [vmem:[#allocation3 + $0x18] sm:$0xe] }
 0x278   : > { %v5219_v43 = vshll.u32 %v3741_v35, 16 }
 0x279   : > { %6519 = vmatmul.mubr.bf16.gmra.mrb[52].mxu0 %v4991_v25  ;;  %v15047_v25 = vsel %vm4114_vm9, %v4999_v36, %v5057_v2  ;;  %v5170_v36 = vshll.u32 %v3800_v10, 16  ;;  %v3748_v10 = vrot.slane %v17171_v4, 6  ;;  %v5225_v4 = vshrl.u32 %v3802_v27, 16 }
 0x27a   : > { %6526 = vmatprep.mubr.bf16.mxu0 %v15036_v59  ;;  %v3803_v2 = vrot.slane %v13194_v63, 6 }
 0x27b   : > { %v5172_v53 = vrot.slane %v5170_v36, 3  ;;  %v3749_v36 = vor.u32 %v3748_v10, %v3745_v0  ;;  %v13369_v10 = vld [vmem:[#allocation3 + $0x1c] sm:$0xf] }
 0x27c   : > { %v3804_v0 = vsel %vm3763_vm11, %v15059_v20, %v3803_v2  ;;  %v15082_v57 = vcombine.low %v3210_v55, %v13369_v10 }
 0x27d   : > { %v5173_v19 = vor.u32 %v5172_v53, %v5169_v34  ;;  %v5230_v34 = vrot.slane %v5228_v7, 3  ;;  %v3754_v53 = vrot.slane %v3752_v15, 5 }
 0x27e   : > { %v3822_v7 = vshrl.u32 %v15082_v57, 16 }
 0x27f   : > { %v15077_v45 = vsel %vm4114_vm9, %v5115_v23, %v5173_v19 }
 0x281   : > { %6527 = vmatmul.mubr.bf16.gmra.mrb[56].mxu0 %v5049_v22  ;;  %v5163_v22 = vrot.slane %v5161_v32, 3  ;;  %v5216_v32 = vshrl.u32 %v3741_v35, 16  ;;  %v3757_v35 = vrot.slane %v3755_v39, 6  ;;  %v3825_v39 = vshll.u32 %v15082_v57, 16 }
 0x282   : > { %6534 = vmatprep.mubr.bf16.mxu0 %v15047_v25 }
 0x283   : > { %v5164_v54 = vor.u32 %v5163_v22, %v5160_v11  ;;  %v5218_v31 = vrot.slane %v5216_v32, 2  ;;  %v3750_v11 = vsel %vm3571_vm12, %v3740_v56, %v3749_v36  ;;  %v5227_v22 = vrot.slane %v5225_v4, 2 }
 0x284   : > { %v5283_v23 = vshrl.u32 %v3750_v11, 16  ;;  %v5286_v27 = vshll.u32 %v3750_v11, 16  ;;  %v5359_v32 = vshrl.u32 %v3804_v0, 16  ;;  %v5362_v56 = vshll.u32 %v3804_v0, 16 }
 0x285   : > { %v5165_v29 = vsel %vm4114_vm9, %v5106_v48, %v5164_v54  ;;  %v15085_v63 = vor.u32 %v5230_v34, %v5227_v22  ;;  %v3758_v4 = vor.u32 %v3757_v35, %v3754_v53  ;;  %v3824_v11 = vrot.slane %v3822_v7, 6 }
 0x286   : > { %v5285_v15 = vrot.slane %v5283_v23, 2  ;;  %v5288_v2 = vrot.slane %v5286_v27, 3  ;;  %v5361_v55 = vrot.slane %v5359_v32, 2  ;;  %v3827_v22 = vrot.slane %v3825_v39, 7 }
 0x287   : > { %v17274_v34 = vshrl.u32 %v14721_v18, 16  ;;  %v17275_v35 = vshll.u32 %v14721_v18, 16 }
 0x288   : > { %v3828_v27 = vor.u32 %v3827_v22, %v3824_v11 }
 0x289   : > { %6535 = vmatmul.mubr.bf16.gmra.mrb[60].mxu0 %v5107_v28  ;;  %v5221_v28 = vrot.slane %v5219_v43, 3  ;;  %v3829_v53 = vrot.slane %v17274_v34, 6  ;;  %v3830_v0 = vrot.slane %v17275_v35, 7 }
 0x28a   : > { %6542 = vmatprep.mubr.bf16.mxu0 %v15069_v6 }
 0x28b   : > { %v5222_v48 = vor.u32 %v5221_v28, %v5218_v31  ;;  %v5364_v31 = vrot.slane %v5362_v56, 3  ;;  %v3759_v28 = vsel %vm3571_vm12, %v3749_v36, %v3758_v4  ;;  %v3831_v32 = vor.u32 %v3830_v0, %v3829_v53 }
 0x28c   : > { %v5350_v10 = vshrl.u32 %v3759_v28, 16  ;;  %v5353_v23 = vshll.u32 %v3759_v28, 16  ;;  %v4233_v28 = vshll.u32 %v3828_v27, 16 }
 0x28d   : > { %v5223_v43 = vsel %vm4114_vm9, %v5164_v54, %v5222_v48  ;;  %v5289_v54 = vor.u32 %v5288_v2, %v5285_v15  ;;  %v3832_v39 = vsel %vm3820_vm13, %v3828_v27, %v3831_v32  ;;  %v17277_v15 = vshll.u32 %v14737_v12, 16 }
 0x28e   : > { %v5352_v56 = vrot.slane %v5350_v10, 2  ;;  %v5355_v4 = vrot.slane %v5353_v23, 3  ;;  %v4238_v11 = vshrl.u32 %v3832_v39, 16  ;;  %v4235_v0 = vrot.slane %v4233_v28, 3 }
 0x28f   : > { %v5290_v36 = vsel %vm4114_vm9, %v5222_v48, %v5289_v54  ;;  %v3834_v2 = vrot.slane %v17277_v15, 7  ;;  %v4241_v48 = vshll.u32 %v3832_v39, 16 }
 0x290   : > { %v4240_v10 = vrot.slane %v4238_v11, 2 }
 0x291   : > { %6543 = vmatmul.mubr.bf16.gmra.mrb[64].mxu0 %v5165_v29  ;;  %v15092_v29 = vsel %vm4114_vm9, %v5173_v19, %v15085_v63  ;;  %v5365_v19 = vor.u32 %v5364_v31, %v5361_v55  ;;  %v5356_v55 = vor.u32 %v5355_v4, %v5352_v56  ;;  %v4230_v31 = vshrl.u32 %v3828_v27, 16 }
 0x292   : > { %6550 = vmatprep.mubr.bf16.mxu0 %v15077_v45  ;;  %v4243_v23 = vrot.slane %v4241_v48, 3  ;;  %v4213_v27 = vshrl.u32 %v14719_v51, 16  ;;  %v4216_v56 = vshll.u32 %v14719_v51, 16 }
 0x293   : > { %v5366_v7 = vsel %vm4114_vm9, %v15085_v63, %v5365_v19  ;;  %v5357_v53 = vsel %vm4114_vm9, %v5289_v54, %v5356_v55  ;;  %v4232_v35 = vrot.slane %v4230_v31, 2 }
 0x294   : > { %v4244_v54 = vor.u32 %v4243_v23, %v4240_v10  ;;  %v4218_v31 = vrot.slane %v4216_v56, 3 }
 0x295   : > { %v4236_v4 = vor.u32 %v4235_v0, %v4232_v35 }
 0x299   : > { %6551 = vmatmul.mubr.bf16.gmra.mrb[68].mxu0 %v5223_v43  ;;  %v17276_v43 = vshrl.u32 %v14737_v12, 16 }
 0x29a   : > { %6558 = vmatprep.mubr.bf16.mxu0 %v15092_v29 }
 0x29b   : > { %v3833_v34 = vrot.slane %v17276_v43, 6  ;;  %v17278_v43 = vshrl.u32 %v14749_v16, 16 }
 0x29d   : > { %v3835_v22 = vor.u32 %v3834_v2, %v3833_v34  ;;  %v3837_v12 = vrot.slane %v17278_v43, 6  ;;  %v4215_v2 = vrot.slane %v4213_v27, 2  ;;  %v17281_v43 = vshll.u32 %v14767_v60, 16 }
 0x29f   : > { %v3836_v18 = vsel %vm3820_vm13, %v3831_v32, %v3835_v22  ;;  %v4245_v32 = vsel %vm4114_vm9, %v4236_v4, %v4244_v54  ;;  %v4219_v51 = vor.u32 %v4218_v31, %v4215_v2  ;;  %v17284_v31 = vmov 0.0  }
 0x2a0   : > { %v4306_v39 = vshrl.u32 %v3836_v18, 16  ;;  %v4309_v34 = vshll.u32 %v3836_v18, 16 }
 0x2a1   : > { %6559 = vmatmul.mubr.bf16.gmra.mrb[72].mxu0 %v5290_v36  ;;  %v17279_v36 = vshll.u32 %v14749_v16, 16  ;;  %v4228_v10 = vsel %vm4114_vm9, %v4219_v51, %v14755_v37  ;;  %v13197_v37 = vld [vmem:[%s17131_s2 + $0x208] sm:$0xff]   ;;  %v17286_v51 = vshll.u32 %v14813_v33, 16 }
 0x2a2   : > { %6566 = vmatprep.mubr.bf16.mxu0 %v5366_v7  ;;  %v4308_v28 = vrot.slane %v4306_v39, 2  ;;  %v4311_v11 = vrot.slane %v4309_v34, 3  ;;  %v17283_v39 = vshll.u32 %v14788_v40, 16 }
 0x2a3   : > { %v3838_v7 = vrot.slane %v17279_v36, 7  ;;  %v3842_v36 = vrot.slane %v17281_v43, 7  ;;  %v17285_v43 = vshrl.u32 %v14813_v33, 16 }
 0x2a4   : > { %v4312_v35 = vor.u32 %v4311_v11, %v4308_v28  ;;  %v3846_v34 = vrot.slane %v17283_v39, 7  ;;  %v17288_v39 = vshll.u32 %v14834_v41, 16 }
 0x2a5   : > { %v3839_v15 = vor.u32 %v3838_v7, %v3837_v12 }
 0x2a6   : > { %v4313_v23 = vsel %vm4114_vm9, %v4244_v54, %v4312_v35 }
 0x2a7   : > { %v3840_v48 = vsel %vm3820_vm13, %v3835_v22, %v3839_v15  ;;  %v13196_v22 = vld [vmem:[%s17131_s2 + $0x200] sm:$0xff]  }
 0x2a8   : > { %v4364_v18 = vshrl.u32 %v3840_v48, 16  ;;  %v4367_v12 = vshll.u32 %v3840_v48, 16 }
 0x2a9   : > { %6567 = vmatmul.mubr.bf16.gmra.mrb[76].mxu0 %v5357_v53  ;;  %v17280_v53 = vshrl.u32 %v14767_v60, 16 }
 0x2aa   : > { %6574 = vmatprep.mubr.bf16.mxu0 %v5365_v19  ;;  %v4366_v7 = vrot.slane %v4364_v18, 2  ;;  %v4369_v27 = vrot.slane %v4367_v12, 3  ;;  %v3850_v18 = vrot.slane %v17286_v51, 7 }
 0x2ab   : > { %v3841_v19 = vrot.slane %v17280_v53, 6 }
 0x2ac   : > { %v4370_v2 = vor.u32 %v4369_v27, %v4366_v7 }
 0x2ad   : > { %v3843_v0 = vor.u32 %v3842_v36, %v3841_v19  ;;  %v3849_v36 = vrot.slane %v17285_v43, 6 }
 0x2ae   : > { %v4371_v11 = vsel %vm4114_vm9, %v4312_v35, %v4370_v2  ;;  %v13199_v35 = vld [vmem:[%s17131_s2 + $0x218] sm:$0xff]  }
 0x2af   : > { %v3844_v56 = vsel %vm3820_vm13, %v3839_v15, %v3843_v0  ;;  %v13198_v15 = vld [vmem:[%s17131_s2 + $0x210] sm:$0xff]  }
 0x2b0   : > { %v4422_v54 = vshrl.u32 %v3844_v56, 16 }
 0x2b1   : > { %6575 = vmatmul.mubr.bf16.gmra.mrb[80].mxu0 %v5356_v55  ;;  %v17282_v55 = vshrl.u32 %v14788_v40, 16 }
 0x2b2   : > { %6614 = vmatprep.mubr.bf16.mxu0 %v4245_v32  ;;  %v4425_v32 = vshll.u32 %v3844_v56, 16  ;;  %v4424_v48 = vrot.slane %v4422_v54, 2 }
 0x2b3   : > { %v3845_v4 = vrot.slane %v17282_v55, 6  ;;  %v17287_v55 = vshrl.u32 %v14834_v41, 16 }
 0x2b4   : > { %v4427_v53 = vrot.slane %v4425_v32, 3 }
 0x2b5   : > { %v3847_v28 = vor.u32 %v3846_v34, %v3845_v4  ;;  %v3853_v4 = vrot.slane %v17287_v55, 6  ;;  %v3854_v34 = vrot.slane %v17288_v39, 7 }
 0x2b6   : > { %v4428_v12 = vor.u32 %v4427_v53, %v4424_v48 }
 0x2b7   : > { %v3848_v19 = vsel %vm3820_vm13, %v3843_v0, %v3847_v28  ;;  %v3851_v0 = vor.u32 %v3850_v18, %v3849_v36  ;;  %v17290_v36 = vshll.u32 %v14858_v14, 16  ;;  %v13204_v18 = vld [vmem:[%s17131_s2 + $0x238] sm:$0xff]  }
 0x2b8   : > { %v4429_v7 = vsel %vm4114_vm9, %v4370_v2, %v4428_v12 }
 0x2b9   : > { %6615 = vmatmul.mubr.bf16.vlgmr.msra.gmra.mrb[0].mxu0 %v4228_v10  ;;  %v4480_v10 = vshrl.u32 %v3848_v19, 16  ;;  %v3852_v56 = vsel %vm3820_vm13, %v3847_v28, %v3851_v0  ;;  %v3855_v28 = vor.u32 %v3854_v34, %v3853_v4  ;;  %v3858_v51 = vrot.slane %v17290_v36, 7 }
 0x2ba   : > { %12137 = vmatpush3.bf16.msra.mxu0 %v13196_v22  ;;  %6622 = vmatprep.mubr.bf16.mxu0 %v4313_v23  ;;  %v4483_v22 = vshll.u32 %v3848_v19, 16  ;;  %v13200_v23 = vld [vmem:[%s17131_s2 + $0x220] sm:$0xff]   ;;  %v4538_v54 = vshrl.u32 %v3852_v56, 16  ;;  %v4541_v32 = vshll.u32 %v3852_v56, 16  ;;  %v17289_v19 = vshrl.u32 %v14858_v14, 16 }
 0x2bb   : > { %12138 = vmatprep.subr.bf16.mxu0 %v17284_v31  ;;  %v3856_v53 = vsel %vm3820_vm13, %v3851_v0, %v3855_v28  ;;  %v17292_v56 = vshll.u32 %v14882_v52, 16 }
 0x2bc   : > { %v4485_v27 = vrot.slane %v4483_v22, 3  ;;  %v4543_v48 = vrot.slane %v4541_v32, 3  ;;  %v3857_v43 = vrot.slane %v17289_v19, 6 }
 0x2bd   : > { %v3862_v55 = vrot.slane %v17292_v56, 7 }
 0x2be   : > { %12139 = vmatpush3.bf16.msra.mxu0 %v13197_v37  ;;  %v13201_v37 = vld [vmem:[%s17131_s2 + $0x228] sm:$0xff]   ;;  %v3859_v22 = vor.u32 %v3858_v51, %v3857_v43 }
 0x2bf   : > { %12140 = vmatprep.subr.bf16.mxu0 %v17284_v31 }
 0x2c1   : > { %6623 = vmatmul.mubr.bf16.gmra.mrb[4].mxu0 %v14792_v30  ;;  %v4482_v30 = vrot.slane %v4480_v10, 2  ;;  %v4599_v10 = vshll.u32 %v3856_v53, 16 }
 0x2c2   : > { %6630 = vmatprep.mubr.bf16.mxu0 %v4371_v11  ;;  %12141 = vmatpush3.bf16.msra.mxu0 %v13198_v15  ;;  %v13202_v15 = vld [vmem:[%s17131_s2 + $0x230] sm:$0xff]  }
 0x2c3   : > { %12142 = vmatprep.subr.bf16.mxu0 %v17284_v31  ;;  %v4486_v2 = vor.u32 %v4485_v27, %v4482_v30  ;;  %v3860_v30 = vsel %vm3820_vm13, %v3855_v28, %v3859_v22  ;;  %v17293_v28 = vshrl.u32 %v14906_v47, 16 }
 0x2c4   : > { %v4654_v39 = vshrl.u32 %v3860_v30, 16  ;;  %v4657_v34 = vshll.u32 %v3860_v30, 16 }
 0x2c5   : > { %v4487_v11 = vsel %vm4114_vm9, %v4428_v12, %v4486_v2  ;;  %v4596_v12 = vshrl.u32 %v3856_v53, 16 }
 0x2c6   : > { %12143 = vmatpush3.bf16.msra.mxu0 %v13199_v35  ;;  %v4659_v32 = vrot.slane %v4657_v34, 3 }
 0x2c7   : > { %12144 = vmatprep.subr.bf16.mxu0 %v17284_v31 }
 0x2c9   : > { %6631 = vmatmul.mubr.bf16.gmra.mrb[8].mxu0 %v14816_v9  ;;  %v4540_v9 = vrot.slane %v4538_v54, 2 }
 0x2ca   : > { %6638 = vmatprep.mubr.bf16.mxu0 %v4429_v7  ;;  %12145 = vmatpush3.bf16.msra.mxu0 %v13200_v23  ;;  %v4598_v23 = vrot.slane %v4596_v12, 2  ;;  %v4601_v7 = vrot.slane %v4599_v10, 3  ;;  %v17295_v12 = vshrl.u32 %v14930_v50, 16 }
 0x2cb   : > { %12146 = vmatprep.subr.bf16.mxu0 %v17284_v31  ;;  %v4544_v35 = vor.u32 %v4543_v48, %v4540_v9  ;;  %v17294_v9 = vshll.u32 %v14906_v47, 16 }
 0x2cc   : > { %v4602_v4 = vor.u32 %v4601_v7, %v4598_v23  ;;  %v3869_v10 = vrot.slane %v17295_v12, 6  ;;  %v3122_v12 = vld [vmem:[%s17130_s1 + $0x28] sm:$0xff] }
 0x2cd   : > { %v4545_v0 = vsel %vm4114_vm9, %v4486_v2, %v4544_v35  ;;  %v4656_v2 = vrot.slane %v4654_v39, 2  ;;  %v3866_v48 = vrot.slane %v17294_v9, 7  ;;  %v17297_v39 = vshrl.u32 %v14954_v17, 16  ;;  %v3120_v9 = vld [vmem:[%s17130_s1 + $0x18] sm:$0xff] }
 0x2ce   : > { %12147 = vmatpush3.bf16.msra.mxu0 %v13201_v37  ;;  %v4603_v54 = vsel %vm4114_vm9, %v4544_v35, %v4602_v4 }
 0x2cf   : > { %12148 = vmatprep.subr.bf16.mxu0 %v17284_v31  ;;  %v3873_v34 = vrot.slane %v17297_v39, 6 }
 0x2d1   : > { %6639 = vmatmul.mubr.bf16.gmra.mrb[12].mxu0 %v14840_v49  ;;  %v17291_v49 = vshrl.u32 %v14882_v52, 16 }
 0x2d2   : > { %6646 = vmatprep.mubr.bf16.mxu0 %v4487_v11  ;;  %12149 = vmatpush3.bf16.msra.mxu0 %v13202_v15  ;;  %v3865_v11 = vrot.slane %v17293_v28, 6 }
 0x2d3   : > { %12150 = vmatprep.subr.bf16.mxu0 %v17284_v31  ;;  %v3861_v27 = vrot.slane %v17291_v49, 6 }
 0x2d4   : > { %v3867_v43 = vor.u32 %v3866_v48, %v3865_v11 }
 0x2d5   : > { %v3863_v37 = vor.u32 %v3862_v55, %v3861_v27 }
 0x2d6   : > { %12151 = vmatpush3.bf16.msra.mxu0 %v13204_v18 }
 0x2d7   : > { %v3864_v15 = vsel %vm3820_vm13, %v3859_v22, %v3863_v37  ;;  %v3868_v35 = vsel %vm3820_vm13, %v3863_v37, %v3867_v43  ;;  %v17296_v22 = vshll.u32 %v14930_v50, 16 }
 0x2d8   : > { %v4712_v53 = vshrl.u32 %v3864_v15, 16  ;;  %v4715_v19 = vshll.u32 %v3864_v15, 16  ;;  %v4770_v7 = vshrl.u32 %v3868_v35, 16  ;;  %v4773_v30 = vshll.u32 %v3868_v35, 16  ;;  %v3123_v35 = vld [vmem:[%s17130_s1 + $0x30] sm:$0xff] }
 0x2d9   : > { %6647 = vmatmul.mubr.bf16.gmra.mrb[16].mxu0 %v14864_v8  ;;  %v4660_v8 = vor.u32 %v4659_v32, %v4656_v2  ;;  %v3119_v2 = vld [vmem:[%s17130_s1 + $0x10] sm:$0xff]  ;;  %v3121_v32 = vld [vmem:[%s17130_s1 + $0x20] sm:$0xff] }
 0x2da   : > { %6654 = vmatprep.mubr.bf16.mxu0 %v4545_v0  ;;  %v4714_v51 = vrot.slane %v4712_v53, 2  ;;  %v4717_v18 = vrot.slane %v4715_v19, 3  ;;  %v3870_v0 = vrot.slane %v17296_v22, 7  ;;  %v4772_v56 = vrot.slane %v4770_v7, 2  ;;  %7035 = vperm.xlu1 %13105, %v3119_v2  }
 0x2db   : > { %v4661_v36 = vsel %vm4114_vm9, %v4602_v4, %v4660_v8  ;;  %v4775_v55 = vrot.slane %v4773_v30, 3 }
 0x2dc   : > { %v4718_v23 = vor.u32 %v4717_v18, %v4714_v51  ;;  %v3871_v49 = vor.u32 %v3870_v0, %v3869_v10  ;;  %v17300_v51 = vshll.u32 %v14971_v62, 16  ;;  %v3125_v10 = vld [vmem:[%s17130_s1 + $0x40] sm:$0xff] }
 0x2dd   : > { %v4776_v15 = vor.u32 %v4775_v55, %v4772_v56  ;;  %v17301_v56 = vshrl.u32 %v14987_v24, 16 }
 0x2de   : > { %v4719_v27 = vsel %vm4114_vm9, %v4660_v8, %v4718_v23  ;;  %v3872_v4 = vsel %vm3820_vm13, %v3867_v43, %v3871_v49  ;;  %7040 = vperm.xlu1 %13105, %v3120_v9   ;;  %v17299_v43 = vshrl.u32 %v14971_v62, 16  ;;  %v3878_v18 = vrot.slane %v17300_v51, 7  ;;  %v3133_v51 = vld [vmem:[%s17130_s1 + $0x80] sm:$0xff] }
 0x2df   : > { %v4828_v28 = vshrl.u32 %v3872_v4, 16  ;;  %v4831_v11 = vshll.u32 %v3872_v4, 16  ;;  %v3881_v55 = vrot.slane %v17301_v56, 6  ;;  %v17302_v4 = vshll.u32 %v14987_v24, 16  ;;  %v3134_v56 = vld [vmem:[%s17130_s1 + $0x88] sm:$0xff] }
 0x2e1   : > { %6655 = vmatmul.mubr.bf16.gmra.mrb[20].mxu0 %v14888_v58  ;;  %v3117_v58 = vld [vmem:[%s17130_s1] sm:$0xff]  ;;  %v4830_v8 = vrot.slane %v4828_v28, 2  ;;  %v4833_v53 = vrot.slane %v4831_v11, 3  ;;  %v3882_v39 = vrot.slane %v17302_v4, 7 }
 0x2e2   : > { %6662 = vmatprep.mubr.bf16.mxu0 %v4603_v54  ;;  %7025 = vperm.xlu0 %13104, %v3117_v58   ;;  %v3118_v54 = vld [vmem:[%s17130_s1 + $0x8] sm:$0xff] }
 0x2e3   : > { %7050 = vperm.xlu1 %13105, %v3122_v12   ;;  %v4834_v22 = vor.u32 %v4833_v53, %v4830_v8  ;;  %v3883_v28 = vor.u32 %v3882_v39, %v3881_v55  ;;  %v17304_v53 = vshll.u32 %v14998_v46, 16  ;;  %v3137_v55 = vld [vmem:[%s17130_s1 + $0xa0] sm:$0xff] }
 0x2e6   : > { %7030 = vperm.xlu0 %13104, %v3118_v54  }
 0x2e9   : > { %6663 = vmatmul.mubr.bf16.gmra.mrb[24].mxu0 %v14912_v42  ;;  %v17298_v42 = vshll.u32 %v14954_v17, 16 }
 0x2ea   : > { %6670 = vmatprep.mubr.bf16.mxu0 %v4661_v36  ;;  %7045 = vperm.xlu0 %13104, %v3121_v32   ;;  %v3877_v36 = vrot.slane %v17299_v43, 6  ;;  %v3131_v43 = vld [vmem:[%s17130_s1 + $0x70] sm:$0xff] }
 0x2eb   : > { %v3874_v37 = vrot.slane %v17298_v42, 7  ;;  %v3126_v42 = vld [vmem:[%s17130_s1 + $0x48] sm:$0xff] }
 0x2ec   : > { %v3879_v7 = vor.u32 %v3878_v18, %v3877_v36  ;;  %v3130_v36 = vld [vmem:[%s17130_s1 + $0x68] sm:$0xff] }
 0x2ed   : > { %v3875_v48 = vor.u32 %v3874_v37, %v3873_v34  ;;  %v3127_v34 = vld [vmem:[%s17130_s1 + $0x50] sm:$0xff]  ;;  %v3129_v37 = vld [vmem:[%s17130_s1 + $0x60] sm:$0xff] }
 0x2ee   : > { %7055 = vperm.xlu0 %13104, %v3123_v35  }
 0x2ef   : > { %v3876_v19 = vsel %vm3820_vm13, %v3871_v49, %v3875_v48 }
 0x2f0   : > { %v4886_v0 = vshrl.u32 %v3876_v19, 16  ;;  %v4889_v58 = vshll.u32 %v3876_v19, 16  ;;  %v3886_v19 = vrot.slane %v17304_v53, 7 }
 0x2f1   : > { %6671 = vmatmul.mubr.bf16.gmra.mrb[28].mxu0 %v14936_v61  ;;  %v4777_v61 = vsel %vm4114_vm9, %v4718_v23, %v4776_v15  ;;  %v3124_v23 = vld [vmem:[%s17130_s1 + $0x38] sm:$0xff] }
 0x2f2   : > { %6678 = vmatprep.mubr.bf16.mxu0 %v4719_v27  ;;  %7065 = vperm.xlu0 %13104, %v3125_v10   ;;  %v4888_v30 = vrot.slane %v4886_v0, 2  ;;  %v4891_v49 = vrot.slane %v4889_v58, 3  ;;  %v3880_v27 = vsel %vm3820_vm13, %v3875_v48, %v3879_v7  ;;  %v3884_v48 = vsel %vm3820_vm13, %v3879_v7, %v3883_v28  ;;  %v3132_v10 = vld [vmem:[%s17130_s1 + $0x78] sm:$0xff] }
 0x2f3   : > { %7060 = vperm.xlu1 %13105, %v3124_v23   ;;  %v4944_v2 = vshrl.u32 %v3880_v27, 16  ;;  %v4947_v32 = vshll.u32 %v3880_v27, 16  ;;  %v5002_v35 = vshrl.u32 %v3884_v48, 16  ;;  %v5005_v12 = vshll.u32 %v3884_v48, 16  ;;  %v3135_v27 = vld [vmem:[%s17130_s1 + $0x90] sm:$0xff]  ;;  %v3138_v48 = vld [vmem:[%s17130_s1 + $0xa8] sm:$0xff] }
 0x2f4   : > { %v4892_v54 = vor.u32 %v4891_v49, %v4888_v30  ;;  %v17305_v7 = vshrl.u32 %v15019_v38, 16  ;;  %v17306_v30 = vshll.u32 %v15019_v38, 16 }
 0x2f5   : > { %v4946_v11 = vrot.slane %v4944_v2, 2  ;;  %v4949_v9 = vrot.slane %v4947_v32, 3  ;;  %v5004_v0 = vrot.slane %v5002_v35, 2  ;;  %v5007_v58 = vrot.slane %v5005_v12, 3 }
 0x2f6   : > { %7075 = vperm.xlu0 %13104, %v3127_v34   ;;  %v3890_v49 = vrot.slane %v17306_v30, 7  ;;  %v17309_v12 = vshrl.u32 %v14627_v26, 16 }
 0x2f7   : > { %7070 = vperm.xlu1 %13105, %v3126_v42   ;;  %v4950_v18 = vor.u32 %v4949_v9, %v4946_v11  ;;  %v5008_v4 = vor.u32 %v5007_v58, %v5004_v0  ;;  %v3136_v42 = vld [vmem:[%s17130_s1 + $0x98] sm:$0xff]  ;;  %v3139_v9 = vld [vmem:[%s17130_s1 + $0xb0] sm:$0xff]  ;;  %v15326_v0 = vld [vmem:[#allocation3 + $0xb0] sm:$0xff]  }
 0x2f8   : > { %v3143_v58 = vld [vmem:[%s17130_s1 + $0xd0] sm:$0xff] }
 0x2f9   : > { %6679 = vmatmul.mubr.bf16.gmra.mrb[32].mxu0 %v14957_v3  ;;  %v4835_v3 = vsel %vm4114_vm9, %v4776_v15, %v4834_v22  ;;  %v3128_v15 = vld [vmem:[%s17130_s1 + $0x58] sm:$0xff] }
 0x2fa   : > { %6686 = vmatprep.mubr.bf16.mxu0 %v4777_v61  ;;  %7085 = vperm.xlu0 %13104, %v3129_v37   ;;  %v17303_v61 = vshrl.u32 %v14998_v46, 16 }
 0x2fb   : > { %7080 = vperm.xlu1 %13105, %v3128_v15   ;;  %v17307_v15 = vshrl.u32 %v15039_v13, 16 }
 0x2fc   : > { %v3885_v8 = vrot.slane %v17303_v61, 6  ;;  %v3141_v61 = vld [vmem:[%s17130_s1 + $0xc0] sm:$0xff] }
 0x2fe   : > { %7095 = vperm.xlu0 %13104, %v3131_v43   ;;  %v3140_v43 = vld [vmem:[%s17130_s1 + $0xb8] sm:$0xff] }
 0x2ff   : > { %7090 = vperm.xlu1 %13105, %v3130_v36  }
 0x301   : > { %6687 = vmatmul.mubr.bf16.gmra.mrb[36].mxu0 %v14974_v1  ;;  %v4893_v1 = vsel %vm4114_vm9, %v4834_v22, %v4892_v54  ;;  %v3887_v22 = vor.u32 %v3886_v19, %v3885_v8 }
 0x302   : > { %6694 = vmatprep.mubr.bf16.mxu0 %v4835_v3  ;;  %7105 = vperm.xlu0 %13104, %v3133_v51   ;;  %v3889_v3 = vrot.slane %v17305_v7, 6  ;;  %v3145_v7 = vld [vmem:[%s17130_s1 + $0xe0] sm:$0xff] }
 0x303   : > { %7100 = vperm.xlu1 %13105, %v3132_v10   ;;  %v3888_v23 = vsel %vm3820_vm13, %v3883_v28, %v3887_v22  ;;  %v3893_v28 = vrot.slane %v17307_v15, 6  ;;  %v3897_v10 = vrot.slane %v17309_v12, 6  ;;  %v3149_v15 = vld [vmem:[%s17130_s1 + $0x100] sm:$0xff] }
 0x304   : > { %v5060_v39 = vshrl.u32 %v3888_v23, 16  ;;  %v5063_v34 = vshll.u32 %v3888_v23, 16  ;;  %v3891_v37 = vor.u32 %v3890_v49, %v3889_v3  ;;  %v3142_v23 = vld [vmem:[%s17130_s1 + $0xc8] sm:$0xff] }
 0x306   : > { %7115 = vperm.xlu0 %13104, %v3135_v27   ;;  %v5065_v2 = vrot.slane %v5063_v34, 3  ;;  %v3892_v32 = vsel %vm3820_vm13, %v3887_v22, %v3891_v37  ;;  %v17310_v22 = vshll.u32 %v14627_v26, 16  ;;  %v3144_v27 = vld [vmem:[%s17130_s1 + $0xd8] sm:$0xff] }
 0x307   : > { %7110 = vperm.xlu1 %13105, %v3134_v56   ;;  %v5118_v53 = vshrl.u32 %v3892_v32, 16  ;;  %v5121_v19 = vshll.u32 %v3892_v32, 16  ;;  %v3146_v32 = vld [vmem:[%s17130_s1 + $0xe8] sm:$0xff] }
 0x309   : > { %6695 = vmatmul.mubr.bf16.gmra.mrb[40].mxu0 %v14990_v44  ;;  %v4951_v44 = vsel %vm4114_vm9, %v4892_v54, %v4950_v18  ;;  %v5062_v54 = vrot.slane %v5060_v39, 2  ;;  %v5120_v51 = vrot.slane %v5118_v53, 2 }
 0x30a   : > { %6702 = vmatprep.mubr.bf16.mxu0 %v4893_v1  ;;  %7125 = vperm.xlu0 %13104, %v3137_v55   ;;  %v17308_v1 = vshll.u32 %v15039_v13, 16  ;;  %v3905_v55 = vshll.u32 %v15326_v0, 16 }
 0x30b   : > { %7120 = vperm.xlu1 %13105, %v3136_v42   ;;  %v5066_v8 = vor.u32 %v5065_v2, %v5062_v54  ;;  %v15345_v54 = vld [vmem:[#allocation3 + $0xb8] ss:$0 sps:$4 sm:$0x77]  }
 0x30c   : > { %v3894_v11 = vrot.slane %v17308_v1, 7  ;;  %v3147_v2 = vld [vmem:[%s17130_s1 + $0xf0] sm:$0xff] }
 0x30e   : > { %7135 = vperm.xlu0 %13104, %v3139_v9   ;;  %v3895_v36 = vor.u32 %v3894_v11, %v3893_v28  ;;  %v3148_v9 = vld [vmem:[%s17130_s1 + $0xf8] sm:$0xff] }
 0x30f   : > { %7130 = vperm.xlu1 %13105, %v3138_v48  }
 0x310   : > { %v3896_v35 = vsel %vm3820_vm13, %v3891_v37, %v3895_v36 }
 0x311   : > { %6703 = vmatmul.mubr.bf16.gmra.mrb[44].mxu0 %v15006_v21  ;;  %v5009_v21 = vsel %vm4114_vm9, %v4950_v18, %v5008_v4  ;;  %v5123_v18 = vrot.slane %v5121_v19, 3  ;;  %v5176_v30 = vshrl.u32 %v3896_v35, 16  ;;  %v5179_v49 = vshll.u32 %v3896_v35, 16  ;;  %v3153_v35 = vld [vmem:[%s17130_s1 + $0x120] sm:$0xff] }
 0x312   : > { %6710 = vmatprep.mubr.bf16.mxu0 %v4951_v44  ;;  %7145 = vperm.xlu0 %13104, %v3141_v61   ;;  %v3898_v44 = vrot.slane %v17310_v22, 7  ;;  %v3914_v61 = vshll.u32 %v15345_v54, 16 }
 0x313   : > { %7140 = vperm.xlu1 %13105, %v3140_v43   ;;  %v5124_v3 = vor.u32 %v5123_v18, %v5120_v51  ;;  %v5178_v39 = vrot.slane %v5176_v30, 2  ;;  %v5181_v34 = vrot.slane %v5179_v49, 3  ;;  %v3151_v51 = vld [vmem:[%s17130_s1 + $0x110] sm:$0xff]  ;;  %v3150_v18 = vld [vmem:[%s17130_s1 + $0x108] sm:$0xff] }
 0x314   : > { %v3899_v56 = vor.u32 %v3898_v44, %v3897_v10  ;;  %v3813_v44 = vrot.slane %v15326_v0, 6 }
 0x315   : > { %v5182_v28 = vor.u32 %v5181_v34, %v5178_v39 }
 0x316   : > { %7155 = vperm.xlu0 %13104, %v3143_v58   ;;  %v3900_v42 = vsel %vm3820_vm13, %v3895_v36, %v3899_v56  ;;  %v3814_v30 = vsel %vm3763_vm11, %v15059_v20, %v3813_v44  ;;  %v3157_v20 = vld [vmem:[%s17130_s1 + $0x140] sm:$0xf] }
 0x317   : > { %7150 = vperm.xlu1 %13105, %v3142_v23   ;;  %v5234_v1 = vshrl.u32 %v3900_v42, 16  ;;  %v5237_v11 = vshll.u32 %v3900_v42, 16  ;;  %v3815_v42 = vrot.slane %v15345_v54, 6 }
 0x319   : > { %6711 = vmatmul.mubr.bf16.gmra.mrb[48].mxu0 %v15022_v5  ;;  %v5067_v5 = vsel %vm4114_vm9, %v5008_v4, %v5066_v8  ;;  %v5125_v4 = vsel %vm4114_vm9, %v5066_v8, %v5124_v3  ;;  %v5183_v8 = vsel %vm4114_vm9, %v5124_v3, %v5182_v28  ;;  %v5236_v53 = vrot.slane %v5234_v1, 2 }
 0x31a   : > { %6718 = vmatprep.mubr.bf16.mxu0 %v5009_v21  ;;  %7165 = vperm.xlu0 %13104, %v3145_v7   ;;  %v3907_v21 = vrot.slane %v3905_v55, 7  ;;  %v5239_v19 = vrot.slane %v5237_v11, 3  ;;  %v5295_v55 = vshll.u32 %v3814_v30, 16 }
 0x31b   : > { %7160 = vperm.xlu1 %13105, %v3144_v27   ;;  %v3155_v27 = vld [vmem:[%s17130_s1 + $0x130] sm:$0xff] }
 0x31c   : > { %v5240_v12 = vor.u32 %v5239_v19, %v5236_v53  ;;  %v3922_v19 = vrot.slane %v15082_v57, 7 }
 0x31e   : > { %7175 = vperm.xlu0 %13104, %v3147_v2   ;;  %v5241_v23 = vsel %vm4114_vm9, %v5182_v28, %v5240_v12  ;;  %v3816_v28 = vsel %vm3763_vm11, %v3813_v44, %v3815_v42 }
 0x31f   : > { %7170 = vperm.xlu1 %13105, %v3146_v32   ;;  %v5368_v11 = vshrl.u32 %v3816_v28, 16 }
 0x321   : > { %6719 = vmatmul.mubr.bf16.gmra.mrb[52].mxu0 %v15036_v59  ;;  %v3902_v59 = vshrl.u32 %v15326_v0, 16 }
 0x322   : > { %6726 = vmatprep.mubr.bf16.mxu0 %v5067_v5  ;;  %7185 = vperm.xlu0 %13104, %v3149_v15   ;;  %v3916_v5 = vrot.slane %v3914_v61, 7 }
 0x323   : > { %v3904_v37 = vrot.slane %v3902_v59, 6  ;;  %7180 = vperm.xlu1 %13105, %v3148_v9   ;;  %v5292_v59 = vshrl.u32 %v3814_v30, 16 }
 0x325   : > { %v3908_v48 = vor.u32 %v3907_v21, %v3904_v37  ;;  %v5294_v37 = vrot.slane %v5292_v59, 2  ;;  %v5297_v21 = vrot.slane %v5295_v55, 3 }
 0x326   : > { %7195 = vperm.xlu0 %13104, %v3151_v51   ;;  %v4247_v51 = vshrl.u32 %v3922_v19, 16 }
 0x327   : > { %v3909_v43 = vsel %vm3820_vm13, %v3899_v56, %v3908_v48  ;;  %7190 = vperm.xlu1 %13105, %v3150_v18   ;;  %v3154_v56 = vld [vmem:[%s17130_s1 + $0x128] sm:$0xff]  ;;  %v5298_v1 = vor.u32 %v5297_v21, %v5294_v37  ;;  %v4250_v18 = vshll.u32 %v3922_v19, 16 }
 0x328   : > { %v5301_v10 = vshrl.u32 %v3909_v43, 16  ;;  %v5304_v22 = vshll.u32 %v3909_v43, 16  ;;  %v17311_v43 = vld [vmem:[#allocation5_spill] sm:$0xff] }
 0x329   : > { %6727 = vmatmul.mubr.bf16.gmra.mrb[56].mxu0 %v15047_v25  ;;  %v3911_v25 = vshrl.u32 %v15345_v54, 16  ;;  %v5371_v54 = vshll.u32 %v3816_v28, 16  ;;  %v4252_v44 = vrot.slane %v4250_v18, 3 }
 0x32a   : > { %6734 = vmatprep.mubr.bf16.mxu0 %v5125_v4  ;;  %7205 = vperm.xlu0 %13104, %v3153_v35   ;;  %v5303_v7 = vrot.slane %v5301_v10, 2  ;;  %v5306_v3 = vrot.slane %v5304_v22, 3  ;;  %v4249_v22 = vrot.slane %v4247_v51, 2 }
 0x32b   : > { %v3913_v36 = vrot.slane %v3911_v25, 6  ;;  %v5370_v25 = vrot.slane %v5368_v11, 2  ;;  %v5373_v61 = vrot.slane %v5371_v54, 3 }
 0x32c   : > { %v5307_v4 = vor.u32 %v5306_v3, %v5303_v7 }
 0x32d   : > { %v3917_v58 = vor.u32 %v3916_v5, %v3913_v36  ;;  %v5374_v53 = vor.u32 %v5373_v61, %v5370_v25  ;;  %v3923_v36 = vrot.slane %v17311_v43, 7  ;;  %v3933_v25 = vrot.slane %v14813_v33, 7 }
 0x32e   : > { %7215 = vperm.xlu0 %13104, %v3155_v27   ;;  %v5308_v2 = vsel %vm4114_vm9, %v5240_v12, %v5307_v4  ;;  %v17312_v12 = vld [vmem:[#allocation6_spill] sm:$0xff] }
 0x32f   : > { %v3918_v49 = vsel %vm3820_vm13, %v3908_v48, %v3917_v58  ;;  %v5299_v48 = vsel %vm4114_vm9, %v15085_v63, %v5298_v1  ;;  %v3924_v5 = vsel %vm670_vm6, %v3922_v19, %v3923_v36  ;;  %v3925_v10 = vrot.slane %v17312_v12, 7 }
 0x330   : > { %v5377_v39 = vshrl.u32 %v3918_v49, 16  ;;  %v5380_v34 = vshll.u32 %v3918_v49, 16  ;;  %v4255_v63 = vshrl.u32 %v3924_v5, 16  ;;  %v4258_v35 = vshll.u32 %v3924_v5, 16 }
 0x331   : > { %6735 = vmatmul.mubr.bf16.gmra.mrb[60].mxu0 %v15069_v6  ;;  %v3152_v6 = vld [vmem:[%s17130_s1 + $0x118] sm:$0xff]  ;;  %v3926_v57 = vsel %vm670_vm6, %v3923_v36, %v3925_v10  ;;  %v3927_v49 = vrot.slane %v14749_v16, 7 }
 0x332   : > { %6742 = vmatprep.mubr.bf16.mxu0 %v5183_v8  ;;  %7200 = vperm.xlu1 %13105, %v3152_v6   ;;  %v5379_v32 = vrot.slane %v5377_v39, 2  ;;  %v5382_v15 = vrot.slane %v5380_v34, 3  ;;  %v4257_v6 = vrot.slane %v4255_v63, 2  ;;  %v4260_v58 = vrot.slane %v4258_v35, 3  ;;  %v13207_v63 = vld [vmem:[%s17133_s4] sm:$0xff]  }
 0x333   : > { %7225 = vperm.xlu0 %13104, %v3157_v20   ;;  %v4315_v3 = vshrl.u32 %v3926_v57, 16  ;;  %v4318_v30 = vshll.u32 %v3926_v57, 16  ;;  %v3928_v55 = vsel %vm670_vm6, %v3925_v10, %v3927_v49  ;;  %v3929_v34 = vrot.slane %v14767_v60, 7  ;;  %10343 = vmatpush1.bf16.msra.mxu1 %v13207_v63 }
 0x334   : > { %v5383_v9 = vor.u32 %v5382_v15, %v5379_v32  ;;  %v4261_v7 = vor.u32 %v4260_v58, %v4257_v6  ;;  %v4376_v39 = vshll.u32 %v3928_v55, 16  ;;  %v3931_v15 = vrot.slane %v14788_v40, 7 }
 0x335   : > { %v4320_v59 = vrot.slane %v4318_v30, 3  ;;  %v3930_v16 = vsel %vm670_vm6, %v3927_v49, %v3929_v34  ;;  %v3939_v49 = vrot.slane %v14882_v52, 7 }
 0x336   : > { %7210 = vperm.xlu1 %13105, %v3154_v56   ;;  %v5384_v8 = vsel %vm4114_vm9, %v5307_v4, %v5383_v9  ;;  %v4317_v56 = vrot.slane %v4315_v3, 2  ;;  %v4373_v4 = vshrl.u32 %v3928_v55, 16  ;;  %v4378_v37 = vrot.slane %v4376_v39, 3 }
 0x337   : > { %v4434_v32 = vshll.u32 %v3930_v16, 16  ;;  %v3932_v60 = vsel %vm670_vm6, %v3929_v34, %v3931_v15  ;;  %v3934_v40 = vsel %vm670_vm6, %v3931_v15, %v3933_v25 }
 0x338   : > { %v4321_v20 = vor.u32 %v4320_v59, %v4317_v56  ;;  %v4547_v43 = vshrl.u32 %v3934_v40, 16  ;;  %v4550_v36 = vshll.u32 %v3934_v40, 16 }
 0x339   : > { %6743 = vmatmul.mubr.bf16.gmra.mrb[64].mxu0 %v15077_v45  ;;  %v3156_v45 = vld [vmem:[%s17130_s1 + $0x138] sm:$0xff]  ;;  %v4436_v11 = vrot.slane %v4434_v32, 3 }
 0x33a   : > { %6750 = vmatprep.mubr.bf16.mxu0 %v5241_v23  ;;  %7220 = vperm.xlu1 %13105, %v3156_v45   ;;  %v4253_v23 = vor.u32 %v4252_v44, %v4249_v22  ;;  %v4322_v42 = vsel %vm4114_vm9, %v4261_v7, %v4321_v20  ;;  %v4375_v45 = vrot.slane %v4373_v4, 2  ;;  %v4549_v51 = vrot.slane %v4547_v43, 2  ;;  %v13211_v4 = vld [vmem:[%s17133_s4 + $0x20] sm:$0xff]  }
 0x33b   : > { %v4552_v18 = vrot.slane %v4550_v36, 3  ;;  %v3937_v22 = vrot.slane %v14858_v14, 7  ;;  %v17313_v44 = vmov 0  }
 0x33c   : > { %v4262_v27 = vsel %vm4114_vm9, %v4253_v23, %v4261_v7  ;;  %v4379_v21 = vor.u32 %v4378_v37, %v4375_v45  ;;  %10344 = vmatprep.subr.bf16.mxu1 %v17313_v44  ;;  %v13209_v7 = vld [vmem:[%s17133_s4 + $0x10] sm:$0xff]   ;;  %v13212_v45 = vld [vmem:[%s17133_s4 + $0x28] sm:$0xff]  }
 0x33d   : > { %v4553_v35 = vor.u32 %v4552_v18, %v4549_v51 }
 0x33e   : > { %v4380_v28 = vsel %vm4114_vm9, %v4321_v20, %v4379_v21  ;;  %v3940_v20 = vsel %vm670_vm6, %v3937_v22, %v3939_v49 }
 0x33f   : > { %v4721_v39 = vshrl.u32 %v3940_v20, 16  ;;  %v4724_v34 = vshll.u32 %v3940_v20, 16  ;;  %v3953_v20 = vrot.slane %v15019_v38, 7  ;;  %v13218_v38 = vld [vmem:[%s17133_s4 + $0x58] sm:$0xff]  }
 0x341   : > { %6751 = vmatmul.mubr.bf16.gmra.mrb[68].mxu0 %v15092_v29  ;;  %v5375_v29 = vsel %vm4114_vm9, %v5298_v1, %v5374_v53 }
 0x342   : > { %6758 = vmatprep.mubr.bf16.mxu0 %v5308_v2  ;;  %v4431_v2 = vshrl.u32 %v3930_v16, 16  ;;  %v4723_v16 = vrot.slane %v4721_v39, 2 }
 0x344   : > { %v4433_v1 = vrot.slane %v4431_v2, 2 }
 0x346   : > { %v4437_v54 = vor.u32 %v4436_v11, %v4433_v1 }
 0x348   : > { %v4438_v61 = vsel %vm4114_vm9, %v4379_v21, %v4437_v54  ;;  %v4726_v21 = vrot.slane %v4724_v34, 3 }
 0x349   : > { %6759 = vmatmul.mubr.bf16.gmra.mrb[72].mxu0 %v5299_v48  ;;  %v4492_v48 = vshll.u32 %v3932_v60, 16 }
 0x34a   : > { %6766 = vmatprep.mubr.bf16.mxu0 %v5384_v8 }
 0x351   : > { %6767 = vmatmul.mubr.bf16.gmra.mrb[76].mxu0 %v5375_v29  ;;  %v3935_v29 = vrot.slane %v14834_v41, 7  ;;  %v13208_v41 = vld [vmem:[%s17133_s4 + $0x8] sm:$0xff]  }
 0x352   : > { %6774 = vmatprep.mubr.bf16.mxu0 %v5383_v9  ;;  %v4489_v9 = vshrl.u32 %v3932_v60, 16  ;;  %10345 = vmatpush1.bf16.msra.mxu1 %v13208_v41 }
 0x353   : > { %v3936_v33 = vsel %vm670_vm6, %v3933_v25, %v3935_v29  ;;  %v3938_v23 = vsel %vm670_vm6, %v3935_v29, %v3937_v22  ;;  %10346 = vmatprep.subr.bf16.mxu1 %v17313_v44  ;;  %v3947_v29 = vrot.slane %v14971_v62, 7 }
 0x354   : > { %v4491_v8 = vrot.slane %v4489_v9, 2  ;;  %v4605_v12 = vshrl.u32 %v3936_v33, 16  ;;  %v4608_v10 = vshll.u32 %v3936_v33, 16  ;;  %v4663_v3 = vshrl.u32 %v3938_v23, 16 }
 0x355   : > { %v4666_v30 = vshll.u32 %v3938_v23, 16 }
 0x356   : > { %v4607_v58 = vrot.slane %v4605_v12, 2  ;;  %v4610_v57 = vrot.slane %v4608_v10, 3  ;;  %10347 = vmatpush1.bf16.msra.mxu1 %v13209_v7  ;;  %v4665_v59 = vrot.slane %v4663_v3, 2  ;;  %v3949_v12 = vrot.slane %v14987_v24, 7  ;;  %v13213_v10 = vld [vmem:[%s17133_s4 + $0x30] sm:$0xff]  }
 0x357   : > { %10348 = vmatprep.subr.bf16.mxu1 %v17313_v44  ;;  %v4668_v55 = vrot.slane %v4666_v30, 3  ;;  %v3951_v7 = vrot.slane %v14998_v46, 7  ;;  %v13216_v46 = vld [vmem:[%s17133_s4 + $0x48] sm:$0xff]  }
 0x358   : > { %v4611_v14 = vor.u32 %v4610_v57, %v4607_v58  ;;  %v13214_v58 = vld [vmem:[%s17133_s4 + $0x38] sm:$0xff]  }
 0x359   : > { %6775 = vmatmul.mubr.bf16.gmra.mrb[80].mxu0 %v5374_v53  ;;  %v4494_v53 = vrot.slane %v4492_v48, 3  ;;  %v4669_v52 = vor.u32 %v4668_v55, %v4665_v59 }
 0x35a   : > { %12152 = vmatprep.mubr.msk.bf16.mxu0 %vm13414_vm14, %v17284_v31  ;;  %v4612_v56 = vsel %vm4114_vm9, %v4553_v35, %v4611_v14 }
 0x35b   : > { %v4495_v19 = vor.u32 %v4494_v53, %v4491_v8  ;;  %v4670_v37 = vsel %vm4114_vm9, %v4611_v14, %v4669_v52  ;;  %v13215_v14 = vld [vmem:[%s17133_s4 + $0x40] sm:$0xff]  }
 0x35d   : > { %v4496_v5 = vsel %vm4114_vm9, %v4437_v54, %v4495_v19  ;;  %v4554_v6 = vsel %vm4114_vm9, %v4495_v19, %v4553_v35 }
 0x361   : > { %12153 = vmatmul.mubr.bf16.vlgmr.msra.gmra.mrb[0].mxu0 %v4262_v27  ;;  %v13210_v27 = vld [vmem:[%s17133_s4 + $0x18] sm:$0xff]  }
 0x362   : > { %12156 = vmatprep.mubr.msk.bf16.mxu0 %vm13414_vm14, %v17284_v31  ;;  %10349 = vmatpush1.bf16.msra.mxu1 %v13210_v27  ;;  %v3952_v27 = vsel %vm670_vm6, %v3949_v12, %v3951_v7 }
 0x363   : > { %10350 = vmatprep.subr.bf16.mxu1 %v17313_v44  ;;  %v5069_v59 = vshrl.u32 %v3952_v27, 16  ;;  %v5072_v55 = vshll.u32 %v3952_v27, 16 }
 0x365   : > { %v5071_v39 = vrot.slane %v5069_v59, 2  ;;  %v5074_v34 = vrot.slane %v5072_v55, 3 }
 0x366   : > { %10351 = vmatpush1.bf16.msra.mxu1 %v13211_v4  ;;  %v13217_v4 = vld [vmem:[%s17133_s4 + $0x50] sm:$0xff]  }
 0x367   : > { %10352 = vmatprep.subr.bf16.mxu1 %v17313_v44 }
 0x369   : > { %12157 = vmatmul.mubr.bf16.gmra.mrb[4].mxu0 %v4322_v42  ;;  %v3941_v42 = vrot.slane %v14906_v47, 7  ;;  %v4727_v47 = vor.u32 %v4726_v21, %v4723_v16  ;;  %v3955_v21 = vrot.slane %v15039_v13, 7  ;;  %v13220_v13 = vld [vmem:[%s17133_s4 + $0x68] sm:$0xff]  }
 0x36a   : > { %12160 = vmatprep.mubr.msk.bf16.mxu0 %vm13414_vm14, %v17284_v31  ;;  %10353 = vmatpush1.bf16.msra.mxu1 %v13212_v45  ;;  %v5075_v45 = vor.u32 %v5074_v34, %v5071_v39 }
 0x36b   : > { %v3942_v2 = vsel %vm670_vm6, %v3939_v49, %v3941_v42  ;;  %10354 = vmatprep.subr.bf16.mxu1 %v17313_v44  ;;  %v4728_v1 = vsel %vm4114_vm9, %v4669_v52, %v4727_v47 }
 0x36c   : > { %v4779_v32 = vshrl.u32 %v3942_v2, 16  ;;  %v4782_v15 = vshll.u32 %v3942_v2, 16  ;;  %v13219_v2 = vld [vmem:[%s17133_s4 + $0x60] sm:$0xff]  }
 0x36e   : > { %v4781_v11 = vrot.slane %v4779_v32, 2  ;;  %v4784_v60 = vrot.slane %v4782_v15, 3  ;;  %10355 = vmatpush1.bf16.msra.mxu1 %v13213_v10 }
 0x36f   : > { %10356 = vmatprep.subr.bf16.mxu1 %v17313_v44 }
 0x370   : > { %v4785_v9 = vor.u32 %v4784_v60, %v4781_v11 }
 0x371   : > { %12161 = vmatmul.mubr.bf16.gmra.mrb[8].mxu0 %v4380_v28  ;;  %v3943_v28 = vrot.slane %v14930_v50, 7 }
 0x372   : > { %12164 = vmatprep.mubr.msk.bf16.mxu0 %vm13414_vm14, %v17284_v31  ;;  %v4786_v8 = vsel %vm4114_vm9, %v4727_v47, %v4785_v9  ;;  %10357 = vmatpush1.bf16.msra.mxu1 %v13214_v58 }
 0x373   : > { %v3944_v54 = vsel %vm670_vm6, %v3941_v42, %v3943_v28  ;;  %10358 = vmatprep.subr.bf16.mxu1 %v17313_v44  ;;  %v3954_v42 = vsel %vm670_vm6, %v3951_v7, %v3953_v20  ;;  %v15572_v7 = vld [vmem:[%s17132_s3] ss:$0 sm:$0xff] }
 0x374   : > { %v4837_v48 = vshrl.u32 %v3944_v54, 16  ;;  %v4840_v25 = vshll.u32 %v3944_v54, 16  ;;  %v5130_v16 = vshll.u32 %v3954_v42, 16  ;;  %v3957_v54 = vrot.slane %v14627_v26, 7  ;;  %v13222_v26 = vld [vmem:[%s17133_s4 + $0x78] sm:$0xff]  }
 0x376   : > { %v4839_v53 = vrot.slane %v4837_v48, 2  ;;  %v4842_v40 = vrot.slane %v4840_v25, 3  ;;  %10359 = vmatpush1.bf16.msra.mxu1 %v13215_v14  ;;  %v5132_v15 = vrot.slane %v5130_v16, 3  ;;  %v15574_v14 = vpop.permute.xlu0 %7025 }
 0x377   : > { %10360 = vmatprep.subr.bf16.mxu1 %v17313_v44  ;;  %17314 = vst [vmem:[#allocation5_spill] sm:$0xff] %v15574_v14 }
 0x378   : > { %v4843_v19 = vor.u32 %v4842_v40, %v4839_v53 }
 0x379   : > { %12165 = vmatmul.mubr.bf16.gmra.mrb[12].mxu0 %v4438_v61  ;;  %v3945_v61 = vrot.slane %v14954_v17, 7 }
 0x37a   : > { %12168 = vmatprep.mubr.msk.bf16.mxu0 %vm13414_vm14, %v17284_v31  ;;  %10361 = vmatpush1.bf16.msra.mxu1 %v13216_v46 }
 0x37b   : > { %v3946_v50 = vsel %vm670_vm6, %v3943_v28, %v3945_v61  ;;  %v3948_v17 = vsel %vm670_vm6, %v3945_v61, %v3947_v29  ;;  %10362 = vmatprep.subr.bf16.mxu1 %v17313_v44  ;;  %v3956_v28 = vsel %vm670_vm6, %v3953_v20, %v3955_v21  ;;  %v15578_v20 = vpop.permute.xlu0 %7030 }
 0x37c   : > { %v4895_v43 = vshrl.u32 %v3946_v50, 16  ;;  %v4898_v36 = vshll.u32 %v3946_v50, 16  ;;  %v4953_v63 = vshrl.u32 %v3948_v17, 16  ;;  %v4956_v35 = vshll.u32 %v3948_v17, 16  ;;  %17315 = vst [vmem:[#allocation6_spill] sm:$0xff] %v15578_v20 }
 0x37d   : > { %v5185_v11 = vshrl.u32 %v3956_v28, 16  ;;  %v5188_v60 = vshll.u32 %v3956_v28, 16 }
 0x37e   : > { %v4897_v51 = vrot.slane %v4895_v43, 2  ;;  %v4900_v18 = vrot.slane %v4898_v36, 3  ;;  %v4955_v22 = vrot.slane %v4953_v63, 2  ;;  %v4958_v41 = vrot.slane %v4956_v35, 3  ;;  %10363 = vmatpush1.bf16.msra.mxu1 %v13217_v4  ;;  %v7525_v4 = vld [vmem:[#allocation4 + $0x8] sm:$0xf] }
 0x37f   : > { %10364 = vmatprep.subr.bf16.mxu1 %v17313_v44  ;;  %v5187_v25 = vrot.slane %v5185_v11, 2  ;;  %v5190_v61 = vrot.slane %v5188_v60, 3 }
 0x380   : > { %v4901_v33 = vor.u32 %v4900_v18, %v4897_v51  ;;  %v4959_v24 = vor.u32 %v4958_v41, %v4955_v22  ;;  %v13206_v51 = vld [vmem:[#allocation3 + $0xb8] ss:$0 sps:$4 sm:$0xff]  }
 0x381   : > { %12169 = vmatmul.mubr.bf16.gmra.mrb[16].mxu0 %v4496_v5  ;;  %v4844_v5 = vsel %vm4114_vm9, %v4785_v9, %v4843_v19  ;;  %v13221_v9 = vld [vmem:[%s17133_s4 + $0x70] sm:$0xff]   ;;  %v5191_v53 = vor.u32 %v5190_v61, %v5187_v25  ;;  %v3961_v63 = vrot.slane %v13206_v51, 7 }
 0x382   : > { %12172 = vmatprep.mubr.msk.bf16.mxu0 %vm13414_vm14, %v17284_v31  ;;  %v4902_v62 = vsel %vm4114_vm9, %v4843_v19, %v4901_v33  ;;  %v4960_v3 = vsel %vm4114_vm9, %v4901_v33, %v4959_v24  ;;  %10365 = vmatpush1.bf16.msra.mxu1 %v13218_v38  ;;  %v3959_v19 = vrot.slane %v15326_v0, 7 }
 0x383   : > { %10366 = vmatprep.subr.bf16.mxu1 %v17313_v44 }
 0x384   : > { %v3962_v10 = vsel %vm670_vm6, %v3959_v19, %v3961_v63 }
 0x385   : > { %v5386_v22 = vshrl.u32 %v3962_v10, 16  ;;  %v5389_v41 = vshll.u32 %v3962_v10, 16  ;;  %v7568_v10 = vld [vmem:[#allocation4 + $0xc] sm:$0x8] }
 0x386   : > { %10367 = vmatpush1.bf16.msra.mxu1 %v13219_v2 }
 0x387   : > { %10368 = vmatprep.subr.bf16.mxu1 %v17313_v44  ;;  %v5388_v58 = vrot.slane %v5386_v22, 2 }
 0x389   : > { %12173 = vmatmul.mubr.bf16.gmra.mrb[20].mxu0 %v4554_v6  ;;  %v3950_v6 = vsel %vm670_vm6, %v3947_v29, %v3949_v12 }
 0x38a   : > { %12176 = vmatprep.mubr.msk.bf16.mxu0 %vm13414_vm14, %v17284_v31  ;;  %v5011_v57 = vshrl.u32 %v3950_v6, 16  ;;  %v5014_v23 = vshll.u32 %v3950_v6, 16  ;;  %10369 = vmatpush1.bf16.msra.mxu1 %v13220_v13 }
 0x38b   : > { %10370 = vmatprep.subr.bf16.mxu1 %v17313_v44 }
 0x38c   : > { %v5013_v30 = vrot.slane %v5011_v57, 2  ;;  %v5016_v49 = vrot.slane %v5014_v23, 3 }
 0x38e   : > { %10371 = vmatpush1.bf16.msra.mxu1 %v13221_v9 }
 0x38f   : > { %10372 = vmatprep.subr.bf16.mxu1 %v17313_v44 }
 0x391   : > { %12177 = vmatmul.mubr.bf16.gmra.mrb[24].mxu0 %v4612_v56  ;;  %v5017_v56 = vor.u32 %v5016_v49, %v5013_v30 }
 0x392   : > { %12180 = vmatprep.mubr.msk.bf16.mxu0 %vm13414_vm14, %v17284_v31  ;;  %10373 = vmatpush1.bf16.msra.mxu1 %v13222_v26 }
 0x393   : > { %v5018_v52 = vsel %vm4114_vm9, %v4959_v24, %v5017_v56  ;;  %v5076_v47 = vsel %vm4114_vm9, %v5017_v56, %v5075_v45  ;;  %10542 = vmatprep.subr.bf16.mxu1 %v17313_v44  ;;  %v5391_v24 = vrot.slane %v5389_v41, 3 }
 0x395   : > { %v5392_v57 = vor.u32 %v5391_v24, %v5388_v58 }
 0x399   : > { %12181 = vmatmul.mubr.bf16.gmra.mrb[28].mxu0 %v4670_v37  ;;  %v5127_v37 = vshrl.u32 %v3954_v42, 16  ;;  %v15582_v42 = vpop.permute.xlu1 %7035 }
 0x39a   : > { %12184 = vmatprep.mubr.msk.bf16.mxu0 %vm13414_vm14, %v17284_v31  ;;  %17316 = vst [vmem:[#allocation7_spill] sm:$0xff] %v15582_v42 }
 0x39b   : > { %v5129_v32 = vrot.slane %v5127_v37, 2 }
 0x39d   : > { %v15586_v11 = vpop.permute.xlu1 %7040 }
 0x39e   : > { %17317 = vst [vmem:[#allocation8_spill] sm:$0xff] %v15586_v11 }
 0x3a1   : > { %12185 = vmatmul.mubr.bf16.gmra.mrb[32].mxu0 %v4728_v1  ;;  %v5133_v1 = vor.u32 %v5132_v15, %v5129_v32  ;;  %v15596_v22 = vpop.permute.xlu1 %7050 }
 0x3a2   : > { %12188 = vmatprep.mubr.msk.bf16.mxu0 %vm13414_vm14, %v17284_v31  ;;  %17320 = vst [vmem:[#allocation11_spill] sm:$0xff] %v15596_v22 }
 0x3a3   : > { %v5134_v48 = vsel %vm4114_vm9, %v5075_v45, %v5133_v1  ;;  %v5192_v43 = vsel %vm4114_vm9, %v5133_v1, %v5191_v53  ;;  %v7524_v1 = vld [vmem:[#allocation4 + $0x4] sm:$0xc] }
 0x3a4   : > { %v11789_v25 = vcombine.low %v7524_v1, %v7525_v4 }
 0x3a9   : > { %12189 = vmatmul.mubr.bf16.gmra.mrb[36].mxu0 %v4786_v8  ;;  %v3958_v8 = vsel %vm670_vm6, %v3955_v21, %v3957_v54 }
 0x3aa   : > { %12192 = vmatprep.mubr.msk.bf16.mxu0 %vm13414_vm14, %v17284_v31  ;;  %v5243_v40 = vshrl.u32 %v3958_v8, 16  ;;  %v5246_v50 = vshll.u32 %v3958_v8, 16 }
 0x3ac   : > { %v5245_v36 = vrot.slane %v5243_v40, 2  ;;  %v5248_v29 = vrot.slane %v5246_v50, 3 }
 0x3ae   : > { %v5249_v18 = vor.u32 %v5248_v29, %v5245_v36 }
 0x3b0   : > { %v5250_v0 = vsel %vm4114_vm9, %v5191_v53, %v5249_v18 }
 0x3b1   : > { %12193 = vmatmul.mubr.bf16.gmra.mrb[40].mxu0 %v4844_v5  ;;  %v3960_v5 = vsel %vm670_vm6, %v3957_v54, %v3959_v19 }
 0x3b2   : > { %12196 = vmatprep.mubr.msk.bf16.mxu0 %vm13414_vm14, %v17284_v31  ;;  %v5310_v17 = vshrl.u32 %v3960_v5, 16  ;;  %v5313_v33 = vshll.u32 %v3960_v5, 16 }
 0x3b4   : > { %v5312_v35 = vrot.slane %v5310_v17, 2  ;;  %v5315_v12 = vrot.slane %v5313_v33, 3  ;;  %v8479_v17 = vshll.u32 %v11789_v25, 16 }
 0x3b9   : > { %12197 = vmatmul.mubr.bf16.gmra.mrb[44].mxu0 %v4902_v62  ;;  %v5316_v62 = vor.u32 %v5315_v12, %v5312_v35 }
 0x3ba   : > { %12200 = vmatprep.mubr.msk.bf16.mxu0 %vm13414_vm14, %v17284_v31 }
 0x3bb   : > { %v5317_v6 = vsel %vm4114_vm9, %v5249_v18, %v5316_v62  ;;  %v5393_v23 = vsel %vm4114_vm9, %v5316_v62, %v5392_v57  ;;  %v8476_v18 = vshrl.u32 %v11789_v25, 16  ;;  %v15594_v62 = vpop.permute.xlu0 %7045 }
 0x3bc   : > { %17319 = vst [vmem:[#allocation10_spill] sm:$0xff] %v15594_v62 }
 0x3c1   : > { %12201 = vmatmul.mubr.bf16.gmra.mrb[48].mxu0 %v4960_v3 }
 0x3c2   : > { %12204 = vmatprep.mubr.msk.bf16.mxu0 %vm13414_vm14, %v17284_v31 }
 0x3c9   : > { %12205 = vmatmul.mubr.bf16.gmra.mrb[52].mxu0 %v5018_v52  ;;  %v7566_v52 = vld [vmem:[#allocation4 + $0x4] sm:$0x8] }
 0x3ca   : > { %12208 = vmatprep.mubr.msk.bf16.mxu0 %vm13414_vm14, %v17284_v31  ;;  %v11810_v21 = vcombine.low %v7566_v52, %v7525_v4 }
 0x3cc   : > { %v7689_v13 = vshll.u32 %v11810_v21, 16  ;;  %v7687_v53 = vshrl.u32 %v11810_v21, 16  ;;  %v7856_v33 = vrot.slane %v11810_v21, 1 }
 0x3ce   : > { %v7691_v40 = vrot.slane %v7689_v13, 1 }
 0x3d0   : > { %v7692_v35 = vor.u32 %v7691_v40, %v7687_v53 }
 0x3d1   : > { %12209 = vmatmul.mubr.bf16.gmra.mrb[56].mxu0 %v5076_v47 }
 0x3d2   : > { %12212 = vmatprep.mubr.msk.bf16.mxu0 %vm13414_vm14, %v17284_v31 }
 0x3d9   : > { %12213 = vmatmul.mubr.bf16.gmra.mrb[60].mxu0 %v5134_v48  ;;  %v7526_v48 = vld [vmem:[#allocation4 + $0xc] sm:$0xf] }
 0x3da   : > { %12216 = vmatprep.mubr.msk.bf16.mxu0 %vm13414_vm14, %v17284_v31 }
 0x3e1   : > { %12217 = vmatmul.mubr.bf16.gmra.mrb[64].mxu0 %v5192_v43 }
 0x3e2   : > { %12220 = vmatprep.mubr.msk.bf16.mxu0 %vm13414_vm14, %v17284_v31 }
 0x3e9   : > { %12221 = vmatmul.mubr.bf16.gmra.mrb[68].mxu0 %v5250_v0 }
 0x3ea   : > { %12224 = vmatprep.mubr.msk.bf16.mxu0 %vm13414_vm14, %v17284_v31 }
 0x3f1   : > { %12225 = vmatmul.mubr.bf16.gmra.mrb[72].mxu0 %v5317_v6 }
 0x3f2   : > { %12228 = vmatprep.mubr.msk.bf16.mxu0 %vm13414_vm14, %v17284_v31 }
 0x3f9   : > { %12229 = vmatmul.mubr.bf16.gmra.mrb[76].mxu0 %v5393_v23 }
 0x3fa   : > { %12232 = vmatprep.mubr.msk.bf16.mxu0 %vm13414_vm14, %v17284_v31 }
 0x401   : > { %12233 = vmatmul.mubr.bf16.gmra.mrb[80].mxu0 %v5392_v57 }
 0x434   : > { %v6816_v3 = vpop.f32.mrb[0].mxu0 }
 0x435   : > { %v12336_v30 = vadd.f32 %v15572_v7, %v6816_v3  ;;  %v12154_v49 = vpop.f32.mrb[1].mxu0  ;;  %v8478_v3 = vrot.slane %v8476_v18, 2 }
 0x436   : > { %v6819_v27 = vpop.f32.mrb[2].mxu0 }
 0x437   : > { %v6982_v46 = vmax.f32 %v12336_v30, 0.0  ;;  %v12337_v56 = vadd.f32 %v15572_v7, %v6819_v27  ;;  %v12155_v59 = vpop.f32.mrb[3].mxu0  ;;  %v8481_v30 = vrot.slane %v8479_v17, 3 }
 0x439   : > { %v6983_v55 = vmax.f32 %v12337_v56, 0.0  ;;  %v7228_v39 = vmul.f32 %v15574_v14, %v6982_v46 }
 0x43b   : > { %v7229_v34 = vmul.f32 %v15578_v20, %v6983_v55 }
 0x43c   : > { %v6824_v38 = vpop.f32.mrb[4].mxu0 }
 0x43d   : > { %v11961_v45 = vpack.c.bf16 %v7229_v34, %v7228_v39  ;;  %v12338_v37 = vadd.f32 %v15572_v7, %v6824_v38  ;;  %v12158_v16 = vpop.f32.mrb[5].mxu0 }
 0x43e   : > { %v6827_v2 = vpop.f32.mrb[6].mxu0 }
 0x43f   : > { %12058 = vst [vmem:[#allocation4 + $0x10] sm:$0xff] %v11961_v45   ;;  %v6984_v47 = vmax.f32 %v12338_v37, 0.0  ;;  %v12339_v32 = vadd.f32 %v15572_v7, %v6827_v2  ;;  %v12159_v15 = vpop.f32.mrb[7].mxu0 }
 0x441   : > { %v6985_v28 = vmax.f32 %v12339_v32, 0.0  ;;  %v7230_v60 = vmul.f32 %v15582_v42, %v6984_v47  ;;  %v8482_v47 = vor.u32 %v8481_v30, %v8478_v3 }
 0x443   : > { %v7231_v54 = vmul.f32 %v15586_v11, %v6985_v28  ;;  %v15604_v28 = vpop.permute.xlu0 %7055 }
 0x444   : > { %v6832_v9 = vpop.f32.mrb[8].mxu0  ;;  %17321 = vst [vmem:[#allocation12_spill] sm:$0xff] %v15604_v28 }
 0x445   : > { %v11966_v61 = vpack.c.bf16 %v7231_v54, %v7230_v60  ;;  %v12340_v8 = vadd.f32 %v15572_v7, %v6832_v9  ;;  %v12162_v26 = vpop.f32.mrb[9].mxu0  ;;  %v15606_v9 = vpop.permute.xlu1 %7060 }
 0x446   : > { %v6835_v50 = vpop.f32.mrb[10].mxu0  ;;  %v7527_v19 = vld [vmem:[#allocation4 + $0x10] sm:$0xf]  ;;  %v7528_v43 = vld [vmem:[#allocation4 + $0x14] sm:$0xf]  ;;  %17322 = vst [vmem:[#allocation13_spill] sm:$0xff] %v15606_v9 }
 0x447   : > { %12059 = vst [vmem:[#allocation4 + $0x18] sm:$0xff] %v11966_v61   ;;  %v6986_v36 = vmax.f32 %v12340_v8, 0.0  ;;  %v12341_v29 = vadd.f32 %v15572_v7, %v6835_v50  ;;  %v12163_v5 = vpop.f32.mrb[11].mxu0  ;;  %v11790_v51 = vcombine.low %v7526_v48, %v7527_v19  ;;  %v15592_v63 = vcombine.low %v7527_v19, %v7528_v43 }
 0x448   : > { %v11812_v49 = vcombine.low %v7568_v10, %v7527_v19 }
 0x449   : > { %17318 = vst [vmem:[#allocation9_spill] sm:$0xff] %v15592_v63  ;;  %v6987_v0 = vmax.f32 %v12341_v29, 0.0  ;;  %v7694_v12 = vshll.u32 %v11790_v51, 16  ;;  %v7698_v41 = vshrl.u32 %v11790_v51, 16  ;;  %v7857_v6 = vrot.slane %v11790_v51, 1 }
 0x44a   : > { %v7232_v58 = vmul.f32 %v15594_v62, %v6986_v36  ;;  %v7908_v32 = vrot.slane %v11812_v49, 1 }
 0x44b   : > { %v7233_v24 = vmul.f32 %v15596_v22, %v6987_v0  ;;  %v7696_v57 = vrot.slane %v7694_v12, 1  ;;  %v7858_v27 = vsel %vm3491_vm10, %v7856_v33, %v7857_v6  ;;  %v8483_v34 = vrot.slane %v7698_v41, 2 }
 0x44c   : > { %v6840_v23 = vpop.f32.mrb[12].mxu0  ;;  %v8484_v38 = vrot.slane %v7694_v12, 3  ;;  %v8505_v15 = vshrl.u32 %v7858_v27, 16  ;;  %v8508_v5 = vshll.u32 %v7858_v27, 16 }
 0x44d   : > { %v11971_v46 = vpack.c.bf16 %v7233_v24, %v7232_v58  ;;  %v12342_v56 = vadd.f32 %v15572_v7, %v6840_v23  ;;  %v12166_v59 = vpop.f32.mrb[13].mxu0  ;;  %v7697_v55 = vsel %vm3320_vm8, %v7692_v35, %v7696_v57  ;;  %v7700_v1 = vor.u32 %v7698_v41, %v7696_v57 }
 0x44e   : > { %v6843_v4 = vpop.f32.mrb[14].mxu0  ;;  %v7529_v52 = vld [vmem:[#allocation4 + $0x18] sm:$0xf]  ;;  %v8488_v39 = vshrl.u32 %v7697_v55, 16  ;;  %v8491_v2 = vshll.u32 %v7697_v55, 16  ;;  %v15609_v61 = vor.u32 %v8484_v38, %v8483_v34  ;;  %v15612_v50 = vrot.slane %v8505_v15, 2  ;;  %v15629_v34 = vpop.permute.xlu0 %7065 }
 0x44f   : > { %12060 = vst [vmem:[#allocation4 + $0x20] sm:$0xff] %v11971_v46   ;;  %v6988_v45 = vmax.f32 %v12342_v56, 0.0  ;;  %v12343_v37 = vadd.f32 %v15572_v7, %v6843_v4  ;;  %v12167_v16 = vpop.f32.mrb[15].mxu0  ;;  %v11791_v21 = vcombine.low %v7528_v43, %v7529_v52  ;;  %v7530_v33 = vld [vmem:[#allocation4 + $0x1c] sm:$0xf]  ;;  %v15625_v59 = vrot.slane %v8508_v5, 3  ;;  %v15631_v38 = vpop.permute.xlu1 %7070 }
 0x450   : > { %v8490_v25 = vrot.slane %v8488_v39, 2  ;;  %v8493_v40 = vrot.slane %v8491_v2, 3  ;;  %v8486_v58 = vsel %vm4114_vm9, %v8482_v47, %v15609_v61  ;;  %17323 = vst [vmem:[#allocation14_spill] sm:$0xff] %v15629_v34  ;;  %17324 = vst [vmem:[#allocation15_spill] sm:$0xff] %v15631_v38 }
 0x451   : > { %v6989_v13 = vmax.f32 %v12343_v37, 0.0  ;;  %v7702_v60 = vshll.u32 %v11791_v21, 16  ;;  %v7706_v54 = vshrl.u32 %v11791_v21, 16  ;;  %v7234_v48 = vmul.f32 %v15604_v28, %v6988_v45 }
 0x452   : > { %v7859_v8 = vrot.slane %v11791_v21, 1  ;;  %v8494_v27 = vor.u32 %v8493_v40, %v8490_v25 }
 0x453   : > { %v7235_v26 = vmul.f32 %v15606_v9, %v6989_v13  ;;  %v7704_v53 = vrot.slane %v7702_v60, 1  ;;  %v8623_v43 = vrot.slane %v7706_v54, 2  ;;  %v8624_v35 = vrot.slane %v7702_v60, 3 }
 0x454   : > { %v6848_v19 = vpop.f32.mrb[16].mxu0  ;;  %v7909_v36 = vsel %vm3491_vm10, %v7908_v32, %v7859_v8  ;;  %v15616_v29 = vsel %vm3491_vm10, %v7857_v6, %v7859_v8  ;;  %v13228_v32 = vld [vmem:[%s17133_s4 + $0x80] sm:$0xff]  }
 0x455   : > { %v11976_v51 = vpack.c.bf16 %v7235_v26, %v7234_v48  ;;  %v12344_v18 = vadd.f32 %v15572_v7, %v6848_v19  ;;  %v12170_v17 = vpop.f32.mrb[17].mxu0  ;;  %v7705_v0 = vsel %vm3320_vm8, %v7700_v1, %v7704_v53  ;;  %v8522_v57 = vshrl.u32 %v7909_v36, 16 }
 0x456   : > { %v6851_v12 = vpop.f32.mrb[18].mxu0  ;;  %v8496_v10 = vshrl.u32 %v7705_v0, 16  ;;  %v8499_v41 = vshll.u32 %v7705_v0, 16  ;;  %v7531_v24 = vld [vmem:[#allocation4 + $0x20] sm:$0xf]  ;;  %v8525_v49 = vshll.u32 %v7909_v36, 16  ;;  %v7708_v4 = vor.u32 %v7706_v54, %v7704_v53 }
 0x457   : > { %12061 = vst [vmem:[#allocation4 + $0x28] sm:$0xff] %v11976_v51   ;;  %v6990_v6 = vmax.f32 %v12344_v18, 0.0  ;;  %v12345_v23 = vadd.f32 %v15572_v7, %v6851_v12  ;;  %v12171_v3 = vpop.f32.mrb[19].mxu0  ;;  %v15623_v30 = vcombine.low %v7530_v33, %v7531_v24  ;;  %v15633_v37 = vor.u32 %v8624_v35, %v8623_v43  ;;  %v7532_v43 = vld [vmem:[#allocation4 + $0x24] sm:$0xf] }
 0x458   : > { %v8498_v46 = vrot.slane %v8496_v10, 2  ;;  %v8501_v56 = vrot.slane %v8499_v41, 3  ;;  %v15636_v21 = vrot.slane %v8522_v57, 2  ;;  %v15643_v13 = vrot.slane %v8525_v49, 3  ;;  %v13230_v10 = vld [vmem:[%s17133_s4 + $0x88] sm:$0xff]  }
 0x459   : > { %v6991_v55 = vmax.f32 %v12345_v23, 0.0  ;;  %v7710_v52 = vshll.u32 %v15623_v30, 16  ;;  %v7714_v39 = vshrl.u32 %v15623_v30, 16  ;;  %v7861_v16 = vrot.slane %v15623_v30, 1  ;;  %v15668_v23 = vpop.permute.xlu0 %7075 }
 0x45a   : > { %v8502_v45 = vor.u32 %v8501_v56, %v8498_v46  ;;  %v7236_v2 = vmul.f32 %v15629_v34, %v6990_v6  ;;  %v8513_v36 = vshrl.u32 %v15616_v29, 16  ;;  %v8626_v17 = vsel %vm4114_vm9, %v15609_v61, %v15633_v37  ;;  %17325 = vst [vmem:[#allocation16_spill] sm:$0xff] %v15668_v23  ;;  %v15672_v56 = vpop.permute.xlu1 %7080 }
 0x45b   : > { %v7237_v47 = vmul.f32 %v15631_v38, %v6991_v55  ;;  %v7712_v15 = vrot.slane %v7710_v52, 1  ;;  %v15646_v54 = vrot.slane %v7714_v39, 2  ;;  %v15648_v48 = vrot.slane %v7710_v52, 3  ;;  %17326 = vst [vmem:[#allocation17_spill] sm:$0xff] %v15672_v56 }
 0x45c   : > { %v6856_v1 = vpop.f32.mrb[20].mxu0  ;;  %v8503_v60 = vsel %vm4114_vm9, %v8494_v27, %v8502_v45  ;;  %v7862_v25 = vsel %vm3491_vm10, %v7859_v8, %v7861_v16  ;;  %v8528_v61 = vor.u32 %v15643_v13, %v15636_v21 }
 0x45d   : > { %v11981_v26 = vpack.c.bf16 %v7237_v47, %v7236_v2  ;;  %v12346_v53 = vadd.f32 %v15572_v7, %v6856_v1  ;;  %v12174_v40 = vpop.f32.mrb[21].mxu0  ;;  %10374 = vmatprep.mubr.bf16.mxu1 %v8503_v60  ;;  %v7713_v19 = vsel %vm3320_vm8, %v7708_v4, %v7712_v15  ;;  %v8530_v8 = vshrl.u32 %v7862_v25, 16 }
 0x45e   : > { %v6859_v5 = vpop.f32.mrb[22].mxu0  ;;  %10375 = vmatmul.mubr.bf16.vlgmr.msra.gmra.mrb[0].mxu1 %v8486_v58  ;;  %v8628_v51 = vshrl.u32 %v7713_v19, 16  ;;  %v8631_v18 = vshll.u32 %v7713_v19, 16  ;;  %v7533_v33 = vld [vmem:[#allocation4 + $0x28] sm:$0xf]  ;;  %v8533_v58 = vshll.u32 %v7862_v25, 16  ;;  %v7716_v49 = vor.u32 %v7714_v39, %v7712_v15 }
 0x45f   : > { %12062 = vst [vmem:[#allocation4 + $0x30] sm:$0xff] %v11981_v26   ;;  %v6992_v0 = vmax.f32 %v12346_v53, 0.0  ;;  %v12347_v35 = vadd.f32 %v15572_v7, %v6859_v5  ;;  %v12175_v12 = vpop.f32.mrb[23].mxu0  ;;  %10543 = vmatpush1.bf16.msra.mxu1 %v13228_v32  ;;  %v15663_v41 = vcombine.low %v7532_v43, %v7533_v33  ;;  %v8532_v6 = vrot.slane %v8530_v8, 2  ;;  %v13232_v39 = vld [vmem:[%s17133_s4 + $0x90] sm:$0xff]  }
 0x460   : > { %v8630_v24 = vrot.slane %v8628_v51, 2  ;;  %v8633_v57 = vrot.slane %v8631_v18, 3  ;;  %10544 = vmatprep.subr.bf16.mxu1 %v17313_v44  ;;  %v8535_v52 = vrot.slane %v8533_v58, 3  ;;  %v8516_v2 = vshll.u32 %v15616_v29, 16  ;;  %v7534_v43 = vld [vmem:[#allocation4 + $0x2c] sm:$0xf] }
 0x461   : > { %v6993_v3 = vmax.f32 %v12347_v35, 0.0  ;;  %v7718_v27 = vshll.u32 %v15663_v41, 16  ;;  %v7722_v46 = vshrl.u32 %v15663_v41, 16  ;;  %v7238_v55 = vmul.f32 %v15668_v23, %v6992_v0 }
 0x462   : > { %v8634_v4 = vor.u32 %v8633_v57, %v8630_v24  ;;  %v8515_v15 = vrot.slane %v8513_v36, 2  ;;  %v15682_v60 = vor.u32 %v8535_v52, %v8532_v6  ;;  %v8518_v25 = vrot.slane %v8516_v2, 3 }
 0x463   : > { %v7239_v47 = vmul.f32 %v15672_v56, %v6993_v3  ;;  %10545 = vmatpush1.bf16.msra.mxu1 %v13230_v10  ;;  %v7720_v21 = vrot.slane %v7718_v27, 1  ;;  %v8741_v32 = vrot.slane %v7722_v46, 2  ;;  %v7863_v29 = vrot.slane %v15663_v41, 1 }
 0x464   : > { %v6864_v13 = vpop.f32.mrb[24].mxu0  ;;  %v8635_v1 = vsel %vm4114_vm9, %v8502_v45, %v8634_v4  ;;  %10546 = vmatprep.subr.bf16.mxu1 %v17313_v44  ;;  %v8742_v5 = vrot.slane %v7718_v27, 3  ;;  %v15689_v33 = vsel %vm4114_vm9, %v8528_v61, %v15682_v60  ;;  %v8511_v8 = vor.u32 %v15625_v59, %v15612_v50  ;;  %v15710_v27 = vpop.permute.xlu0 %7085 }
 0x465   : > { %v11986_v26 = vpack.c.bf16 %v7239_v47, %v7238_v55  ;;  %v12348_v53 = vadd.f32 %v15572_v7, %v6864_v13  ;;  %v12178_v40 = vpop.f32.mrb[25].mxu0  ;;  %10382 = vmatprep.mubr.bf16.mxu1 %v8635_v1  ;;  %v7721_v19 = vsel %vm3320_vm8, %v7716_v49, %v7720_v21  ;;  %v8519_v58 = vor.u32 %v8518_v25, %v8515_v15  ;;  %v15712_v55 = vpop.permute.xlu1 %7090 }
 0x466   : > { %v6867_v36 = vpop.f32.mrb[26].mxu0  ;;  %10383 = vmatmul.mubr.bf16.gmra.mrb[4].mxu1 %v8626_v17  ;;  %v8688_v51 = vshrl.u32 %v7721_v19, 16  ;;  %v8691_v45 = vshll.u32 %v7721_v19, 16  ;;  %v7535_v18 = vld [vmem:[#allocation4 + $0x30] sm:$0xf]  ;;  %v13235_v17 = vld [vmem:[%s17133_s4 + $0x98] sm:$0xff]   ;;  %v8685_v61 = vor.u32 %v15648_v48, %v15646_v54  ;;  %v7864_v50 = vsel %vm3491_vm10, %v7861_v16, %v7863_v29 }
 0x467   : > { %12063 = vst [vmem:[#allocation4 + $0x38] sm:$0xff] %v11986_v26   ;;  %v6994_v0 = vmax.f32 %v12348_v53, 0.0  ;;  %v12349_v35 = vadd.f32 %v15572_v7, %v6867_v36  ;;  %v12179_v12 = vpop.f32.mrb[27].mxu0  ;;  %10547 = vmatpush1.bf16.msra.mxu1 %v13232_v39  ;;  %v15694_v10 = vcombine.low %v7534_v43, %v7535_v18  ;;  %v7724_v6 = vor.u32 %v7722_v46, %v7720_v21  ;;  %v13237_v21 = vld [vmem:[%s17133_s4 + $0xa0] sm:$0xff]   ;;  %v7536_v43 = vld [vmem:[#allocation4 + $0x34] sm:$0xf] }
 0x468   : > { %v8690_v24 = vrot.slane %v8688_v51, 2  ;;  %v8693_v57 = vrot.slane %v8691_v45, 3  ;;  %10548 = vmatprep.subr.bf16.mxu1 %v17313_v44  ;;  %v15708_v49 = vor.u32 %v8742_v5, %v8741_v32  ;;  %17327 = vst [vmem:[#allocation18_spill] sm:$0xff] %v15710_v27  ;;  %17328 = vst [vmem:[#allocation19_spill] sm:$0xff] %v15712_v55  ;;  %v15715_v54 = vsel %vm4114_vm9, %v8511_v8, %v8519_v58 }
 0x469   : > { %v6995_v59 = vmax.f32 %v12349_v35, 0.0  ;;  %v7726_v3 = vshll.u32 %v15694_v10, 16  ;;  %v8638_v48 = vshrl.u32 %v7864_v50, 16  ;;  %v8641_v2 = vshll.u32 %v7864_v50, 16 }
 0x46a   : > { %v8694_v52 = vor.u32 %v8693_v57, %v8690_v24  ;;  %v7240_v30 = vmul.f32 %v15710_v27, %v6994_v0  ;;  %v7730_v46 = vshrl.u32 %v15694_v10, 16  ;;  %v15727_v1 = vsel %vm4114_vm9, %v8519_v58, %v15682_v60 }
 0x46b   : > { %v7241_v16 = vmul.f32 %v15712_v55, %v6995_v59  ;;  %v7728_v47 = vrot.slane %v7726_v3, 1  ;;  %10549 = vmatpush1.bf16.msra.mxu1 %v13235_v17  ;;  %v8640_v15 = vrot.slane %v8638_v48, 2  ;;  %v8643_v13 = vrot.slane %v8641_v2, 3  ;;  %v15752_v2 = vpop.permute.xlu0 %7095 }
 0x46c   : > { %v6872_v39 = vpop.f32.mrb[28].mxu0  ;;  %v8695_v32 = vsel %vm4114_vm9, %v8634_v4, %v8694_v52  ;;  %10550 = vmatprep.subr.bf16.mxu1 %v17313_v44  ;;  %v8686_v40 = vsel %vm4114_vm9, %v15633_v37, %v8685_v61  ;;  %v8744_v51 = vsel %vm4114_vm9, %v8685_v61, %v15708_v49  ;;  %v13239_v37 = vld [vmem:[%s17133_s4 + $0xa8] sm:$0xff]   ;;  %v7865_v17 = vrot.slane %v15694_v10, 1  ;;  %17329 = vst [vmem:[#allocation20_spill] sm:$0xff] %v15752_v2 }
 0x46d   : > { %v11991_v25 = vpack.c.bf16 %v7241_v16, %v7240_v30  ;;  %v12350_v26 = vadd.f32 %v15572_v7, %v6872_v39  ;;  %v12182_v53 = vpop.f32.mrb[29].mxu0  ;;  %10390 = vmatprep.mubr.bf16.mxu1 %v8695_v32  ;;  %v7729_v19 = vsel %vm3320_vm8, %v7724_v6, %v7728_v47  ;;  %v15735_v18 = vor.u32 %v8643_v13, %v8640_v15  ;;  %v15754_v30 = vpop.permute.xlu1 %7100  ;;  %v13242_v13 = vld [vmem:[%s17133_s4 + $0xb0] sm:$0xff]  }
 0x46e   : > { %v6875_v4 = vpop.f32.mrb[30].mxu0  ;;  %10391 = vmatmul.mubr.bf16.gmra.mrb[8].mxu1 %v8686_v40  ;;  %v8746_v5 = vshrl.u32 %v7729_v19, 16  ;;  %v8749_v36 = vshll.u32 %v7729_v19, 16  ;;  %v7537_v45 = vld [vmem:[#allocation4 + $0x38] sm:$0xf]  ;;  %v8799_v57 = vrot.slane %v7730_v46, 2  ;;  %v7732_v16 = vor.u32 %v7730_v46, %v7728_v47 }
 0x46f   : > { %12064 = vst [vmem:[#allocation4 + $0x40] sm:$0xff] %v11991_v25   ;;  %v6996_v8 = vmax.f32 %v12350_v26, 0.0  ;;  %v12351_v0 = vadd.f32 %v15572_v7, %v6875_v4  ;;  %v12183_v35 = vpop.f32.mrb[31].mxu0  ;;  %v15738_v12 = vcombine.low %v7536_v43, %v7537_v45  ;;  %10551 = vmatpush1.bf16.msra.mxu1 %v13237_v21  ;;  %v15748_v61 = vsel %vm4114_vm9, %v15682_v60, %v15735_v18  ;;  %v7538_v43 = vld [vmem:[#allocation4 + $0x3c] sm:$0xf] }
 0x470   : > { %v8748_v58 = vrot.slane %v8746_v5, 2  ;;  %v8751_v24 = vrot.slane %v8749_v36, 3  ;;  %10552 = vmatprep.subr.bf16.mxu1 %v17313_v44  ;;  %v8800_v6 = vrot.slane %v7726_v3, 3  ;;  %17330 = vst [vmem:[#allocation21_spill] sm:$0xff] %v15754_v30  ;;  %v7866_v21 = vsel %vm3491_vm10, %v7863_v29, %v7865_v17 }
 0x471   : > { %v6997_v50 = vmax.f32 %v12351_v0, 0.0  ;;  %v7734_v59 = vshll.u32 %v15738_v12, 16  ;;  %v7738_v48 = vshrl.u32 %v15738_v12, 16  ;;  %v7867_v39 = vrot.slane %v15738_v12, 1 }
 0x472   : > { %v8752_v10 = vor.u32 %v8751_v24, %v8748_v58  ;;  %v7242_v60 = vmul.f32 %v15752_v2, %v6996_v8  ;;  %v8697_v41 = vshrl.u32 %v7866_v21, 16  ;;  %v8700_v29 = vshll.u32 %v7866_v21, 16  ;;  %v13244_v58 = vld [vmem:[%s17133_s4 + $0xb8] sm:$0xff]  }
 0x473   : > { %v7243_v32 = vmul.f32 %v15754_v30, %v6997_v50  ;;  %v7736_v15 = vrot.slane %v7734_v59, 1  ;;  %v8857_v3 = vrot.slane %v7738_v48, 2  ;;  %10553 = vmatpush1.bf16.msra.mxu1 %v13239_v37  ;;  %v7868_v46 = vsel %vm3491_vm10, %v7865_v17, %v7867_v39 }
 0x474   : > { %v6880_v25 = vpop.f32.mrb[32].mxu0  ;;  %v8753_v47 = vsel %vm4114_vm9, %v8694_v52, %v8752_v10  ;;  %10554 = vmatprep.subr.bf16.mxu1 %v17313_v44  ;;  %v8858_v4 = vrot.slane %v7734_v59, 3  ;;  %v8699_v8 = vrot.slane %v8697_v41, 2  ;;  %v8702_v24 = vrot.slane %v8700_v29, 3 }
 0x475   : > { %v11996_v26 = vpack.c.bf16 %v7243_v32, %v7242_v60  ;;  %v12352_v53 = vadd.f32 %v15572_v7, %v6880_v25  ;;  %v12186_v40 = vpop.f32.mrb[33].mxu0  ;;  %10398 = vmatprep.mubr.bf16.mxu1 %v8753_v47  ;;  %v7737_v19 = vsel %vm3320_vm8, %v7732_v16, %v7736_v15  ;;  %v8755_v16 = vshrl.u32 %v7868_v46, 16  ;;  %v15782_v47 = vpop.permute.xlu0 %7105 }
 0x476   : > { %v6883_v5 = vpop.f32.mrb[34].mxu0  ;;  %10399 = vmatmul.mubr.bf16.gmra.mrb[12].mxu1 %v8744_v51  ;;  %v8804_v52 = vshrl.u32 %v7737_v19, 16  ;;  %v8807_v36 = vshll.u32 %v7737_v19, 16  ;;  %v7539_v45 = vld [vmem:[#allocation4 + $0x40] sm:$0xf]  ;;  %v8801_v51 = vor.u32 %v8800_v6, %v8799_v57  ;;  %v7740_v60 = vor.u32 %v7738_v48, %v7736_v15  ;;  %17331 = vst [vmem:[#allocation22_spill] sm:$0xff] %v15782_v47 }
 0x477   : > { %12065 = vst [vmem:[#allocation4 + $0x48] sm:$0xff] %v11996_v26   ;;  %v6998_v0 = vmax.f32 %v12352_v53, 0.0  ;;  %v12353_v35 = vadd.f32 %v15572_v7, %v6883_v5  ;;  %v12187_v37 = vpop.f32.mrb[35].mxu0  ;;  %v15773_v17 = vcombine.low %v7538_v43, %v7539_v45  ;;  %10555 = vmatpush1.bf16.msra.mxu1 %v13242_v13  ;;  %v15780_v25 = vor.u32 %v8858_v4, %v8857_v3  ;;  %v15784_v13 = vpop.permute.xlu1 %7110  ;;  %v13246_v48 = vld [vmem:[%s17133_s4 + $0xc0] sm:$0xff]  }
 0x478   : > { %v8806_v50 = vrot.slane %v8804_v52, 2  ;;  %v8809_v59 = vrot.slane %v8807_v36, 3  ;;  %10556 = vmatprep.subr.bf16.mxu1 %v17313_v44  ;;  %17332 = vst [vmem:[#allocation23_spill] sm:$0xff] %v15784_v13  ;;  %v8703_v26 = vor.u32 %v8702_v24, %v8699_v8  ;;  %v8757_v53 = vrot.slane %v8755_v16, 2 }
 0x479   : > { %v6999_v21 = vmax.f32 %v12353_v35, 0.0  ;;  %v7742_v32 = vshll.u32 %v15773_v17, 16  ;;  %v8758_v29 = vshll.u32 %v7868_v46, 16  ;;  %v7244_v40 = vmul.f32 %v15782_v47, %v6998_v0 }
 0x47a   : > { %v8810_v41 = vor.u32 %v8809_v59, %v8806_v50  ;;  %v7746_v19 = vshrl.u32 %v15773_v17, 16  ;;  %v15796_v46 = vsel %vm4114_vm9, %v15735_v18, %v8703_v26  ;;  %v7869_v4 = vrot.slane %v15773_v17, 1 }
 0x47b   : > { %v7245_v57 = vmul.f32 %v15784_v13, %v6999_v21  ;;  %v7744_v6 = vrot.slane %v7742_v32, 1  ;;  %10557 = vmatpush1.bf16.msra.mxu1 %v13244_v58  ;;  %v8760_v43 = vrot.slane %v8758_v29, 3  ;;  %v8802_v45 = vsel %vm4114_vm9, %v15708_v49, %v8801_v51  ;;  %v13249_v49 = vld [vmem:[%s17133_s4 + $0xc8] sm:$0xff]   ;;  %v15825_v12 = vpop.permute.xlu1 %7120 }
 0x47c   : > { %v6888_v15 = vpop.f32.mrb[36].mxu0  ;;  %v8811_v3 = vsel %vm4114_vm9, %v8752_v10, %v8810_v41  ;;  %10558 = vmatprep.subr.bf16.mxu1 %v17313_v44  ;;  %v7540_v10 = vld [vmem:[#allocation4 + $0x44] sm:$0xf]  ;;  %v8860_v18 = vsel %vm4114_vm9, %v8801_v51, %v15780_v25  ;;  %v7870_v21 = vsel %vm3491_vm10, %v7867_v39, %v7869_v4  ;;  %17334 = vst [vmem:[#allocation25_spill] sm:$0xff] %v15825_v12 }
 0x47d   : > { %v12001_v5 = vpack.c.bf16 %v7245_v57, %v7244_v40  ;;  %v12354_v52 = vadd.f32 %v15572_v7, %v6888_v15  ;;  %v12190_v36 = vpop.f32.mrb[37].mxu0  ;;  %10406 = vmatprep.mubr.bf16.mxu1 %v8811_v3  ;;  %v7745_v8 = vsel %vm3320_vm8, %v7740_v60, %v7744_v6  ;;  %v15805_v17 = vor.u32 %v8760_v43, %v8757_v53  ;;  %v15823_v3 = vpop.permute.xlu0 %7115 }
 0x47e   : > { %v6891_v0 = vpop.f32.mrb[38].mxu0  ;;  %10407 = vmatmul.mubr.bf16.gmra.mrb[16].mxu1 %v8802_v45  ;;  %v8862_v35 = vshrl.u32 %v7745_v8, 16  ;;  %v8865_v37 = vshll.u32 %v7745_v8, 16  ;;  %v7541_v58 = vld [vmem:[#allocation4 + $0x48] sm:$0xf]  ;;  %v8915_v53 = vrot.slane %v7746_v19, 2  ;;  %v7748_v45 = vor.u32 %v7746_v19, %v7744_v6 }
 0x47f   : > { %12066 = vst [vmem:[#allocation4 + $0x50] sm:$0xff] %v12001_v5   ;;  %v7000_v24 = vmax.f32 %v12354_v52, 0.0  ;;  %v12355_v50 = vadd.f32 %v15572_v7, %v6891_v0  ;;  %v12191_v59 = vpop.f32.mrb[39].mxu0  ;;  %v15808_v16 = vcombine.low %v7540_v10, %v7541_v58  ;;  %10559 = vmatpush1.bf16.msra.mxu1 %v13246_v48  ;;  %v15819_v29 = vsel %vm4114_vm9, %v8703_v26, %v15805_v17 }
 0x480   : > { %v8864_v51 = vrot.slane %v8862_v35, 2  ;;  %v8867_v60 = vrot.slane %v8865_v37, 3  ;;  %10560 = vmatprep.subr.bf16.mxu1 %v17313_v44  ;;  %v8916_v48 = vrot.slane %v7742_v32, 3  ;;  %17333 = vst [vmem:[#allocation24_spill] sm:$0xff] %v15823_v3  ;;  %v8813_v43 = vshrl.u32 %v7870_v21, 16  ;;  %v13251_v32 = vld [vmem:[%s17133_s4 + $0xd0] sm:$0xff]  }
 0x481   : > { %v7001_v40 = vmax.f32 %v12355_v50, 0.0  ;;  %v7750_v57 = vshll.u32 %v15808_v16, 16  ;;  %v7754_v15 = vshrl.u32 %v15808_v16, 16  ;;  %v8816_v5 = vshll.u32 %v7870_v21, 16 }
 0x482   : > { %v8868_v39 = vor.u32 %v8867_v60, %v8864_v51  ;;  %v7871_v52 = vrot.slane %v15808_v16, 1  ;;  %v7246_v36 = vmul.f32 %v15823_v3, %v7000_v24  ;;  %v8815_v35 = vrot.slane %v8813_v43, 2  ;;  %v7542_v16 = vld [vmem:[#allocation4 + $0x4c] sm:$0xf] }
 0x483   : > { %v7247_v26 = vmul.f32 %v15825_v12, %v7001_v40  ;;  %v7752_v8 = vrot.slane %v7750_v57, 1  ;;  %10561 = vmatpush1.bf16.msra.mxu1 %v13249_v49  ;;  %v8818_v37 = vrot.slane %v8816_v5, 3  ;;  %v15838_v19 = vor.u32 %v8916_v48, %v8915_v53  ;;  %v13253_v53 = vld [vmem:[%s17133_s4 + $0xd8] sm:$0xff]  }
 0x484   : > { %v6896_v10 = vpop.f32.mrb[40].mxu0  ;;  %v8869_v0 = vsel %vm4114_vm9, %v8810_v41, %v8868_v39  ;;  %10562 = vmatprep.subr.bf16.mxu1 %v17313_v44  ;;  %v7872_v58 = vsel %vm3491_vm10, %v7869_v4, %v7871_v52  ;;  %v8973_v60 = vrot.slane %v7754_v15, 2 }
 0x485   : > { %v12006_v50 = vpack.c.bf16 %v7247_v26, %v7246_v36  ;;  %v12356_v24 = vadd.f32 %v15572_v7, %v6896_v10  ;;  %v12194_v59 = vpop.f32.mrb[41].mxu0  ;;  %10414 = vmatprep.mubr.bf16.mxu1 %v8869_v0  ;;  %v7753_v6 = vsel %vm3320_vm8, %v7748_v45, %v7752_v8  ;;  %v8819_v40 = vor.u32 %v8818_v37, %v8815_v35  ;;  %v15855_v37 = vpop.permute.xlu0 %7125 }
 0x486   : > { %v6899_v49 = vpop.f32.mrb[42].mxu0  ;;  %10415 = vmatmul.mubr.bf16.gmra.mrb[20].mxu1 %v8860_v18  ;;  %v8920_v21 = vshrl.u32 %v7753_v6, 16  ;;  %v8923_v41 = vshll.u32 %v7753_v6, 16  ;;  %v7543_v51 = vld [vmem:[#allocation4 + $0x50] sm:$0xf]  ;;  %v8871_v48 = vshrl.u32 %v7872_v58, 16  ;;  %v8918_v35 = vsel %vm4114_vm9, %v15780_v25, %v15838_v19 }
 0x487   : > { %12067 = vst [vmem:[#allocation4 + $0x58] sm:$0xff] %v12006_v50   ;;  %v7002_v43 = vmax.f32 %v12356_v24, 0.0  ;;  %v12357_v4 = vadd.f32 %v15572_v7, %v6899_v49  ;;  %v12195_v5 = vpop.f32.mrb[43].mxu0  ;;  %v15841_v36 = vcombine.low %v7542_v16, %v7543_v51  ;;  %10563 = vmatpush1.bf16.msra.mxu1 %v13251_v32  ;;  %v8974_v45 = vrot.slane %v7750_v57, 3  ;;  %17335 = vst [vmem:[#allocation26_spill] sm:$0xff] %v15855_v37  ;;  %v15857_v50 = vpop.permute.xlu1 %7130  ;;  %v13256_v25 = vld [vmem:[%s17133_s4 + $0xe0] sm:$0xff]  }
 0x488   : > { %v8922_v26 = vrot.slane %v8920_v21, 2  ;;  %v8925_v18 = vrot.slane %v8923_v41, 3  ;;  %10564 = vmatprep.subr.bf16.mxu1 %v17313_v44  ;;  %v15849_v10 = vsel %vm4114_vm9, %v15805_v17, %v8819_v40  ;;  %17336 = vst [vmem:[#allocation27_spill] sm:$0xff] %v15857_v50  ;;  %v8873_v59 = vrot.slane %v8871_v48, 2  ;;  %v7544_v48 = vld [vmem:[#allocation4 + $0x54] sm:$0xf] }
 0x489   : > { %v7003_v0 = vmax.f32 %v12357_v4, 0.0  ;;  %v17178_v32 = vshll.u32 %v15841_v36, 16  ;;  %v8874_v57 = vshll.u32 %v7872_v58, 16  ;;  %v7873_v6 = vrot.slane %v15841_v36, 1 }
 0x48a   : > { %v8926_v24 = vor.u32 %v8925_v18, %v8922_v26  ;;  %v7248_v16 = vmul.f32 %v15855_v37, %v7002_v43  ;;  %v7756_v49 = vor.u32 %v7754_v15, %v7752_v8  ;;  %v15868_v4 = vor.u32 %v8974_v45, %v8973_v60 }
 0x48b   : > { %v7249_v17 = vmul.f32 %v15857_v50, %v7003_v0  ;;  %v7760_v21 = vrot.slane %v17178_v32, 1  ;;  %10565 = vmatpush1.bf16.msra.mxu1 %v13253_v53  ;;  %v8876_v58 = vrot.slane %v8874_v57, 3  ;;  %v7874_v43 = vsel %vm3491_vm10, %v7871_v52, %v7873_v6 }
 0x48c   : > { %v6904_v41 = vpop.f32.mrb[44].mxu0  ;;  %v8927_v51 = vsel %vm4114_vm9, %v8868_v39, %v8926_v24  ;;  %10566 = vmatprep.subr.bf16.mxu1 %v17313_v44  ;;  %v7762_v26 = vshrl.u32 %v15841_v36, 16 }
 0x48d   : > { %v12011_v5 = vpack.c.bf16 %v7249_v17, %v7248_v16  ;;  %v12358_v15 = vadd.f32 %v15572_v7, %v6904_v41  ;;  %v12198_v8 = vpop.f32.mrb[45].mxu0  ;;  %10422 = vmatprep.mubr.bf16.mxu1 %v8927_v51  ;;  %v7761_v53 = vsel %vm3320_vm8, %v7756_v49, %v7760_v21  ;;  %v8877_v0 = vor.u32 %v8876_v58, %v8873_v59  ;;  %v13258_v49 = vld [vmem:[%s17133_s4 + $0xe8] sm:$0xff]  }
 0x48e   : > { %v6907_v18 = vpop.f32.mrb[46].mxu0  ;;  %10423 = vmatmul.mubr.bf16.gmra.mrb[24].mxu1 %v8918_v35  ;;  %v8978_v39 = vshrl.u32 %v7761_v53, 16  ;;  %v8981_v60 = vshll.u32 %v7761_v53, 16  ;;  %v7545_v45 = vld [vmem:[#allocation4 + $0x58] sm:$0xf]  ;;  %v8929_v41 = vshrl.u32 %v7874_v43, 16  ;;  %v8976_v58 = vsel %vm4114_vm9, %v15838_v19, %v15868_v4  ;;  %v15891_v53 = vpop.permute.xlu1 %7140 }
 0x48f   : > { %12068 = vst [vmem:[#allocation4 + $0x60] sm:$0xff] %v12011_v5   ;;  %v7004_v57 = vmax.f32 %v12358_v15, 0.0  ;;  %v12359_v52 = vadd.f32 %v15572_v7, %v6907_v18  ;;  %v12199_v16 = vpop.f32.mrb[47].mxu0  ;;  %v15876_v17 = vcombine.low %v7544_v48, %v7545_v45  ;;  %10567 = vmatpush1.bf16.msra.mxu1 %v13256_v25  ;;  %v15883_v35 = vsel %vm4114_vm9, %v8819_v40, %v8877_v0  ;;  %v15889_v15 = vpop.permute.xlu0 %7135  ;;  %v13260_v19 = vld [vmem:[%s17133_s4 + $0xf0] sm:$0xff]  }
 0x490   : > { %v8980_v51 = vrot.slane %v8978_v39, 2  ;;  %v8983_v8 = vrot.slane %v8981_v60, 3  ;;  %10568 = vmatprep.subr.bf16.mxu1 %v17313_v44  ;;  %v9031_v25 = vrot.slane %v7762_v26, 2  ;;  %17337 = vst [vmem:[#allocation28_spill] sm:$0xff] %v15889_v15  ;;  %17338 = vst [vmem:[#allocation29_spill] sm:$0xff] %v15891_v53  ;;  %v8931_v18 = vrot.slane %v8929_v41, 2 }
 0x491   : > { %v7005_v59 = vmax.f32 %v12359_v52, 0.0  ;;  %v7766_v5 = vshll.u32 %v15876_v17, 16  ;;  %v8932_v39 = vshll.u32 %v7874_v43, 16  ;;  %v7875_v60 = vrot.slane %v15876_v17, 1 }
 0x492   : > { %v8984_v48 = vor.u32 %v8983_v8, %v8980_v51  ;;  %v7250_v40 = vmul.f32 %v15889_v15, %v7004_v57  ;;  %v7764_v52 = vor.u32 %v7762_v26, %v7760_v21  ;;  %v17339_v51 = vshll.u32 %v15841_v36, 16 }
 0x493   : > { %v7251_v45 = vmul.f32 %v15891_v53, %v7005_v59  ;;  %v7768_v16 = vrot.slane %v7766_v5, 1  ;;  %10569 = vmatpush1.bf16.msra.mxu1 %v13258_v49  ;;  %v8934_v43 = vrot.slane %v8932_v39, 3  ;;  %v7876_v57 = vsel %vm3491_vm10, %v7873_v6, %v7875_v60  ;;  %v7546_v59 = vld [vmem:[#allocation4 + $0x5c] sm:$0xf] }
 0x494   : > { %v6912_v32 = vpop.f32.mrb[48].mxu0  ;;  %v8985_v50 = vsel %vm4114_vm9, %v8926_v24, %v8984_v48  ;;  %v9032_v41 = vrot.slane %v17339_v51, 3  ;;  %10570 = vmatprep.subr.bf16.mxu1 %v17313_v44  ;;  %v7770_v53 = vshrl.u32 %v15876_v17, 16 }
 0x495   : > { %v12016_v8 = vpack.c.bf16 %v7251_v45, %v7250_v40  ;;  %v12360_v21 = vadd.f32 %v15572_v7, %v6912_v32  ;;  %v12202_v26 = vpop.f32.mrb[49].mxu0  ;;  %10430 = vmatprep.mubr.bf16.mxu1 %v8985_v50  ;;  %v7769_v49 = vsel %vm3320_vm8, %v7764_v52, %v7768_v16  ;;  %v8935_v37 = vor.u32 %v8934_v43, %v8931_v18  ;;  %v13261_v32 = vld [vmem:[%s17133_s4 + $0xf8] sm:$0xff]  }
 0x496   : > { %v6915_v15 = vpop.f32.mrb[50].mxu0  ;;  %10431 = vmatmul.mubr.bf16.gmra.mrb[28].mxu1 %v8976_v58  ;;  %v9036_v24 = vshrl.u32 %v7769_v49, 16  ;;  %v9039_v36 = vshll.u32 %v7769_v49, 16  ;;  %v7547_v51 = vld [vmem:[#allocation4 + $0x60] sm:$0xf]  ;;  %v8987_v50 = vshrl.u32 %v7876_v57, 16  ;;  %v15913_v58 = vor.u32 %v9032_v41, %v9031_v25 }
 0x497   : > { %12069 = vst [vmem:[#allocation4 + $0x68] sm:$0xff] %v12016_v8   ;;  %v7006_v39 = vmax.f32 %v12360_v21, 0.0  ;;  %v12361_v6 = vadd.f32 %v15572_v7, %v6915_v15  ;;  %v12203_v40 = vpop.f32.mrb[51].mxu0  ;;  %v15908_v45 = vcombine.low %v7546_v59, %v7547_v51  ;;  %10571 = vmatpush1.bf16.msra.mxu1 %v13260_v19  ;;  %v15917_v18 = vsel %vm4114_vm9, %v8877_v0, %v8935_v37  ;;  %v15920_v19 = vpop.permute.xlu0 %7145 }
 0x498   : > { %v9038_v17 = vrot.slane %v9036_v24, 2  ;;  %v9041_v52 = vrot.slane %v9039_v36, 3  ;;  %10572 = vmatprep.subr.bf16.mxu1 %v17313_v44  ;;  %v9089_v15 = vrot.slane %v7770_v53, 2  ;;  %v9090_v8 = vrot.slane %v7766_v5, 3  ;;  %17340 = vst [vmem:[#allocation30_spill] sm:$0xff] %v15920_v19  ;;  %v15922_v21 = vpop.permute.xlu1 %7150 }
 0x499   : > { %v7007_v43 = vmax.f32 %v12361_v6, 0.0  ;;  %v7774_v7 = vshll.u32 %v15908_v45, 16  ;;  %17341 = vst [vmem:[#allocation31_spill] sm:$0xff] %v15922_v21  ;;  %v8989_v49 = vrot.slane %v8987_v50, 2  ;;  %v8990_v59 = vshll.u32 %v7876_v57, 16 }
 0x49a   : > { %v9042_v26 = vor.u32 %v9041_v52, %v9038_v17  ;;  %v7877_v25 = vrot.slane %v15908_v45, 1  ;;  %v7252_v41 = vmul.f32 %v15920_v19, %v7006_v39  ;;  %v7772_v0 = vor.u32 %v7770_v53, %v7768_v16  ;;  %v15934_v39 = vld [vmem:[%s17132_s3] ss:$0 sm:$0xff] }
 0x49b   : > { %v7253_v24 = vmul.f32 %v15922_v21, %v7007_v43  ;;  %v7776_v36 = vrot.slane %v7774_v7, 1  ;;  %10573 = vmatpush1.bf16.msra.mxu1 %v13261_v32  ;;  %v7778_v5 = vshrl.u32 %v15908_v45, 16  ;;  %v8992_v40 = vrot.slane %v8990_v59, 3  ;;  %v7548_v32 = vld [vmem:[#allocation4 + $0x64] sm:$0xf] }
 0x49c   : > { %v6920_v51 = vpop.f32.mrb[52].mxu0  ;;  %v9043_v6 = vsel %vm4114_vm9, %v8984_v48, %v9042_v26  ;;  %10742 = vmatprep.subr.bf16.mxu1 %v17313_v44  ;;  %v7878_v50 = vsel %vm3491_vm10, %v7875_v60, %v7877_v25  ;;  %v9034_v48 = vsel %vm4114_vm9, %v15868_v4, %v15913_v58  ;;  %v9091_v43 = vor.u32 %v9090_v8, %v9089_v15 }
 0x49d   : > { %v12021_v57 = vpack.c.bf16 %v7253_v24, %v7252_v41  ;;  %v12362_v53 = vadd.f32 %v15934_v39, %v6920_v51  ;;  %v12206_v16 = vpop.f32.mrb[53].mxu0  ;;  %10438 = vmatprep.mubr.bf16.mxu1 %v9043_v6  ;;  %v7777_v45 = vsel %vm3320_vm8, %v7772_v0, %v7776_v36  ;;  %v8993_v41 = vor.u32 %v8992_v40, %v8989_v49  ;;  %v15949_v49 = vpop.permute.xlu0 %7155 }
 0x49e   : > { %v6923_v17 = vpop.f32.mrb[54].mxu0  ;;  %10439 = vmatmul.mubr.bf16.gmra.mrb[32].mxu1 %v9034_v48  ;;  %v9094_v60 = vshrl.u32 %v7777_v45, 16  ;;  %v9097_v52 = vshll.u32 %v7777_v45, 16  ;;  %v7549_v59 = vld [vmem:[#allocation4 + $0x68] sm:$0xf]  ;;  %v9045_v21 = vshrl.u32 %v7878_v50, 16  ;;  %v15951_v40 = vpop.permute.xlu1 %7160 }
 0x49f   : > { %12070 = vst [vmem:[#allocation4 + $0x70] sm:$0xff] %v12021_v57   ;;  %v7008_v24 = vmax.f32 %v12362_v53, 0.0  ;;  %v12363_v51 = vadd.f32 %v15934_v39, %v6923_v17  ;;  %v12207_v16 = vpop.f32.mrb[55].mxu0  ;;  %v15942_v6 = vcombine.low %v7548_v32, %v7549_v59  ;;  %v9147_v12 = vrot.slane %v7778_v5, 2  ;;  %17342 = vst [vmem:[#allocation32_spill] sm:$0xff] %v15949_v49 }
 0x4a0   : > { %v9096_v19 = vrot.slane %v9094_v60, 2  ;;  %v9099_v4 = vrot.slane %v9097_v52, 3  ;;  %v15945_v0 = vsel %vm4114_vm9, %v8935_v37, %v8993_v41  ;;  %v9148_v15 = vrot.slane %v7774_v7, 3  ;;  %17343 = vst [vmem:[#allocation33_spill] sm:$0xff] %v15951_v40 }
 0x4a1   : > { %v7009_v48 = vmax.f32 %v12363_v51, 0.0  ;;  %v7782_v45 = vshll.u32 %v15942_v6, 16  ;;  %v7786_v8 = vshrl.u32 %v15942_v6, 16  ;;  %v9047_v53 = vrot.slane %v9045_v21, 2 }
 0x4a2   : > { %v9100_v57 = vor.u32 %v9099_v4, %v9096_v19  ;;  %v9048_v32 = vshll.u32 %v7878_v50, 16  ;;  %v7879_v17 = vrot.slane %v15942_v6, 1  ;;  %v7254_v60 = vmul.f32 %v15949_v49, %v7008_v24  ;;  %v7550_v4 = vld [vmem:[#allocation4 + $0x6c] sm:$0xf] }
 0x4a3   : > { %v7255_v37 = vmul.f32 %v15951_v40, %v7009_v48  ;;  %v7780_v52 = vor.u32 %v7778_v5, %v7776_v36  ;;  %v7784_v59 = vrot.slane %v7782_v45, 1  ;;  %v9092_v16 = vsel %vm4114_vm9, %v15913_v58, %v9091_v43 }
 0x4a4   : > { %v6928_v51 = vpop.f32.mrb[56].mxu0  ;;  %v9101_v7 = vsel %vm4114_vm9, %v9042_v26, %v9100_v57  ;;  %v9050_v3 = vrot.slane %v9048_v32, 3  ;;  %v7880_v13 = vsel %vm3491_vm10, %v7877_v25, %v7879_v17  ;;  %v9149_v6 = vor.u32 %v9148_v15, %v9147_v12 }
 0x4a5   : > { %v12026_v19 = vpack.c.bf16 %v7255_v37, %v7254_v60  ;;  %v12364_v21 = vadd.f32 %v15934_v39, %v6928_v51  ;;  %v12210_v50 = vpop.f32.mrb[57].mxu0  ;;  %10446 = vmatprep.mubr.bf16.mxu1 %v9101_v7  ;;  %v7785_v24 = vsel %vm3320_vm8, %v7780_v52, %v7784_v59  ;;  %v9205_v40 = vrot.slane %v7786_v8, 2 }
 0x4a6   : > { %v6931_v36 = vpop.f32.mrb[58].mxu0  ;;  %10447 = vmatmul.mubr.bf16.gmra.mrb[36].mxu1 %v9092_v16  ;;  %v9152_v5 = vshrl.u32 %v7785_v24, 16  ;;  %v9155_v48 = vshll.u32 %v7785_v24, 16  ;;  %v7551_v26 = vld [vmem:[#allocation4 + $0x70] sm:$0xf]  ;;  %v9051_v49 = vor.u32 %v9050_v3, %v9047_v53  ;;  %v9103_v37 = vshrl.u32 %v7880_v13, 16  ;;  %v15970_v3 = vpop.permute.xlu0 %7165 }
 0x4a7   : > { %12071 = vst [vmem:[#allocation4 + $0x78] sm:$0xff] %v12026_v19   ;;  %v7010_v58 = vmax.f32 %v12364_v21, 0.0  ;;  %v12365_v25 = vadd.f32 %v15934_v39, %v6931_v36  ;;  %v12211_v32 = vpop.f32.mrb[59].mxu0  ;;  %v15963_v60 = vcombine.low %v7550_v4, %v7551_v26  ;;  %v9206_v52 = vrot.slane %v7782_v45, 3  ;;  %17344 = vst [vmem:[#allocation34_spill] sm:$0xff] %v15970_v3  ;;  %v15972_v53 = vpop.permute.xlu1 %7170 }
 0x4a8   : > { %v9154_v51 = vrot.slane %v9152_v5, 2  ;;  %v9157_v7 = vrot.slane %v9155_v48, 3  ;;  %v15966_v12 = vsel %vm4114_vm9, %v8993_v41, %v9051_v49  ;;  %v9150_v16 = vsel %vm4114_vm9, %v9091_v43, %v9149_v6  ;;  %17345 = vst [vmem:[#allocation35_spill] sm:$0xff] %v15972_v53 }
 0x4a9   : > { %v7011_v15 = vmax.f32 %v12365_v25, 0.0  ;;  %v7790_v50 = vshll.u32 %v15963_v60, 16  ;;  %v9105_v21 = vrot.slane %v9103_v37, 2  ;;  %v9106_v24 = vshll.u32 %v7880_v13, 16 }
 0x4aa   : > { %v9158_v19 = vor.u32 %v9157_v7, %v9154_v51  ;;  %v7881_v4 = vrot.slane %v15963_v60, 1  ;;  %v7256_v36 = vmul.f32 %v15970_v3, %v7010_v58  ;;  %v7788_v41 = vor.u32 %v7786_v8, %v7784_v59  ;;  %v7552_v58 = vld [vmem:[#allocation4 + $0x74] sm:$0xf] }
 0x4ab   : > { %v7257_v45 = vmul.f32 %v15972_v53, %v7011_v15  ;;  %v7792_v5 = vrot.slane %v7790_v50, 1  ;;  %v15978_v26 = vor.u32 %v9206_v52, %v9205_v40  ;;  %v9108_v25 = vrot.slane %v9106_v24, 3 }
 0x4ac   : > { %v6936_v48 = vpop.f32.mrb[60].mxu0  ;;  %v9159_v43 = vsel %vm4114_vm9, %v9100_v57, %v9158_v19  ;;  %v7882_v32 = vsel %vm3491_vm10, %v7879_v17, %v7881_v4  ;;  %v7794_v7 = vshrl.u32 %v15963_v60, 16 }
 0x4ad   : > { %v12031_v47 = vpack.c.bf16 %v7257_v45, %v7256_v36  ;;  %v12366_v37 = vadd.f32 %v15934_v39, %v6936_v48  ;;  %v12214_v13 = vpop.f32.mrb[61].mxu0  ;;  %10454 = vmatprep.mubr.bf16.mxu1 %v9159_v43  ;;  %v7793_v51 = vsel %vm3320_vm8, %v7788_v41, %v7792_v5  ;;  %v9109_v40 = vor.u32 %v9108_v25, %v9105_v21  ;;  %v15995_v25 = vpop.permute.xlu1 %7180 }
 0x4ae   : > { %v6939_v8 = vpop.f32.mrb[62].mxu0  ;;  %10455 = vmatmul.mubr.bf16.gmra.mrb[40].mxu1 %v9150_v16  ;;  %v9210_v59 = vshrl.u32 %v7793_v51, 16  ;;  %v9213_v15 = vshll.u32 %v7793_v51, 16  ;;  %v7553_v57 = vld [vmem:[#allocation4 + $0x78] sm:$0xf]  ;;  %v9161_v45 = vshrl.u32 %v7882_v32, 16  ;;  %v9208_v16 = vsel %vm4114_vm9, %v9149_v6, %v15978_v26 }
 0x4af   : > { %12072 = vst [vmem:[#allocation4 + $0x80] sm:$0xff] %v12031_v47   ;;  %v7012_v52 = vmax.f32 %v12366_v37, 0.0  ;;  %v12367_v17 = vadd.f32 %v15934_v39, %v6939_v8  ;;  %v12215_v24 = vpop.f32.mrb[63].mxu0  ;;  %v15985_v36 = vcombine.low %v7552_v58, %v7553_v57  ;;  %v15988_v41 = vsel %vm4114_vm9, %v9051_v49, %v9109_v40  ;;  %v15993_v47 = vpop.permute.xlu0 %7175  ;;  %17347 = vst [vmem:[#allocation37_spill] sm:$0xff] %v15995_v25 }
 0x4b0   : > { %v9212_v48 = vrot.slane %v9210_v59, 2  ;;  %v9215_v43 = vrot.slane %v9213_v15, 3  ;;  %v9263_v21 = vrot.slane %v7794_v7, 2  ;;  %17346 = vst [vmem:[#allocation36_spill] sm:$0xff] %v15993_v47  ;;  %v9163_v51 = vrot.slane %v9161_v45, 2 }
 0x4b1   : > { %v7013_v60 = vmax.f32 %v12367_v17, 0.0  ;;  %v7798_v13 = vshll.u32 %v15985_v36, 16  ;;  %v9164_v58 = vshll.u32 %v7882_v32, 16  ;;  %v7883_v8 = vrot.slane %v15985_v36, 1 }
 0x4b2   : > { %v9216_v37 = vor.u32 %v9215_v43, %v9212_v48  ;;  %v7258_v59 = vmul.f32 %v15993_v47, %v7012_v52  ;;  %v7796_v15 = vor.u32 %v7794_v7, %v7792_v5  ;;  %v9264_v24 = vrot.slane %v7790_v50, 3  ;;  %v7554_v43 = vld [vmem:[#allocation4 + $0x7c] sm:$0xf] }
 0x4b3   : > { %v7259_v49 = vmul.f32 %v15995_v25, %v7013_v60  ;;  %v7800_v57 = vrot.slane %v7798_v13, 1  ;;  %v9166_v53 = vrot.slane %v9164_v58, 3  ;;  %v7884_v3 = vsel %vm3491_vm10, %v7881_v4, %v7883_v8 }
 0x4b4   : > { %v6944_v17 = vpop.f32.mrb[64].mxu0  ;;  %v9217_v6 = vsel %vm4114_vm9, %v9158_v19, %v9216_v37  ;;  %v7802_v52 = vshrl.u32 %v15985_v36, 16  ;;  %v9322_v47 = vrot.slane %v7798_v13, 3 }
 0x4b5   : > { %v12036_v30 = vpack.c.bf16 %v7259_v49, %v7258_v59  ;;  %v12368_v48 = vadd.f32 %v15934_v39, %v6944_v17  ;;  %v12218_v45 = vpop.f32.mrb[65].mxu0  ;;  %10462 = vmatprep.mubr.bf16.mxu1 %v9217_v6  ;;  %v7801_v32 = vsel %vm3320_vm8, %v7796_v15, %v7800_v57  ;;  %v9167_v19 = vor.u32 %v9166_v53, %v9163_v51  ;;  %v16012_v53 = vpop.permute.xlu0 %7185 }
 0x4b6   : > { %v6947_v60 = vpop.f32.mrb[66].mxu0  ;;  %10463 = vmatmul.mubr.bf16.gmra.mrb[44].mxu1 %v9208_v16  ;;  %v9268_v5 = vshrl.u32 %v7801_v32, 16  ;;  %v9271_v7 = vshll.u32 %v7801_v32, 16  ;;  %v7555_v25 = vld [vmem:[#allocation4 + $0x80] sm:$0xf]  ;;  %v9219_v49 = vshrl.u32 %v7884_v3, 16  ;;  %v9265_v15 = vor.u32 %v9264_v24, %v9263_v21 }
 0x4b7   : > { %12073 = vst [vmem:[#allocation4 + $0x88] sm:$0xff] %v12036_v30   ;;  %v7014_v50 = vmax.f32 %v12368_v48, 0.0  ;;  %v12369_v4 = vadd.f32 %v15934_v39, %v6947_v60  ;;  %v12219_v58 = vpop.f32.mrb[67].mxu0  ;;  %v16006_v59 = vcombine.low %v7554_v43, %v7555_v25  ;;  %v16009_v45 = vsel %vm4114_vm9, %v9109_v40, %v9167_v19  ;;  %17348 = vst [vmem:[#allocation38_spill] sm:$0xff] %v16012_v53  ;;  %v16014_v30 = vpop.permute.xlu1 %7190 }
 0x4b8   : > { %v9270_v17 = vrot.slane %v9268_v5, 2  ;;  %v9273_v6 = vrot.slane %v9271_v7, 3  ;;  %v9321_v32 = vrot.slane %v7802_v52, 2  ;;  %17349 = vst [vmem:[#allocation39_spill] sm:$0xff] %v16014_v30  ;;  %v9221_v48 = vrot.slane %v9219_v49, 2 }
 0x4b9   : > { %v7015_v36 = vmax.f32 %v12369_v4, 0.0  ;;  %v7806_v16 = vshll.u32 %v16006_v59, 16  ;;  %v9222_v25 = vshll.u32 %v7884_v3, 16  ;;  %v7885_v43 = vrot.slane %v16006_v59, 1 }
 0x4ba   : > { %v9274_v51 = vor.u32 %v9273_v6, %v9270_v17  ;;  %v7260_v60 = vmul.f32 %v16012_v53, %v7014_v50  ;;  %v7804_v40 = vor.u32 %v7802_v52, %v7800_v57  ;;  %v7810_v13 = vshrl.u32 %v16006_v59, 16  ;;  %v7556_v57 = vld [vmem:[#allocation4 + $0x84] sm:$0xf] }
 0x4bb   : > { %v7261_v21 = vmul.f32 %v16014_v30, %v7015_v36  ;;  %v7808_v24 = vrot.slane %v7806_v16, 1  ;;  %v9224_v4 = vrot.slane %v9222_v25, 3  ;;  %v7886_v58 = vsel %vm3491_vm10, %v7883_v8, %v7885_v43 }
 0x4bc   : > { %v6952_v5 = vpop.f32.mrb[68].mxu0  ;;  %v9275_v7 = vsel %vm4114_vm9, %v9216_v37, %v9274_v51  ;;  %v9266_v50 = vsel %vm4114_vm9, %v15978_v26, %v9265_v15  ;;  %v9323_v36 = vor.u32 %v9322_v47, %v9321_v32  ;;  %v9277_v26 = vshrl.u32 %v7886_v58, 16 }
 0x4bd   : > { %v12041_v2 = vpack.c.bf16 %v7261_v21, %v7260_v60  ;;  %v12370_v49 = vadd.f32 %v15934_v39, %v6952_v5  ;;  %v12222_v3 = vpop.f32.mrb[69].mxu0  ;;  %10470 = vmatprep.mubr.bf16.mxu1 %v9275_v7  ;;  %v7809_v17 = vsel %vm3320_vm8, %v7804_v40, %v7808_v24  ;;  %v9225_v25 = vor.u32 %v9224_v4, %v9221_v48  ;;  %v16037_v48 = vpop.permute.xlu0 %7195 }
 0x4be   : > { %v6955_v52 = vpop.f32.mrb[70].mxu0  ;;  %10471 = vmatmul.mubr.bf16.gmra.mrb[48].mxu1 %v9266_v50  ;;  %v9326_v6 = vshrl.u32 %v7809_v17, 16  ;;  %v9329_v37 = vshll.u32 %v7809_v17, 16  ;;  %v16026_v59 = vld [vmem:[#allocation4 + $0x88] sm:$0xf]  ;;  %v9379_v3 = vrot.slane %v7810_v13, 2  ;;  %v16039_v4 = vpop.permute.xlu1 %7200  ;;  %v9324_v53 = vsel %vm4114_vm9, %v9265_v15, %v9323_v36 }
 0x4bf   : > { %12074 = vst [vmem:[#allocation4 + $0x90] sm:$0xff] %v12041_v2   ;;  %v7016_v8 = vmax.f32 %v12370_v49, 0.0  ;;  %v12371_v60 = vadd.f32 %v15934_v39, %v6955_v52  ;;  %v12223_v21 = vpop.f32.mrb[71].mxu0  ;;  %v16030_v5 = vcombine.low %v7556_v57, %v16026_v59  ;;  %v16033_v50 = vsel %vm4114_vm9, %v9167_v19, %v9225_v25  ;;  %17350 = vst [vmem:[#allocation40_spill] sm:$0xff] %v16037_v48 }
 0x4c0   : > { %v9328_v7 = vrot.slane %v9326_v6, 2  ;;  %v9331_v40 = vrot.slane %v9329_v37, 3  ;;  %v9380_v32 = vrot.slane %v7806_v16, 3  ;;  %17351 = vst [vmem:[#allocation41_spill] sm:$0xff] %v16039_v4  ;;  %v9279_v57 = vrot.slane %v9277_v26, 2 }
 0x4c1   : > { %v7017_v17 = vmax.f32 %v12371_v60, 0.0  ;;  %v7814_v47 = vshll.u32 %v16030_v5, 16  ;;  %v7818_v2 = vshrl.u32 %v16030_v5, 16  ;;  %v9280_v52 = vshll.u32 %v7886_v58, 16 }
 0x4c2   : > { %v9332_v49 = vor.u32 %v9331_v40, %v9328_v7  ;;  %v7887_v6 = vrot.slane %v16030_v5, 1  ;;  %v7262_v37 = vmul.f32 %v16037_v48, %v7016_v8  ;;  %v7812_v21 = vor.u32 %v7810_v13, %v7808_v24  ;;  %v16049_v7 = vld [vmem:[#allocation4 + $0x8c] sm:$0xf] }
 0x4c3   : > { %v7263_v19 = vmul.f32 %v16039_v4, %v7017_v17  ;;  %v7816_v60 = vrot.slane %v7814_v47, 1  ;;  %v9282_v55 = vrot.slane %v9280_v52, 3  ;;  %v9381_v8 = vor.u32 %v9380_v32, %v9379_v3 }
 0x4c4   : > { %v6960_v30 = vpop.f32.mrb[72].mxu0  ;;  %v9333_v16 = vsel %vm4114_vm9, %v9274_v51, %v9332_v49  ;;  %v7888_v27 = vsel %vm3491_vm10, %v7885_v43, %v7887_v6  ;;  %v9437_v15 = vrot.slane %v7818_v2, 2 }
 0x4c5   : > { %v12046_v56 = vpack.c.bf16 %v7263_v19, %v7262_v37  ;;  %v12372_v26 = vadd.f32 %v15934_v39, %v6960_v30  ;;  %v12226_v58 = vpop.f32.mrb[73].mxu0  ;;  %10478 = vmatprep.mubr.bf16.mxu1 %v9333_v16  ;;  %v7817_v5 = vsel %vm3320_vm8, %v7812_v21, %v7816_v60  ;;  %v9283_v17 = vor.u32 %v9282_v55, %v9279_v57  ;;  %v16063_v55 = vpop.permute.xlu0 %7205 }
 0x4c6   : > { %v6963_v24 = vpop.f32.mrb[74].mxu0  ;;  %10479 = vmatmul.mubr.bf16.gmra.mrb[52].mxu1 %v9324_v53  ;;  %v9384_v13 = vshrl.u32 %v7817_v5, 16  ;;  %v9387_v40 = vshll.u32 %v7817_v5, 16  ;;  %v16051_v51 = vld [vmem:[#allocation4 + $0x90] sm:$0xf]  ;;  %v9335_v3 = vshrl.u32 %v7888_v27, 16  ;;  %v9382_v58 = vsel %vm4114_vm9, %v9323_v36, %v9381_v8  ;;  %v16065_v57 = vpop.permute.xlu1 %7210 }
 0x4c7   : > { %12075 = vst [vmem:[#allocation4 + $0x98] sm:$0xff] %v12046_v56   ;;  %v7018_v43 = vmax.f32 %v12372_v26, 0.0  ;;  %v12373_v52 = vadd.f32 %v15934_v39, %v6963_v24  ;;  %v12227_v30 = vpop.f32.mrb[75].mxu0  ;;  %v16056_v37 = vcombine.low %v16049_v7, %v16051_v51  ;;  %v9438_v21 = vrot.slane %v7814_v47, 3  ;;  %17352 = vst [vmem:[#allocation42_spill] sm:$0xff] %v16063_v55 }
 0x4c8   : > { %v9386_v32 = vrot.slane %v9384_v13, 2  ;;  %v9389_v19 = vrot.slane %v9387_v40, 3  ;;  %v16059_v53 = vsel %vm4114_vm9, %v9225_v25, %v9283_v17  ;;  %17353 = vst [vmem:[#allocation43_spill] sm:$0xff] %v16065_v57  ;;  %v9337_v5 = vrot.slane %v9335_v3, 2 }
 0x4c9   : > { %v7019_v16 = vmax.f32 %v12373_v52, 0.0  ;;  %v7822_v56 = vshll.u32 %v16056_v37, 16  ;;  %v9338_v24 = vshll.u32 %v7888_v27, 16  ;;  %v7889_v30 = vrot.slane %v16056_v37, 1 }
 0x4ca   : > { %v9390_v26 = vor.u32 %v9389_v19, %v9386_v32  ;;  %v7264_v13 = vmul.f32 %v16063_v55, %v7018_v43  ;;  %v7820_v25 = vor.u32 %v7818_v2, %v7816_v60  ;;  %v16071_v4 = vor.u32 %v9438_v21, %v9437_v15  ;;  %v16076_v43 = vld [vmem:[#allocation4 + $0x94] sm:$0xf] }
 0x4cb   : > { %v7265_v47 = vmul.f32 %v16065_v57, %v7019_v16  ;;  %v7824_v40 = vrot.slane %v7822_v56, 1  ;;  %v9340_v48 = vrot.slane %v9338_v24, 3  ;;  %v7890_v23 = vsel %vm3491_vm10, %v7887_v6, %v7889_v30 }
 0x4cc   : > { %v6968_v52 = vpop.f32.mrb[76].mxu0  ;;  %v9391_v36 = vsel %vm4114_vm9, %v9332_v49, %v9390_v26  ;;  %v7826_v2 = vshrl.u32 %v16056_v37, 16 }
 0x4cd   : > { %v12051_v38 = vpack.c.bf16 %v7265_v47, %v7264_v13  ;;  %v12374_v3 = vadd.f32 %v15934_v39, %v6968_v52  ;;  %v12230_v27 = vpop.f32.mrb[77].mxu0  ;;  %10486 = vmatprep.mubr.bf16.mxu1 %v9391_v36  ;;  %v7825_v32 = vsel %vm3320_vm8, %v7820_v25, %v7824_v40  ;;  %v9341_v21 = vor.u32 %v9340_v48, %v9337_v5  ;;  %v16091_v5 = vpop.permute.xlu1 %7220 }
 0x4ce   : > { %v6971_v60 = vpop.f32.mrb[78].mxu0  ;;  %10487 = vmatmul.mubr.bf16.gmra.mrb[56].mxu1 %v9382_v58  ;;  %v9442_v19 = vshrl.u32 %v7825_v32, 16  ;;  %v9445_v49 = vshll.u32 %v7825_v32, 16  ;;  %v16079_v15 = vld [vmem:[#allocation4 + $0x98] sm:$0xf]  ;;  %v9393_v47 = vshrl.u32 %v7890_v23, 16  ;;  %v9440_v36 = vsel %vm4114_vm9, %v9381_v8, %v16071_v4 }
 0x4cf   : > { %12076 = vst [vmem:[#allocation4 + $0xa0] sm:$0xff] %v12051_v38   ;;  %v7020_v6 = vmax.f32 %v12374_v3, 0.0  ;;  %v12375_v16 = vadd.f32 %v15934_v39, %v6971_v60  ;;  %v12231_v24 = vpop.f32.mrb[79].mxu0  ;;  %v11807_v13 = vcombine.low %v16076_v43, %v16079_v15  ;;  %v16085_v37 = vsel %vm4114_vm9, %v9283_v17, %v9341_v21  ;;  %v16089_v38 = vpop.permute.xlu0 %7215  ;;  %17355 = vst [vmem:[#allocation45_spill] sm:$0xff] %v16091_v5 }
 0x4d0   : > { %v9444_v25 = vrot.slane %v9442_v19, 2  ;;  %v9447_v52 = vrot.slane %v9445_v49, 3  ;;  %v9495_v48 = vrot.slane %v7826_v2, 2  ;;  %17354 = vst [vmem:[#allocation44_spill] sm:$0xff] %v16089_v38  ;;  %v9395_v32 = vrot.slane %v9393_v47, 2 }
 0x4d1   : > { %v7021_v58 = vmax.f32 %v12375_v16, 0.0  ;;  %v7830_v27 = vshll.u32 %v11807_v13, 16  ;;  %v9396_v60 = vshll.u32 %v7890_v23, 16  ;;  %v7891_v24 = vrot.slane %v11807_v13, 1  ;;  %v16099_v47 = vld [vmem:[#allocation4 + $0x9c] sm:$0xf] }
 0x4d2   : > { %v9448_v3 = vor.u32 %v9447_v52, %v9444_v25  ;;  %v7266_v19 = vmul.f32 %v16089_v38, %v7020_v6  ;;  %v7828_v17 = vor.u32 %v7826_v2, %v7824_v40  ;;  %v9496_v8 = vrot.slane %v7822_v56, 3 }
 0x4d3   : > { %v7267_v49 = vmul.f32 %v16091_v5, %v7021_v58  ;;  %v7832_v57 = vrot.slane %v7830_v27, 1  ;;  %v9398_v34 = vrot.slane %v9396_v60, 3  ;;  %v7892_v9 = vsel %vm3491_vm10, %v7889_v30, %v7891_v24 }
 0x4d4   : > { %v6976_v16 = vpop.f32.mrb[80].mxu0  ;;  %v9449_v55 = vsel %vm4114_vm9, %v9390_v26, %v9448_v3  ;;  %v7834_v6 = vshrl.u32 %v11807_v13, 16  ;;  %v9451_v60 = vshrl.u32 %v7892_v9, 16  ;;  %v9554_v5 = vrot.slane %v7830_v27, 3 }
 0x4d5   : > { %v12056_v28 = vpack.c.bf16 %v7267_v49, %v7266_v19  ;;  %v12376_v22 = vadd.f32 %v15934_v39, %v6976_v16  ;;  %v12234_v25 = vpop.f32.mrb[81].mxu0  ;;  %10494 = vmatprep.mubr.bf16.mxu1 %v9449_v55  ;;  %v7833_v23 = vsel %vm3320_vm8, %v7828_v17, %v7832_v57  ;;  %v9399_v56 = vor.u32 %v9398_v34, %v9395_v32  ;;  %v16105_v55 = vpop.permute.xlu0 %7225 }
 0x4d6   : > { %v6979_v52 = vpop.f32.mrb[82].mxu0  ;;  %10495 = vmatmul.mubr.bf16.gmra.mrb[60].mxu1 %v9440_v36  ;;  %v9500_v40 = vshrl.u32 %v7833_v23, 16  ;;  %v9503_v2 = vshll.u32 %v7833_v23, 16  ;;  %v16101_v58 = vld [vmem:[#allocation4 + $0xa0] sm:$0xf]  ;;  %17356 = vst [vmem:[#allocation46_spill] sm:$0xff] %v16105_v55  ;;  %v9497_v17 = vor.u32 %v9496_v8, %v9495_v48 }
 0x4d7   : > { %12077 = vst [vmem:[#allocation4 + $0xa8] sm:$0xff] %v12056_v28   ;;  %v7022_v26 = vmax.f32 %v12376_v22, 0.0  ;;  %v12235_v30 = vpop.f32.mrb[83].mxu0  ;;  %v11808_v39 = vcombine.low %v16099_v47, %v16101_v58  ;;  %v16108_v13 = vsel %vm4114_vm9, %v9341_v21, %v9399_v56  ;;  %v9553_v25 = vrot.slane %v7834_v6, 2 }
 0x4d8   : > { %v9502_v19 = vrot.slane %v9500_v40, 2  ;;  %v9505_v49 = vrot.slane %v9503_v2, 3  ;;  %v9453_v28 = vrot.slane %v9451_v60, 2  ;;  %v9454_v22 = vshll.u32 %v7892_v9, 16  ;;  %v16119_v9 = vld [vmem:[#allocation4 + $0xa4] sm:$0xf] }
 0x4d9   : > { %v7268_v36 = vmul.f32 %v16105_v55, %v7022_v26  ;;  %v7838_v16 = vshll.u32 %v11808_v39, 16  ;;  %v16111_v32 = vrot.slane %v11808_v39, 1  ;;  %v7836_v52 = vor.u32 %v7834_v6, %v7832_v57 }
 0x4da   : > { %v9506_v34 = vor.u32 %v9505_v49, %v9502_v19  ;;  %v9456_v2 = vrot.slane %v9454_v22, 3  ;;  %v9498_v48 = vsel %vm4114_vm9, %v16071_v4, %v9497_v17  ;;  %v7842_v26 = vshrl.u32 %v11808_v39, 16 }
 0x4db   : > { %v11957_v23 = vpack.c.bf16 %v7268_v36, %v7268_v36  ;;  %v7840_v30 = vrot.slane %v7838_v16, 1  ;;  %v7894_v21 = vsel %vm3491_vm10, %v7891_v24, %v16111_v32  ;;  %v9555_v49 = vor.u32 %v9554_v5, %v9553_v25 }
 0x4dc   : > { %v9507_v40 = vsel %vm4114_vm9, %v9448_v3, %v9506_v34  ;;  %v9509_v60 = vshrl.u32 %v7894_v21, 16  ;;  %v9457_v3 = vor.u32 %v9456_v2, %v9453_v28  ;;  %v9512_v19 = vshll.u32 %v7894_v21, 16 }
 0x4dd   : > { %7523 = vst [vmem:[#allocation4 + $0xb0] sm:$0x3] %v11957_v23  ;;  %10502 = vmatprep.mubr.bf16.mxu1 %v9507_v40  ;;  %v7841_v8 = vsel %vm3320_vm8, %v7836_v52, %v7840_v30  ;;  %v7936_v4 = vshrl.u32 %v15592_v63, 16  ;;  %v9611_v2 = vrot.slane %v7842_v26, 2  ;;  %v9556_v62 = vsel %vm4114_vm9, %v9497_v17, %v9555_v49 }
 0x4de   : > { %10503 = vmatmul.mubr.bf16.gmra.mrb[64].mxu1 %v9498_v48  ;;  %v9558_v57 = vshrl.u32 %v7841_v8, 16  ;;  %v9561_v27 = vshll.u32 %v7841_v8, 16  ;;  %v7565_v6 = vld [vmem:[#allocation4 + $0xa8] sm:$0x1]  ;;  %v9511_v36 = vrot.slane %v9509_v60, 2  ;;  %v16128_v39 = vsel %vm4114_vm9, %v9399_v56, %v9457_v3 }
 0x4df   : > { %v16122_v24 = vcombine.low %v16119_v9, %v7565_v6  ;;  %v7569_v22 = vld [vmem:[#allocation4 + $0xa8] sm:$0xf]  ;;  %v16124_v23 = vld [vmem:[#allocation4 + $0xac] sm:$0xf]  ;;  %v9514_v48 = vrot.slane %v9512_v19, 3  ;;  %v9612_v60 = vrot.slane %v7838_v16, 3 }
 0x4e0   : > { %v9560_v52 = vrot.slane %v9558_v57, 2  ;;  %v9563_v40 = vrot.slane %v9561_v27, 3  ;;  %v7567_v8 = vld [vmem:[#allocation4 + $0xa8] sm:$0x3]  ;;  %v11813_v5 = vcombine.low %v16119_v9, %v7569_v22  ;;  %v16133_v25 = vcombine.low %v7569_v22, %v16124_v23 }
 0x4e1   : > { %v7846_v28 = vshll.u32 %v16122_v24, 16  ;;  %v9515_v6 = vor.u32 %v9514_v48, %v9511_v36  ;;  %v11811_v55 = vcombine.low %v16119_v9, %v7567_v8  ;;  %v7844_v57 = vor.u32 %v7842_v26, %v7840_v30 }
 0x4e2   : > { %17357 = vst [vmem:[#allocation47_spill] sm:$0xff] %v16133_v25  ;;  %v9564_v21 = vor.u32 %v9563_v40, %v9560_v52  ;;  %v7850_v56 = vshrl.u32 %v16122_v24, 16  ;;  %v16137_v38 = vrot.slane %v11813_v5, 1  ;;  %v7939_v22 = vshll.u32 %v15592_v63, 16  ;;  %v13371_v40 = vld [vmem:[#allocation4 + $0x18] sm:$0xf] }
 0x4e3   : > { %v7848_v27 = vrot.slane %v7846_v28, 1  ;;  %v16142_v11 = vsel %vm4114_vm9, %v9457_v3, %v9515_v6  ;;  %v16149_v26 = vrot.slane %v11811_v55, 1  ;;  %v13372_v3 = vld [vmem:[#allocation4 + $0x1c] sm:$0xf]  ;;  %v9613_v8 = vor.u32 %v9612_v60, %v9611_v2 }
 0x4e4   : > { %v9565_v19 = vsel %vm4114_vm9, %v9506_v34, %v9564_v21  ;;  %v7911_v30 = vsel %vm3491_vm10, %v16111_v32, %v16137_v38  ;;  %v16151_v48 = vcombine.low %v13371_v40, %v13372_v3  ;;  %v7938_v55 = vrot.slane %v7936_v4, 5 }
 0x4e5   : > { %10510 = vmatprep.mubr.bf16.mxu1 %v9565_v19  ;;  %v7849_v16 = vsel %vm3320_vm8, %v7844_v57, %v7848_v27  ;;  %v7852_v36 = vor.u32 %v7850_v56, %v7848_v27  ;;  %v9567_v52 = vshrl.u32 %v7911_v30, 16  ;;  %v9570_v17 = vshll.u32 %v7911_v30, 16 }
 0x4e6   : > { %10511 = vmatmul.mubr.bf16.gmra.mrb[68].mxu1 %v9556_v62  ;;  %v9616_v24 = vshrl.u32 %v7849_v16, 16  ;;  %v9619_v34 = vshll.u32 %v7849_v16, 16  ;;  %v7896_v16 = vsel %vm3491_vm10, %v16111_v32, %v16149_v26  ;;  %v7941_v30 = vrot.slane %v7939_v22, 6 }
 0x4e7   : > { %v9683_v5 = vshrl.u32 %v7852_v36, 16  ;;  %v9686_v19 = vshll.u32 %v7852_v36, 16  ;;  %v9569_v42 = vrot.slane %v9567_v52, 2  ;;  %v9572_v20 = vrot.slane %v9570_v17, 3 }
 0x4e8   : > { %v9618_v57 = vrot.slane %v9616_v24, 2  ;;  %v9621_v27 = vrot.slane %v9619_v34, 3  ;;  %v9625_v3 = vshrl.u32 %v7896_v16, 16  ;;  %v9628_v2 = vshll.u32 %v7896_v16, 16 }
 0x4e9   : > { %v9685_v14 = vrot.slane %v9683_v5, 2  ;;  %v9688_v31 = vrot.slane %v9686_v19, 3  ;;  %v16153_v62 = vor.u32 %v9572_v20, %v9569_v42  ;;  %v7944_v60 = vshrl.u32 %v16151_v48, 16 }
 0x4ea   : > { %v9622_v63 = vor.u32 %v9621_v27, %v9618_v57  ;;  %v9614_v24 = vsel %vm4114_vm9, %v9555_v49, %v9613_v8  ;;  %v9678_v34 = vrot.slane %v7850_v56, 2  ;;  %v9679_v42 = vrot.slane %v7846_v28, 3  ;;  %v13373_v49 = vld [vmem:[#allocation4 + $0x20] sm:$0xf]  ;;  %v13374_v56 = vld [vmem:[#allocation4 + $0x24] sm:$0xf] }
 0x4eb   : > { %v9689_v40 = vor.u32 %v9688_v31, %v9685_v14  ;;  %v16163_v4 = vsel %vm4114_vm9, %v9515_v6, %v16153_v62  ;;  %v9627_v32 = vrot.slane %v9625_v3, 2  ;;  %v9630_v22 = vrot.slane %v9628_v2, 3 }
 0x4ec   : > { %v9623_v36 = vsel %vm4114_vm9, %v9564_v21, %v9622_v63  ;;  %v7942_v31 = vor.u32 %v7941_v30, %v7938_v55  ;;  %v7946_v52 = vrot.slane %v7944_v60, 5  ;;  %v7947_v21 = vshll.u32 %v16151_v48, 16 }
 0x4ed   : > { %10518 = vmatprep.mubr.bf16.mxu1 %v9623_v36  ;;  %v9690_v20 = vsel %vm4114_vm9, %v9622_v63, %v9689_v40  ;;  %v16166_v14 = vor.u32 %v9630_v22, %v9627_v32  ;;  %v16169_v17 = vcombine.low %v13373_v49, %v13374_v56  ;;  %v9680_v5 = vor.u32 %v9679_v42, %v9678_v34 }
 0x4ee   : > { %10519 = vmatmul.mubr.bf16.gmra.mrb[72].mxu1 %v9614_v24  ;;  %v7949_v63 = vrot.slane %v7947_v21, 6  ;;  %v8539_v28 = vshrl.u32 %v7942_v31, 16  ;;  %v8542_v57 = vshll.u32 %v7942_v31, 16 }
 0x4ef   : > { %10526 = vmatprep.mubr.bf16.mxu1 %v9690_v20  ;;  %v16173_v19 = vsel %vm4114_vm9, %v9515_v6, %v16166_v14  ;;  %v17235_v55 = vshrl.u32 %v16169_v17, 16  ;;  %v9681_v16 = vsel %vm4114_vm9, %v9613_v8, %v9680_v5  ;;  %v17234_v2 = vshll.u32 %v16169_v17, 16 }
 0x4f0   : > { %v7950_v27 = vor.u32 %v7949_v63, %v7946_v52  ;;  %v8541_v60 = vrot.slane %v8539_v28, 2  ;;  %v8544_v36 = vrot.slane %v8542_v57, 3  ;;  %v13263_v57 = vld [vmem:[%s17133_s4 + $0x100] sm:$0xff]  }
 0x4f1   : > { %v7955_v3 = vrot.slane %v17235_v55, 5  ;;  %v7958_v34 = vrot.slane %v17234_v2, 6 }
 0x4f2   : > { %v7951_v30 = vsel %vm3571_vm12, %v7942_v31, %v7950_v27  ;;  %v8545_v8 = vor.u32 %v8544_v36, %v8541_v60  ;;  %v13275_v60 = vld [vmem:[%s17133_s4 + $0x160] sm:$0xff]   ;;  %v13282_v36 = vld [vmem:[%s17133_s4 + $0x170] sm:$0xff]  }
 0x4f3   : > { %v8547_v6 = vshrl.u32 %v7951_v30, 16  ;;  %v8550_v24 = vshll.u32 %v7951_v30, 16  ;;  %v16183_v32 = vor.u32 %v7958_v34, %v7955_v3  ;;  %v13271_v30 = vld [vmem:[%s17133_s4 + $0x140] sm:$0xff]   ;;  %v13273_v3 = vld [vmem:[%s17133_s4 + $0x150] sm:$0xff]  }
 0x4f5   : > { %v8549_v20 = vrot.slane %v8547_v6, 2  ;;  %v8552_v42 = vrot.slane %v8550_v24, 3  ;;  %v7960_v31 = vsel %vm3571_vm12, %v7950_v27, %v16183_v32  ;;  %v13267_v27 = vld [vmem:[%s17133_s4 + $0x120] sm:$0xff]  }
 0x4f6   : > { %10527 = vmatmul.mubr.bf16.gmra.mrb[76].mxu1 %v9681_v16  ;;  %v8647_v21 = vshrl.u32 %v7960_v31, 16  ;;  %v8650_v49 = vshll.u32 %v7960_v31, 16  ;;  %v13269_v16 = vld [vmem:[%s17133_s4 + $0x130] sm:$0xff]  }
 0x4f7   : > { %10534 = vmatprep.mubr.bf16.mxu1 %v9689_v40  ;;  %v8553_v22 = vor.u32 %v8552_v42, %v8549_v20 }
 0x4f8   : > { %v8649_v56 = vrot.slane %v8647_v21, 2  ;;  %v8652_v40 = vrot.slane %v8650_v49, 3 }
 0x4f9   : > { %v16188_v52 = vsel %vm4114_vm9, %v8545_v8, %v8553_v22 }
 0x4fa   : > { %v16191_v63 = vor.u32 %v8652_v40, %v8649_v56  ;;  %v17237_v40 = vshrl.u32 %v16133_v25, 16 }
 0x4fc   : > { %v16195_v28 = vsel %vm4114_vm9, %v8553_v22, %v16191_v63 }
 0x4fe   : > { %10535 = vmatmul.mubr.bf16.gmra.mrb[80].mxu1 %v9680_v5  ;;  %v13264_v5 = vld [vmem:[%s17133_s4 + $0x108] sm:$0xff]  }
 0x4ff   : > { %10574 = vmatprep.mubr.bf16.mxu1 %v15689_v33  ;;  %v13265_v33 = vld [vmem:[%s17133_s4 + $0x110] sm:$0xff]  }
 0x506   : > { %10575 = vmatmul.mubr.bf16.vlgmr.msra.gmra.mrb[0].mxu1 %v15715_v54  ;;  %v13266_v54 = vld [vmem:[%s17133_s4 + $0x118] sm:$0xff]  }
 0x507   : > { %10582 = vmatprep.mubr.bf16.mxu1 %v15748_v61  ;;  %10743 = vmatpush1.bf16.msra.mxu1 %v13263_v57 }
 0x508   : > { %10744 = vmatprep.subr.bf16.mxu1 %v17313_v44 }
 0x50b   : > { %10745 = vmatpush1.bf16.msra.mxu1 %v13264_v5  ;;  %v17236_v5 = vshll.u32 %v16133_v25, 16 }
 0x50c   : > { %10746 = vmatprep.subr.bf16.mxu1 %v17313_v44 }
 0x50e   : > { %10583 = vmatmul.mubr.bf16.gmra.mrb[4].mxu1 %v15727_v1  ;;  %v13268_v1 = vld [vmem:[%s17133_s4 + $0x128] sm:$0xff]  }
 0x50f   : > { %10590 = vmatprep.mubr.bf16.mxu1 %v15796_v46  ;;  %10747 = vmatpush1.bf16.msra.mxu1 %v13265_v33 }
 0x510   : > { %10748 = vmatprep.subr.bf16.mxu1 %v17313_v44 }
 0x513   : > { %10749 = vmatpush1.bf16.msra.mxu1 %v13266_v54 }
 0x514   : > { %10750 = vmatprep.subr.bf16.mxu1 %v17313_v44 }
 0x516   : > { %10591 = vmatmul.mubr.bf16.gmra.mrb[8].mxu1 %v15748_v61  ;;  %v13270_v61 = vld [vmem:[%s17133_s4 + $0x138] sm:$0xff]  }
 0x517   : > { %10598 = vmatprep.mubr.bf16.mxu1 %v15819_v29  ;;  %10751 = vmatpush1.bf16.msra.mxu1 %v13267_v27 }
 0x518   : > { %10752 = vmatprep.subr.bf16.mxu1 %v17313_v44 }
 0x51b   : > { %10753 = vmatpush1.bf16.msra.mxu1 %v13268_v1 }
 0x51c   : > { %10754 = vmatprep.subr.bf16.mxu1 %v17313_v44 }
 0x51e   : > { %10599 = vmatmul.mubr.bf16.gmra.mrb[12].mxu1 %v15796_v46  ;;  %v13272_v46 = vld [vmem:[%s17133_s4 + $0x148] sm:$0xff]  }
 0x51f   : > { %10606 = vmatprep.mubr.bf16.mxu1 %v15849_v10  ;;  %10755 = vmatpush1.bf16.msra.mxu1 %v13269_v16 }
 0x520   : > { %10756 = vmatprep.subr.bf16.mxu1 %v17313_v44 }
 0x523   : > { %10757 = vmatpush1.bf16.msra.mxu1 %v13270_v61  ;;  %v13327_v61 = vld [vmem:[#allocation4 + $0xb0] sm:$0xff]  }
 0x524   : > { %10758 = vmatprep.subr.bf16.mxu1 %v17313_v44 }
 0x526   : > { %10607 = vmatmul.mubr.bf16.gmra.mrb[16].mxu1 %v15819_v29  ;;  %v13274_v29 = vld [vmem:[%s17133_s4 + $0x158] sm:$0xff]  }
 0x527   : > { %10614 = vmatprep.mubr.bf16.mxu1 %v15883_v35  ;;  %10759 = vmatpush1.bf16.msra.mxu1 %v13271_v30 }
 0x528   : > { %10760 = vmatprep.subr.bf16.mxu1 %v17313_v44 }
 0x52b   : > { %10761 = vmatpush1.bf16.msra.mxu1 %v13272_v46 }
 0x52c   : > { %10762 = vmatprep.subr.bf16.mxu1 %v17313_v44 }
 0x52e   : > { %10615 = vmatmul.mubr.bf16.gmra.mrb[20].mxu1 %v15849_v10  ;;  %v13280_v10 = vld [vmem:[%s17133_s4 + $0x168] sm:$0xff]  }
 0x52f   : > { %10622 = vmatprep.mubr.bf16.mxu1 %v15917_v18  ;;  %10763 = vmatpush1.bf16.msra.mxu1 %v13273_v3 }
 0x530   : > { %10764 = vmatprep.subr.bf16.mxu1 %v17313_v44 }
 0x533   : > { %10765 = vmatpush1.bf16.msra.mxu1 %v13274_v29 }
 0x534   : > { %10766 = vmatprep.subr.bf16.mxu1 %v17313_v44 }
 0x536   : > { %10623 = vmatmul.mubr.bf16.gmra.mrb[24].mxu1 %v15883_v35  ;;  %v13283_v35 = vld [vmem:[%s17133_s4 + $0x178] sm:$0xff]  }
 0x537   : > { %10630 = vmatprep.mubr.bf16.mxu1 %v15945_v0  ;;  %10767 = vmatpush1.bf16.msra.mxu1 %v13275_v60 }
 0x538   : > { %10768 = vmatprep.subr.bf16.mxu1 %v17313_v44 }
 0x53b   : > { %10769 = vmatpush1.bf16.msra.mxu1 %v13280_v10 }
 0x53c   : > { %10770 = vmatprep.subr.bf16.mxu1 %v17313_v44 }
 0x53e   : > { %10631 = vmatmul.mubr.bf16.gmra.mrb[28].mxu1 %v15917_v18  ;;  %v7571_v18 = vld [vmem:[#allocation4 + $0xb0] sm:$0x3] }
 0x53f   : > { %10638 = vmatprep.mubr.bf16.mxu1 %v15966_v12  ;;  %10771 = vmatpush1.bf16.msra.mxu1 %v13282_v36  ;;  %v8258_v36 = vrot.slane %v17237_v40, 6  ;;  %v13390_v40 = vld [vmem:[#allocation4 + $0x64] sm:$0xf] }
 0x540   : > { %10772 = vmatprep.subr.bf16.mxu1 %v17313_v44 }
 0x543   : > { %10773 = vmatpush1.bf16.msra.mxu1 %v13283_v35 }
 0x544   : > { %10942 = vmatprep.subr.bf16.mxu1 %v17313_v44 }
 0x546   : > { %10639 = vmatmul.mubr.bf16.gmra.mrb[32].mxu1 %v15945_v0  ;;  %v16291_v0 = vcombine.low %v16026_v59, %v16049_v7 }
 0x547   : > { %10646 = vmatprep.mubr.bf16.mxu1 %v15988_v41 }
 0x548   : > { %17358 = vst [vmem:[#allocation48_spill] sm:$0xff] %v16291_v0  ;;  %v17253_v59 = vshll.u32 %v16291_v0, 16 }
 0x54e   : > { %10647 = vmatmul.mubr.bf16.gmra.mrb[36].mxu1 %v15966_v12  ;;  %v16295_v12 = vcombine.low %v16051_v51, %v16076_v43 }
 0x54f   : > { %10654 = vmatprep.mubr.bf16.mxu1 %v16009_v45 }
 0x550   : > { %17359 = vst [vmem:[#allocation49_spill] sm:$0xff] %v16295_v12  ;;  %v17251_v7 = vshrl.u32 %v16295_v12, 16  ;;  %v17248_v51 = vshll.u32 %v16295_v12, 16 }
 0x552   : > { %v8246_v6 = vrot.slane %v17251_v7, 6  ;;  %v8247_v24 = vrot.slane %v17248_v51, 7 }
 0x554   : > { %v8248_v22 = vor.u32 %v8247_v24, %v8246_v6  ;;  %v8263_v24 = vshrl.u32 %v13327_v61, 16 }
 0x556   : > { %10655 = vmatmul.mubr.bf16.gmra.mrb[40].mxu1 %v15988_v41  ;;  %v11814_v41 = vcombine.low %v16124_v23, %v7571_v18  ;;  %v8243_v23 = vrot.slane %v17253_v59, 7 }
 0x557   : > { %10662 = vmatprep.mubr.bf16.mxu1 %v16033_v50 }
 0x558   : > { %v16312_v43 = vrot.slane %v11814_v41, 1 }
 0x55a   : > { %v7913_v34 = vsel %vm3491_vm10, %v16137_v38, %v16312_v43 }
 0x55b   : > { %v9634_v49 = vshrl.u32 %v7913_v34, 16  ;;  %v9637_v56 = vshll.u32 %v7913_v34, 16  ;;  %v8266_v34 = vshll.u32 %v13327_v61, 16 }
 0x55d   : > { %v9636_v29 = vrot.slane %v9634_v49, 2  ;;  %v9639_v35 = vrot.slane %v9637_v56, 3  ;;  %v8268_v49 = vrot.slane %v8266_v34, 7 }
 0x55e   : > { %10663 = vmatmul.mubr.bf16.gmra.mrb[44].mxu1 %v16009_v45  ;;  %v16300_v45 = vcombine.low %v16079_v15, %v16099_v47 }
 0x55f   : > { %10670 = vmatprep.mubr.bf16.mxu1 %v16059_v53 }
 0x560   : > { %17360 = vst [vmem:[#allocation50_spill] sm:$0xff] %v16300_v45  ;;  %v17247_v15 = vshrl.u32 %v16300_v45, 16 }
 0x562   : > { %v8250_v20 = vrot.slane %v17247_v15, 6 }
 0x566   : > { %10671 = vmatmul.mubr.bf16.gmra.mrb[48].mxu1 %v16033_v50  ;;  %v17255_v50 = vshrl.u32 %v16291_v0, 16 }
 0x567   : > { %10678 = vmatprep.mubr.bf16.mxu1 %v16085_v37 }
 0x56e   : > { %10679 = vmatmul.mubr.bf16.gmra.mrb[52].mxu1 %v16059_v53  ;;  %v16306_v53 = vcombine.low %v16101_v58, %v16119_v9  ;;  %v8242_v58 = vrot.slane %v17255_v50, 6 }
 0x56f   : > { %10686 = vmatprep.mubr.bf16.mxu1 %v16108_v13 }
 0x570   : > { %17361 = vst [vmem:[#allocation51_spill] sm:$0xff] %v16306_v53  ;;  %v17243_v47 = vshrl.u32 %v16306_v53, 16  ;;  %v17242_v9 = vshll.u32 %v16306_v53, 16  ;;  %v16334_v8 = vor.u32 %v8243_v23, %v8242_v58  ;;  %v8259_v58 = vrot.slane %v17236_v5, 7  ;;  %v13389_v5 = vld [vmem:[#allocation4 + $0x60] sm:$0xf] }
 0x572   : > { %v8254_v21 = vrot.slane %v17243_v47, 6  ;;  %v8255_v38 = vrot.slane %v17242_v9, 7  ;;  %v8249_v57 = vsel %vm3820_vm13, %v16334_v8, %v8248_v22  ;;  %v13393_v47 = vld [vmem:[#allocation4 + $0x70] sm:$0xf] }
 0x573   : > { %v9420_v33 = vshrl.u32 %v8249_v57, 16  ;;  %v9423_v54 = vshll.u32 %v8249_v57, 16 }
 0x574   : > { %v8256_v16 = vor.u32 %v8255_v38, %v8254_v21  ;;  %v8265_v21 = vrot.slane %v8263_v24, 6  ;;  %v9701_v38 = vshrl.u32 %v16312_v43, 16 }
 0x575   : > { %v9422_v30 = vrot.slane %v9420_v33, 2  ;;  %v9425_v46 = vrot.slane %v9423_v54, 3 }
 0x576   : > { %10687 = vmatmul.mubr.bf16.gmra.mrb[56].mxu1 %v16085_v37  ;;  %v17244_v37 = vshll.u32 %v16300_v45, 16 }
 0x577   : > { %10694 = vmatprep.mubr.bf16.mxu1 %v16128_v39  ;;  %v16352_v23 = vor.u32 %v9425_v46, %v9422_v30 }
 0x578   : > { %v8251_v42 = vrot.slane %v17244_v37, 7  ;;  %v13394_v37 = vld [vmem:[#allocation4 + $0x74] sm:$0xf] }
 0x57a   : > { %v8252_v31 = vor.u32 %v8251_v42, %v8250_v20 }
 0x57c   : > { %v8257_v10 = vsel %vm3820_vm13, %v8252_v31, %v8256_v16 }
 0x57d   : > { %v9536_v18 = vshrl.u32 %v8257_v10, 16  ;;  %v9539_v41 = vshll.u32 %v8257_v10, 16 }
 0x57e   : > { %10695 = vmatmul.mubr.bf16.gmra.mrb[60].mxu1 %v16108_v13  ;;  %v8253_v13 = vsel %vm3820_vm13, %v8248_v22, %v8252_v31  ;;  %v8260_v22 = vor.u32 %v8259_v58, %v8258_v36 }
 0x57f   : > { %10702 = vmatprep.mubr.bf16.mxu1 %v16142_v11  ;;  %v9478_v27 = vshrl.u32 %v8253_v13, 16  ;;  %v9481_v1 = vshll.u32 %v8253_v13, 16  ;;  %v9538_v20 = vrot.slane %v9536_v18, 2  ;;  %v9541_v42 = vrot.slane %v9539_v41, 3 }
 0x580   : > { %v8261_v57 = vsel %vm3820_vm13, %v8256_v16, %v8260_v22  ;;  %v9640_v13 = vor.u32 %v9639_v35, %v9636_v29  ;;  %v9703_v16 = vrot.slane %v9701_v38, 2  ;;  %v9692_v18 = vshrl.u32 %v16149_v26, 16 }
 0x581   : > { %v9480_v3 = vrot.slane %v9478_v27, 2  ;;  %v9483_v60 = vrot.slane %v9481_v1, 3  ;;  %v9542_v56 = vor.u32 %v9541_v42, %v9538_v20  ;;  %v9594_v33 = vshrl.u32 %v8261_v57, 16  ;;  %v17367_v20 = vld [vmem:[#allocation9_spill] sm:$0xff] }
 0x582   : > { %v9597_v54 = vshll.u32 %v8261_v57, 16  ;;  %v9695_v41 = vshll.u32 %v16149_v26, 16  ;;  %v9694_v24 = vrot.slane %v9692_v18, 2  ;;  %v8126_v42 = vrot.slane %v17367_v20, 6 }
 0x583   : > { %v9484_v6 = vor.u32 %v9483_v60, %v9480_v3  ;;  %v9596_v1 = vrot.slane %v9594_v33, 2 }
 0x584   : > { %v9599_v61 = vrot.slane %v9597_v54, 3  ;;  %v9697_v34 = vrot.slane %v9695_v41, 3  ;;  %v13376_v54 = vld [vmem:[#allocation4 + $0x2c] sm:$0xf] }
 0x585   : > { %v16357_v31 = vsel %vm4114_vm9, %v16352_v23, %v9484_v6  ;;  %v16365_v27 = vsel %vm4114_vm9, %v9484_v6, %v9542_v56 }
 0x586   : > { %10703 = vmatmul.mubr.bf16.gmra.mrb[64].mxu1 %v16128_v39  ;;  %v9704_v39 = vshll.u32 %v16312_v43, 16  ;;  %17363 = vst [vmem:[#allocation53_spill] sm:$0xff] %v16365_v27  ;;  %v9641_v43 = vsel %vm4114_vm9, %v16153_v62, %v9640_v13  ;;  %v9600_v60 = vor.u32 %v9599_v61, %v9596_v1 }
 0x587   : > { %10710 = vmatprep.mubr.bf16.mxu1 %v16163_v4  ;;  %v16362_v4 = vor.u32 %v8268_v49, %v8265_v21  ;;  %v9698_v21 = vor.u32 %v9697_v34, %v9694_v24  ;;  %v13377_v24 = vld [vmem:[#allocation4 + $0x30] sm:$0xf]  ;;  %v13378_v34 = vld [vmem:[#allocation4 + $0x34] sm:$0xf] }
 0x588   : > { %v9706_v29 = vrot.slane %v9704_v39, 3  ;;  %v16373_v35 = vsel %vm4114_vm9, %v9542_v56, %v9600_v60  ;;  %v8556_v39 = vshrl.u32 %v8126_v42, 16  ;;  %v8559_v56 = vshll.u32 %v8126_v42, 16 }
 0x589   : > { %17362 = vst [vmem:[#allocation52_spill] sm:$0xff] %v16362_v4  ;;  %v8270_v30 = vsel %vm3820_vm13, %v8260_v22, %v16362_v4  ;;  %17364 = vst [vmem:[#allocation54_spill] sm:$0xff] %v16373_v35  ;;  %v9699_v57 = vsel %vm4114_vm9, %v16166_v14, %v9698_v21  ;;  %v16405_v20 = vcombine.low %v13377_v24, %v13378_v34  ;;  %v13290_v34 = vld [vmem:[%s17133_s4 + $0x190] sm:$0xff]  }
 0x58a   : > { %v9661_v46 = vshrl.u32 %v8270_v30, 16  ;;  %v9664_v3 = vshll.u32 %v8270_v30, 16  ;;  %v9707_v6 = vor.u32 %v9706_v29, %v9703_v16  ;;  %v8558_v30 = vrot.slane %v8556_v39, 2 }
 0x58c   : > { %v9663_v10 = vrot.slane %v9661_v46, 2  ;;  %v9666_v36 = vrot.slane %v9664_v3, 3  ;;  %v9708_v22 = vsel %vm4114_vm9, %v9640_v13, %v9707_v6  ;;  %v8561_v46 = vrot.slane %v8559_v56, 3 }
 0x58e   : > { %10711 = vmatmul.mubr.bf16.gmra.mrb[68].mxu1 %v16142_v11  ;;  %v16377_v58 = vor.u32 %v9666_v36, %v9663_v10  ;;  %v16380_v11 = vrot.slane %v16151_v48, 6  ;;  %v8129_v48 = vrot.slane %v16169_v17, 6  ;;  %v8562_v10 = vor.u32 %v8561_v46, %v8558_v30 }
 0x58f   : > { %10718 = vmatprep.mubr.bf16.mxu1 %v9641_v43 }
 0x590   : > { %17365 = vst [vmem:[#allocation55_spill] sm:$0xff] %v16377_v58  ;;  %v16384_v62 = vsel %vm4114_vm9, %v9600_v60, %v16377_v58  ;;  %v8128_v26 = vsel %vm3763_vm11, %v8126_v42, %v16380_v11  ;;  %v8130_v33 = vsel %vm3763_vm11, %v16380_v11, %v8129_v48 }
 0x591   : > { %17366 = vst [vmem:[#allocation56_spill] sm:$0xff] %v16384_v62  ;;  %v8564_v49 = vshrl.u32 %v8128_v26, 16  ;;  %v8567_v38 = vshll.u32 %v8128_v26, 16  ;;  %v8581_v3 = vshrl.u32 %v8130_v33, 16  ;;  %v8584_v43 = vshll.u32 %v8130_v33, 16 }
 0x592   : > { %v17226_v33 = vshll.u32 %v16405_v20, 16 }
 0x593   : > { %v8566_v1 = vrot.slane %v8564_v49, 2  ;;  %v8569_v61 = vrot.slane %v8567_v38, 3  ;;  %v8583_v36 = vrot.slane %v8581_v3, 2  ;;  %v8586_v18 = vrot.slane %v8584_v43, 3 }
 0x594   : > { %v8133_v38 = vrot.slane %v16405_v20, 6 }
 0x595   : > { %v8570_v14 = vor.u32 %v8569_v61, %v8566_v1  ;;  %v16409_v26 = vor.u32 %v8586_v18, %v8583_v36  ;;  %v13379_v1 = vld [vmem:[#allocation4 + $0x38] sm:$0xf]  ;;  %v13380_v61 = vld [vmem:[#allocation4 + $0x3c] sm:$0xf] }
 0x596   : > { %10719 = vmatmul.mubr.bf16.gmra.mrb[72].mxu1 %v16173_v19  ;;  %v13375_v19 = vld [vmem:[#allocation4 + $0x28] sm:$0xf]  ;;  %v16422_v30 = vcombine.low %v13379_v1, %v13380_v61 }
 0x597   : > { %10726 = vmatprep.mubr.bf16.mxu1 %v9708_v22  ;;  %v16396_v13 = vcombine.low %v13375_v19, %v13376_v54  ;;  %v8571_v42 = vsel %vm4114_vm9, %v8562_v10, %v8570_v14  ;;  %v8655_v19 = vsel %vm4114_vm9, %v8570_v14, %v16409_v26  ;;  %v7976_v10 = vrot.slane %v17226_v33, 6 }
 0x598   : > { %v17223_v18 = vshrl.u32 %v16422_v30, 16 }
 0x599   : > { %v17229_v16 = vshrl.u32 %v16396_v13, 16  ;;  %v17228_v29 = vshll.u32 %v16396_v13, 16  ;;  %v8131_v60 = vrot.slane %v16396_v13, 6 }
 0x59a   : > { %v7982_v1 = vrot.slane %v17223_v18, 5 }
 0x59b   : > { %v7964_v41 = vrot.slane %v17229_v16, 5  ;;  %v8132_v22 = vsel %vm3763_vm11, %v8129_v48, %v8131_v60  ;;  %v8134_v54 = vsel %vm3763_vm11, %v8131_v60, %v8133_v38  ;;  %v13386_v16 = vld [vmem:[#allocation4 + $0x54] sm:$0xf] }
 0x59c   : > { %v8657_v39 = vshrl.u32 %v8132_v22, 16  ;;  %v8660_v56 = vshll.u32 %v8132_v22, 16  ;;  %v8715_v36 = vshrl.u32 %v8134_v54, 16  ;;  %v13381_v22 = vld [vmem:[#allocation4 + $0x40] sm:$0xf] }
 0x59e   : > { %10727 = vmatmul.mubr.bf16.gmra.mrb[76].mxu1 %v9699_v57  ;;  %v17227_v57 = vshrl.u32 %v16405_v20, 16  ;;  %v8659_v46 = vrot.slane %v8657_v39, 2  ;;  %v8662_v3 = vrot.slane %v8660_v56, 3  ;;  %v13382_v39 = vld [vmem:[#allocation4 + $0x44] sm:$0xf] }
 0x59f   : > { %10734 = vmatprep.mubr.bf16.mxu1 %v9707_v6  ;;  %v7967_v6 = vrot.slane %v17228_v29, 6  ;;  %v16439_v56 = vcombine.low %v13381_v22, %v13382_v39  ;;  %v13385_v29 = vld [vmem:[#allocation4 + $0x50] sm:$0xf] }
 0x5a0   : > { %v7973_v43 = vrot.slane %v17227_v57, 5 }
 0x5a1   : > { %v7968_v49 = vor.u32 %v7967_v6, %v7964_v41  ;;  %v17222_v41 = vshll.u32 %v16422_v30, 16  ;;  %v8663_v6 = vor.u32 %v8662_v3, %v8659_v46  ;;  %v17225_v39 = vshrl.u32 %v16439_v56, 16 }
 0x5a2   : > { %v7977_v24 = vor.u32 %v7976_v10, %v7973_v43  ;;  %v13293_v10 = vld [vmem:[%s17133_s4 + $0x198] sm:$0xff]  }
 0x5a3   : > { %v7969_v48 = vsel %vm3571_vm12, %v16183_v32, %v7968_v49  ;;  %v13288_v32 = vld [vmem:[%s17133_s4 + $0x188] sm:$0xff]   ;;  %v7985_v61 = vrot.slane %v17222_v41, 6  ;;  %v16449_v46 = vsel %vm4114_vm9, %v16409_v26, %v8663_v6 }
 0x5a4   : > { %v8706_v14 = vshrl.u32 %v7969_v48, 16  ;;  %v8709_v60 = vshll.u32 %v7969_v48, 16  ;;  %v8717_v48 = vrot.slane %v8715_v36, 2  ;;  %v7978_v3 = vsel %vm3571_vm12, %v7968_v49, %v7977_v24 }
 0x5a5   : > { %v8767_v36 = vshll.u32 %v7978_v3, 16 }
 0x5a6   : > { %10735 = vmatmul.mubr.bf16.gmra.mrb[80].mxu1 %v9698_v21  ;;  %v13286_v21 = vld [vmem:[%s17133_s4 + $0x180] sm:$0xff]  }
 0x5a7   : > { %10774 = vmatprep.mubr.bf16.mxu1 %v8571_v42  ;;  %v8135_v42 = vrot.slane %v16422_v30, 6 }
 0x5a9   : > { %v8136_v43 = vsel %vm3763_vm11, %v8133_v38, %v8135_v42  ;;  %v13295_v38 = vld [vmem:[%s17133_s4 + $0x1a0] sm:$0xff]  }
 0x5aa   : > { %v8773_v22 = vshrl.u32 %v8136_v43, 16  ;;  %v8776_v49 = vshll.u32 %v8136_v43, 16  ;;  %v13384_v43 = vld [vmem:[#allocation4 + $0x4c] sm:$0xf] }
 0x5ac   : > { %v8775_v41 = vrot.slane %v8773_v22, 2  ;;  %v8778_v18 = vrot.slane %v8776_v49, 3 }
 0x5ae   : > { %10775 = vmatmul.mubr.bf16.vlgmr.msra.gmra.mrb[0].mxu1 %v16188_v52  ;;  %v8718_v52 = vshll.u32 %v8134_v54, 16 }
 0x5af   : > { %10782 = vmatprep.mubr.bf16.mxu1 %v8655_v19  ;;  %10943 = vmatpush1.bf16.msra.mxu1 %v13286_v21  ;;  %v8708_v21 = vrot.slane %v8706_v14, 2  ;;  %v8711_v19 = vrot.slane %v8709_v60, 3  ;;  %v8764_v60 = vshrl.u32 %v7978_v3, 16  ;;  %v13383_v3 = vld [vmem:[#allocation4 + $0x48] sm:$0xf] }
 0x5b0   : > { %10944 = vmatprep.subr.bf16.mxu1 %v17313_v44  ;;  %v8720_v54 = vrot.slane %v8718_v52, 3  ;;  %v7986_v52 = vor.u32 %v7985_v61, %v7982_v1  ;;  %v8769_v1 = vrot.slane %v8767_v36, 3 }
 0x5b2   : > { %v8721_v14 = vor.u32 %v8720_v54, %v8717_v48  ;;  %v8766_v54 = vrot.slane %v8764_v60, 2  ;;  %v7987_v61 = vsel %vm3571_vm12, %v7977_v24, %v7986_v52  ;;  %v13297_v24 = vld [vmem:[%s17133_s4 + $0x1a8] sm:$0xff]  }
 0x5b3   : > { %10945 = vmatpush1.bf16.msra.mxu1 %v13288_v32  ;;  %v8712_v32 = vor.u32 %v8711_v19, %v8708_v21  ;;  %v8822_v60 = vshrl.u32 %v7987_v61, 16  ;;  %v8825_v36 = vshll.u32 %v7987_v61, 16 }
 0x5b4   : > { %10946 = vmatprep.subr.bf16.mxu1 %v17313_v44  ;;  %v16467_v19 = vsel %vm4114_vm9, %v8663_v6, %v8721_v14  ;;  %v8770_v22 = vor.u32 %v8769_v1, %v8766_v54  ;;  %v16489_v54 = vcombine.low %v13385_v29, %v13386_v16  ;;  %v13302_v29 = vld [vmem:[%s17133_s4 + $0x1b8] sm:$0xff]  }
 0x5b5   : > { %v8713_v21 = vsel %vm4114_vm9, %v16191_v63, %v8712_v32  ;;  %v7991_v63 = vrot.slane %v17225_v39, 5  ;;  %v8824_v57 = vrot.slane %v8822_v60, 2  ;;  %v8827_v61 = vrot.slane %v8825_v36, 3 }
 0x5b6   : > { %10783 = vmatmul.mubr.bf16.gmra.mrb[4].mxu1 %v16195_v28  ;;  %v8137_v28 = vrot.slane %v16439_v56, 6 }
 0x5b7   : > { %10790 = vmatprep.mubr.bf16.mxu1 %v16449_v46  ;;  %10947 = vmatpush1.bf16.msra.mxu1 %v13290_v34  ;;  %v17224_v34 = vshll.u32 %v16439_v56, 16 }
 0x5b8   : > { %10948 = vmatprep.subr.bf16.mxu1 %v17313_v44  ;;  %v8138_v48 = vsel %vm3763_vm11, %v8135_v42, %v8137_v28 }
 0x5b9   : > { %v7994_v6 = vrot.slane %v17224_v34, 6  ;;  %v8831_v42 = vshrl.u32 %v8138_v48, 16 }
 0x5bb   : > { %10949 = vmatpush1.bf16.msra.mxu1 %v13293_v10  ;;  %v16472_v10 = vcombine.low %v13383_v3, %v13384_v43  ;;  %v8834_v3 = vshll.u32 %v8138_v48, 16  ;;  %v8779_v43 = vor.u32 %v8778_v18, %v8775_v41  ;;  %v7995_v34 = vor.u32 %v7994_v6, %v7991_v63 }
 0x5bc   : > { %10950 = vmatprep.subr.bf16.mxu1 %v17313_v44  ;;  %v8833_v39 = vrot.slane %v8831_v42, 2  ;;  %v8771_v18 = vsel %vm4114_vm9, %v8712_v32, %v8770_v22  ;;  %v8828_v32 = vor.u32 %v8827_v61, %v8824_v57 }
 0x5bd   : > { %v17231_v49 = vshrl.u32 %v16472_v10, 16  ;;  %v8139_v33 = vrot.slane %v16472_v10, 6  ;;  %v8836_v48 = vrot.slane %v8834_v3, 3  ;;  %v16498_v63 = vsel %vm4114_vm9, %v8721_v14, %v8779_v43 }
 0x5be   : > { %10791 = vmatmul.mubr.bf16.gmra.mrb[8].mxu1 %v8713_v21  ;;  %v17230_v21 = vshll.u32 %v16472_v10, 16  ;;  %v7996_v6 = vsel %vm3571_vm12, %v7986_v52, %v7995_v34  ;;  %v8829_v57 = vsel %vm4114_vm9, %v8770_v22, %v8828_v32 }
 0x5bf   : > { %10798 = vmatprep.mubr.bf16.mxu1 %v16467_v19  ;;  %10951 = vmatpush1.bf16.msra.mxu1 %v13295_v38  ;;  %v13299_v38 = vld [vmem:[%s17133_s4 + $0x1b0] sm:$0xff]   ;;  %v8000_v41 = vrot.slane %v17231_v49, 5  ;;  %v8140_v16 = vsel %vm3763_vm11, %v8137_v28, %v8139_v33  ;;  %v8837_v42 = vor.u32 %v8836_v48, %v8833_v39  ;;  %v8880_v60 = vshrl.u32 %v7996_v6, 16 }
 0x5c0   : > { %10952 = vmatprep.subr.bf16.mxu1 %v17313_v44  ;;  %v8003_v1 = vrot.slane %v17230_v21, 6  ;;  %v8883_v14 = vshll.u32 %v7996_v6, 16  ;;  %v8889_v3 = vshrl.u32 %v8140_v16, 16  ;;  %v8892_v52 = vshll.u32 %v8140_v16, 16  ;;  %v13387_v6 = vld [vmem:[#allocation4 + $0x58] sm:$0xf] }
 0x5c1   : > { %v17232_v28 = vshll.u32 %v16489_v54, 16  ;;  %v16515_v39 = vsel %vm4114_vm9, %v8779_v43, %v8837_v42  ;;  %v8882_v48 = vrot.slane %v8880_v60, 2  ;;  %v13388_v16 = vld [vmem:[#allocation4 + $0x5c] sm:$0xf] }
 0x5c2   : > { %v8004_v36 = vor.u32 %v8003_v1, %v8000_v41  ;;  %v8885_v41 = vrot.slane %v8883_v14, 3  ;;  %v8891_v21 = vrot.slane %v8889_v3, 2  ;;  %v8894_v49 = vrot.slane %v8892_v52, 3 }
 0x5c3   : > { %10953 = vmatpush1.bf16.msra.mxu1 %v13297_v24  ;;  %v8141_v24 = vrot.slane %v16489_v54, 6  ;;  %v8012_v43 = vrot.slane %v17232_v28, 6 }
 0x5c4   : > { %10954 = vmatprep.subr.bf16.mxu1 %v17313_v44  ;;  %v8005_v1 = vsel %vm3571_vm12, %v7995_v34, %v8004_v36  ;;  %v13306_v34 = vld [vmem:[%s17133_s4 + $0x1c8] sm:$0xff]   ;;  %v8886_v3 = vor.u32 %v8885_v41, %v8882_v48  ;;  %v16537_v48 = vcombine.low %v13389_v5, %v13390_v40  ;;  %v13311_v5 = vld [vmem:[%s17133_s4 + $0x1d8] sm:$0xff]  }
 0x5c5   : > { %v8142_v61 = vsel %vm3763_vm11, %v8139_v33, %v8141_v24  ;;  %v8938_v60 = vshrl.u32 %v8005_v1, 16  ;;  %v8941_v14 = vshll.u32 %v8005_v1, 16 }
 0x5c6   : > { %10799 = vmatmul.mubr.bf16.gmra.mrb[12].mxu1 %v8771_v18  ;;  %v17233_v18 = vshrl.u32 %v16489_v54, 16  ;;  %v8947_v33 = vshrl.u32 %v8142_v61, 16 }
 0x5c7   : > { %10806 = vmatprep.mubr.bf16.mxu1 %v16498_v63  ;;  %10955 = vmatpush1.bf16.msra.mxu1 %v13299_v38  ;;  %v13304_v38 = vld [vmem:[%s17133_s4 + $0x1c0] sm:$0xff]   ;;  %v8940_v55 = vrot.slane %v8938_v60, 2  ;;  %v8943_v1 = vrot.slane %v8941_v14, 3 }
 0x5c8   : > { %10956 = vmatprep.subr.bf16.mxu1 %v17313_v44  ;;  %v8009_v22 = vrot.slane %v17233_v18, 5  ;;  %v8949_v18 = vrot.slane %v8947_v33, 2 }
 0x5ca   : > { %v8013_v28 = vor.u32 %v8012_v43, %v8009_v22 }
 0x5cb   : > { %10957 = vmatpush1.bf16.msra.mxu1 %v13302_v29  ;;  %v16520_v29 = vcombine.low %v13387_v6, %v13388_v16  ;;  %v8950_v6 = vshll.u32 %v8142_v61, 16  ;;  %v8895_v16 = vor.u32 %v8894_v49, %v8891_v21  ;;  %v8887_v49 = vsel %vm4114_vm9, %v8828_v32, %v8886_v3 }
 0x5cc   : > { %10958 = vmatprep.subr.bf16.mxu1 %v17313_v44  ;;  %v8014_v43 = vsel %vm3571_vm12, %v8004_v36, %v8013_v28  ;;  %v8944_v32 = vor.u32 %v8943_v1, %v8940_v55 }
 0x5cd   : > { %v17239_v52 = vshrl.u32 %v16520_v29, 16  ;;  %v8143_v2 = vrot.slane %v16520_v29, 6  ;;  %v8952_v61 = vrot.slane %v8950_v6, 3  ;;  %v16546_v22 = vsel %vm4114_vm9, %v8837_v42, %v8895_v16 }
 0x5ce   : > { %10807 = vmatmul.mubr.bf16.gmra.mrb[16].mxu1 %v8829_v57  ;;  %v17238_v57 = vshll.u32 %v16520_v29, 16  ;;  %v8996_v60 = vshrl.u32 %v8014_v43, 16  ;;  %v8999_v42 = vshll.u32 %v8014_v43, 16  ;;  %v8945_v55 = vsel %vm4114_vm9, %v8886_v3, %v8944_v32  ;;  %v13391_v43 = vld [vmem:[#allocation4 + $0x68] sm:$0xf] }
 0x5cf   : > { %10814 = vmatprep.mubr.bf16.mxu1 %v16515_v39  ;;  %10959 = vmatpush1.bf16.msra.mxu1 %v13304_v38  ;;  %v13309_v38 = vld [vmem:[%s17133_s4 + $0x1d0] sm:$0xff]   ;;  %v8018_v21 = vrot.slane %v17239_v52, 5  ;;  %v8144_v40 = vsel %vm3763_vm11, %v8141_v24, %v8143_v2  ;;  %v8953_v33 = vor.u32 %v8952_v61, %v8949_v18  ;;  %v17240_v24 = vshll.u32 %v16537_v48, 16 }
 0x5d0   : > { %10960 = vmatprep.subr.bf16.mxu1 %v17313_v44  ;;  %v8021_v41 = vrot.slane %v17238_v57, 6  ;;  %v9005_v6 = vshrl.u32 %v8144_v40, 16  ;;  %v9008_v36 = vshll.u32 %v8144_v40, 16  ;;  %v8998_v61 = vrot.slane %v8996_v60, 2  ;;  %v13392_v40 = vld [vmem:[#allocation4 + $0x6c] sm:$0xf] }
 0x5d1   : > { %v16563_v18 = vsel %vm4114_vm9, %v8895_v16, %v8953_v33  ;;  %v8030_v16 = vrot.slane %v17240_v24, 6 }
 0x5d2   : > { %v8022_v14 = vor.u32 %v8021_v41, %v8018_v21  ;;  %v9001_v21 = vrot.slane %v8999_v42, 3  ;;  %v9007_v57 = vrot.slane %v9005_v6, 2  ;;  %v9010_v52 = vrot.slane %v9008_v36, 3 }
 0x5d3   : > { %10961 = vmatpush1.bf16.msra.mxu1 %v13306_v34  ;;  %v8145_v34 = vrot.slane %v16537_v48, 6 }
 0x5d4   : > { %10962 = vmatprep.subr.bf16.mxu1 %v17313_v44  ;;  %v8023_v41 = vsel %vm3571_vm12, %v8013_v28, %v8022_v14  ;;  %v9002_v42 = vor.u32 %v9001_v21, %v8998_v61  ;;  %v16585_v61 = vcombine.low %v13393_v47, %v13394_v37  ;;  %v13318_v47 = vld [vmem:[%s17133_s4 + $0x1f8] sm:$0xff]  }
 0x5d5   : > { %v8146_v1 = vsel %vm3763_vm11, %v8143_v2, %v8145_v34  ;;  %v13315_v2 = vld [vmem:[%s17133_s4 + $0x1e8] sm:$0xff]   ;;  %v9054_v28 = vshrl.u32 %v8023_v41, 16  ;;  %v9057_v60 = vshll.u32 %v8023_v41, 16 }
 0x5d6   : > { %10815 = vmatmul.mubr.bf16.gmra.mrb[20].mxu1 %v8887_v49  ;;  %v17241_v49 = vshrl.u32 %v16537_v48, 16  ;;  %v9063_v6 = vshrl.u32 %v8146_v1, 16  ;;  %v9066_v36 = vshll.u32 %v8146_v1, 16 }
 0x5d7   : > { %10822 = vmatprep.mubr.bf16.mxu1 %v16546_v22  ;;  %10963 = vmatpush1.bf16.msra.mxu1 %v13309_v38  ;;  %v13313_v38 = vld [vmem:[%s17133_s4 + $0x1e0] sm:$0xff]   ;;  %v9056_v9 = vrot.slane %v9054_v28, 2  ;;  %v9059_v41 = vrot.slane %v9057_v60, 3 }
 0x5d8   : > { %10964 = vmatprep.subr.bf16.mxu1 %v17313_v44  ;;  %v8027_v3 = vrot.slane %v17241_v49, 5  ;;  %v9068_v1 = vrot.slane %v9066_v36, 3  ;;  %v17250_v36 = vshll.u32 %v16585_v61, 16 }
 0x5db   : > { %10965 = vmatpush1.bf16.msra.mxu1 %v13311_v5  ;;  %v16568_v5 = vcombine.low %v13391_v43, %v13392_v40  ;;  %v9011_v43 = vor.u32 %v9010_v52, %v9007_v57  ;;  %v8031_v40 = vor.u32 %v8030_v16, %v8027_v3  ;;  %v9003_v52 = vsel %vm4114_vm9, %v8944_v32, %v9002_v42 }
 0x5dc   : > { %10966 = vmatprep.subr.bf16.mxu1 %v17313_v44  ;;  %v9065_v57 = vrot.slane %v9063_v6, 2  ;;  %v9060_v32 = vor.u32 %v9059_v41, %v9056_v9  ;;  %v17249_v6 = vshrl.u32 %v16585_v61, 16  ;;  %v17368_v41 = vmov 0.0  }
 0x5dd   : > { %v17246_v24 = vshrl.u32 %v16568_v5, 16  ;;  %v17245_v49 = vshll.u32 %v16568_v5, 16  ;;  %v16591_v3 = vsel %vm4114_vm9, %v8953_v33, %v9011_v43  ;;  %v8032_v16 = vsel %vm3571_vm12, %v8022_v14, %v8031_v40 }
 0x5de   : > { %10823 = vmatmul.mubr.bf16.gmra.mrb[24].mxu1 %v8945_v55  ;;  %v8147_v55 = vrot.slane %v16568_v5, 6  ;;  %v8149_v33 = vrot.slane %v16585_v61, 6  ;;  %v9112_v14 = vshrl.u32 %v8032_v16, 16  ;;  %v9115_v60 = vshll.u32 %v8032_v16, 16 }
 0x5df   : > { %10830 = vmatprep.mubr.bf16.mxu1 %v16563_v18  ;;  %10967 = vmatpush1.bf16.msra.mxu1 %v13313_v38  ;;  %v13317_v38 = vld [vmem:[%s17133_s4 + $0x1f0] sm:$0xff]   ;;  %v8039_v37 = vrot.slane %v17245_v49, 6  ;;  %v8048_v16 = vrot.slane %v17250_v36, 6 }
 0x5e0   : > { %10968 = vmatprep.subr.bf16.mxu1 %v17313_v44  ;;  %v8148_v21 = vsel %vm3763_vm11, %v8145_v34, %v8147_v55  ;;  %v8150_v9 = vsel %vm3763_vm11, %v8147_v55, %v8149_v33  ;;  %v9117_v51 = vrot.slane %v9115_v60, 3 }
 0x5e1   : > { %v9121_v34 = vshrl.u32 %v8148_v21, 16  ;;  %v9124_v28 = vshll.u32 %v8148_v21, 16  ;;  %v9114_v21 = vrot.slane %v9112_v14, 2 }
 0x5e3   : > { %10969 = vmatpush1.bf16.msra.mxu1 %v13315_v2  ;;  %v8036_v2 = vrot.slane %v17246_v24, 5  ;;  %v9123_v24 = vrot.slane %v9121_v34, 2  ;;  %v9126_v15 = vrot.slane %v9124_v28, 3  ;;  %v9182_v34 = vshll.u32 %v8150_v9, 16 }
 0x5e4   : > { %10970 = vmatprep.subr.bf16.mxu1 %v17313_v44  ;;  %v9118_v28 = vor.u32 %v9117_v51, %v9114_v21 }
 0x5e5   : > { %v8040_v49 = vor.u32 %v8039_v37, %v8036_v2  ;;  %v13396_v2 = vld [vmem:[#allocation4 + $0x7c] sm:$0xf]  ;;  %v9127_v55 = vor.u32 %v9126_v15, %v9123_v24 }
 0x5e6   : > { %10831 = vmatmul.mubr.bf16.gmra.mrb[28].mxu1 %v9003_v52  ;;  %v9069_v52 = vor.u32 %v9068_v1, %v9065_v57  ;;  %v13395_v1 = vld [vmem:[#allocation4 + $0x78] sm:$0xf]  ;;  %v9119_v7 = vsel %vm4114_vm9, %v9060_v32, %v9118_v28 }
 0x5e7   : > { %10838 = vmatprep.mubr.bf16.mxu1 %v16591_v3  ;;  %10971 = vmatpush1.bf16.msra.mxu1 %v13317_v38  ;;  %v9061_v38 = vsel %vm4114_vm9, %v9002_v42, %v9060_v32  ;;  %v8041_v42 = vsel %vm3571_vm12, %v8031_v40, %v8040_v49  ;;  %v16617_v37 = vcombine.low %v13395_v1, %v13396_v2  ;;  %v9184_v2 = vrot.slane %v9182_v34, 3 }
 0x5e8   : > { %10972 = vmatprep.subr.bf16.mxu1 %v17313_v44  ;;  %v8045_v44 = vrot.slane %v17249_v6, 5  ;;  %v16614_v57 = vsel %vm4114_vm9, %v9011_v43, %v9069_v52  ;;  %v9170_v14 = vshrl.u32 %v8041_v42, 16  ;;  %v9173_v60 = vshll.u32 %v8041_v42, 16 }
 0x5e9   : > { %v17252_v43 = vshrl.u32 %v16617_v37, 16  ;;  %v17254_v36 = vshll.u32 %v16617_v37, 16  ;;  %v16624_v40 = vsel %vm4114_vm9, %v9069_v52, %v9127_v55  ;;  %v13398_v52 = vld [vmem:[#allocation4 + $0x84] sm:$0xf] }
 0x5ea   : > { %v8049_v6 = vor.u32 %v8048_v16, %v8045_v44  ;;  %v9172_v15 = vrot.slane %v9170_v14, 2  ;;  %v9175_v24 = vrot.slane %v9173_v60, 3  ;;  %v13397_v16 = vld [vmem:[#allocation4 + $0x80] sm:$0xf] }
 0x5eb   : > { %10973 = vmatpush1.bf16.msra.mxu1 %v13318_v47  ;;  %v9179_v47 = vshrl.u32 %v8150_v9, 16  ;;  %v8054_v21 = vrot.slane %v17252_v43, 5  ;;  %v8057_v44 = vrot.slane %v17254_v36, 6  ;;  %v16633_v42 = vcombine.low %v13397_v16, %v13398_v52 }
 0x5ec   : > { %12236 = vmatprep.subr.bf16.mxu1 %v17368_v41  ;;  %v8050_v51 = vsel %vm3571_vm12, %v8040_v49, %v8049_v6  ;;  %v9176_v34 = vor.u32 %v9175_v24, %v9172_v15 }
 0x5ed   : > { %v9181_v1 = vrot.slane %v9179_v47, 2  ;;  %v9228_v32 = vshrl.u32 %v8050_v51, 16  ;;  %v9231_v47 = vshll.u32 %v8050_v51, 16  ;;  %v8058_v60 = vor.u32 %v8057_v44, %v8054_v21 }
 0x5ee   : > { %10839 = vmatmul.mubr.bf16.gmra.mrb[32].mxu1 %v9061_v38  ;;  %v8151_v38 = vrot.slane %v16617_v37, 6  ;;  %v17258_v43 = vshll.u32 %v16633_v42, 16  ;;  %v8153_v59 = vrot.slane %v16633_v42, 6  ;;  %v9177_v16 = vsel %vm4114_vm9, %v9118_v28, %v9176_v34 }
 0x5ef   : > { %10846 = vmatprep.mubr.bf16.mxu1 %v16614_v57  ;;  %v9185_v14 = vor.u32 %v9184_v2, %v9181_v1  ;;  %v9230_v36 = vrot.slane %v9228_v32, 2  ;;  %v9233_v50 = vrot.slane %v9231_v47, 3  ;;  %v8059_v1 = vsel %vm3571_vm12, %v8049_v6, %v8058_v60 }
 0x5f0   : > { %v8152_v9 = vsel %vm3763_vm11, %v8149_v33, %v8151_v38  ;;  %v17257_v33 = vshrl.u32 %v16633_v42, 16  ;;  %v8066_v24 = vrot.slane %v17258_v43, 6  ;;  %v8154_v51 = vsel %vm3763_vm11, %v8151_v38, %v8153_v59 }
 0x5f1   : > { %v9237_v49 = vshrl.u32 %v8152_v9, 16  ;;  %v16641_v52 = vsel %vm4114_vm9, %v9127_v55, %v9185_v14  ;;  %v8155_v28 = vrot.slane %v16291_v0, 6  ;;  %v9286_v55 = vshrl.u32 %v8059_v1, 16 }
 0x5f2   : > { %v8063_v2 = vrot.slane %v17257_v33, 5  ;;  %v9289_v21 = vshll.u32 %v8059_v1, 16  ;;  %v9295_v32 = vshrl.u32 %v8154_v51, 16  ;;  %v9298_v47 = vshll.u32 %v8154_v51, 16 }
 0x5f3   : > { %v9239_v58 = vrot.slane %v9237_v49, 2  ;;  %v17369_v43 = vshrl.u32 %v16291_v0, 16  ;;  %v17370_v38 = vshll.u32 %v16291_v0, 16 }
 0x5f4   : > { %v8067_v49 = vor.u32 %v8066_v24, %v8063_v2  ;;  %v9291_v33 = vrot.slane %v9289_v21, 3  ;;  %v8157_v21 = vrot.slane %v16295_v12, 6 }
 0x5f5   : > { %v8072_v62 = vrot.slane %v17369_v43, 5 }
 0x5f6   : > { %10847 = vmatmul.mubr.bf16.gmra.mrb[36].mxu1 %v9119_v7  ;;  %v9240_v7 = vshll.u32 %v8152_v9, 16  ;;  %v9234_v9 = vor.u32 %v9233_v50, %v9230_v36  ;;  %v8075_v50 = vrot.slane %v17370_v38, 6  ;;  %v8068_v1 = vsel %vm3571_vm12, %v8058_v60, %v8067_v49 }
 0x5f7   : > { %10854 = vmatprep.mubr.bf16.mxu1 %v16624_v40  ;;  %v9344_v24 = vshrl.u32 %v8068_v1, 16  ;;  %v9347_v51 = vshll.u32 %v8068_v1, 16 }
 0x5f8   : > { %v9242_v15 = vrot.slane %v9240_v7, 3  ;;  %v9235_v6 = vsel %vm4114_vm9, %v9176_v34, %v9234_v9  ;;  %v8156_v7 = vsel %vm3763_vm11, %v8153_v59, %v8155_v28 }
 0x5f9   : > { %v9353_v34 = vshrl.u32 %v8156_v7, 16  ;;  %v9356_v59 = vshll.u32 %v8156_v7, 16  ;;  %v9346_v0 = vrot.slane %v9344_v24, 2  ;;  %v17371_v7 = vshrl.u32 %v16295_v12, 16 }
 0x5fa   : > { %v9243_v44 = vor.u32 %v9242_v15, %v9239_v58  ;;  %v9297_v58 = vrot.slane %v9295_v32, 2  ;;  %v9300_v15 = vrot.slane %v9298_v47, 3  ;;  %v9349_v32 = vrot.slane %v9347_v51, 3 }
 0x5fb   : > { %v9355_v38 = vrot.slane %v9353_v34, 2 }
 0x5fc   : > { %v16658_v36 = vsel %vm4114_vm9, %v9185_v14, %v9243_v44  ;;  %v9301_v43 = vor.u32 %v9300_v15, %v9297_v58  ;;  %v9350_v15 = vor.u32 %v9349_v32, %v9346_v0  ;;  %v17373_v0 = vshrl.u32 %v16300_v45, 16 }
 0x5fe   : > { %10855 = vmatmul.mubr.bf16.gmra.mrb[40].mxu1 %v9177_v16  ;;  %v9288_v16 = vrot.slane %v9286_v55, 2  ;;  %v8076_v55 = vor.u32 %v8075_v50, %v8072_v62  ;;  %v16666_v60 = vsel %vm4114_vm9, %v9243_v44, %v9301_v43  ;;  %v8081_v62 = vrot.slane %v17371_v7, 5 }
 0x5ff   : > { %10862 = vmatprep.mubr.bf16.mxu1 %v16641_v52  ;;  %v8159_v44 = vrot.slane %v16300_v45, 6 }
 0x600   : > { %v9292_v2 = vor.u32 %v9291_v33, %v9288_v16  ;;  %v8077_v47 = vsel %vm3571_vm12, %v8067_v49, %v8076_v55  ;;  %v8158_v33 = vsel %vm3763_vm11, %v8155_v28, %v8157_v21  ;;  %v17372_v16 = vshll.u32 %v16295_v12, 16 }
 0x601   : > { %v9402_v58 = vshrl.u32 %v8077_v47, 16  ;;  %v9411_v34 = vshrl.u32 %v8158_v33, 16  ;;  %v9414_v49 = vshll.u32 %v8158_v33, 16 }
 0x602   : > { %v9293_v14 = vsel %vm4114_vm9, %v9234_v9, %v9292_v2  ;;  %v8084_v50 = vrot.slane %v17372_v16, 6  ;;  %v9405_v9 = vshll.u32 %v8077_v47, 16  ;;  %v9351_v28 = vsel %vm4114_vm9, %v9292_v2, %v9350_v15 }
 0x603   : > { %v9404_v24 = vrot.slane %v9402_v58, 2  ;;  %v9413_v7 = vrot.slane %v9411_v34, 2  ;;  %v9416_v16 = vrot.slane %v9414_v49, 3  ;;  %v8160_v47 = vsel %vm3763_vm11, %v8157_v21, %v8159_v44 }
 0x604   : > { %v9407_v51 = vrot.slane %v9405_v9, 3  ;;  %v8161_v2 = vrot.slane %v16306_v53, 6  ;;  %v9469_v58 = vshrl.u32 %v8160_v47, 16  ;;  %v9472_v9 = vshll.u32 %v8160_v47, 16 }
 0x605   : > { %v17376_v21 = vshll.u32 %v16306_v53, 16 }
 0x606   : > { %10863 = vmatmul.mubr.bf16.gmra.mrb[44].mxu1 %v9235_v6  ;;  %v9358_v6 = vrot.slane %v9356_v59, 3  ;;  %v8085_v59 = vor.u32 %v8084_v50, %v8081_v62  ;;  %v9408_v33 = vor.u32 %v9407_v51, %v9404_v24  ;;  %v9417_v50 = vor.u32 %v9416_v16, %v9413_v7 }
 0x607   : > { %10870 = vmatprep.mubr.bf16.mxu1 %v16658_v36  ;;  %v8162_v49 = vsel %vm3763_vm11, %v8159_v44, %v8161_v2  ;;  %v8102_v24 = vrot.slane %v17376_v21, 6  ;;  %v9474_v7 = vrot.slane %v9472_v9, 3 }
 0x608   : > { %v9359_v1 = vor.u32 %v9358_v6, %v9355_v38  ;;  %v8086_v12 = vsel %vm3571_vm12, %v8076_v55, %v8085_v59  ;;  %v8090_v38 = vrot.slane %v17373_v0, 5  ;;  %v17374_v6 = vshll.u32 %v16300_v45, 16 }
 0x609   : > { %v9463_v62 = vshll.u32 %v8086_v12, 16  ;;  %v9409_v55 = vsel %vm4114_vm9, %v9350_v15, %v9408_v33  ;;  %v9527_v15 = vshrl.u32 %v8162_v49, 16 }
 0x60a   : > { %v8093_v32 = vrot.slane %v17374_v6, 6  ;;  %v17375_v6 = vshrl.u32 %v16306_v53, 16  ;;  %v16694_v51 = vsel %vm4114_vm9, %v9359_v1, %v9417_v50 }
 0x60b   : > { %v9465_v0 = vrot.slane %v9463_v62, 3  ;;  %v9530_v62 = vshll.u32 %v8162_v49, 16 }
 0x60c   : > { %v8094_v34 = vor.u32 %v8093_v32, %v8090_v38  ;;  %v8099_v45 = vrot.slane %v17375_v6, 5  ;;  %v16699_v6 = vrot.slane %v16133_v25, 6 }
 0x60e   : > { %10871 = vmatmul.mubr.bf16.gmra.mrb[48].mxu1 %v9293_v14  ;;  %v16677_v14 = vsel %vm4114_vm9, %v9301_v43, %v9359_v1  ;;  %v9460_v43 = vshrl.u32 %v8086_v12, 16  ;;  %v9471_v12 = vrot.slane %v9469_v58, 2  ;;  %v8095_v16 = vsel %vm3571_vm12, %v8085_v59, %v8094_v34 }
 0x60f   : > { %10878 = vmatprep.mubr.bf16.mxu1 %v16666_v60  ;;  %v9518_v38 = vshrl.u32 %v8095_v16, 16  ;;  %v9521_v32 = vshll.u32 %v8095_v16, 16  ;;  %v8103_v47 = vor.u32 %v8102_v24, %v8099_v45  ;;  %v9529_v1 = vrot.slane %v9527_v15, 2 }
 0x610   : > { %v17378_v45 = vshrl.u32 %v16133_v25, 16  ;;  %v17379_v24 = vshll.u32 %v16133_v25, 16 }
 0x611   : > { %v9520_v9 = vrot.slane %v9518_v38, 2  ;;  %v9523_v53 = vrot.slane %v9521_v32, 3  ;;  %v8104_v59 = vsel %vm3571_vm12, %v8094_v34, %v8103_v47 }
 0x612   : > { %v8108_v49 = vrot.slane %v17378_v45, 5  ;;  %v9576_v16 = vshrl.u32 %v8104_v59, 16  ;;  %v9579_v15 = vshll.u32 %v8104_v59, 16 }
 0x613   : > { %v9524_v34 = vor.u32 %v9523_v53, %v9520_v9 }
 0x614   : > { %v9578_v45 = vrot.slane %v9576_v16, 2  ;;  %v9581_v35 = vrot.slane %v9579_v15, 3 }
 0x616   : > { %10879 = vmatmul.mubr.bf16.gmra.mrb[52].mxu1 %v9351_v28  ;;  %v9462_v28 = vrot.slane %v9460_v43, 2  ;;  %v9475_v43 = vor.u32 %v9474_v7, %v9471_v12  ;;  %v8111_v12 = vrot.slane %v17379_v24, 6  ;;  %v13316_v7 = vld [vmem:[#allocation4 + $0xb0] ss:$0 sps:$4 sm:$0x77]   ;;  %v9582_v9 = vor.u32 %v9581_v35, %v9578_v45 }
 0x617   : > { %10886 = vmatprep.mubr.bf16.mxu1 %v16677_v14  ;;  %v8165_v4 = vrot.slane %v13316_v7, 6 }
 0x618   : > { %v9466_v44 = vor.u32 %v9465_v0, %v9462_v28  ;;  %v16704_v28 = vsel %vm4114_vm9, %v9417_v50, %v9475_v43  ;;  %v9532_v0 = vrot.slane %v9530_v62, 3  ;;  %v9583_v15 = vsel %vm4114_vm9, %v9524_v34, %v9582_v9 }
 0x619   : > { %17377 = vst [vmem:[#allocation9_spill] sm:$0xff] %v16704_v28 }
 0x61a   : > { %v9467_v58 = vsel %vm4114_vm9, %v9408_v33, %v9466_v44  ;;  %v8164_v33 = vsel %vm3763_vm11, %v8161_v2, %v16699_v6  ;;  %v9533_v50 = vor.u32 %v9532_v0, %v9529_v1  ;;  %v9525_v24 = vsel %vm4114_vm9, %v9466_v44, %v9524_v34  ;;  %v13400_v0 = vld [vmem:[#allocation4 + $0x1c] sm:$0xf] }
 0x61b   : > { %v9588_v62 = vshll.u32 %v8164_v33, 16  ;;  %v8166_v1 = vsel %vm3763_vm11, %v16699_v6, %v8165_v4 }
 0x61c   : > { %v16715_v2 = vsel %vm4114_vm9, %v9475_v43, %v9533_v50  ;;  %v9719_v43 = vshrl.u32 %v8166_v1, 16  ;;  %v9722_v16 = vshll.u32 %v8166_v1, 16 }
 0x61d   : > { %v9590_v53 = vrot.slane %v9588_v62, 3  ;;  %v17381_v62 = vshll.u32 %v16169_v17, 16 }
 0x61e   : > { %10887 = vmatmul.mubr.bf16.gmra.mrb[56].mxu1 %v9409_v55  ;;  %v13399_v55 = vld [vmem:[#allocation4 + $0xb0] sm:$0x3] }
 0x61f   : > { %10894 = vmatprep.mubr.bf16.mxu1 %v16694_v51  ;;  %v11835_v21 = vcombine.low %v13399_v55, %v13399_v55  ;;  %v9585_v55 = vshrl.u32 %v8164_v33, 16  ;;  %v8191_v45 = vrot.slane %v17381_v62, 7 }
 0x621   : > { %v8115_v38 = vshrl.u32 %v11835_v21, 16  ;;  %v8118_v32 = vshll.u32 %v11835_v21, 16  ;;  %v9587_v59 = vrot.slane %v9585_v55, 2 }
 0x623   : > { %v8117_v25 = vrot.slane %v8115_v38, 5  ;;  %v8120_v27 = vrot.slane %v8118_v32, 6  ;;  %v16723_v7 = vor.u32 %v9590_v53, %v9587_v59 }
 0x625   : > { %v8121_v33 = vor.u32 %v8120_v27, %v8117_v25  ;;  %v16731_v35 = vsel %vm4114_vm9, %v9533_v50, %v16723_v7  ;;  %v9721_v25 = vrot.slane %v9719_v43, 2  ;;  %v9724_v27 = vrot.slane %v9722_v16, 3 }
 0x626   : > { %10895 = vmatmul.mubr.bf16.gmra.mrb[60].mxu1 %v9467_v58  ;;  %v8112_v58 = vor.u32 %v8111_v12, %v8108_v49 }
 0x627   : > { %10902 = vmatprep.mubr.bf16.mxu1 %v16704_v28  ;;  %v7576_v28 = vld [vmem:[#allocation4 + $0x18] sm:$0xe]  ;;  %v9725_v1 = vor.u32 %v9724_v27, %v9721_v25 }
 0x628   : > { %v8113_v21 = vsel %vm3571_vm12, %v8103_v47, %v8112_v58  ;;  %v16721_v49 = vcombine.low %v7576_v28, %v13400_v0  ;;  %v8122_v55 = vsel %vm3571_vm12, %v8112_v58, %v8121_v33  ;;  %v17380_v28 = vshrl.u32 %v16169_v17, 16 }
 0x629   : > { %v9643_v44 = vshrl.u32 %v8113_v21, 16  ;;  %v9646_v12 = vshll.u32 %v8113_v21, 16  ;;  %v9713_v58 = vshll.u32 %v8122_v55, 16  ;;  %v9726_v43 = vsel %vm4114_vm9, %v16723_v7, %v9725_v1 }
 0x62a   : > { %v8183_v47 = vshrl.u32 %v16721_v49, 16  ;;  %v8186_v4 = vshll.u32 %v16721_v49, 16  ;;  %v8190_v34 = vrot.slane %v17380_v28, 6 }
 0x62b   : > { %v9645_v38 = vrot.slane %v9643_v44, 2  ;;  %v9648_v32 = vrot.slane %v9646_v12, 3  ;;  %v9715_v12 = vrot.slane %v9713_v58, 3  ;;  %v17384_v58 = vshrl.u32 %v16405_v20, 16 }
 0x62c   : > { %v8185_v53 = vrot.slane %v8183_v47, 6  ;;  %v8188_v21 = vrot.slane %v8186_v4, 7  ;;  %v8192_v0 = vor.u32 %v8191_v45, %v8190_v34  ;;  %v17383_v47 = vshll.u32 %v16396_v13, 16 }
 0x62d   : > { %v9649_v59 = vor.u32 %v9648_v32, %v9645_v38 }
 0x62e   : > { %10903 = vmatmul.mubr.bf16.gmra.mrb[64].mxu1 %v9525_v24  ;;  %v9710_v24 = vshrl.u32 %v8122_v55, 16  ;;  %v8189_v33 = vor.u32 %v8188_v21, %v8185_v53  ;;  %v8195_v32 = vrot.slane %v17383_v47, 7  ;;  %v8198_v53 = vrot.slane %v17384_v58, 6 }
 0x62f   : > { %10910 = vmatprep.mubr.bf16.mxu1 %v16715_v2  ;;  %v9650_v50 = vsel %vm4114_vm9, %v9582_v9, %v9649_v59  ;;  %v17385_v21 = vshll.u32 %v16405_v20, 16 }
 0x630   : > { %v9712_v44 = vrot.slane %v9710_v24, 2  ;;  %v8193_v16 = vsel %vm3820_vm13, %v8189_v33, %v8192_v0  ;;  %v8590_v27 = vshrl.u32 %v8189_v33, 16  ;;  %v8593_v28 = vshll.u32 %v8189_v33, 16 }
 0x631   : > { %v8598_v4 = vshrl.u32 %v8193_v16, 16  ;;  %v8601_v25 = vshll.u32 %v8193_v16, 16  ;;  %v8573_v16 = vshrl.u32 %v16380_v11, 16 }
 0x632   : > { %v9716_v55 = vor.u32 %v9715_v12, %v9712_v44  ;;  %v8592_v44 = vrot.slane %v8590_v27, 2  ;;  %v8595_v12 = vrot.slane %v8593_v28, 3  ;;  %v17386_v28 = vshrl.u32 %v16422_v30, 16 }
 0x633   : > { %v8600_v62 = vrot.slane %v8598_v4, 2  ;;  %v8603_v45 = vrot.slane %v8601_v25, 3 }
 0x634   : > { %v9717_v34 = vsel %vm4114_vm9, %v9649_v59, %v9716_v55  ;;  %v8576_v59 = vshll.u32 %v16380_v11, 16  ;;  %v8596_v47 = vor.u32 %v8595_v12, %v8592_v44 }
 0x636   : > { %10911 = vmatmul.mubr.bf16.gmra.mrb[68].mxu1 %v9583_v15  ;;  %v17382_v15 = vshrl.u32 %v16396_v13, 16  ;;  %v8578_v25 = vrot.slane %v8576_v59, 3 }
 0x637   : > { %10918 = vmatprep.mubr.bf16.mxu1 %v16731_v35 }
 0x638   : > { %v8194_v38 = vrot.slane %v17382_v15, 6 }
 0x63a   : > { %v8196_v9 = vor.u32 %v8195_v32, %v8194_v38 }
 0x63c   : > { %v8197_v24 = vsel %vm3820_vm13, %v8192_v0, %v8196_v9  ;;  %v8575_v0 = vrot.slane %v8573_v16, 2 }
 0x63d   : > { %v8666_v33 = vshrl.u32 %v8197_v24, 16  ;;  %v8669_v15 = vshll.u32 %v8197_v24, 16 }
 0x63e   : > { %10919 = vmatmul.mubr.bf16.gmra.mrb[72].mxu1 %v9650_v50  ;;  %v8199_v50 = vrot.slane %v17385_v21, 7 }
 0x63f   : > { %10926 = vmatprep.mubr.bf16.mxu1 %v9726_v43  ;;  %v8604_v43 = vor.u32 %v8603_v45, %v8600_v62  ;;  %v8668_v32 = vrot.slane %v8666_v33, 2  ;;  %v8671_v4 = vrot.slane %v8669_v15, 3  ;;  %v17387_v62 = vshll.u32 %v16422_v30, 16  ;;  %v13321_v33 = vld [vmem:[%s17133_s4 + $0x208] sm:$0xff]  }
 0x640   : > { %v8200_v38 = vor.u32 %v8199_v50, %v8198_v53  ;;  %v8579_v53 = vor.u32 %v8578_v25, %v8575_v0  ;;  %v17388_v15 = vshrl.u32 %v16439_v56, 16 }
 0x641   : > { %v8203_v45 = vrot.slane %v17387_v62, 7  ;;  %v8672_v24 = vor.u32 %v8671_v4, %v8668_v32 }
 0x642   : > { %v8201_v27 = vsel %vm3820_vm13, %v8196_v9, %v8200_v38  ;;  %v8588_v50 = vsel %vm4114_vm9, %v8579_v53, %v16409_v26  ;;  %v8206_v59 = vrot.slane %v17388_v15, 6  ;;  %v17393_v15 = vshll.u32 %v16489_v54, 16 }
 0x643   : > { %v8724_v11 = vshrl.u32 %v8201_v27, 16  ;;  %v8727_v58 = vshll.u32 %v8201_v27, 16  ;;  %v8673_v9 = vsel %vm4114_vm9, %v8604_v43, %v8672_v24 }
 0x645   : > { %v8726_v44 = vrot.slane %v8724_v11, 2  ;;  %v8729_v12 = vrot.slane %v8727_v58, 3  ;;  %v13323_v58 = vld [vmem:[%s17133_s4 + $0x218] sm:$0xff]  }
 0x646   : > { %10927 = vmatmul.mubr.bf16.gmra.mrb[76].mxu1 %v9717_v34  ;;  %v8202_v34 = vrot.slane %v17386_v28, 6 }
 0x647   : > { %10934 = vmatprep.mubr.bf16.mxu1 %v9725_v1  ;;  %v8605_v1 = vsel %vm4114_vm9, %v8596_v47, %v8604_v43  ;;  %v17389_v47 = vshll.u32 %v16439_v56, 16  ;;  %v8730_v26 = vor.u32 %v8729_v12, %v8726_v44 }
 0x648   : > { %v8204_v21 = vor.u32 %v8203_v45, %v8202_v34  ;;  %v17390_v34 = vshrl.u32 %v16472_v10, 16  ;;  %v17391_v45 = vshll.u32 %v16472_v10, 16 }
 0x649   : > { %v8731_v4 = vsel %vm4114_vm9, %v8672_v24, %v8730_v26 }
 0x64a   : > { %v8205_v16 = vsel %vm3820_vm13, %v8200_v38, %v8204_v21  ;;  %v13322_v38 = vld [vmem:[%s17133_s4 + $0x210] sm:$0xff]   ;;  %v8210_v62 = vrot.slane %v17390_v34, 6  ;;  %v8211_v11 = vrot.slane %v17391_v45, 7  ;;  %v17395_v34 = vshll.u32 %v16520_v29, 16  ;;  %v13329_v45 = vld [vmem:[%s17133_s4 + $0x238] sm:$0xff]  }
 0x64b   : > { %v8782_v43 = vshrl.u32 %v8205_v16, 16  ;;  %v8785_v0 = vshll.u32 %v8205_v16, 16  ;;  %v17392_v16 = vshrl.u32 %v16489_v54, 16 }
 0x64d   : > { %v8784_v25 = vrot.slane %v8782_v43, 2  ;;  %v8787_v27 = vrot.slane %v8785_v0, 3  ;;  %v13326_v0 = vld [vmem:[%s17133_s4 + $0x230] sm:$0xff]  }
 0x64e   : > { %10935 = vmatmul.mubr.bf16.gmra.mrb[80].mxu1 %v9716_v55  ;;  %v13320_v55 = vld [vmem:[%s17133_s4 + $0x200] sm:$0xff]  }
 0x64f   : > { %10974 = vmatprep.mubr.bf16.mxu1 %v8605_v1  ;;  %v8207_v1 = vrot.slane %v17389_v47, 7  ;;  %v13325_v47 = vld [vmem:[%s17133_s4 + $0x228] sm:$0xff]  }
 0x651   : > { %v8208_v32 = vor.u32 %v8207_v1, %v8206_v59  ;;  %v8215_v59 = vrot.slane %v17393_v15, 7 }
 0x653   : > { %v8209_v28 = vsel %vm3820_vm13, %v8204_v21, %v8208_v32  ;;  %v13324_v21 = vld [vmem:[%s17133_s4 + $0x220] sm:$0xff]  }
 0x654   : > { %v8840_v24 = vshrl.u32 %v8209_v28, 16  ;;  %v8843_v53 = vshll.u32 %v8209_v28, 16 }
 0x656   : > { %10975 = vmatmul.mubr.bf16.vlgmr.msra.gmra.mrb[0].mxu1 %v8588_v50  ;;  %v8845_v44 = vrot.slane %v8843_v53, 3 }
 0x657   : > { %10982 = vmatprep.mubr.bf16.mxu1 %v8673_v9  ;;  %12237 = vmatpush3.bf16.msra.mxu1 %v13320_v55  ;;  %v8212_v55 = vor.u32 %v8211_v11, %v8210_v62  ;;  %v8842_v9 = vrot.slane %v8840_v24, 2  ;;  %v8219_v62 = vrot.slane %v17395_v34, 7 }
 0x658   : > { %12238 = vmatprep.subr.bf16.mxu1 %v17368_v41 }
 0x659   : > { %v8213_v12 = vsel %vm3820_vm13, %v8208_v32, %v8212_v55 }
 0x65a   : > { %v8898_v1 = vshrl.u32 %v8213_v12, 16 }
 0x65b   : > { %12239 = vmatpush3.bf16.msra.mxu1 %v13321_v33  ;;  %v8214_v33 = vrot.slane %v17392_v16, 6 }
 0x65c   : > { %12240 = vmatprep.subr.bf16.mxu1 %v17368_v41 }
 0x65d   : > { %v8216_v43 = vor.u32 %v8215_v59, %v8214_v33 }
 0x65e   : > { %10983 = vmatmul.mubr.bf16.gmra.mrb[4].mxu1 %v16449_v46  ;;  %v8788_v46 = vor.u32 %v8787_v27, %v8784_v25  ;;  %v17394_v27 = vshrl.u32 %v16520_v29, 16 }
 0x65f   : > { %10990 = vmatprep.mubr.bf16.mxu1 %v8731_v4  ;;  %12241 = vmatpush3.bf16.msra.mxu1 %v13322_v38  ;;  %v8900_v38 = vrot.slane %v8898_v1, 2  ;;  %v8217_v25 = vsel %vm3820_vm13, %v8212_v55, %v8216_v43 }
 0x660   : > { %12242 = vmatprep.subr.bf16.mxu1 %v17368_v41  ;;  %v8789_v50 = vsel %vm4114_vm9, %v8730_v26, %v8788_v46  ;;  %v8901_v26 = vshll.u32 %v8213_v12, 16  ;;  %v8218_v28 = vrot.slane %v17394_v27, 6  ;;  %v8956_v11 = vshrl.u32 %v8217_v25, 16 }
 0x662   : > { %v8903_v4 = vrot.slane %v8901_v26, 3  ;;  %v8958_v53 = vrot.slane %v8956_v11, 2  ;;  %v17398_v26 = vshrl.u32 %v16568_v5, 16  ;;  %v17401_v11 = vshll.u32 %v16585_v61, 16 }
 0x663   : > { %12243 = vmatpush3.bf16.msra.mxu1 %v13323_v58  ;;  %v8959_v58 = vshll.u32 %v8217_v25, 16 }
 0x664   : > { %12244 = vmatprep.subr.bf16.mxu1 %v17368_v41 }
 0x665   : > { %v8961_v55 = vrot.slane %v8959_v58, 3  ;;  %v8231_v58 = vrot.slane %v17401_v11, 7 }
 0x666   : > { %10991 = vmatmul.mubr.bf16.gmra.mrb[8].mxu1 %v16467_v19  ;;  %v8846_v19 = vor.u32 %v8845_v44, %v8842_v9  ;;  %v17397_v44 = vshll.u32 %v16537_v48, 16 }
 0x667   : > { %10998 = vmatprep.mubr.bf16.mxu1 %v8789_v50  ;;  %12245 = vmatpush3.bf16.msra.mxu1 %v13324_v21  ;;  %v17396_v50 = vshrl.u32 %v16537_v48, 16  ;;  %v8962_v16 = vor.u32 %v8961_v55, %v8958_v53 }
 0x668   : > { %12246 = vmatprep.subr.bf16.mxu1 %v17368_v41  ;;  %v8847_v32 = vsel %vm4114_vm9, %v8788_v46, %v8846_v19  ;;  %v8220_v46 = vor.u32 %v8219_v62, %v8218_v28  ;;  %v8223_v12 = vrot.slane %v17397_v44, 7  ;;  %v17402_v44 = vshrl.u32 %v16617_v37, 16 }
 0x669   : > { %v8222_v9 = vrot.slane %v17396_v50, 6 }
 0x66a   : > { %v8221_v21 = vsel %vm3820_vm13, %v8216_v43, %v8220_v46  ;;  %v8226_v43 = vrot.slane %v17398_v26, 6 }
 0x66b   : > { %12247 = vmatpush3.bf16.msra.mxu1 %v13325_v47  ;;  %v9014_v33 = vshrl.u32 %v8221_v21, 16  ;;  %v9017_v15 = vshll.u32 %v8221_v21, 16  ;;  %v8224_v59 = vor.u32 %v8223_v12, %v8222_v9  ;;  %v8234_v12 = vrot.slane %v17402_v44, 6 }
 0x66c   : > { %12248 = vmatprep.subr.bf16.mxu1 %v17368_v41 }
 0x66d   : > { %v9016_v47 = vrot.slane %v9014_v33, 2  ;;  %v8225_v1 = vsel %vm3820_vm13, %v8220_v46, %v8224_v59 }
 0x66e   : > { %10999 = vmatmul.mubr.bf16.gmra.mrb[12].mxu1 %v16498_v63  ;;  %v8904_v63 = vor.u32 %v8903_v4, %v8900_v38  ;;  %v9072_v4 = vshrl.u32 %v8225_v1, 16  ;;  %v9075_v25 = vshll.u32 %v8225_v1, 16 }
 0x66f   : > { %11006 = vmatprep.mubr.bf16.mxu1 %v8847_v32  ;;  %12249 = vmatpush3.bf16.msra.mxu1 %v13326_v0  ;;  %v17399_v0 = vshll.u32 %v16568_v5, 16 }
 0x670   : > { %12250 = vmatprep.subr.bf16.mxu1 %v17368_v41  ;;  %v8905_v24 = vsel %vm4114_vm9, %v8846_v19, %v8904_v63  ;;  %v9019_v19 = vrot.slane %v9017_v15, 3  ;;  %v9074_v28 = vrot.slane %v9072_v4, 2  ;;  %v9077_v34 = vrot.slane %v9075_v25, 3 }
 0x671   : > { %v8227_v32 = vrot.slane %v17399_v0, 7 }
 0x672   : > { %v9020_v38 = vor.u32 %v9019_v19, %v9016_v47  ;;  %v9078_v46 = vor.u32 %v9077_v34, %v9074_v28 }
 0x673   : > { %12251 = vmatpush3.bf16.msra.mxu1 %v13329_v45  ;;  %v8228_v27 = vor.u32 %v8227_v32, %v8226_v43  ;;  %v17400_v45 = vshrl.u32 %v16585_v61, 16  ;;  %v17404_v43 = vshrl.u32 %v16633_v42, 16  ;;  %v17405_v32 = vshll.u32 %v16633_v42, 16 }
 0x675   : > { %v8229_v62 = vsel %vm3820_vm13, %v8224_v59, %v8228_v27  ;;  %v8238_v0 = vrot.slane %v17404_v43, 6 }
 0x676   : > { %11007 = vmatmul.mubr.bf16.gmra.mrb[16].mxu1 %v16515_v39  ;;  %v8963_v39 = vsel %vm4114_vm9, %v8904_v63, %v8962_v16  ;;  %v8230_v63 = vrot.slane %v17400_v45, 6  ;;  %v9133_v53 = vshll.u32 %v8229_v62, 16 }
 0x677   : > { %11014 = vmatprep.mubr.bf16.mxu1 %v8905_v24  ;;  %v9130_v24 = vshrl.u32 %v8229_v62, 16 }
 0x678   : > { %v8232_v55 = vor.u32 %v8231_v58, %v8230_v63  ;;  %v9135_v50 = vrot.slane %v9133_v53, 3 }
 0x679   : > { %v9132_v21 = vrot.slane %v9130_v24, 2 }
 0x67a   : > { %v8233_v9 = vsel %vm3820_vm13, %v8228_v27, %v8232_v55 }
 0x67b   : > { %v9136_v15 = vor.u32 %v9135_v50, %v9132_v21  ;;  %v9188_v59 = vshrl.u32 %v8233_v9, 16 }
 0x67d   : > { %v9190_v19 = vrot.slane %v9188_v59, 2 }
 0x67e   : > { %11015 = vmatmul.mubr.bf16.gmra.mrb[20].mxu1 %v16546_v22  ;;  %v9021_v22 = vsel %vm4114_vm9, %v8962_v16, %v9020_v38  ;;  %v17403_v16 = vshll.u32 %v16617_v37, 16 }
 0x67f   : > { %11022 = vmatprep.mubr.bf16.mxu1 %v8963_v39  ;;  %v9191_v39 = vshll.u32 %v8233_v9, 16 }
 0x680   : > { %v8235_v33 = vrot.slane %v17403_v16, 7 }
 0x681   : > { %v9193_v1 = vrot.slane %v9191_v39, 3  ;;  %v16873_v39 = vld [vmem:[#allocation4 + $0xb0] sm:$0xff]  }
 0x682   : > { %v8236_v47 = vor.u32 %v8235_v33, %v8234_v12  ;;  %v17406_v33 = vld [vmem:[#allocation9_spill] sm:$0xff] }
 0x683   : > { %v9194_v4 = vor.u32 %v9193_v1, %v9190_v19 }
 0x684   : > { %v8237_v26 = vsel %vm3820_vm13, %v8232_v55, %v8236_v47 }
 0x685   : > { %v9246_v25 = vshrl.u32 %v8237_v26, 16  ;;  %v9249_v27 = vshll.u32 %v8237_v26, 16 }
 0x686   : > { %11023 = vmatmul.mubr.bf16.gmra.mrb[24].mxu1 %v16563_v18  ;;  %v9079_v18 = vsel %vm4114_vm9, %v9020_v38, %v9078_v46  ;;  %v8239_v38 = vrot.slane %v17405_v32, 7 }
 0x687   : > { %11030 = vmatprep.mubr.bf16.mxu1 %v9021_v22  ;;  %v9248_v28 = vrot.slane %v9246_v25, 2  ;;  %v9251_v34 = vrot.slane %v9249_v27, 3  ;;  %v17410_v27 = vld [vmem:[#allocation56_spill] sm:$0xff] }
 0x688   : > { %v8240_v22 = vor.u32 %v8239_v38, %v8238_v0 }
 0x689   : > { %v9252_v45 = vor.u32 %v9251_v34, %v9248_v28 }
 0x68a   : > { %v8241_v62 = vsel %vm3820_vm13, %v8236_v47, %v8240_v22 }
 0x68b   : > { %v9304_v63 = vshrl.u32 %v8241_v62, 16  ;;  %v9307_v11 = vshll.u32 %v8241_v62, 16  ;;  %v9253_v58 = vsel %vm4114_vm9, %v9194_v4, %v9252_v45 }
 0x68d   : > { %v9309_v24 = vrot.slane %v9307_v11, 3 }
 0x68e   : > { %11031 = vmatmul.mubr.bf16.gmra.mrb[28].mxu1 %v16591_v3  ;;  %v9137_v3 = vsel %vm4114_vm9, %v9078_v46, %v9136_v15  ;;  %v9306_v46 = vrot.slane %v9304_v63, 2  ;;  %v17411_v63 = vld [vmem:[#allocation55_spill] sm:$0xff] }
 0x68f   : > { %11038 = vmatprep.mubr.bf16.mxu1 %v9079_v18 }
 0x690   : > { %v9310_v53 = vor.u32 %v9309_v24, %v9306_v46  ;;  %v8283_v46 = vrot.slane %v16721_v49, 7 }
 0x692   : > { %v9311_v21 = vsel %vm4114_vm9, %v9252_v45, %v9310_v53 }
 0x696   : > { %11039 = vmatmul.mubr.bf16.gmra.mrb[32].mxu1 %v16614_v57  ;;  %v9195_v57 = vsel %vm4114_vm9, %v9136_v15, %v9194_v4  ;;  %v17407_v15 = vld [vmem:[#allocation53_spill] sm:$0xff] }
 0x697   : > { %11046 = vmatprep.mubr.bf16.mxu1 %v9137_v3 }
 0x69e   : > { %11047 = vmatmul.mubr.bf16.gmra.mrb[36].mxu1 %v16624_v40  ;;  %v8245_v40 = vsel %vm3820_vm13, %v8240_v22, %v16334_v8 }
 0x69f   : > { %11054 = vmatprep.mubr.bf16.mxu1 %v9195_v57  ;;  %v9362_v55 = vshrl.u32 %v8245_v40, 16  ;;  %v9365_v18 = vshll.u32 %v8245_v40, 16 }
 0x6a1   : > { %v9364_v50 = vrot.slane %v9362_v55, 2  ;;  %v9367_v9 = vrot.slane %v9365_v18, 3  ;;  %v8286_v55 = vrot.slane %v16396_v13, 7  ;;  %v8607_v18 = vshrl.u32 %v8283_v46, 16 }
 0x6a3   : > { %v9368_v44 = vor.u32 %v9367_v9, %v9364_v50 }
 0x6a5   : > { %v9427_v8 = vsel %vm4114_vm9, %v9368_v44, %v16352_v23 }
 0x6a6   : > { %11055 = vmatmul.mubr.bf16.gmra.mrb[40].mxu1 %v16641_v52  ;;  %v9369_v52 = vsel %vm4114_vm9, %v9310_v53, %v9368_v44 }
 0x6a7   : > { %11062 = vmatprep.mubr.bf16.mxu1 %v9253_v58  ;;  %v8284_v58 = vrot.slane %v16169_v17, 7  ;;  %v8609_v17 = vrot.slane %v8607_v18, 2 }
 0x6a9   : > { %v8285_v40 = vsel %vm670_vm6, %v8283_v46, %v8284_v58  ;;  %v8287_v44 = vsel %vm670_vm6, %v8284_v58, %v8286_v55 }
 0x6aa   : > { %v8615_v53 = vshrl.u32 %v8285_v40, 16 }
 0x6ac   : > { %v8617_v50 = vrot.slane %v8615_v53, 2 }
 0x6ae   : > { %11063 = vmatmul.mubr.bf16.gmra.mrb[44].mxu1 %v16658_v36  ;;  %v13328_v36 = vld [vmem:[#allocation4 + $0xb8] ss:$0 sps:$4 sm:$0x77]  }
 0x6af   : > { %11070 = vmatprep.mubr.bf16.mxu1 %v9311_v21  ;;  %v8272_v12 = vshrl.u32 %v13328_v36, 16  ;;  %v8275_v16 = vshll.u32 %v13328_v36, 16  ;;  %v8177_v0 = vrot.slane %v13328_v36, 6  ;;  %v8610_v21 = vshll.u32 %v8283_v46, 16 }
 0x6b0   : > { %v8678_v36 = vshll.u32 %v8287_v44, 16 }
 0x6b1   : > { %v8277_v59 = vrot.slane %v8275_v16, 7  ;;  %v8612_v49 = vrot.slane %v8610_v21, 3 }
 0x6b3   : > { %v8613_v16 = vor.u32 %v8612_v49, %v8609_v17 }
 0x6b6   : > { %11071 = vmatmul.mubr.bf16.gmra.mrb[48].mxu1 %v16666_v60  ;;  %v8274_v60 = vrot.slane %v8272_v12, 6  ;;  %v8288_v12 = vrot.slane %v16405_v20, 7 }
 0x6b7   : > { %11078 = vmatprep.mubr.bf16.mxu1 %v9369_v52 }
 0x6b8   : > { %v8278_v47 = vor.u32 %v8277_v59, %v8274_v60  ;;  %v8289_v60 = vsel %vm670_vm6, %v8286_v55, %v8288_v12 }
 0x6be   : > { %11079 = vmatmul.mubr.bf16.gmra.mrb[52].mxu1 %v16677_v14  ;;  %v8175_v14 = vrot.slane %v16873_v39, 6 }
 0x6bf   : > { %11086 = vmatprep.mubr.bf16.mxu1 %v9427_v8  ;;  %v8675_v8 = vshrl.u32 %v8287_v44, 16 }
 0x6c0   : > { %v8176_v23 = vsel %vm3763_vm11, %v16699_v6, %v8175_v14 }
 0x6c1   : > { %v9652_v19 = vshrl.u32 %v8176_v23, 16  ;;  %v9655_v1 = vshll.u32 %v8176_v23, 16  ;;  %v8290_v23 = vrot.slane %v16422_v30, 7 }
 0x6c3   : > { %v9654_v32 = vrot.slane %v9652_v19, 2  ;;  %v9657_v38 = vrot.slane %v9655_v1, 3 }
 0x6c5   : > { %v9658_v6 = vor.u32 %v9657_v38, %v9654_v32 }
 0x6c6   : > { %11087 = vmatmul.mubr.bf16.gmra.mrb[56].mxu1 %v16694_v51  ;;  %v17409_v51 = vld [vmem:[#allocation52_spill] sm:$0xff] }
 0x6c7   : > { %11094 = vmatprep.mubr.bf16.mxu1 %v16357_v31  ;;  %v17408_v31 = vld [vmem:[#allocation54_spill] sm:$0xff]  ;;  %v8279_v3 = vsel %vm3820_vm13, %v17409_v51, %v8278_v47  ;;  %v9659_v34 = vsel %vm4114_vm9, %v16723_v7, %v9658_v6  ;;  %v8618_v7 = vshll.u32 %v8285_v40, 16  ;;  %v8736_v47 = vshll.u32 %v8289_v60, 16 }
 0x6c8   : > { %v9737_v26 = vshrl.u32 %v8279_v3, 16  ;;  %v9740_v43 = vshll.u32 %v8279_v3, 16  ;;  %v8291_v3 = vsel %vm670_vm6, %v8288_v12, %v8290_v23  ;;  %v8298_v40 = vrot.slane %v16520_v29, 7 }
 0x6c9   : > { %v8620_v9 = vrot.slane %v8618_v7, 3  ;;  %v8738_v20 = vrot.slane %v8736_v47, 3  ;;  %v8791_v1 = vshrl.u32 %v8291_v3, 16  ;;  %v8302_v12 = vrot.slane %v16568_v5, 7 }
 0x6ca   : > { %v9739_v4 = vrot.slane %v9737_v26, 2  ;;  %v9742_v25 = vrot.slane %v9740_v43, 3  ;;  %v8794_v26 = vshll.u32 %v8291_v3, 16  ;;  %v8292_v43 = vrot.slane %v16439_v56, 7 }
 0x6cb   : > { %v8621_v52 = vor.u32 %v8620_v9, %v8617_v50  ;;  %v8793_v32 = vrot.slane %v8791_v1, 2  ;;  %v8300_v9 = vrot.slane %v16537_v48, 7 }
 0x6cc   : > { %v9743_v28 = vor.u32 %v9742_v25, %v9739_v4  ;;  %v8796_v38 = vrot.slane %v8794_v26, 3  ;;  %v8293_v30 = vsel %vm670_vm6, %v8290_v23, %v8292_v43 }
 0x6cd   : > { %v8622_v13 = vsel %vm4114_vm9, %v8613_v16, %v8621_v52  ;;  %v8849_v25 = vshrl.u32 %v8293_v30, 16  ;;  %v8301_v29 = vsel %vm670_vm6, %v8298_v40, %v8300_v9  ;;  %v8303_v48 = vsel %vm670_vm6, %v8300_v9, %v8302_v12 }
 0x6ce   : > { %11095 = vmatmul.mubr.bf16.gmra.mrb[60].mxu1 %v17406_v33  ;;  %v9744_v11 = vsel %vm4114_vm9, %v17411_v63, %v9743_v28  ;;  %v8677_v33 = vrot.slane %v8675_v8, 2  ;;  %v8797_v4 = vor.u32 %v8796_v38, %v8793_v32  ;;  %v9081_v8 = vshrl.u32 %v8301_v29, 16 }
 0x6cf   : > { %11102 = vmatprep.mubr.bf16.mxu1 %v17407_v15  ;;  %v8680_v15 = vrot.slane %v8678_v36, 3  ;;  %v9084_v36 = vshll.u32 %v8301_v29, 16 }
 0x6d1   : > { %v8681_v59 = vor.u32 %v8680_v15, %v8677_v33  ;;  %v9086_v33 = vrot.slane %v9084_v36, 3 }
 0x6d6   : > { %11103 = vmatmul.mubr.bf16.gmra.mrb[64].mxu1 %v16715_v2  ;;  %v8178_v2 = vsel %vm3763_vm11, %v8175_v14, %v8177_v0  ;;  %v8733_v14 = vshrl.u32 %v8289_v60, 16  ;;  %v9139_v60 = vshrl.u32 %v8303_v48, 16 }
 0x6d7   : > { %11110 = vmatprep.mubr.bf16.mxu1 %v17408_v31  ;;  %v9728_v22 = vshrl.u32 %v8178_v2, 16  ;;  %v9731_v57 = vshll.u32 %v8178_v2, 16  ;;  %v8682_v31 = vsel %vm4114_vm9, %v8621_v52, %v8681_v59  ;;  %v8852_v2 = vshll.u32 %v8293_v30, 16 }
 0x6d8   : > { %v8735_v51 = vrot.slane %v8733_v14, 2  ;;  %v8304_v14 = vrot.slane %v16585_v61, 7  ;;  %v9141_v23 = vrot.slane %v9139_v60, 2  ;;  %v8308_v30 = vrot.slane %v16633_v42, 7  ;;  %v17416_v60 = vld [vmem:[#allocation47_spill] sm:$0xff] }
 0x6d9   : > { %v9730_v62 = vrot.slane %v9728_v22, 2  ;;  %v9733_v45 = vrot.slane %v9731_v57, 3  ;;  %v8851_v22 = vrot.slane %v8849_v25, 2  ;;  %v8854_v57 = vrot.slane %v8852_v2, 3 }
 0x6da   : > { %v8739_v19 = vor.u32 %v8738_v20, %v8735_v51  ;;  %v8305_v5 = vsel %vm670_vm6, %v8302_v12, %v8304_v14 }
 0x6db   : > { %v9197_v20 = vshrl.u32 %v8305_v5, 16  ;;  %v9200_v3 = vshll.u32 %v8305_v5, 16 }
 0x6dc   : > { %v8740_v0 = vsel %vm4114_vm9, %v8681_v59, %v8739_v19  ;;  %v9142_v59 = vshll.u32 %v8303_v48, 16 }
 0x6dd   : > { %v9199_v26 = vrot.slane %v9197_v20, 2 }
 0x6de   : > { %11111 = vmatmul.mubr.bf16.gmra.mrb[68].mxu1 %v16731_v35  ;;  %v9734_v35 = vor.u32 %v9733_v45, %v9730_v62  ;;  %v8296_v45 = vrot.slane %v16489_v54, 7 }
 0x6df   : > { %11118 = vmatprep.mubr.bf16.mxu1 %v17410_v27  ;;  %v8294_v27 = vrot.slane %v16472_v10, 7 }
 0x6e0   : > { %v9735_v24 = vsel %vm4114_vm9, %v9658_v6, %v9734_v35  ;;  %v8798_v6 = vsel %vm4114_vm9, %v8739_v19, %v8797_v4  ;;  %v8299_v54 = vsel %vm670_vm6, %v8296_v45, %v8298_v40  ;;  %v8306_v19 = vrot.slane %v16617_v37, 7 }
 0x6e1   : > { %v8295_v56 = vsel %vm670_vm6, %v8292_v43, %v8294_v27  ;;  %v8297_v10 = vsel %vm670_vm6, %v8294_v27, %v8296_v45  ;;  %v9023_v21 = vshrl.u32 %v8299_v54, 16  ;;  %v9026_v50 = vshll.u32 %v8299_v54, 16  ;;  %v17414_v54 = vld [vmem:[#allocation50_spill] sm:$0xff] }
 0x6e2   : > { %v8910_v62 = vshll.u32 %v8295_v56, 16  ;;  %v8965_v46 = vshrl.u32 %v8297_v10, 16  ;;  %v9202_v43 = vrot.slane %v9200_v3, 3  ;;  %v8307_v61 = vsel %vm670_vm6, %v8304_v14, %v8306_v19 }
 0x6e3   : > { %v9025_v17 = vrot.slane %v9023_v21, 2  ;;  %v9028_v49 = vrot.slane %v9026_v50, 3  ;;  %v9255_v32 = vshrl.u32 %v8307_v61, 16  ;;  %v9258_v38 = vshll.u32 %v8307_v61, 16  ;;  %v13330_v61 = vld [vmem:[#allocation4 + $0xb8] ss:$0 sps:$4 sm:$0xff]  }
 0x6e4   : > { %v8967_v7 = vrot.slane %v8965_v46, 2  ;;  %v8309_v37 = vsel %vm670_vm6, %v8306_v19, %v8308_v30  ;;  %v8320_v3 = vrot.slane %v16873_v39, 7 }
 0x6e5   : > { %v9029_v52 = vor.u32 %v9028_v49, %v9025_v17  ;;  %v9257_v25 = vrot.slane %v9255_v32, 2  ;;  %v9260_v2 = vrot.slane %v9258_v38, 3 }
 0x6e6   : > { %11119 = vmatmul.mubr.bf16.gmra.mrb[72].mxu1 %v9659_v34  ;;  %v8907_v34 = vshrl.u32 %v8295_v56, 16 }
 0x6e7   : > { %11126 = vmatprep.mubr.bf16.mxu1 %v9744_v11  ;;  %v9261_v27 = vor.u32 %v9260_v2, %v9257_v25 }
 0x6e8   : > { %v8909_v11 = vrot.slane %v8907_v34, 2 }
 0x6ee   : > { %11127 = vmatmul.mubr.bf16.gmra.mrb[76].mxu1 %v9735_v24  ;;  %v8968_v24 = vshll.u32 %v8297_v10, 16 }
 0x6ef   : > { %11134 = vmatprep.mubr.bf16.mxu1 %v9743_v28  ;;  %v8855_v28 = vor.u32 %v8854_v57, %v8851_v22  ;;  %v9316_v22 = vshll.u32 %v8309_v37, 16  ;;  %v17412_v57 = vld [vmem:[#allocation48_spill] sm:$0xff] }
 0x6f0   : > { %v8970_v55 = vrot.slane %v8968_v24, 3  ;;  %v8310_v56 = vrot.slane %v17412_v57, 7 }
 0x6f1   : > { %v8856_v63 = vsel %vm4114_vm9, %v8797_v4, %v8855_v28 }
 0x6f2   : > { %v8971_v18 = vor.u32 %v8970_v55, %v8967_v7  ;;  %v8311_v42 = vsel %vm670_vm6, %v8308_v30, %v8310_v56  ;;  %v8322_v30 = vrot.slane %v13330_v61, 7  ;;  %v17424_v61 = vld [vmem:[#allocation13_spill] sm:$0xff] }
 0x6f4   : > { %v9030_v16 = vsel %vm4114_vm9, %v8971_v18, %v9029_v52  ;;  %v8323_v39 = vsel %vm670_vm6, %v8320_v3, %v8322_v30 }
 0x6f6   : > { %11135 = vmatmul.mubr.bf16.gmra.mrb[80].mxu1 %v9734_v35  ;;  %v8912_v35 = vrot.slane %v8910_v62, 3  ;;  %v9318_v62 = vrot.slane %v9316_v22, 3 }
 0x6f7   : > { %12252 = vmatprep.mubr.msk.bf16.mxu1 %vm13414_vm14, %v17368_v41 }
 0x6f8   : > { %v8913_v58 = vor.u32 %v8912_v35, %v8909_v11  ;;  %v9374_v11 = vshll.u32 %v8311_v42, 16  ;;  %v17413_v35 = vld [vmem:[#allocation49_spill] sm:$0xff] }
 0x6f9   : > { %v8312_v10 = vrot.slane %v17413_v35, 7 }
 0x6fa   : > { %v8914_v53 = vsel %vm4114_vm9, %v8855_v28, %v8913_v58  ;;  %v8972_v44 = vsel %vm4114_vm9, %v8913_v58, %v8971_v18  ;;  %v9376_v24 = vrot.slane %v9374_v11, 3  ;;  %v8314_v18 = vrot.slane %v17414_v54, 7 }
 0x6fb   : > { %v8313_v40 = vsel %vm670_vm6, %v8310_v56, %v8312_v10 }
 0x6fc   : > { %v9429_v7 = vshrl.u32 %v8313_v40, 16  ;;  %v9432_v55 = vshll.u32 %v8313_v40, 16  ;;  %v17418_v40 = vld [vmem:[#allocation6_spill] sm:$0xff] }
 0x6fe   : > { %12253 = vmatmul.mubr.bf16.vlgmr.msra.gmra.mrb[0].mxu1 %v8622_v13  ;;  %v9083_v13 = vrot.slane %v9081_v8, 2  ;;  %v9431_v50 = vrot.slane %v9429_v7, 2  ;;  %v9434_v9 = vrot.slane %v9432_v55, 3 }
 0x6ff   : > { %12256 = vmatprep.mubr.msk.bf16.mxu1 %vm13414_vm14, %v17368_v41 }
 0x700   : > { %v9087_v15 = vor.u32 %v9086_v33, %v9083_v13  ;;  %v9435_v17 = vor.u32 %v9434_v9, %v9431_v50 }
 0x702   : > { %v9088_v47 = vsel %vm4114_vm9, %v9029_v52, %v9087_v15  ;;  %v17415_v52 = vld [vmem:[#allocation51_spill] sm:$0xff] }
 0x703   : > { %v8316_v8 = vrot.slane %v17415_v52, 7 }
 0x705   : > { %v8317_v13 = vsel %vm670_vm6, %v8314_v18, %v8316_v8 }
 0x706   : > { %12257 = vmatmul.mubr.bf16.gmra.mrb[4].mxu1 %v8682_v31  ;;  %v9144_v31 = vrot.slane %v9142_v59, 3  ;;  %v9545_v48 = vshrl.u32 %v8317_v13, 16  ;;  %v8318_v59 = vrot.slane %v17416_v60, 7 }
 0x707   : > { %12260 = vmatprep.mubr.msk.bf16.mxu1 %vm13414_vm14, %v17368_v41 }
 0x708   : > { %v9145_v51 = vor.u32 %v9144_v31, %v9141_v23  ;;  %v8319_v31 = vsel %vm670_vm6, %v8316_v8, %v8318_v59 }
 0x709   : > { %v9606_v20 = vshll.u32 %v8319_v31, 16 }
 0x70a   : > { %v9146_v1 = vsel %vm4114_vm9, %v9087_v15, %v9145_v51  ;;  %v9548_v15 = vshll.u32 %v8317_v13, 16 }
 0x70c   : > { %v9550_v23 = vrot.slane %v9548_v15, 3  ;;  %v17421_v15 = vld [vmem:[#allocation10_spill] sm:$0xff] }
 0x70e   : > { %12261 = vmatmul.mubr.bf16.gmra.mrb[8].mxu1 %v8740_v0  ;;  %v9203_v0 = vor.u32 %v9202_v43, %v9199_v26  ;;  %v9608_v26 = vrot.slane %v9606_v20, 3  ;;  %v8321_v43 = vsel %vm670_vm6, %v8318_v59, %v8320_v3 }
 0x70f   : > { %12264 = vmatprep.mubr.msk.bf16.mxu1 %vm13414_vm14, %v17368_v41  ;;  %v9670_v32 = vshrl.u32 %v8321_v43, 16  ;;  %v9673_v38 = vshll.u32 %v8321_v43, 16 }
 0x710   : > { %v9204_v4 = vsel %vm4114_vm9, %v9145_v51, %v9203_v0  ;;  %v9262_v28 = vsel %vm4114_vm9, %v9203_v0, %v9261_v27  ;;  %v9603_v51 = vshrl.u32 %v8319_v31, 16 }
 0x711   : > { %v9672_v25 = vrot.slane %v9670_v32, 2  ;;  %v9675_v2 = vrot.slane %v9673_v38, 3 }
 0x716   : > { %12265 = vmatmul.mubr.bf16.gmra.mrb[12].mxu1 %v8798_v6  ;;  %v9313_v6 = vshrl.u32 %v8309_v37, 16  ;;  %v9676_v37 = vor.u32 %v9675_v2, %v9672_v25 }
 0x717   : > { %12268 = vmatprep.mubr.msk.bf16.mxu1 %vm13414_vm14, %v17368_v41 }
 0x718   : > { %v9315_v34 = vrot.slane %v9313_v6, 2  ;;  %v9749_v6 = vshll.u32 %v8323_v39, 16 }
 0x71a   : > { %v9319_v45 = vor.u32 %v9318_v62, %v9315_v34  ;;  %v9751_v56 = vrot.slane %v9749_v6, 3  ;;  %v16995_v62 = vld [vmem:[%s17134_s5] ss:$0 sm:$0xff] }
 0x71c   : > { %v9320_v58 = vsel %vm4114_vm9, %v9261_v27, %v9319_v45  ;;  %v9746_v27 = vshrl.u32 %v8323_v39, 16 }
 0x71e   : > { %12269 = vmatmul.mubr.bf16.gmra.mrb[16].mxu1 %v8856_v63  ;;  %v9371_v63 = vshrl.u32 %v8311_v42, 16  ;;  %v9748_v57 = vrot.slane %v9746_v27, 2 }
 0x71f   : > { %12272 = vmatprep.mubr.msk.bf16.mxu1 %vm13414_vm14, %v17368_v41 }
 0x720   : > { %v9373_v46 = vrot.slane %v9371_v63, 2 }
 0x726   : > { %12273 = vmatmul.mubr.bf16.gmra.mrb[20].mxu1 %v8914_v53  ;;  %v9377_v53 = vor.u32 %v9376_v24, %v9373_v46 }
 0x727   : > { %12276 = vmatprep.mubr.msk.bf16.mxu1 %vm13414_vm14, %v17368_v41 }
 0x728   : > { %v9378_v21 = vsel %vm4114_vm9, %v9319_v45, %v9377_v53  ;;  %v9436_v36 = vsel %vm4114_vm9, %v9377_v53, %v9435_v17 }
 0x72e   : > { %12277 = vmatmul.mubr.bf16.gmra.mrb[24].mxu1 %v8972_v44  ;;  %v8315_v44 = vsel %vm670_vm6, %v8312_v10, %v8314_v18 }
 0x72f   : > { %12280 = vmatprep.mubr.msk.bf16.mxu1 %vm13414_vm14, %v17368_v41  ;;  %v9487_v49 = vshrl.u32 %v8315_v44, 16  ;;  %v9490_v29 = vshll.u32 %v8315_v44, 16  ;;  %v17419_v44 = vld [vmem:[#allocation7_spill] sm:$0xff] }
 0x731   : > { %v9489_v12 = vrot.slane %v9487_v49, 2 }
 0x736   : > { %12281 = vmatmul.mubr.bf16.gmra.mrb[28].mxu1 %v9030_v16  ;;  %v9492_v16 = vrot.slane %v9490_v29, 3  ;;  %v17420_v29 = vld [vmem:[#allocation8_spill] sm:$0xff] }
 0x737   : > { %12284 = vmatprep.mubr.msk.bf16.mxu1 %vm13414_vm14, %v17368_v41 }
 0x738   : > { %v9493_v33 = vor.u32 %v9492_v16, %v9489_v12 }
 0x73a   : > { %v9494_v14 = vsel %vm4114_vm9, %v9435_v17, %v9493_v33 }
 0x73e   : > { %12285 = vmatmul.mubr.bf16.gmra.mrb[32].mxu1 %v9088_v47  ;;  %v9547_v47 = vrot.slane %v9545_v48, 2 }
 0x73f   : > { %12288 = vmatprep.mubr.msk.bf16.mxu1 %vm13414_vm14, %v17368_v41 }
 0x740   : > { %v9551_v5 = vor.u32 %v9550_v23, %v9547_v47 }
 0x742   : > { %v9552_v19 = vsel %vm4114_vm9, %v9493_v33, %v9551_v5 }
 0x746   : > { %12289 = vmatmul.mubr.bf16.gmra.mrb[36].mxu1 %v9146_v1  ;;  %v9605_v1 = vrot.slane %v9603_v51, 2 }
 0x747   : > { %12292 = vmatprep.mubr.msk.bf16.mxu1 %vm13414_vm14, %v17368_v41 }
 0x748   : > { %v9609_v0 = vor.u32 %v9608_v26, %v9605_v1  ;;  %v17423_v1 = vld [vmem:[#allocation12_spill] sm:$0xff] }
 0x74a   : > { %v9677_v22 = vsel %vm4114_vm9, %v9609_v0, %v9676_v37 }
 0x74e   : > { %12293 = vmatmul.mubr.bf16.gmra.mrb[40].mxu1 %v9204_v4  ;;  %v9610_v4 = vsel %vm4114_vm9, %v9551_v5, %v9609_v0 }
 0x74f   : > { %12296 = vmatprep.mubr.msk.bf16.mxu1 %vm13414_vm14, %v17368_v41 }
 0x756   : > { %12297 = vmatmul.mubr.bf16.gmra.mrb[44].mxu1 %v9262_v28  ;;  %v9752_v28 = vor.u32 %v9751_v56, %v9748_v57 }
 0x757   : > { %12300 = vmatprep.mubr.msk.bf16.mxu1 %vm13414_vm14, %v17368_v41 }
 0x758   : > { %v9753_v34 = vsel %vm4114_vm9, %v9676_v37, %v9752_v28  ;;  %v17425_v37 = vld [vmem:[#allocation14_spill] sm:$0xff] }
 0x75e   : > { %12301 = vmatmul.mubr.bf16.gmra.mrb[48].mxu1 %v9320_v58 }
 0x75f   : > { %12304 = vmatprep.mubr.msk.bf16.mxu1 %vm13414_vm14, %v17368_v41 }
 0x766   : > { %12305 = vmatmul.mubr.bf16.gmra.mrb[52].mxu1 %v9378_v21 }
 0x767   : > { %12308 = vmatprep.mubr.msk.bf16.mxu1 %vm13414_vm14, %v17368_v41 }
 0x76e   : > { %12309 = vmatmul.mubr.bf16.gmra.mrb[56].mxu1 %v9436_v36 }
 0x76f   : > { %12312 = vmatprep.mubr.msk.bf16.mxu1 %vm13414_vm14, %v17368_v41 }
 0x776   : > { %12313 = vmatmul.mubr.bf16.gmra.mrb[60].mxu1 %v9494_v14  ;;  %v17422_v14 = vld [vmem:[#allocation11_spill] sm:$0xff] }
 0x777   : > { %12316 = vmatprep.mubr.msk.bf16.mxu1 %vm13414_vm14, %v17368_v41 }
 0x77e   : > { %12317 = vmatmul.mubr.bf16.gmra.mrb[64].mxu1 %v9552_v19 }
 0x77f   : > { %12320 = vmatprep.mubr.msk.bf16.mxu1 %vm13414_vm14, %v17368_v41 }
 0x786   : > { %12321 = vmatmul.mubr.bf16.gmra.mrb[68].mxu1 %v9610_v4 }
 0x787   : > { %12324 = vmatprep.mubr.msk.bf16.mxu1 %vm13414_vm14, %v17368_v41 }
 0x78e   : > { %12325 = vmatmul.mubr.bf16.gmra.mrb[72].mxu1 %v9677_v22  ;;  %v17426_v22 = vld [vmem:[#allocation15_spill] sm:$0xff] }
 0x78f   : > { %12328 = vmatprep.mubr.msk.bf16.mxu1 %vm13414_vm14, %v17368_v41 }
 0x796   : > { %12329 = vmatmul.mubr.bf16.gmra.mrb[76].mxu1 %v9753_v34 }
 0x797   : > { %12332 = vmatprep.mubr.msk.bf16.mxu1 %vm13414_vm14, %v17368_v41  ;;  %v17417_v41 = vld [vmem:[#allocation5_spill] sm:$0xff] }
 0x79e   : > { %12333 = vmatmul.mubr.bf16.gmra.mrb[80].mxu1 %v9752_v28 }
 0x7d1   : > { %v11176_v42 = vpop.f32.mrb[0].mxu1 }
 0x7d2   : > { %v12377_v45 = vadd.f32 %v16995_v62, %v11176_v42  ;;  %v12254_v63 = vpop.f32.mrb[1].mxu1 }
 0x7d3   : > { %v11179_v11 = vpop.f32.mrb[2].mxu1 }
 0x7d4   : > { %v11342_v35 = vmax.f32 %v12377_v45, 0.0  ;;  %v12378_v10 = vadd.f32 %v16995_v62, %v11179_v11  ;;  %v12255_v58 = vpop.f32.mrb[3].mxu1 }
 0x7d6   : > { %v11383_v46 = vmul.f32 %v11342_v35, %v17417_v41  ;;  %v11343_v24 = vmax.f32 %v12378_v10, 0.0  ;;  %v17427_v35 = vld [vmem:[#allocation16_spill] sm:$0xff]  ;;  %v17428_v41 = vld [vmem:[#allocation17_spill] sm:$0xff] }
 0x7d8   : > { %11424 = vst [vmem:[%s17003_s9] sm:$0xff] %v11383_v46  ;;  %v11384_v53 = vmul.f32 %v11343_v24, %v17418_v40 }
 0x7d9   : > { %v11184_v7 = vpop.f32.mrb[4].mxu1 }
 0x7da   : > { %11425 = vst [vmem:[%s17003_s9 + $0x8] sm:$0xff] %v11384_v53  ;;  %v12379_v55 = vadd.f32 %v16995_v62, %v11184_v7  ;;  %v12258_v54 = vpop.f32.mrb[5].mxu1 }
 0x7db   : > { %v11187_v18 = vpop.f32.mrb[6].mxu1 }
 0x7dc   : > { %v11344_v21 = vmax.f32 %v12379_v55, 0.0  ;;  %v12380_v50 = vadd.f32 %v16995_v62, %v11187_v18  ;;  %v12259_v9 = vpop.f32.mrb[7].mxu1 }
 0x7de   : > { %v11385_v17 = vmul.f32 %v11344_v21, %v17419_v44  ;;  %v11345_v49 = vmax.f32 %v12380_v50, 0.0  ;;  %v17429_v21 = vld [vmem:[#allocation18_spill] sm:$0xff]  ;;  %v17430_v44 = vld [vmem:[#allocation19_spill] sm:$0xff] }
 0x7e0   : > { %11426 = vst [vmem:[%s17003_s9 + $0x10] sm:$0xff] %v11385_v17  ;;  %v11386_v52 = vmul.f32 %v11345_v49, %v17420_v29 }
 0x7e1   : > { %v11192_v8 = vpop.f32.mrb[8].mxu1 }
 0x7e2   : > { %11427 = vst [vmem:[%s17003_s9 + $0x18] sm:$0xff] %v11386_v52  ;;  %v12381_v36 = vadd.f32 %v16995_v62, %v11192_v8  ;;  %v12262_v12 = vpop.f32.mrb[9].mxu1 }
 0x7e3   : > { %v11195_v16 = vpop.f32.mrb[10].mxu1 }
 0x7e4   : > { %v11346_v13 = vmax.f32 %v12381_v36, 0.0  ;;  %v12382_v33 = vadd.f32 %v16995_v62, %v11195_v16  ;;  %v12263_v48 = vpop.f32.mrb[11].mxu1 }
 0x7e6   : > { %v11387_v60 = vmul.f32 %v11346_v13, %v17421_v15  ;;  %v11347_v59 = vmax.f32 %v12382_v33, 0.0  ;;  %v17431_v13 = vld [vmem:[#allocation20_spill] sm:$0xff]  ;;  %v17432_v15 = vld [vmem:[#allocation21_spill] sm:$0xff] }
 0x7e8   : > { %11428 = vst [vmem:[%s17003_s9 + $0x20] sm:$0xff] %v11387_v60  ;;  %v11388_v47 = vmul.f32 %v11347_v59, %v17422_v14 }
 0x7e9   : > { %v11200_v23 = vpop.f32.mrb[12].mxu1 }
 0x7ea   : > { %11429 = vst [vmem:[%s17003_s9 + $0x28] sm:$0xff] %v11388_v47  ;;  %v12383_v31 = vadd.f32 %v16995_v62, %v11200_v23  ;;  %v12266_v5 = vpop.f32.mrb[13].mxu1 }
 0x7eb   : > { %v11203_v51 = vpop.f32.mrb[14].mxu1 }
 0x7ec   : > { %v11348_v20 = vmax.f32 %v12383_v31, 0.0  ;;  %v12384_v3 = vadd.f32 %v16995_v62, %v11203_v51  ;;  %v12267_v19 = vpop.f32.mrb[15].mxu1 }
 0x7ee   : > { %v11389_v26 = vmul.f32 %v11348_v20, %v17423_v1  ;;  %v11349_v43 = vmax.f32 %v12384_v3, 0.0  ;;  %v17433_v20 = vld [vmem:[#allocation22_spill] sm:$0xff]  ;;  %v17434_v1 = vld [vmem:[#allocation23_spill] sm:$0xff] }
 0x7f0   : > { %11430 = vst [vmem:[%s17003_s9 + $0x30] sm:$0xff] %v11389_v26  ;;  %v11390_v0 = vmul.f32 %v11349_v43, %v17424_v61 }
 0x7f1   : > { %v11208_v32 = vpop.f32.mrb[16].mxu1 }
 0x7f2   : > { %11431 = vst [vmem:[%s17003_s9 + $0x38] sm:$0xff] %v11390_v0  ;;  %v12385_v38 = vadd.f32 %v16995_v62, %v11208_v32  ;;  %v12270_v30 = vpop.f32.mrb[17].mxu1 }
 0x7f3   : > { %v11211_v4 = vpop.f32.mrb[18].mxu1 }
 0x7f4   : > { %v11350_v25 = vmax.f32 %v12385_v38, 0.0  ;;  %v12386_v2 = vadd.f32 %v16995_v62, %v11211_v4  ;;  %v12271_v39 = vpop.f32.mrb[19].mxu1 }
 0x7f6   : > { %v11391_v27 = vmul.f32 %v11350_v25, %v17425_v37  ;;  %v11351_v6 = vmax.f32 %v12386_v2, 0.0  ;;  %v17435_v25 = vld [vmem:[#allocation24_spill] sm:$0xff]  ;;  %v17436_v37 = vld [vmem:[#allocation25_spill] sm:$0xff] }
 0x7f8   : > { %11432 = vst [vmem:[%s17003_s9 + $0x40] sm:$0xff] %v11391_v27  ;;  %v11392_v57 = vmul.f32 %v11351_v6, %v17426_v22 }
 0x7f9   : > { %v11216_v56 = vpop.f32.mrb[20].mxu1 }
 0x7fa   : > { %11433 = vst [vmem:[%s17003_s9 + $0x48] sm:$0xff] %v11392_v57  ;;  %v12387_v28 = vadd.f32 %v16995_v62, %v11216_v56  ;;  %v12274_v34 = vpop.f32.mrb[21].mxu1 }
 0x7fb   : > { %v11219_v42 = vpop.f32.mrb[22].mxu1 }
 0x7fc   : > { %v11352_v45 = vmax.f32 %v12387_v28, 0.0  ;;  %v12388_v63 = vadd.f32 %v16995_v62, %v11219_v42  ;;  %v12275_v11 = vpop.f32.mrb[23].mxu1 }
 0x7fe   : > { %v11393_v10 = vmul.f32 %v11352_v45, %v17427_v35  ;;  %v11353_v58 = vmax.f32 %v12388_v63, 0.0  ;;  %v17437_v45 = vld [vmem:[#allocation26_spill] sm:$0xff]  ;;  %v17438_v35 = vld [vmem:[#allocation27_spill] sm:$0xff] }
 0x800   : > { %11434 = vst [vmem:[%s17003_s9 + $0x50] sm:$0xff] %v11393_v10  ;;  %v11394_v46 = vmul.f32 %v11353_v58, %v17428_v41 }
 0x801   : > { %v11224_v24 = vpop.f32.mrb[24].mxu1 }
 0x802   : > { %11435 = vst [vmem:[%s17003_s9 + $0x58] sm:$0xff] %v11394_v46  ;;  %v12389_v40 = vadd.f32 %v16995_v62, %v11224_v24  ;;  %v12278_v53 = vpop.f32.mrb[25].mxu1 }
 0x803   : > { %v11227_v7 = vpop.f32.mrb[26].mxu1 }
 0x804   : > { %v11354_v55 = vmax.f32 %v12389_v40, 0.0  ;;  %v12390_v54 = vadd.f32 %v16995_v62, %v11227_v7  ;;  %v12279_v18 = vpop.f32.mrb[27].mxu1 }
 0x806   : > { %v11395_v50 = vmul.f32 %v11354_v55, %v17429_v21  ;;  %v11355_v9 = vmax.f32 %v12390_v54, 0.0  ;;  %v17439_v55 = vld [vmem:[#allocation28_spill] sm:$0xff]  ;;  %v17440_v21 = vld [vmem:[#allocation29_spill] sm:$0xff] }
 0x808   : > { %11436 = vst [vmem:[%s17003_s9 + $0x60] sm:$0xff] %v11395_v50  ;;  %v11396_v17 = vmul.f32 %v11355_v9, %v17430_v44 }
 0x809   : > { %v11232_v49 = vpop.f32.mrb[28].mxu1 }
 0x80a   : > { %11437 = vst [vmem:[%s17003_s9 + $0x68] sm:$0xff] %v11396_v17  ;;  %v12391_v29 = vadd.f32 %v16995_v62, %v11232_v49  ;;  %v12282_v52 = vpop.f32.mrb[29].mxu1 }
 0x80b   : > { %v11235_v8 = vpop.f32.mrb[30].mxu1 }
 0x80c   : > { %v11356_v36 = vmax.f32 %v12391_v29, 0.0  ;;  %v12392_v12 = vadd.f32 %v16995_v62, %v11235_v8  ;;  %v12283_v16 = vpop.f32.mrb[31].mxu1 }
 0x80e   : > { %v11397_v33 = vmul.f32 %v11356_v36, %v17431_v13  ;;  %v11357_v48 = vmax.f32 %v12392_v12, 0.0  ;;  %v17441_v36 = vld [vmem:[#allocation30_spill] sm:$0xff]  ;;  %v17442_v13 = vld [vmem:[#allocation31_spill] sm:$0xff] }
 0x810   : > { %11438 = vst [vmem:[%s17003_s9 + $0x70] sm:$0xff] %v11397_v33  ;;  %v11398_v60 = vmul.f32 %v11357_v48, %v17432_v15 }
 0x811   : > { %v11240_v59 = vpop.f32.mrb[32].mxu1 }
 0x812   : > { %11439 = vst [vmem:[%s17003_s9 + $0x78] sm:$0xff] %v11398_v60  ;;  %v12393_v14 = vadd.f32 %v16995_v62, %v11240_v59  ;;  %v12286_v47 = vpop.f32.mrb[33].mxu1 }
 0x813   : > { %v11243_v23 = vpop.f32.mrb[34].mxu1 }
 0x814   : > { %v11358_v31 = vmax.f32 %v12393_v14, 0.0  ;;  %v12394_v5 = vadd.f32 %v16995_v62, %v11243_v23  ;;  %v12287_v51 = vpop.f32.mrb[35].mxu1 }
 0x816   : > { %v11399_v3 = vmul.f32 %v11358_v31, %v17433_v20  ;;  %v11359_v19 = vmax.f32 %v12394_v5, 0.0  ;;  %v17443_v31 = vld [vmem:[#allocation32_spill] sm:$0xff]  ;;  %v17444_v20 = vld [vmem:[#allocation33_spill] sm:$0xff] }
 0x818   : > { %11440 = vst [vmem:[%s17003_s9 + $0x80] sm:$0xff] %v11399_v3  ;;  %v11400_v26 = vmul.f32 %v11359_v19, %v17434_v1 }
 0x819   : > { %v11248_v43 = vpop.f32.mrb[36].mxu1 }
 0x81a   : > { %11441 = vst [vmem:[%s17003_s9 + $0x88] sm:$0xff] %v11400_v26  ;;  %v12395_v61 = vadd.f32 %v16995_v62, %v11248_v43  ;;  %v12290_v0 = vpop.f32.mrb[37].mxu1 }
 0x81b   : > { %v11251_v32 = vpop.f32.mrb[38].mxu1 }
 0x81c   : > { %v11360_v38 = vmax.f32 %v12395_v61, 0.0  ;;  %v12396_v30 = vadd.f32 %v16995_v62, %v11251_v32  ;;  %v12291_v4 = vpop.f32.mrb[39].mxu1 }
 0x81e   : > { %v11401_v2 = vmul.f32 %v11360_v38, %v17435_v25  ;;  %v11361_v39 = vmax.f32 %v12396_v30, 0.0  ;;  %v17445_v38 = vld [vmem:[#allocation34_spill] sm:$0xff]  ;;  %v17446_v25 = vld [vmem:[#allocation35_spill] sm:$0xff] }
 0x820   : > { %11442 = vst [vmem:[%s17003_s9 + $0x90] sm:$0xff] %v11401_v2  ;;  %v11402_v27 = vmul.f32 %v11361_v39, %v17436_v37 }
 0x821   : > { %v11256_v6 = vpop.f32.mrb[40].mxu1 }
 0x822   : > { %11443 = vst [vmem:[%s17003_s9 + $0x98] sm:$0xff] %v11402_v27  ;;  %v12397_v22 = vadd.f32 %v16995_v62, %v11256_v6  ;;  %v12294_v57 = vpop.f32.mrb[41].mxu1 }
 0x823   : > { %v11259_v56 = vpop.f32.mrb[42].mxu1 }
 0x824   : > { %v11362_v28 = vmax.f32 %v12397_v22, 0.0  ;;  %v12398_v34 = vadd.f32 %v16995_v62, %v11259_v56  ;;  %v12295_v42 = vpop.f32.mrb[43].mxu1 }
 0x826   : > { %v11403_v63 = vmul.f32 %v11362_v28, %v17437_v45  ;;  %v11363_v11 = vmax.f32 %v12398_v34, 0.0  ;;  %v17447_v28 = vld [vmem:[#allocation36_spill] sm:$0xff]  ;;  %v17448_v45 = vld [vmem:[#allocation37_spill] sm:$0xff] }
 0x828   : > { %11444 = vst [vmem:[%s17003_s9 + $0xa0] sm:$0xff] %v11403_v63  ;;  %v11404_v10 = vmul.f32 %v11363_v11, %v17438_v35 }
 0x829   : > { %v11264_v58 = vpop.f32.mrb[44].mxu1 }
 0x82a   : > { %11445 = vst [vmem:[%s17003_s9 + $0xa8] sm:$0xff] %v11404_v10  ;;  %v12399_v41 = vadd.f32 %v16995_v62, %v11264_v58  ;;  %v12298_v46 = vpop.f32.mrb[45].mxu1 }
 0x82b   : > { %v11267_v24 = vpop.f32.mrb[46].mxu1 }
 0x82c   : > { %v11364_v40 = vmax.f32 %v12399_v41, 0.0  ;;  %v12400_v53 = vadd.f32 %v16995_v62, %v11267_v24  ;;  %v12299_v7 = vpop.f32.mrb[47].mxu1 }
 0x82e   : > { %v11405_v54 = vmul.f32 %v11364_v40, %v17439_v55  ;;  %v11365_v18 = vmax.f32 %v12400_v53, 0.0  ;;  %v17449_v40 = vld [vmem:[#allocation38_spill] sm:$0xff]  ;;  %v17450_v55 = vld [vmem:[#allocation39_spill] sm:$0xff] }
 0x830   : > { %11446 = vst [vmem:[%s17003_s9 + $0xb0] sm:$0xff] %v11405_v54  ;;  %v11406_v50 = vmul.f32 %v11365_v18, %v17440_v21 }
 0x831   : > { %v11272_v9 = vpop.f32.mrb[48].mxu1 }
 0x832   : > { %11447 = vst [vmem:[%s17003_s9 + $0xb8] sm:$0xff] %v11406_v50  ;;  %v12401_v44 = vadd.f32 %v16995_v62, %v11272_v9  ;;  %v12302_v17 = vpop.f32.mrb[49].mxu1 }
 0x833   : > { %v11275_v49 = vpop.f32.mrb[50].mxu1 }
 0x834   : > { %v11366_v29 = vmax.f32 %v12401_v44, 0.0  ;;  %v12402_v52 = vadd.f32 %v16995_v62, %v11275_v49  ;;  %v12303_v8 = vpop.f32.mrb[51].mxu1 }
 0x836   : > { %v11407_v12 = vmul.f32 %v11366_v29, %v17441_v36  ;;  %v11367_v16 = vmax.f32 %v12402_v52, 0.0  ;;  %v17451_v29 = vld [vmem:[#allocation40_spill] sm:$0xff]  ;;  %v17452_v36 = vld [vmem:[#allocation41_spill] sm:$0xff] }
 0x838   : > { %11448 = vst [vmem:[%s17003_s9 + $0xc0] sm:$0xff] %v11407_v12  ;;  %v11408_v33 = vmul.f32 %v11367_v16, %v17442_v13 }
 0x839   : > { %v11280_v48 = vpop.f32.mrb[52].mxu1 }
 0x83a   : > { %11449 = vst [vmem:[%s17003_s9 + $0xc8] sm:$0xff] %v11408_v33  ;;  %v12403_v15 = vadd.f32 %v16995_v62, %v11280_v48  ;;  %v12306_v60 = vpop.f32.mrb[53].mxu1 }
 0x83b   : > { %v11283_v59 = vpop.f32.mrb[54].mxu1 }
 0x83c   : > { %v11368_v14 = vmax.f32 %v12403_v15, 0.0  ;;  %v12404_v47 = vadd.f32 %v16995_v62, %v11283_v59  ;;  %v12307_v23 = vpop.f32.mrb[55].mxu1 }
 0x83e   : > { %v11409_v5 = vmul.f32 %v11368_v14, %v17443_v31  ;;  %v11369_v51 = vmax.f32 %v12404_v47, 0.0  ;;  %v17453_v14 = vld [vmem:[#allocation42_spill] sm:$0xff]  ;;  %v17454_v31 = vld [vmem:[#allocation43_spill] sm:$0xff] }
 0x840   : > { %11450 = vst [vmem:[%s17003_s9 + $0xd0] sm:$0xff] %v11409_v5  ;;  %v11410_v3 = vmul.f32 %v11369_v51, %v17444_v20 }
 0x841   : > { %v11288_v19 = vpop.f32.mrb[56].mxu1 }
 0x842   : > { %11451 = vst [vmem:[%s17003_s9 + $0xd8] sm:$0xff] %v11410_v3  ;;  %v12405_v1 = vadd.f32 %v16995_v62, %v11288_v19  ;;  %v12310_v26 = vpop.f32.mrb[57].mxu1 }
 0x843   : > { %v11291_v43 = vpop.f32.mrb[58].mxu1 }
 0x844   : > { %v11370_v61 = vmax.f32 %v12405_v1, 0.0  ;;  %v12406_v0 = vadd.f32 %v16995_v62, %v11291_v43  ;;  %v12311_v32 = vpop.f32.mrb[59].mxu1 }
 0x846   : > { %v11411_v30 = vmul.f32 %v11370_v61, %v17445_v38  ;;  %v11371_v4 = vmax.f32 %v12406_v0, 0.0  ;;  %v17455_v61 = vld [vmem:[#allocation44_spill] sm:$0xff]  ;;  %v17456_v38 = vld [vmem:[#allocation45_spill] sm:$0xff] }
 0x848   : > { %11452 = vst [vmem:[%s17003_s9 + $0xe0] sm:$0xff] %v11411_v30  ;;  %v11412_v2 = vmul.f32 %v11371_v4, %v17446_v25 }
 0x849   : > { %v11296_v39 = vpop.f32.mrb[60].mxu1 }
 0x84a   : > { %11453 = vst [vmem:[%s17003_s9 + $0xe8] sm:$0xff] %v11412_v2  ;;  %v12407_v37 = vadd.f32 %v16995_v62, %v11296_v39  ;;  %v12314_v27 = vpop.f32.mrb[61].mxu1 }
 0x84b   : > { %v11299_v6 = vpop.f32.mrb[62].mxu1 }
 0x84c   : > { %v11372_v22 = vmax.f32 %v12407_v37, 0.0  ;;  %v12408_v57 = vadd.f32 %v16995_v62, %v11299_v6  ;;  %v12315_v56 = vpop.f32.mrb[63].mxu1  ;;  %v17457_v6 = vld [vmem:[#allocation46_spill] sm:$0xff] }
 0x84e   : > { %v11413_v34 = vmul.f32 %v11372_v22, %v17447_v28  ;;  %v11373_v42 = vmax.f32 %v12408_v57, 0.0 }
 0x850   : > { %11454 = vst [vmem:[%s17003_s9 + $0xf0] sm:$0xff] %v11413_v34  ;;  %v11414_v63 = vmul.f32 %v11373_v42, %v17448_v45 }
 0x851   : > { %v11304_v11 = vpop.f32.mrb[64].mxu1 }
 0x852   : > { %11455 = vst [vmem:[%s17003_s9 + $0xf8] sm:$0xff] %v11414_v63  ;;  %v12409_v35 = vadd.f32 %v16995_v62, %v11304_v11  ;;  %v12318_v10 = vpop.f32.mrb[65].mxu1 }
 0x853   : > { %v11307_v58 = vpop.f32.mrb[66].mxu1 }
 0x854   : > { %v11374_v41 = vmax.f32 %v12409_v35, 0.0  ;;  %v12410_v46 = vadd.f32 %v16995_v62, %v11307_v58  ;;  %v12319_v24 = vpop.f32.mrb[67].mxu1 }
 0x856   : > { %v11415_v53 = vmul.f32 %v11374_v41, %v17449_v40  ;;  %v11375_v7 = vmax.f32 %v12410_v46, 0.0 }
 0x858   : > { %11456 = vst [vmem:[%s17003_s9 + $0x100] sm:$0xff] %v11415_v53  ;;  %v11416_v54 = vmul.f32 %v11375_v7, %v17450_v55 }
 0x859   : > { %v11312_v18 = vpop.f32.mrb[68].mxu1 }
 0x85a   : > { %11457 = vst [vmem:[%s17003_s9 + $0x108] sm:$0xff] %v11416_v54  ;;  %v12411_v21 = vadd.f32 %v16995_v62, %v11312_v18  ;;  %v12322_v50 = vpop.f32.mrb[69].mxu1 }
 0x85b   : > { %v11315_v9 = vpop.f32.mrb[70].mxu1 }
 0x85c   : > { %v11376_v44 = vmax.f32 %v12411_v21, 0.0  ;;  %v12412_v17 = vadd.f32 %v16995_v62, %v11315_v9  ;;  %v12323_v49 = vpop.f32.mrb[71].mxu1 }
 0x85e   : > { %v11417_v52 = vmul.f32 %v11376_v44, %v17451_v29  ;;  %v11377_v8 = vmax.f32 %v12412_v17, 0.0 }
 0x860   : > { %11458 = vst [vmem:[%s17003_s9 + $0x110] sm:$0xff] %v11417_v52  ;;  %v11418_v12 = vmul.f32 %v11377_v8, %v17452_v36 }
 0x861   : > { %v11320_v16 = vpop.f32.mrb[72].mxu1 }
 0x862   : > { %11459 = vst [vmem:[%s17003_s9 + $0x118] sm:$0xff] %v11418_v12  ;;  %v12413_v13 = vadd.f32 %v16995_v62, %v11320_v16  ;;  %v12326_v33 = vpop.f32.mrb[73].mxu1 }
 0x863   : > { %v11323_v48 = vpop.f32.mrb[74].mxu1 }
 0x864   : > { %v11378_v15 = vmax.f32 %v12413_v13, 0.0  ;;  %v12414_v60 = vadd.f32 %v16995_v62, %v11323_v48  ;;  %v12327_v59 = vpop.f32.mrb[75].mxu1 }
 0x866   : > { %v11419_v47 = vmul.f32 %v11378_v15, %v17453_v14  ;;  %v11379_v23 = vmax.f32 %v12414_v60, 0.0 }
 0x868   : > { %11460 = vst [vmem:[%s17003_s9 + $0x120] sm:$0xff] %v11419_v47  ;;  %v11420_v5 = vmul.f32 %v11379_v23, %v17454_v31 }
 0x869   : > { %v11328_v51 = vpop.f32.mrb[76].mxu1 }
 0x86a   : > { %11461 = vst [vmem:[%s17003_s9 + $0x128] sm:$0xff] %v11420_v5  ;;  %v12415_v20 = vadd.f32 %v16995_v62, %v11328_v51  ;;  %v12330_v3 = vpop.f32.mrb[77].mxu1 }
 0x86b   : > { %v11331_v19 = vpop.f32.mrb[78].mxu1 }
 0x86c   : > { %v11380_v1 = vmax.f32 %v12415_v20, 0.0  ;;  %v12416_v26 = vadd.f32 %v16995_v62, %v11331_v19  ;;  %v12331_v43 = vpop.f32.mrb[79].mxu1 }
 0x86e   : > { %v11421_v0 = vmul.f32 %v11380_v1, %v17455_v61  ;;  %v11381_v32 = vmax.f32 %v12416_v26, 0.0 }
 0x870   : > { %11462 = vst [vmem:[%s17003_s9 + $0x130] sm:$0xff] %v11421_v0  ;;  %v11422_v30 = vmul.f32 %v11381_v32, %v17456_v38 }
 0x871   : > { %v11336_v4 = vpop.f32.mrb[80].mxu1 }
 0x872   : > { %11463 = vst [vmem:[%s17003_s9 + $0x138] sm:$0xff] %v11422_v30  ;;  %v12417_v25 = vadd.f32 %v16995_v62, %v11336_v4  ;;  %v12334_v2 = vpop.f32.mrb[81].mxu1 }
 0x873   : > { %v11339_v39 = vpop.f32.mrb[82].mxu1 }
 0x874   : > { %v11382_v37 = vmax.f32 %v12417_v25, 0.0  ;;  %v12335_v27 = vpop.f32.mrb[83].mxu1 }
 0x876   : > { %v11423_v22 = vmul.f32 %v11382_v37, %v17457_v6 }
 0x878   : > { %11464 = vst [vmem:[%s17003_s9 + $0x140] sm:$0xf] %v11423_v22 }
 0x879 PF: > { %s16_s21 = sadd.s32 1, %s13408_s21  }
 0x87a   : > { %p13_p4 = scmp.ge.s32.totalorder %s16_s21, 4  }
 0x87c   :  { %15 = sbr.rel (!%p13_p4) target bundleno = 1 (0x1), region = 75 }

</bundles_post_ra>
